<compile_context>
chip_gen: v5e
topology: v5e:2x2
jax: 0.10.0
libtpu: 0.0.40
codegen_flags: <defaults>
</compile_context>

<pallas_src>
import numpy as np
import jax
import jax.numpy as jnp
from jax import lax
from jax.experimental import pallas as pl
from jax.experimental.pallas import tpu as pltpu

BN_EPS = 1e-5
VMEM_LIMIT = 48 * 1024 * 1024     # stay under v7x's 64 MiB physical VMEM per TensorCore


# ----------------------------- Pallas kernels ------------------------------ #

def _up_kernel(x_ref, w_ref, b_ref, o_ref):
    # ConvTranspose2d(k=2, s=2, pad=0) has non-overlapping taps -> per-pixel matmul
    # producing 4*Cout channels (one Cout slab per (ky, kx) sub-pixel position).
    o_ref[...] = (jnp.dot(x_ref[...], w_ref[...], preferred_element_type=jnp.float32)
                  + b_ref[...]).astype(o_ref.dtype)


def _im2col_matmul(pad_ref, w_ref, H2, W2):
    # 3x3 "same" conv as ONE MXU matmul: gather the 9 taps into (H2*W2, 9*Cin)
    # and contract against the (9*Cin, Cout) weight. bf16 operands, f32 accumulation.
    C = pad_ref.shape[-1]
    M = H2 * W2
    xp = pad_ref[...]
    patches = jnp.concatenate(
        [xp[dy:dy + H2, dx:dx + W2, :].reshape(M, C)
         for dy in range(3) for dx in range(3)], axis=-1)            # (M, 9*C)
    return jnp.dot(patches, w_ref[...], preferred_element_type=jnp.float32)   # (M, Cout)


def _accum_stats(st_ref, z):
    # one-pass BatchNorm statistics: per-channel sum and sum-of-squares (f32).
    st_ref[...] += jnp.concatenate(
        [jnp.sum(z, axis=0, keepdims=True),
         jnp.sum(z * z, axis=0, keepdims=True)], axis=0)


def _conv1_kernel(up_ref, skip_ref, w1_ref, z1_ref, st1_ref, pad_ref):
    # per-image: concat([up, skip]) in VMEM -> conv3x3 (im2col matmul) -> raw z1 + BN1 stats.
    n = pl.program_id(0)
    H2, W2, Cout = z1_ref.shape

    @pl.when(n == 0)
    def _():
        st1_ref[...] = jnp.zeros_like(st1_ref)
        pad_ref[...] = jnp.zeros_like(pad_ref)    # zero the 1-pixel halo once; it is never rewritten

    pad_ref[1:H2 + 1, 1:W2 + 1, :] = jnp.concatenate(
        [up_ref[...], skip_ref[...]], axis=-1)    # xc lives only in VMEM

    z = _im2col_matmul(pad_ref, w1_ref, H2, W2)   # conv bias dropped: BN mean-subtraction cancels it
    z1_ref[...] = z.reshape(H2, W2, Cout)
    _accum_stats(st1_ref, z)


def _conv2_kernel(z1_ref, s1_ref, b1_ref, w2_ref, z2_ref, st2_ref, pad_ref):
    # per-image: BN1 (folded scale/shift) + ReLU -> conv3x3 (im2col matmul) -> raw z2 + BN2 stats.
    n = pl.program_id(0)
    H2, W2, Cout = z2_ref.shape

    @pl.when(n == 0)
    def _():
        st2_ref[...] = jnp.zeros_like(st2_ref)
        pad_ref[...] = jnp.zeros_like(pad_ref)

    y = jnp.maximum(z1_ref[...] * s1_ref[...] + b1_ref[...], 0.0)    # f32 epilogue
    pad_ref[1:H2 + 1, 1:W2 + 1, :] = y.astype(pad_ref.dtype)         # bf16 for the MXU

    z = _im2col_matmul(pad_ref, w2_ref, H2, W2)
    z2_ref[...] = z.reshape(H2, W2, Cout)
    _accum_stats(st2_ref, z)


def _bn_relu_kernel(z_ref, s_ref, b_ref, o_ref):
    # lane-dense elementwise BN2 + ReLU on the (rows, W2*Cout) view.
    o_ref[...] = jnp.maximum(z_ref[...] * s_ref[...] + b_ref[...], 0.0)


# ------------------------------- Wrapper ----------------------------------- #

def _row_tile(m, target=1024):
    """Largest multiple-of-8 divisor of m that is <= target (falls back to m)."""
    if m % 8 != 0:
        return m
    t = (min(m, target) // 8) * 8
    while m % t != 0:
        t -= 8
    return t


def _bn_affine(stats, count, gamma, beta):
    """Fold one-pass BN statistics + (gamma, beta) into per-channel scale/shift (f32)."""
    mean = stats[0] / count
    var = stats[1] / count - mean * mean          # biased variance (training-mode BN)
    scale = gamma * lax.rsqrt(var + BN_EPS)
    shift = beta - mean * scale
    return scale.reshape(1, -1), shift.reshape(1, -1)


def decoder_block_forward(inputs_nchw, skip_nchw, params):
    x = jnp.transpose(inputs_nchw, (0, 2, 3, 1)).astype(jnp.float32)    # NHWC
    skip = jnp.transpose(skip_nchw, (0, 2, 3, 1)).astype(jnp.float32)   # NHWC
    N, H, W, Cin = x.shape
    Cout = params["wup"].shape[1]
    Ccat = 2 * Cout
    H2, W2 = 2 * H, 2 * W
    M1 = N * H * W
    M2 = N * H2 * W2

    # ---- weights, preprocessed once; bf16 operands for the MXU ----
    wup = jnp.transpose(params["wup"], (0, 2, 3, 1)).reshape(Cin, 4 * Cout).astype(jnp.bfloat16)
    bup4 = jnp.tile(params["bup"], 4).reshape(1, 4 * Cout).astype(jnp.float32)
    w1 = jnp.transpose(params["w1"], (2, 3, 1, 0)).reshape(9 * Ccat, Cout).astype(jnp.bfloat16)
    w2 = jnp.transpose(params["w2"], (2, 3, 1, 0)).reshape(9 * Cout, Cout).astype(jnp.bfloat16)

    # ---- kernel A: ConvTranspose2d(k=2, s=2) == per-pixel matmul, tiled over rows ----
    x2d = x.reshape(M1, Cin).astype(jnp.bfloat16)
    tm = _row_tile(M1)
    up4 = pl.pallas_call(
        _up_kernel,
        out_shape=jax.ShapeDtypeStruct((M1, 4 * Cout), jnp.bfloat16),
        grid=(M1 // tm,),
        in_specs=[pl.BlockSpec((tm, Cin), lambda i: (i, 0)),
                  pl.BlockSpec((Cin, 4 * Cout), lambda i: (0, 0)),
                  pl.BlockSpec((1, 4 * Cout), lambda i: (0, 0))],
        out_specs=pl.BlockSpec((tm, 4 * Cout), lambda i: (i, 0)),
        compiler_params=pltpu.CompilerParams(
            dimension_semantics=("parallel",), vmem_limit_bytes=VMEM_LIMIT),
    )(x2d, wup, bup4)

    # TODO(synk): depth-to-space still runs as one XLA transpose pass over HBM; fusing the 2x2
    # scatter into the conv1 kernel needs strided VMEM stores and is left out for robustness.
    up = (up4.reshape(N, H, W, 2, 2, Cout)
             .transpose(0, 1, 3, 2, 4, 5)
             .reshape(N, H2, W2, Cout))
    skip_bf = skip.astype(jnp.bfloat16)

    # ---- kernel B: VMEM concat(up, skip) + conv1 (single im2col matmul) + BN1 stats ----
    z1, st1 = pl.pallas_call(
        _conv1_kernel,
        out_shape=(jax.ShapeDtypeStruct((N, H2, W2, Cout), jnp.float32),
                   jax.ShapeDtypeStruct((2, Cout), jnp.float32)),
        grid=(N,),
        in_specs=[pl.BlockSpec((None, H2, W2, Cout), lambda n: (n, 0, 0, 0)),
                  pl.BlockSpec((None, H2, W2, Cout), lambda n: (n, 0, 0, 0)),
                  pl.BlockSpec((9 * Ccat, Cout), lambda n: (0, 0))],
        out_specs=(pl.BlockSpec((None, H2, W2, Cout), lambda n: (n, 0, 0, 0)),
                   pl.BlockSpec((2, Cout), lambda n: (0, 0))),
        scratch_shapes=[pltpu.VMEM((H2 + 2, W2 + 2, Ccat), jnp.bfloat16)],
        compiler_params=pltpu.CompilerParams(
            dimension_semantics=("arbitrary",), vmem_limit_bytes=VMEM_LIMIT),
    )(up, skip_bf, w1)
    scale1, shift1 = _bn_affine(st1, M2, params["g1"], params["be1"])

    # ---- kernel C: BN1 + ReLU + conv2 (single im2col matmul) + BN2 stats ----
    z2, st2 = pl.pallas_call(
        _conv2_kernel,
        out_shape=(jax.ShapeDtypeStruct((N, H2, W2, Cout), jnp.float32),
                   jax.ShapeDtypeStruct((2, Cout), jnp.float32)),
        grid=(N,),
        in_specs=[pl.BlockSpec((None, H2, W2, Cout), lambda n: (n, 0, 0, 0)),
                  pl.BlockSpec((1, Cout), lambda n: (0, 0)),
                  pl.BlockSpec((1, Cout), lambda n: (0, 0)),
                  pl.BlockSpec((9 * Cout, Cout), lambda n: (0, 0))],
        out_specs=(pl.BlockSpec((None, H2, W2, Cout), lambda n: (n, 0, 0, 0)),
                   pl.BlockSpec((2, Cout), lambda n: (0, 0))),
        scratch_shapes=[pltpu.VMEM((H2 + 2, W2 + 2, Cout), jnp.bfloat16)],
        compiler_params=pltpu.CompilerParams(
            dimension_semantics=("arbitrary",), vmem_limit_bytes=VMEM_LIMIT),
    )(z1, scale1, shift1, w2)
    scale2, shift2 = _bn_affine(st2, M2, params["g2"], params["be2"])

    # ---- kernel D: BN2 + ReLU, lane-dense over the (N*H2, W2*Cout) view ----
    z2r = z2.reshape(N * H2, W2 * Cout)
    s2row = jnp.tile(scale2.reshape(-1), W2).reshape(1, W2 * Cout)
    b2row = jnp.tile(shift2.reshape(-1), W2).reshape(1, W2 * Cout)
    tr = _row_tile(N * H2)
    out = pl.pallas_call(
        _bn_relu_kernel,
        out_shape=jax.ShapeDtypeStruct((N * H2, W2 * Cout), jnp.float32),
        grid=((N * H2) // tr,),
        in_specs=[pl.BlockSpec((tr, W2 * Cout), lambda i: (i, 0)),
                  pl.BlockSpec((1, W2 * Cout), lambda i: (0, 0)),
                  pl.BlockSpec((1, W2 * Cout), lambda i: (0, 0))],
        out_specs=pl.BlockSpec((tr, W2 * Cout), lambda i: (i, 0)),
        compiler_params=pltpu.CompilerParams(
            dimension_semantics=("parallel",), vmem_limit_bytes=VMEM_LIMIT),
    )(z2r, s2row, b2row)

    out = out.reshape(N, H2, W2, Cout)
    return jnp.transpose(out, (0, 3, 1, 2))        # back to NCHW


# ------------------------- Pure-JAX reference ------------------------------ #

def _bn_train(x, gamma, beta):
    mean = x.mean(axis=(0, 2, 3), keepdims=True)
    var = ((x - mean) ** 2).mean(axis=(0, 2, 3), keepdims=True)
    return ((x - mean) / jnp.sqrt(var + BN_EPS)) * gamma[None, :, None, None] \
        + beta[None, :, None, None]


def ref_forward(inputs_nchw, skip_nchw, p):
    x = inputs_nchw.astype(jnp.float32)
    N, Cin, H, W = x.shape
    Cout = p["wup"].shape[1]
    t = jnp.einsum("nchw,coyx->nohywx", x, p["wup"], precision=lax.Precision.HIGHEST)
    up = t.reshape(N, Cout, 2 * H, 2 * W) + p["bup"][None, :, None, None]
    xc = jnp.concatenate([up, skip_nchw.astype(jnp.float32)], axis=1)

    def conv(xin, w, b):
        y = lax.conv_general_dilated(
            xin, w, window_strides=(1, 1), padding=[(1, 1), (1, 1)],
            dimension_numbers=("NCHW", "OIHW", "NCHW"),
            precision=lax.Precision.HIGHEST)
        return y + b[None, :, None, None]

    h = jnp.maximum(_bn_train(conv(xc, p["w1"], p["b1"]), p["g1"], p["be1"]), 0.0)
    h = jnp.maximum(_bn_train(conv(h, p["w2"], p["b2"]), p["g2"], p["be2"]), 0.0)
    return h


# --------------------------------- Main ------------------------------------ #

if __name__ == "__main__":
    key = jax.random.PRNGKey(0)
    N, in_c, out_c, H, W = 2, 8, 4, 8, 8
    ks = jax.random.split(key, 8)
    inputs = jax.random.normal(ks[0], (N, in_c, H, W), jnp.float32)
    skip = jax.random.normal(ks[1], (N, out_c, 2 * H, 2 * W), jnp.float32)

    params = {
        "wup": 0.1 * jax.random.normal(ks[2], (in_c, out_c, 2, 2), jnp.float32),
        "bup": 0.1 * jax.random.normal(ks[3], (out_c,), jnp.float32),
        "w1": 0.1 * jax.random.normal(ks[4], (out_c, 2 * out_c, 3, 3), jnp.float32),
        "b1": 0.1 * jax.random.normal(ks[5], (out_c,), jnp.float32),
        "g1": jnp.ones((out_c,), jnp.float32),
        "be1": jnp.zeros((out_c,), jnp.float32),
        "w2": 0.1 * jax.random.normal(ks[6], (out_c, out_c, 3, 3), jnp.float32),
        "b2": 0.1 * jax.random.normal(ks[7], (out_c,), jnp.float32),
        "g2": jnp.ones((out_c,), jnp.float32),
        "be2": jnp.zeros((out_c,), jnp.float32),
    }

    fwd = jax.jit(decoder_block_forward)
    out = jax.block_until_ready(fwd(inputs, skip, params))

    ref = ref_forward(inputs, skip, params)
    # bf16 MXU operands (f32 accumulation) per perf review -> ~1e-2 abs error on the
    # unit-variance post-BN outputs; keep a little headroom over that.
    np.testing.assert_allclose(np.asarray(out), np.asarray(ref), rtol=3e-2, atol=3e-2)
    print("KERNEL_OK")
</pallas_src>

<mosaic_0001>
module attributes {stable_mosaic.version = 11 : i64} {
  func.func @_up_kernel(%arg0: i32, %arg1: memref<128x8xbf16, #tpu.memory_space<vmem>>, %arg2: memref<8x16xbf16, #tpu.memory_space<vmem>>, %arg3: memref<1x16xf32, #tpu.memory_space<vmem>>, %arg4: memref<128x16xbf16, #tpu.memory_space<vmem>>) attributes {dimension_semantics = [#tpu.dimension_semantics<parallel>], iteration_bounds = array<i64: 1>, scalar_prefetch = 0 : i64, scratch_operands = 0 : i64, tpu.core_type = #tpu.core_type<tc>, window_params = [{transform_indices = @transform_0, window_bounds = array<i64: 128, 8>}, {pipeline_mode = #tpu.pipeline_mode<synchronous>, transform_indices = @transform_1, window_bounds = array<i64: 8, 16>}, {pipeline_mode = #tpu.pipeline_mode<synchronous>, transform_indices = @transform_2, window_bounds = array<i64: 1, 16>}, {transform_indices = @transform_3, window_bounds = array<i64: 128, 16>}]} {
    %c0 = arith.constant 0 : index
    %c0_0 = arith.constant 0 : index
    %0 = vector.load %arg1[%c0, %c0_0] : memref<128x8xbf16, #tpu.memory_space<vmem>>, vector<128x8xbf16>
    %c0_1 = arith.constant 0 : index
    %c0_2 = arith.constant 0 : index
    %1 = vector.load %arg2[%c0_1, %c0_2] : memref<8x16xbf16, #tpu.memory_space<vmem>>, vector<8x16xbf16>
    %cst = arith.constant dense<0.000000e+00> : vector<128x16xf32>
    %2 = tpu.matmul %0, %1, %cst {dimension_numbers = #tpu.dot_dimension_numbers<[1], [0], [0], [1], [0, 0, 1, 1], [], []>} : vector<128x8xbf16>, vector<8x16xbf16>, vector<128x16xf32> -> vector<128x16xf32>
    %c0_3 = arith.constant 0 : index
    %c0_4 = arith.constant 0 : index
    %3 = vector.load %arg3[%c0_3, %c0_4] : memref<1x16xf32, #tpu.memory_space<vmem>>, vector<1x16xf32>
    %4 = vector.broadcast %3 : vector<1x16xf32> to vector<128x16xf32>
    %5 = arith.addf %2, %4 : vector<128x16xf32>
    %6 = arith.truncf %5 : vector<128x16xf32> to vector<128x16xbf16>
    %c0_5 = arith.constant 0 : index
    %c0_6 = arith.constant 0 : index
    %7 = vector.load %arg4[%c0_5, %c0_6] : memref<128x16xbf16, #tpu.memory_space<vmem>>, vector<128x16xbf16>
    tpu.vector_store %arg4[%c0_5, %c0_6], %6 {strides = array<i32>} : memref<128x16xbf16, #tpu.memory_space<vmem>>, vector<128x16xbf16>,
    return
  }
  func.func @transform_0(%arg0: i32) -> (i32, i32) {
    %c0_i32 = arith.constant 0 : i32
    %c0_i32_0 = arith.constant 0 : i32
    return %arg0, %c0_i32 : i32, i32
  }
  func.func @transform_1(%arg0: i32) -> (i32, i32) {
    %c0_i32 = arith.constant 0 : i32
    %c0_i32_0 = arith.constant 0 : i32
    %c0_i32_1 = arith.constant 0 : i32
    return %c0_i32, %c0_i32_0 : i32, i32
  }
  func.func @transform_2(%arg0: i32) -> (i32, i32) {
    %c0_i32 = arith.constant 0 : i32
    %c0_i32_0 = arith.constant 0 : i32
    %c0_i32_1 = arith.constant 0 : i32
    return %c0_i32, %c0_i32_0 : i32, i32
  }
  func.func @transform_3(%arg0: i32) -> (i32, i32) {
    %c0_i32 = arith.constant 0 : i32
    %c0_i32_0 = arith.constant 0 : i32
    return %arg0, %c0_i32 : i32, i32
  }
}

module attributes {stable_mosaic.version = 11 : i64} {
  func.func @_conv2_kernel(%arg0: i32, %arg1: memref<1x16x16x4xf32, #tpu.memory_space<vmem>>, %arg2: memref<1x4xf32, #tpu.memory_space<vmem>>, %arg3: memref<1x4xf32, #tpu.memory_space<vmem>>, %arg4: memref<36x4xbf16, #tpu.memory_space<vmem>>, %arg5: memref<1x16x16x4xf32, #tpu.memory_space<vmem>>, %arg6: memref<2x4xf32, #tpu.memory_space<vmem>>, %arg7: memref<18x18x4xbf16, #tpu.memory_space<vmem>>) attributes {dimension_semantics = [#tpu.dimension_semantics<arbitrary>], iteration_bounds = array<i64: 2>, scalar_prefetch = 0 : i64, scratch_operands = 1 : i64, tpu.core_type = #tpu.core_type<tc>, window_params = [{transform_indices = @transform_0, window_bounds = array<i64: 1, 16, 16, 4>}, {pipeline_mode = #tpu.pipeline_mode<synchronous>, transform_indices = @transform_1, window_bounds = array<i64: 1, 4>}, {pipeline_mode = #tpu.pipeline_mode<synchronous>, transform_indices = @transform_2, window_bounds = array<i64: 1, 4>}, {pipeline_mode = #tpu.pipeline_mode<synchronous>, transform_indices = @transform_3, window_bounds = array<i64: 36, 4>}, {transform_indices = @transform_4, window_bounds = array<i64: 1, 16, 16, 4>}, {pipeline_mode = #tpu.pipeline_mode<synchronous>, transform_indices = @transform_5, window_bounds = array<i64: 2, 4>}]} {
    %c0_i32 = arith.constant 0 : i32
    %0 = arith.cmpi eq, %arg0, %c0_i32 : i32
    %1 = arith.extui %0 : i1 to i32
    %c0_i32_0 = arith.constant 0 : i32
    %2 = arith.cmpi ne, %1, %c0_i32_0 : i32
    scf.if %2 {
      %cst_26 = arith.constant 0.000000e+00 : f32
      %52 = vector.broadcast %cst_26 : f32 to vector<2x4xf32>
      %c0_27 = arith.constant 0 : index
      %c0_28 = arith.constant 0 : index
      %53 = vector.load %arg6[%c0_27, %c0_28] : memref<2x4xf32, #tpu.memory_space<vmem>>, vector<2x4xf32>
      tpu.vector_store %arg6[%c0_27, %c0_28], %52 {strides = array<i32>} : memref<2x4xf32, #tpu.memory_space<vmem>>, vector<2x4xf32>,
      %cst_29 = arith.constant 0.000000e+00 : bf16
      %54 = vector.broadcast %cst_29 : bf16 to vector<18x18x4xbf16>
      %c0_30 = arith.constant 0 : index
      %c0_31 = arith.constant 0 : index
      %c0_32 = arith.constant 0 : index
      %55 = vector.load %arg7[%c0_30, %c0_31, %c0_32] : memref<18x18x4xbf16, #tpu.memory_space<vmem>>, vector<18x18x4xbf16>
      tpu.vector_store %arg7[%c0_30, %c0_31, %c0_32], %54 {strides = array<i32>} : memref<18x18x4xbf16, #tpu.memory_space<vmem>>, vector<18x18x4xbf16>,
    } else {
    }
    %c0 = arith.constant 0 : index
    %c0_1 = arith.constant 0 : index
    %c0_2 = arith.constant 0 : index
    %c0_3 = arith.constant 0 : index
    %3 = vector.load %arg1[%c0, %c0_1, %c0_2, %c0_3] : memref<1x16x16x4xf32, #tpu.memory_space<vmem>>, vector<1x16x16x4xf32>
    %4 = vector.shape_cast %3 : vector<1x16x16x4xf32> to vector<16x16x4xf32>
    %c0_4 = arith.constant 0 : index
    %c0_5 = arith.constant 0 : index
    %5 = vector.load %arg2[%c0_4, %c0_5] : memref<1x4xf32, #tpu.memory_space<vmem>>, vector<1x4xf32>
    %6 = vector.shape_cast %5 : vector<1x4xf32> to vector<1x1x4xf32>
    %7 = vector.broadcast %6 : vector<1x1x4xf32> to vector<16x16x4xf32>
    %8 = arith.mulf %4, %7 : vector<16x16x4xf32>
    %c0_6 = arith.constant 0 : index
    %c0_7 = arith.constant 0 : index
    %9 = vector.load %arg3[%c0_6, %c0_7] : memref<1x4xf32, #tpu.memory_space<vmem>>, vector<1x4xf32>
    %10 = vector.shape_cast %9 : vector<1x4xf32> to vector<1x1x4xf32>
    %11 = vector.broadcast %10 : vector<1x1x4xf32> to vector<16x16x4xf32>
    %12 = arith.addf %8, %11 : vector<16x16x4xf32>
    %cst = arith.constant 0.000000e+00 : f32
    %13 = vector.broadcast %cst : f32 to vector<16x16x4xf32>
    %14 = arith.maximumf %12, %13 : vector<16x16x4xf32>
    %15 = arith.truncf %14 : vector<16x16x4xf32> to vector<16x16x4xbf16>
    %c1 = arith.constant 1 : index
    %c1_8 = arith.constant 1 : index
    %c0_9 = arith.constant 0 : index
    %16 = vector.load %arg7[%c1, %c1_8, %c0_9] : memref<18x18x4xbf16, #tpu.memory_space<vmem>>, vector<16x16x4xbf16>
    tpu.vector_store %arg7[%c1, %c1_8, %c0_9], %15 {strides = array<i32>} : memref<18x18x4xbf16, #tpu.memory_space<vmem>>, vector<16x16x4xbf16>,
    %c0_10 = arith.constant 0 : index
    %c0_11 = arith.constant 0 : index
    %c0_12 = arith.constant 0 : index
    %17 = vector.load %arg7[%c0_10, %c0_11, %c0_12] : memref<18x18x4xbf16, #tpu.memory_space<vmem>>, vector<18x18x4xbf16>
    %18 = vector.extract_strided_slice %17 {offsets = [0, 0, 0], sizes = [16, 16, 4], strides = [1, 1, 1]} : vector<18x18x4xbf16> to vector<16x16x4xbf16>
    %19 = vector.shape_cast %18 : vector<16x16x4xbf16> to vector<256x4xbf16>
    %20 = vector.extract_strided_slice %17 {offsets = [0, 1, 0], sizes = [16, 16, 4], strides = [1, 1, 1]} : vector<18x18x4xbf16> to vector<16x16x4xbf16>
    %21 = vector.shape_cast %20 : vector<16x16x4xbf16> to vector<256x4xbf16>
    %22 = vector.extract_strided_slice %17 {offsets = [0, 2, 0], sizes = [16, 16, 4], strides = [1, 1, 1]} : vector<18x18x4xbf16> to vector<16x16x4xbf16>
    %23 = vector.shape_cast %22 : vector<16x16x4xbf16> to vector<256x4xbf16>
    %24 = vector.extract_strided_slice %17 {offsets = [1, 0, 0], sizes = [16, 16, 4], strides = [1, 1, 1]} : vector<18x18x4xbf16> to vector<16x16x4xbf16>
    %25 = vector.shape_cast %24 : vector<16x16x4xbf16> to vector<256x4xbf16>
    %26 = vector.extract_strided_slice %17 {offsets = [1, 1, 0], sizes = [16, 16, 4], strides = [1, 1, 1]} : vector<18x18x4xbf16> to vector<16x16x4xbf16>
    %27 = vector.shape_cast %26 : vector<16x16x4xbf16> to vector<256x4xbf16>
    %28 = vector.extract_strided_slice %17 {offsets = [1, 2, 0], sizes = [16, 16, 4], strides = [1, 1, 1]} : vector<18x18x4xbf16> to vector<16x16x4xbf16>
    %29 = vector.shape_cast %28 : vector<16x16x4xbf16> to vector<256x4xbf16>
    %30 = vector.extract_strided_slice %17 {offsets = [2, 0, 0], sizes = [16, 16, 4], strides = [1, 1, 1]} : vector<18x18x4xbf16> to vector<16x16x4xbf16>
    %31 = vector.shape_cast %30 : vector<16x16x4xbf16> to vector<256x4xbf16>
    %32 = vector.extract_strided_slice %17 {offsets = [2, 1, 0], sizes = [16, 16, 4], strides = [1, 1, 1]} : vector<18x18x4xbf16> to vector<16x16x4xbf16>
    %33 = vector.shape_cast %32 : vector<16x16x4xbf16> to vector<256x4xbf16>
    %34 = vector.extract_strided_slice %17 {offsets = [2, 2, 0], sizes = [16, 16, 4], strides = [1, 1, 1]} : vector<18x18x4xbf16> to vector<16x16x4xbf16>
    %35 = vector.shape_cast %34 : vector<16x16x4xbf16> to vector<256x4xbf16>
    %36 = tpu.concatenate %19, %21, %23, %25, %27, %29, %31, %33, %35 in 1 : vector<256x4xbf16>, vector<256x4xbf16>, vector<256x4xbf16>, vector<256x4xbf16>, vector<256x4xbf16>, vector<256x4xbf16>, vector<256x4xbf16>, vector<256x4xbf16>, vector<256x4xbf16> -> vector<256x36xbf16>
    %c0_13 = arith.constant 0 : index
    %c0_14 = arith.constant 0 : index
    %37 = vector.load %arg4[%c0_13, %c0_14] : memref<36x4xbf16, #tpu.memory_space<vmem>>, vector<36x4xbf16>
    %cst_15 = arith.constant dense<0.000000e+00> : vector<256x4xf32>
    %38 = tpu.matmul %36, %37, %cst_15 {dimension_numbers = #tpu.dot_dimension_numbers<[1], [0], [0], [1], [0, 0, 1, 1], [], []>} : vector<256x36xbf16>, vector<36x4xbf16>, vector<256x4xf32> -> vector<256x4xf32>
    %39 = vector.shape_cast %38 : vector<256x4xf32> to vector<16x16x4xf32>
    %c0_16 = arith.constant 0 : index
    %c0_17 = arith.constant 0 : index
    %c0_18 = arith.constant 0 : index
    %c0_19 = arith.constant 0 : index
    %40 = vector.load %arg5[%c0_16, %c0_17, %c0_18, %c0_19] : memref<1x16x16x4xf32, #tpu.memory_space<vmem>>, vector<1x16x16x4xf32>
    %41 = vector.shape_cast %40 : vector<1x16x16x4xf32> to vector<16x16x4xf32>
    %42 = vector.shape_cast %39 : vector<16x16x4xf32> to vector<1x16x16x4xf32>
    tpu.vector_store %arg5[%c0_16, %c0_17, %c0_18, %c0_19], %42 {strides = array<i32>} : memref<1x16x16x4xf32, #tpu.memory_space<vmem>>, vector<1x16x16x4xf32>,
    %c0_20 = arith.constant 0 : index
    %c0_21 = arith.constant 0 : index
    %43 = vector.load %arg6[%c0_20, %c0_21] : memref<2x4xf32, #tpu.memory_space<vmem>>, vector<2x4xf32>
    %cst_22 = arith.constant dense<0.000000e+00> : vector<4xf32>
    %44 = vector.multi_reduction <add>, %38, %cst_22 [0] : vector<256x4xf32> to vector<4xf32>
    %45 = vector.shape_cast %44 : vector<4xf32> to vector<1x4xf32>
    %46 = arith.mulf %38, %38 : vector<256x4xf32>
    %cst_23 = arith.constant dense<0.000000e+00> : vector<4xf32>
    %47 = vector.multi_reduction <add>, %46, %cst_23 [0] : vector<256x4xf32> to vector<4xf32>
    %48 = vector.shape_cast %47 : vector<4xf32> to vector<1x4xf32>
    %49 = tpu.concatenate %45, %48 in 0 : vector<1x4xf32>, vector<1x4xf32> -> vector<2x4xf32>
    %50 = arith.addf %43, %49 : vector<2x4xf32>
    %c0_24 = arith.constant 0 : index
    %c0_25 = arith.constant 0 : index
    %51 = vector.load %arg6[%c0_24, %c0_25] : memref<2x4xf32, #tpu.memory_space<vmem>>, vector<2x4xf32>
    tpu.vector_store %arg6[%c0_24, %c0_25], %50 {strides = array<i32>} : memref<2x4xf32, #tpu.memory_space<vmem>>, vector<2x4xf32>,
    return
  }
  func.func @transform_0(%arg0: i32) -> (i32, i32, i32, i32) {
    %c0_i32 = arith.constant 0 : i32
    %c0_i32_0 = arith.constant 0 : i32
    %c0_i32_1 = arith.constant 0 : i32
    %c0_i32_2 = arith.constant 0 : i32
    return %arg0, %c0_i32, %c0_i32_0, %c0_i32_1 : i32, i32, i32, i32
  }
  func.func @transform_1(%arg0: i32) -> (i32, i32) {
    %c0_i32 = arith.constant 0 : i32
    %c0_i32_0 = arith.constant 0 : i32
    %c0_i32_1 = arith.constant 0 : i32
    return %c0_i32, %c0_i32_0 : i32, i32
  }
  func.func @transform_2(%arg0: i32) -> (i32, i32) {
    %c0_i32 = arith.constant 0 : i32
    %c0_i32_0 = arith.constant 0 : i32
    %c0_i32_1 = arith.constant 0 : i32
    return %c0_i32, %c0_i32_0 : i32, i32
  }
  func.func @transform_3(%arg0: i32) -> (i32, i32) {
    %c0_i32 = arith.constant 0 : i32
    %c0_i32_0 = arith.constant 0 : i32
    %c0_i32_1 = arith.constant 0 : i32
    return %c0_i32, %c0_i32_0 : i32, i32
  }
  func.func @transform_4(%arg0: i32) -> (i32, i32, i32, i32) {
    %c0_i32 = arith.constant 0 : i32
    %c0_i32_0 = arith.constant 0 : i32
    %c0_i32_1 = arith.constant 0 : i32
    %c0_i32_2 = arith.constant 0 : i32
    return %arg0, %c0_i32, %c0_i32_0, %c0_i32_1 : i32, i32, i32, i32
  }
  func.func @transform_5(%arg0: i32) -> (i32, i32) {
    %c0_i32 = arith.constant 0 : i32
    %c0_i32_0 = arith.constant 0 : i32
    %c0_i32_1 = arith.constant 0 : i32
    return %c0_i32, %c0_i32_0 : i32, i32
  }
}

module attributes {stable_mosaic.version = 11 : i64} {
  func.func @_conv1_kernel(%arg0: i32, %arg1: memref<1x16x16x4xbf16, #tpu.memory_space<vmem>>, %arg2: memref<1x16x16x4xbf16, #tpu.memory_space<vmem>>, %arg3: memref<72x4xbf16, #tpu.memory_space<vmem>>, %arg4: memref<1x16x16x4xf32, #tpu.memory_space<vmem>>, %arg5: memref<2x4xf32, #tpu.memory_space<vmem>>, %arg6: memref<18x18x8xbf16, #tpu.memory_space<vmem>>) attributes {dimension_semantics = [#tpu.dimension_semantics<arbitrary>], iteration_bounds = array<i64: 2>, scalar_prefetch = 0 : i64, scratch_operands = 1 : i64, tpu.core_type = #tpu.core_type<tc>, window_params = [{transform_indices = @transform_0, window_bounds = array<i64: 1, 16, 16, 4>}, {transform_indices = @transform_1, window_bounds = array<i64: 1, 16, 16, 4>}, {pipeline_mode = #tpu.pipeline_mode<synchronous>, transform_indices = @transform_2, window_bounds = array<i64: 72, 4>}, {transform_indices = @transform_3, window_bounds = array<i64: 1, 16, 16, 4>}, {pipeline_mode = #tpu.pipeline_mode<synchronous>, transform_indices = @transform_4, window_bounds = array<i64: 2, 4>}]} {
    %c0_i32 = arith.constant 0 : i32
    %0 = arith.cmpi eq, %arg0, %c0_i32 : i32
    %1 = arith.extui %0 : i1 to i32
    %c0_i32_0 = arith.constant 0 : i32
    %2 = arith.cmpi ne, %1, %c0_i32_0 : i32
    scf.if %2 {
      %cst_25 = arith.constant 0.000000e+00 : f32
      %44 = vector.broadcast %cst_25 : f32 to vector<2x4xf32>
      %c0_26 = arith.constant 0 : index
      %c0_27 = arith.constant 0 : index
      %45 = vector.load %arg5[%c0_26, %c0_27] : memref<2x4xf32, #tpu.memory_space<vmem>>, vector<2x4xf32>
      tpu.vector_store %arg5[%c0_26, %c0_27], %44 {strides = array<i32>} : memref<2x4xf32, #tpu.memory_space<vmem>>, vector<2x4xf32>,
      %cst_28 = arith.constant 0.000000e+00 : bf16
      %46 = vector.broadcast %cst_28 : bf16 to vector<18x18x8xbf16>
      %c0_29 = arith.constant 0 : index
      %c0_30 = arith.constant 0 : index
      %c0_31 = arith.constant 0 : index
      %47 = vector.load %arg6[%c0_29, %c0_30, %c0_31] : memref<18x18x8xbf16, #tpu.memory_space<vmem>>, vector<18x18x8xbf16>
      tpu.vector_store %arg6[%c0_29, %c0_30, %c0_31], %46 {strides = array<i32>} : memref<18x18x8xbf16, #tpu.memory_space<vmem>>, vector<18x18x8xbf16>,
    } else {
    }
    %c0 = arith.constant 0 : index
    %c0_1 = arith.constant 0 : index
    %c0_2 = arith.constant 0 : index
    %c0_3 = arith.constant 0 : index
    %3 = vector.load %arg1[%c0, %c0_1, %c0_2, %c0_3] : memref<1x16x16x4xbf16, #tpu.memory_space<vmem>>, vector<1x16x16x4xbf16>
    %4 = vector.shape_cast %3 : vector<1x16x16x4xbf16> to vector<16x16x4xbf16>
    %c0_4 = arith.constant 0 : index
    %c0_5 = arith.constant 0 : index
    %c0_6 = arith.constant 0 : index
    %c0_7 = arith.constant 0 : index
    %5 = vector.load %arg2[%c0_4, %c0_5, %c0_6, %c0_7] : memref<1x16x16x4xbf16, #tpu.memory_space<vmem>>, vector<1x16x16x4xbf16>
    %6 = vector.shape_cast %5 : vector<1x16x16x4xbf16> to vector<16x16x4xbf16>
    %7 = tpu.concatenate %4, %6 in 2 : vector<16x16x4xbf16>, vector<16x16x4xbf16> -> vector<16x16x8xbf16>
    %c1 = arith.constant 1 : index
    %c1_8 = arith.constant 1 : index
    %c0_9 = arith.constant 0 : index
    %8 = vector.load %arg6[%c1, %c1_8, %c0_9] : memref<18x18x8xbf16, #tpu.memory_space<vmem>>, vector<16x16x8xbf16>
    tpu.vector_store %arg6[%c1, %c1_8, %c0_9], %7 {strides = array<i32>} : memref<18x18x8xbf16, #tpu.memory_space<vmem>>, vector<16x16x8xbf16>,
    %c0_10 = arith.constant 0 : index
    %c0_11 = arith.constant 0 : index
    %c0_12 = arith.constant 0 : index
    %9 = vector.load %arg6[%c0_10, %c0_11, %c0_12] : memref<18x18x8xbf16, #tpu.memory_space<vmem>>, vector<18x18x8xbf16>
    %10 = vector.extract_strided_slice %9 {offsets = [0, 0, 0], sizes = [16, 16, 8], strides = [1, 1, 1]} : vector<18x18x8xbf16> to vector<16x16x8xbf16>
    %11 = vector.shape_cast %10 : vector<16x16x8xbf16> to vector<256x8xbf16>
    %12 = vector.extract_strided_slice %9 {offsets = [0, 1, 0], sizes = [16, 16, 8], strides = [1, 1, 1]} : vector<18x18x8xbf16> to vector<16x16x8xbf16>
    %13 = vector.shape_cast %12 : vector<16x16x8xbf16> to vector<256x8xbf16>
    %14 = vector.extract_strided_slice %9 {offsets = [0, 2, 0], sizes = [16, 16, 8], strides = [1, 1, 1]} : vector<18x18x8xbf16> to vector<16x16x8xbf16>
    %15 = vector.shape_cast %14 : vector<16x16x8xbf16> to vector<256x8xbf16>
    %16 = vector.extract_strided_slice %9 {offsets = [1, 0, 0], sizes = [16, 16, 8], strides = [1, 1, 1]} : vector<18x18x8xbf16> to vector<16x16x8xbf16>
    %17 = vector.shape_cast %16 : vector<16x16x8xbf16> to vector<256x8xbf16>
    %18 = vector.extract_strided_slice %9 {offsets = [1, 1, 0], sizes = [16, 16, 8], strides = [1, 1, 1]} : vector<18x18x8xbf16> to vector<16x16x8xbf16>
    %19 = vector.shape_cast %18 : vector<16x16x8xbf16> to vector<256x8xbf16>
    %20 = vector.extract_strided_slice %9 {offsets = [1, 2, 0], sizes = [16, 16, 8], strides = [1, 1, 1]} : vector<18x18x8xbf16> to vector<16x16x8xbf16>
    %21 = vector.shape_cast %20 : vector<16x16x8xbf16> to vector<256x8xbf16>
    %22 = vector.extract_strided_slice %9 {offsets = [2, 0, 0], sizes = [16, 16, 8], strides = [1, 1, 1]} : vector<18x18x8xbf16> to vector<16x16x8xbf16>
    %23 = vector.shape_cast %22 : vector<16x16x8xbf16> to vector<256x8xbf16>
    %24 = vector.extract_strided_slice %9 {offsets = [2, 1, 0], sizes = [16, 16, 8], strides = [1, 1, 1]} : vector<18x18x8xbf16> to vector<16x16x8xbf16>
    %25 = vector.shape_cast %24 : vector<16x16x8xbf16> to vector<256x8xbf16>
    %26 = vector.extract_strided_slice %9 {offsets = [2, 2, 0], sizes = [16, 16, 8], strides = [1, 1, 1]} : vector<18x18x8xbf16> to vector<16x16x8xbf16>
    %27 = vector.shape_cast %26 : vector<16x16x8xbf16> to vector<256x8xbf16>
    %28 = tpu.concatenate %11, %13, %15, %17, %19, %21, %23, %25, %27 in 1 : vector<256x8xbf16>, vector<256x8xbf16>, vector<256x8xbf16>, vector<256x8xbf16>, vector<256x8xbf16>, vector<256x8xbf16>, vector<256x8xbf16>, vector<256x8xbf16>, vector<256x8xbf16> -> vector<256x72xbf16>
    %c0_13 = arith.constant 0 : index
    %c0_14 = arith.constant 0 : index
    %29 = vector.load %arg3[%c0_13, %c0_14] : memref<72x4xbf16, #tpu.memory_space<vmem>>, vector<72x4xbf16>
    %cst = arith.constant dense<0.000000e+00> : vector<256x4xf32>
    %30 = tpu.matmul %28, %29, %cst {dimension_numbers = #tpu.dot_dimension_numbers<[1], [0], [0], [1], [0, 0, 1, 1], [], []>} : vector<256x72xbf16>, vector<72x4xbf16>, vector<256x4xf32> -> vector<256x4xf32>
    %31 = vector.shape_cast %30 : vector<256x4xf32> to vector<16x16x4xf32>
    %c0_15 = arith.constant 0 : index
    %c0_16 = arith.constant 0 : index
    %c0_17 = arith.constant 0 : index
    %c0_18 = arith.constant 0 : index
    %32 = vector.load %arg4[%c0_15, %c0_16, %c0_17, %c0_18] : memref<1x16x16x4xf32, #tpu.memory_space<vmem>>, vector<1x16x16x4xf32>
    %33 = vector.shape_cast %32 : vector<1x16x16x4xf32> to vector<16x16x4xf32>
    %34 = vector.shape_cast %31 : vector<16x16x4xf32> to vector<1x16x16x4xf32>
    tpu.vector_store %arg4[%c0_15, %c0_16, %c0_17, %c0_18], %34 {strides = array<i32>} : memref<1x16x16x4xf32, #tpu.memory_space<vmem>>, vector<1x16x16x4xf32>,
    %c0_19 = arith.constant 0 : index
    %c0_20 = arith.constant 0 : index
    %35 = vector.load %arg5[%c0_19, %c0_20] : memref<2x4xf32, #tpu.memory_space<vmem>>, vector<2x4xf32>
    %cst_21 = arith.constant dense<0.000000e+00> : vector<4xf32>
    %36 = vector.multi_reduction <add>, %30, %cst_21 [0] : vector<256x4xf32> to vector<4xf32>
    %37 = vector.shape_cast %36 : vector<4xf32> to vector<1x4xf32>
    %38 = arith.mulf %30, %30 : vector<256x4xf32>
    %cst_22 = arith.constant dense<0.000000e+00> : vector<4xf32>
    %39 = vector.multi_reduction <add>, %38, %cst_22 [0] : vector<256x4xf32> to vector<4xf32>
    %40 = vector.shape_cast %39 : vector<4xf32> to vector<1x4xf32>
    %41 = tpu.concatenate %37, %40 in 0 : vector<1x4xf32>, vector<1x4xf32> -> vector<2x4xf32>
    %42 = arith.addf %35, %41 : vector<2x4xf32>
    %c0_23 = arith.constant 0 : index
    %c0_24 = arith.constant 0 : index
    %43 = vector.load %arg5[%c0_23, %c0_24] : memref<2x4xf32, #tpu.memory_space<vmem>>, vector<2x4xf32>
    tpu.vector_store %arg5[%c0_23, %c0_24], %42 {strides = array<i32>} : memref<2x4xf32, #tpu.memory_space<vmem>>, vector<2x4xf32>,
    return
  }
  func.func @transform_0(%arg0: i32) -> (i32, i32, i32, i32) {
    %c0_i32 = arith.constant 0 : i32
    %c0_i32_0 = arith.constant 0 : i32
    %c0_i32_1 = arith.constant 0 : i32
    %c0_i32_2 = arith.constant 0 : i32
    return %arg0, %c0_i32, %c0_i32_0, %c0_i32_1 : i32, i32, i32, i32
  }
  func.func @transform_1(%arg0: i32) -> (i32, i32, i32, i32) {
    %c0_i32 = arith.constant 0 : i32
    %c0_i32_0 = arith.constant 0 : i32
    %c0_i32_1 = arith.constant 0 : i32
    %c0_i32_2 = arith.constant 0 : i32
    return %arg0, %c0_i32, %c0_i32_0, %c0_i32_1 : i32, i32, i32, i32
  }
  func.func @transform_2(%arg0: i32) -> (i32, i32) {
    %c0_i32 = arith.constant 0 : i32
    %c0_i32_0 = arith.constant 0 : i32
    %c0_i32_1 = arith.constant 0 : i32
    return %c0_i32, %c0_i32_0 : i32, i32
  }
  func.func @transform_3(%arg0: i32) -> (i32, i32, i32, i32) {
    %c0_i32 = arith.constant 0 : i32
    %c0_i32_0 = arith.constant 0 : i32
    %c0_i32_1 = arith.constant 0 : i32
    %c0_i32_2 = arith.constant 0 : i32
    return %arg0, %c0_i32, %c0_i32_0, %c0_i32_1 : i32, i32, i32, i32
  }
  func.func @transform_4(%arg0: i32) -> (i32, i32) {
    %c0_i32 = arith.constant 0 : i32
    %c0_i32_0 = arith.constant 0 : i32
    %c0_i32_1 = arith.constant 0 : i32
    return %c0_i32, %c0_i32_0 : i32, i32
  }
}

module attributes {stable_mosaic.version = 11 : i64} {
  func.func @_bn_relu_kernel(%arg0: i32, %arg1: memref<32x64xf32, #tpu.memory_space<vmem>>, %arg2: memref<1x64xf32, #tpu.memory_space<vmem>>, %arg3: memref<1x64xf32, #tpu.memory_space<vmem>>, %arg4: memref<32x64xf32, #tpu.memory_space<vmem>>) attributes {dimension_semantics = [#tpu.dimension_semantics<parallel>], iteration_bounds = array<i64: 1>, scalar_prefetch = 0 : i64, scratch_operands = 0 : i64, tpu.core_type = #tpu.core_type<tc>, window_params = [{transform_indices = @transform_0, window_bounds = array<i64: 32, 64>}, {pipeline_mode = #tpu.pipeline_mode<synchronous>, transform_indices = @transform_1, window_bounds = array<i64: 1, 64>}, {pipeline_mode = #tpu.pipeline_mode<synchronous>, transform_indices = @transform_2, window_bounds = array<i64: 1, 64>}, {transform_indices = @transform_3, window_bounds = array<i64: 32, 64>}]} {
    %c0 = arith.constant 0 : index
    %c0_0 = arith.constant 0 : index
    %0 = vector.load %arg1[%c0, %c0_0] : memref<32x64xf32, #tpu.memory_space<vmem>>, vector<32x64xf32>
    %c0_1 = arith.constant 0 : index
    %c0_2 = arith.constant 0 : index
    %1 = vector.load %arg2[%c0_1, %c0_2] : memref<1x64xf32, #tpu.memory_space<vmem>>, vector<1x64xf32>
    %2 = vector.broadcast %1 : vector<1x64xf32> to vector<32x64xf32>
    %3 = arith.mulf %0, %2 : vector<32x64xf32>
    %c0_3 = arith.constant 0 : index
    %c0_4 = arith.constant 0 : index
    %4 = vector.load %arg3[%c0_3, %c0_4] : memref<1x64xf32, #tpu.memory_space<vmem>>, vector<1x64xf32>
    %5 = vector.broadcast %4 : vector<1x64xf32> to vector<32x64xf32>
    %6 = arith.addf %3, %5 : vector<32x64xf32>
    %cst = arith.constant 0.000000e+00 : f32
    %7 = vector.broadcast %cst : f32 to vector<32x64xf32>
    %8 = arith.maximumf %6, %7 : vector<32x64xf32>
    %c0_5 = arith.constant 0 : index
    %c0_6 = arith.constant 0 : index
    %9 = vector.load %arg4[%c0_5, %c0_6] : memref<32x64xf32, #tpu.memory_space<vmem>>, vector<32x64xf32>
    tpu.vector_store %arg4[%c0_5, %c0_6], %8 {strides = array<i32>} : memref<32x64xf32, #tpu.memory_space<vmem>>, vector<32x64xf32>,
    return
  }
  func.func @transform_0(%arg0: i32) -> (i32, i32) {
    %c0_i32 = arith.constant 0 : i32
    %c0_i32_0 = arith.constant 0 : i32
    return %arg0, %c0_i32 : i32, i32
  }
  func.func @transform_1(%arg0: i32) -> (i32, i32) {
    %c0_i32 = arith.constant 0 : i32
    %c0_i32_0 = arith.constant 0 : i32
    %c0_i32_1 = arith.constant 0 : i32
    return %c0_i32, %c0_i32_0 : i32, i32
  }
  func.func @transform_2(%arg0: i32) -> (i32, i32) {
    %c0_i32 = arith.constant 0 : i32
    %c0_i32_0 = arith.constant 0 : i32
    %c0_i32_1 = arith.constant 0 : i32
    return %c0_i32, %c0_i32_0 : i32, i32
  }
  func.func @transform_3(%arg0: i32) -> (i32, i32) {
    %c0_i32 = arith.constant 0 : i32
    %c0_i32_0 = arith.constant 0 : i32
    return %arg0, %c0_i32 : i32, i32
  }
}

</mosaic_0001>

<bundles_post_ra>
// kernel: tile.16
= control target key start
LH: loop header
LB: loop body
LE: loop exit
PB: predicated region body
PF: predicated region fallthrough
CT: control target
= control target key end

     0   :  { %s22_s0 = inlined_call_operand.vmem [shape: f32[4], index: 0, kind: input, shape index: {}]   ;;  %s23_s1 = inlined_call_operand.vmem [shape: f32[4,4], index: 1, kind: output, shape index: {}]  }
   0x1   :  { %v4_v0 = vld [vmem:[%s22_s0] ss:$0 sm:$0xff] }
   0x2   :  { %5 = vst [vmem:[%s23_s1] sm:$0xf] %v4_v0 }

// kernel: tile.17
= control target key start
LH: loop header
LB: loop body
LE: loop exit
PB: predicated region body
PF: predicated region fallthrough
CT: control target
= control target key end

     0   :  { %s37_s8 = smov 4   ;;  %s38_s9 = smov 8   ;;  %vm7_vm0 = vcmask 31744   ;;  %vm13_vm1 = vcmask 130144   ;;  %vm19_vm2 = vcmask 97344   ;;  %vm25_vm3 = vcmask 64544   ;;  %s55_s0 = inlined_call_operand.vmem [shape: f32[4,4], index: 0, kind: input, shape index: {}]   ;;  %s56_s1 = inlined_call_operand.vmem [shape: f32[1,16], index: 1, kind: output, shape index: {}]  }
   0x1   :  { %v4_v0 = vld [vmem:[%s55_s0] sm:$0xf]  ;;  %s36_s0 = smov 12  }
   0x2   :  { %5 = vst [vmem:[#allocation1] sm:$0xf] %v4_v0 }
   0x9   :  { %v10_v1 = vld [vmem:[#allocation1 + $0x3] sm:$0x1]   ;;  %v22_v2 = vld [vmem:[#allocation1 + $0x1] sm:$0x1]   ;;  %v16_v3 = vld [vmem:[#allocation1 + $0x2] sm:$0x1]  }
   0xa   :  { %11 = vrot.lane.b32.xlu0 %v10_v1, %s36_s0  ;;  %23 = vrot.lane.b32.xlu1 %v22_v2, %s37_s8  ;;  %v6_v4 = vld [vmem:[#allocation1] sm:$0x1]  }
   0xb   :  { %8 = vst.msk [vmem:[#allocation0] sm:$0x1] %vm7_vm0, %v6_v4  }
  0x12   :  { %17 = vrot.lane.b32.xlu0 %v16_v3, %s38_s9 }
  0x7c   :  { %v12_v5 = vpop.permute.xlu0 %11   ;;  %v24_v6 = vpop.permute.xlu1 %23  }
  0x7d   :  { %14 = vst.msk [vmem:[#allocation0] sm:$0x1] %vm13_vm1, %v12_v5  }
  0x84   :  { %v18_v7 = vpop.permute.xlu0 %17  }
  0x85   :  { %20 = vst.msk [vmem:[#allocation0] sm:$0x1] %vm19_vm2, %v18_v7  }
  0x86   :  { %26 = vst.msk [vmem:[#allocation0] sm:$0x1] %vm25_vm3, %v24_v6  }
  0x8d   :  { %v29_v8 = vld [vmem:[#allocation0] sm:$0x1] }
  0x8e   :  { %32 = vst [vmem:[%s56_s1] sm:$0x1] %v29_v8 }

// kernel: tile.20
= control target key start
LH: loop header
LB: loop body
LE: loop exit
PB: predicated region body
PF: predicated region fallthrough
CT: control target
= control target key end

     0   :  { %s28_s0 = inlined_call_operand.vmem [shape: f32[4], index: 0, kind: input, shape index: {}]   ;;  %s29_s1 = inlined_call_operand.vmem [shape: f32[16,4], index: 1, kind: output, shape index: {}]  }
   0x1   :  { %v4_v0 = vld [vmem:[%s28_s0] ss:$0 sm:$0xff] }
   0x2   :  { %5 = vst [vmem:[%s29_s1] sm:$0xff] %v4_v0 }
   0x3   :  { %8 = vst [vmem:[%s29_s1 + $0x8] sm:$0xff] %v4_v0 }

// kernel: tile.21
= control target key start
LH: loop header
LB: loop body
LE: loop exit
PB: predicated region body
PF: predicated region fallthrough
CT: control target
= control target key end

     0   :  { %s131_s10 = smov 60   ;;  %s132_s11 = smov 52   ;;  %vm3_vm0 = vcmask 31744   ;;  %vm9_vm1 = vcmask 523744   ;;  %vm15_vm2 = vcmask 490944   ;;  %vm21_vm3 = vcmask 458144   ;;  %s207_s0 = inlined_call_operand.vmem [shape: f32[16,4], index: 0, kind: input, shape index: {}]   ;;  %s208_s1 = inlined_call_operand.vmem [shape: f32[1,64], index: 1, kind: output, shape index: {}]  }
   0x1   :  { %v101_v0 = vld [vmem:[%s207_s0 + $0xf] sm:$0x1]   ;;  %v103_v1 = vld [vmem:[%s207_s0 + $0xd] sm:$0x1]   ;;  %v105_v2 = vld [vmem:[%s207_s0 + $0xb] sm:$0x1]  }
   0x2   :  { %7 = vrot.lane.b32.xlu0 %v101_v0, %s131_s10  ;;  %19 = vrot.lane.b32.xlu1 %v103_v1, %s132_s11  ;;  %s133_s14 = smov 44   ;;  %v102_v3 = vld [vmem:[%s207_s0 + $0xe] sm:$0x1]   ;;  %v104_v4 = vld [vmem:[%s207_s0 + $0xc] sm:$0x1]   ;;  %s134_s19 = smov 56  }
   0x3   :  { %31 = vrot.lane.b32.xlu2 %v105_v2, %s133_s14  ;;  %s135_s20 = smov 48   ;;  %v106_v5 = vld [vmem:[%s207_s0 + $0xa] sm:$0x1]   ;;  %s136_s23 = smov 40   ;;  %v107_v6 = vld [vmem:[%s207_s0 + $0x9] sm:$0x1]  }
   0x4   :  { %v108_v7 = vld [vmem:[%s207_s0 + $0x8] sm:$0x1]   ;;  %s137_s28 = smov 36   ;;  %s138_s29 = smov 32   ;;  %v109_v8 = vld [vmem:[%s207_s0 + $0x7] sm:$0x1]  }
   0x5   :  { %s139_s3 = smov 28   ;;  %v110_v9 = vld [vmem:[%s207_s0 + $0x6] sm:$0x1]   ;;  %v111_v10 = vld [vmem:[%s207_s0 + $0x5] sm:$0x1]   ;;  %s140_s8 = smov 24  }
   0x6   :  { %s141_s9 = smov 20   ;;  %v112_v11 = vld [vmem:[%s207_s0 + $0x4] sm:$0x1]   ;;  %s142_s12 = smov 16   ;;  %v113_v12 = vld [vmem:[%s207_s0 + $0x3] sm:$0x1]  }
   0x7   :  { %v114_v13 = vld [vmem:[%s207_s0 + $0x2] sm:$0x1]   ;;  %s143_s17 = smov 12   ;;  %s144_s18 = smov 8   ;;  %v115_v14 = vld [vmem:[%s207_s0 + $0x1] sm:$0x1]  }
   0x8   :  { %s145_s21 = smov 4   ;;  %v2_v15 = vld [vmem:[%s207_s0] sm:$0x1]   ;;  %vm27_vm4 = vcmask 425344   ;;  %vm33_vm5 = vcmask 392544   ;;  %vm39_vm6 = vcmask 359744  }
   0x9   :  { %4 = vst.msk [vmem:[#allocation0] sm:$0x1] %vm3_vm0, %v2_v15   ;;  %vm45_vm7 = vcmask 326944   ;;  %vm51_vm8 = vcmask 294144   ;;  %vm57_vm9 = vcmask 261344   ;;  %vm63_vm10 = vcmask 228544  }
   0xa   :  { %13 = vrot.lane.b32.xlu0 %v102_v3, %s134_s19  ;;  %25 = vrot.lane.b32.xlu1 %v104_v4, %s135_s20  ;;  %vm69_vm11 = vcmask 195744   ;;  %vm75_vm12 = vcmask 162944   ;;  %vm81_vm13 = vcmask 130144   ;;  %vm87_vm14 = vcmask 97344  }
   0xb   :  { %37 = vrot.lane.b32.xlu2 %v106_v5, %s136_s23  ;;  %vm93_vm15 = vcmask 64544  }
  0x12   :  { %43 = vrot.lane.b32.xlu0 %v107_v6, %s137_s28  ;;  %49 = vrot.lane.b32.xlu1 %v108_v7, %s138_s29 }
  0x13   :  { %55 = vrot.lane.b32.xlu2 %v109_v8, %s139_s3 }
  0x1a   :  { %61 = vrot.lane.b32.xlu0 %v110_v9, %s140_s8  ;;  %67 = vrot.lane.b32.xlu1 %v111_v10, %s141_s9 }
  0x1b   :  { %73 = vrot.lane.b32.xlu2 %v112_v11, %s142_s12 }
  0x22   :  { %79 = vrot.lane.b32.xlu0 %v113_v12, %s143_s17  ;;  %85 = vrot.lane.b32.xlu1 %v114_v13, %s144_s18 }
  0x23   :  { %91 = vrot.lane.b32.xlu2 %v115_v14, %s145_s21 }
  0x5d   :  { %v32_v16 = vpop.permute.xlu2 %31  }
  0x65   :  { %v38_v17 = vpop.permute.xlu2 %37  }
  0x6d   :  { %v56_v18 = vpop.permute.xlu2 %55  }
  0x74   :  { %v8_v19 = vpop.permute.xlu0 %7   ;;  %v20_v20 = vpop.permute.xlu1 %19  }
  0x75   :  { %10 = vst.msk [vmem:[#allocation0] sm:$0x1] %vm9_vm1, %v8_v19   ;;  %v74_v21 = vpop.permute.xlu2 %73  }
  0x7c   :  { %v14_v22 = vpop.permute.xlu0 %13   ;;  %v26_v23 = vpop.permute.xlu1 %25  }
  0x7d   :  { %16 = vst.msk [vmem:[#allocation0] sm:$0x1] %vm15_vm2, %v14_v22   ;;  %v92_v24 = vpop.permute.xlu2 %91  }
  0x7e   :  { %22 = vst.msk [vmem:[#allocation0] sm:$0x1] %vm21_vm3, %v20_v20  }
  0x7f   :  { %28 = vst.msk [vmem:[#allocation0] sm:$0x1] %vm27_vm4, %v26_v23  }
  0x80   :  { %34 = vst.msk [vmem:[#allocation0] sm:$0x1] %vm33_vm5, %v32_v16  }
  0x81   :  { %40 = vst.msk [vmem:[#allocation0] sm:$0x1] %vm39_vm6, %v38_v17  }
  0x84   :  { %v44_v25 = vpop.permute.xlu0 %43   ;;  %v50_v26 = vpop.permute.xlu1 %49  }
  0x85   :  { %46 = vst.msk [vmem:[#allocation0] sm:$0x1] %vm45_vm7, %v44_v25  }
  0x86   :  { %52 = vst.msk [vmem:[#allocation0] sm:$0x1] %vm51_vm8, %v50_v26  }
  0x87   :  { %58 = vst.msk [vmem:[#allocation0] sm:$0x1] %vm57_vm9, %v56_v18  }
  0x8c   :  { %v62_v27 = vpop.permute.xlu0 %61   ;;  %v68_v28 = vpop.permute.xlu1 %67  }
  0x8d   :  { %64 = vst.msk [vmem:[#allocation0] sm:$0x1] %vm63_vm10, %v62_v27  }
  0x8e   :  { %70 = vst.msk [vmem:[#allocation0] sm:$0x1] %vm69_vm11, %v68_v28  }
  0x8f   :  { %76 = vst.msk [vmem:[#allocation0] sm:$0x1] %vm75_vm12, %v74_v21  }
  0x94   :  { %v80_v29 = vpop.permute.xlu0 %79   ;;  %v86_v30 = vpop.permute.xlu1 %85  }
  0x95   :  { %82 = vst.msk [vmem:[#allocation0] sm:$0x1] %vm81_vm13, %v80_v29  }
  0x96   :  { %88 = vst.msk [vmem:[#allocation0] sm:$0x1] %vm87_vm14, %v86_v30  }
  0x97   :  { %94 = vst.msk [vmem:[#allocation0] sm:$0x1] %vm93_vm15, %v92_v24  }
  0x9e   :  { %v97_v31 = vld [vmem:[#allocation0] sm:$0x1] }
  0x9f   :  { %100 = vst [vmem:[%s208_s1] sm:$0x1] %v97_v31 }

// kernel: decoder_block_forward.4
= control target key start
LH: loop header
LB: loop body
LE: loop exit
PB: predicated region body
PF: predicated region fallthrough
CT: control target
= control target key end

     0   :  { %vm101_vm0 = vcmask 1043456   ;;  %vm76_vm1 = vcmask 64512   ;;  %vm170_vm2 = vcmask 125952   ;;  %s365_s1 = inlined_call_operand.vmem [shape: bf16[8,16], index: 1, kind: input, shape index: {}]   ;;  %s366_s0 = inlined_call_operand.vmem [shape: bf16[128,8], index: 0, kind: input, shape index: {}]   ;;  %s367_s2 = inlined_call_operand.vmem [shape: f32[1,16], index: 2, kind: input, shape index: {}]   ;;  %s368_s3 = inlined_call_operand.vmem [shape: bf16[128,16], index: 3, kind: output, shape index: {}]  }
   0x1   :  { %v31_v0 = vld [vmem:[%s365_s1] sm:$0xf]  ;;  %v233_v3 = vld [vmem:[%s366_s0 + $0x10] sm:$0xff]  ;;  %v232_v6 = vld [vmem:[%s366_s0 + $0x8] sm:$0xff] }
   0x2   :  { %v103_v1 = vsel %vm101_vm0, %v31_v0, 0  ;;  %v231_v2 = vld [vmem:[%s366_s0] sm:$0xff]  ;;  %v237_v5 = vld [vmem:[%s366_s0 + $0x30] sm:$0xff]  ;;  %v234_v7 = vld [vmem:[%s366_s0 + $0x18] sm:$0xff] }
   0x3   :  { %112 = vmatpush.bf16.msra.mxu0 %v103_v1  ;;  %239 = vmatpush.bf16.msra.mxu1 %v103_v1  ;;  %v235_v4 = vld [vmem:[%s366_s0 + $0x20] sm:$0xff]  ;;  %v236_v8 = vld [vmem:[%s366_s0 + $0x28] sm:$0xff]  ;;  %v238_v9 = vld [vmem:[%s366_s0 + $0x38] sm:$0xff] }
   0x4   :  { %240 = vmatpush.bf16.msra.mxu2 %v103_v1  ;;  %241 = vmatpush.bf16.msra.mxu3 %v103_v1  ;;  %v242_v10 = vld [vmem:[%s367_s2] ss:$0 sm:$0xff] }
   0x6   :  { %223 = vmatmul.msk.bf16.vlgmr.msra.gmra.mxu0 %vm76_vm1, %v231_v2  ;;  %225 = vmatmul.msk.bf16.vlgmr.msra.gmra.mxu1 %vm76_vm1, %v233_v3 }
   0x7   :  { %227 = vmatmul.msk.bf16.vlgmr.msra.gmra.mxu2 %vm76_vm1, %v235_v4  ;;  %229 = vmatmul.msk.bf16.vlgmr.msra.gmra.mxu3 %vm76_vm1, %v237_v5 }
  0x16   :  { %224 = vmatmul.msk.bf16.gmra.mxu0 %vm76_vm1, %v232_v6  ;;  %226 = vmatmul.msk.bf16.gmra.mxu1 %vm76_vm1, %v234_v7 }
  0x17   :  { %228 = vmatmul.msk.bf16.gmra.mxu2 %vm76_vm1, %v236_v8  ;;  %230 = vmatmul.msk.bf16.gmra.mxu3 %vm76_vm1, %v238_v9 }
  0x83   :  { %v114_v11 = vpop.f32.mrf.mxu0  ;;  %v124_v12 = vpop.f32.mrf.mxu1 }
  0x84   :  { %v115_v13 = vadd.f32 %v242_v10, %v114_v11  ;;  %v125_v14 = vadd.f32 %v242_v10, %v124_v12 }
  0x86   :  { %v154_v15 = vpack.c.bf16 %v115_v13, %v115_v13  ;;  %v158_v16 = vpack.c.bf16 %v125_v14, %v125_v14 }
  0x88   :  { %171 = vst.msk [vmem:[%s368_s3] sm:$0xf] %vm170_vm2, %v154_v15 }
  0x89   :  { %175 = vst.msk [vmem:[%s368_s3 + $0x10] sm:$0xf] %vm170_vm2, %v158_v16 }
  0x8a   :  { %v134_v17 = vpop.f32.mrf.mxu2  ;;  %v144_v18 = vpop.f32.mrf.mxu3 }
  0x8b   :  { %v135_v19 = vadd.f32 %v242_v10, %v134_v17  ;;  %v145_v20 = vadd.f32 %v242_v10, %v144_v18  ;;  %v116_v21 = vpop.f32.mrf.mxu0  ;;  %v126_v22 = vpop.f32.mrf.mxu1 }
  0x8c   :  { %v117_v23 = vadd.f32 %v242_v10, %v116_v21  ;;  %v127_v24 = vadd.f32 %v242_v10, %v126_v22 }
  0x8d   :  { %v162_v25 = vpack.c.bf16 %v135_v19, %v135_v19  ;;  %v166_v26 = vpack.c.bf16 %v145_v20, %v145_v20 }
  0x8e   :  { %v155_v27 = vpack.c.bf16 %v117_v23, %v117_v23  ;;  %v159_v28 = vpack.c.bf16 %v127_v24, %v127_v24 }
  0x8f   :  { %179 = vst.msk [vmem:[%s368_s3 + $0x20] sm:$0xf] %vm170_vm2, %v162_v25 }
  0x90   :  { %183 = vst.msk [vmem:[%s368_s3 + $0x30] sm:$0xf] %vm170_vm2, %v166_v26 }
  0x91   :  { %172 = vst.msk [vmem:[%s368_s3 + $0x4] sm:$0xf] %vm170_vm2, %v155_v27 }
  0x92   :  { %176 = vst.msk [vmem:[%s368_s3 + $0x14] sm:$0xf] %vm170_vm2, %v159_v28  ;;  %v136_v29 = vpop.f32.mrf.mxu2  ;;  %v146_v30 = vpop.f32.mrf.mxu3 }
  0x93   :  { %v137_v31 = vadd.f32 %v242_v10, %v136_v29  ;;  %v147_v32 = vadd.f32 %v242_v10, %v146_v30  ;;  %v119_v33 = vpop.f32.mrf.mxu0  ;;  %v129_v34 = vpop.f32.mrf.mxu1 }
  0x94   :  { %v120_v35 = vadd.f32 %v242_v10, %v119_v33  ;;  %v130_v36 = vadd.f32 %v242_v10, %v129_v34 }
  0x95   :  { %v163_v37 = vpack.c.bf16 %v137_v31, %v137_v31  ;;  %v167_v38 = vpack.c.bf16 %v147_v32, %v147_v32 }
  0x96   :  { %v156_v39 = vpack.c.bf16 %v120_v35, %v120_v35  ;;  %v160_v40 = vpack.c.bf16 %v130_v36, %v130_v36 }
  0x97   :  { %180 = vst.msk [vmem:[%s368_s3 + $0x24] sm:$0xf] %vm170_vm2, %v163_v37 }
  0x98   :  { %184 = vst.msk [vmem:[%s368_s3 + $0x34] sm:$0xf] %vm170_vm2, %v167_v38 }
  0x99   :  { %173 = vst.msk [vmem:[%s368_s3 + $0x8] sm:$0xf] %vm170_vm2, %v156_v39 }
  0x9a   :  { %177 = vst.msk [vmem:[%s368_s3 + $0x18] sm:$0xf] %vm170_vm2, %v160_v40  ;;  %v139_v41 = vpop.f32.mrf.mxu2  ;;  %v149_v42 = vpop.f32.mrf.mxu3 }
  0x9b   :  { %v140_v43 = vadd.f32 %v242_v10, %v139_v41  ;;  %v150_v44 = vadd.f32 %v242_v10, %v149_v42  ;;  %v121_v45 = vpop.f32.mrf.mxu0  ;;  %v131_v46 = vpop.f32.mrf.mxu1 }
  0x9c   :  { %v122_v47 = vadd.f32 %v242_v10, %v121_v45  ;;  %v132_v48 = vadd.f32 %v242_v10, %v131_v46 }
  0x9d   :  { %v164_v49 = vpack.c.bf16 %v140_v43, %v140_v43  ;;  %v168_v50 = vpack.c.bf16 %v150_v44, %v150_v44 }
  0x9e   :  { %v157_v51 = vpack.c.bf16 %v122_v47, %v122_v47  ;;  %v161_v52 = vpack.c.bf16 %v132_v48, %v132_v48 }
  0x9f   :  { %181 = vst.msk [vmem:[%s368_s3 + $0x28] sm:$0xf] %vm170_vm2, %v164_v49 }
  0xa0   :  { %185 = vst.msk [vmem:[%s368_s3 + $0x38] sm:$0xf] %vm170_vm2, %v168_v50 }
  0xa1   :  { %174 = vst.msk [vmem:[%s368_s3 + $0xc] sm:$0xf] %vm170_vm2, %v157_v51 }
  0xa2   :  { %178 = vst.msk [vmem:[%s368_s3 + $0x1c] sm:$0xf] %vm170_vm2, %v161_v52  ;;  %v141_v53 = vpop.f32.mrf.mxu2  ;;  %v151_v54 = vpop.f32.mrf.mxu3 }
  0xa3   :  { %v142_v55 = vadd.f32 %v242_v10, %v141_v53  ;;  %v152_v56 = vadd.f32 %v242_v10, %v151_v54 }
  0xa5   :  { %v165_v57 = vpack.c.bf16 %v142_v55, %v142_v55  ;;  %v169_v58 = vpack.c.bf16 %v152_v56, %v152_v56 }
  0xa7   :  { %182 = vst.msk [vmem:[%s368_s3 + $0x2c] sm:$0xf] %vm170_vm2, %v165_v57 }
  0xa8   :  { %186 = vst.msk [vmem:[%s368_s3 + $0x3c] sm:$0xf] %vm170_vm2, %v169_v58 }

// kernel: decoder_block_forward.7
= control target key start
LH: loop header
LB: loop body
LE: loop exit
PB: predicated region body
PF: predicated region fallthrough
CT: control target
= control target key end

     0   :  { %vm38_vm0 = vcmask 523264   ;;  %s99_s0 = inlined_call_operand.vmem [shape: f32[32,64], index: 0, kind: input, shape index: {}]   ;;  %s100_s1 = inlined_call_operand.vmem [shape: f32[1,64], index: 1, kind: input, shape index: {}]   ;;  %s101_s2 = inlined_call_operand.vmem [shape: f32[1,64], index: 2, kind: input, shape index: {}]   ;;  %s102_s3 = inlined_call_operand.vmem [shape: f32[32,64], index: 3, kind: output, shape index: {}]  }
   0x1   :  { %v14_v0 = vld [vmem:[%s99_s0] sm:$0xff]  ;;  %v15_v3 = vld [vmem:[%s99_s0 + $0x8] sm:$0xff]  ;;  %v16_v6 = vld [vmem:[%s99_s0 + $0x10] sm:$0xff] }
   0x2   :  { %v47_v1 = vld [vmem:[%s100_s1] ss:$0 sm:$0xff]  ;;  %v17_v7 = vld [vmem:[%s99_s0 + $0x18] sm:$0xff] }
   0x3   :  { %v48_v2 = vld [vmem:[%s101_s2] ss:$0 sm:$0xff]  ;;  %v22_v4 = vmul.f32 %v47_v1, %v14_v0  ;;  %v23_v5 = vmul.f32 %v47_v1, %v15_v3  ;;  %v24_v8 = vmul.f32 %v47_v1, %v16_v6  ;;  %v25_v9 = vmul.f32 %v47_v1, %v17_v7 }
   0x5   :  { %v30_v10 = vadd.f32 %v48_v2, %v22_v4  ;;  %v31_v11 = vadd.f32 %v48_v2, %v23_v5  ;;  %v32_v12 = vadd.f32 %v48_v2, %v24_v8  ;;  %v33_v13 = vadd.f32 %v48_v2, %v25_v9 }
   0x7   :  { %v34_v14 = vmax.f32 %v30_v10, 0.0  ;;  %v35_v15 = vmax.f32 %v31_v11, 0.0  ;;  %v36_v16 = vmax.f32 %v32_v12, 0.0  ;;  %v37_v17 = vmax.f32 %v33_v13, 0.0 }
   0x9   :  { %39 = vst.msk [vmem:[%s102_s3] sm:$0xff] %vm38_vm0, %v34_v14 }
   0xa   :  { %40 = vst.msk [vmem:[%s102_s3 + $0x8] sm:$0xff] %vm38_vm0, %v35_v15 }
   0xb   :  { %41 = vst.msk [vmem:[%s102_s3 + $0x10] sm:$0xff] %vm38_vm0, %v36_v16 }
   0xc   :  { %42 = vst.msk [vmem:[%s102_s3 + $0x18] sm:$0xff] %vm38_vm0, %v37_v17 }

// kernel: decoder_block_forward.5
= control target key start
LH: loop header
LB: loop body
LE: loop exit
PB: predicated region body
PF: predicated region fallthrough
CT: control target
= control target key end

     0   :  { %s3323_s15 = smov 0   ;;  %s4812_s0 = inlined_call_operand.vmem [shape: bf16[2,16,16,4], index: 0, kind: input, shape index: {}]   ;;  %s4813_s1 = inlined_call_operand.vmem [shape: bf16[2,16,16,4], index: 1, kind: input, shape index: {}]   ;;  %s4814_s2 = inlined_call_operand.vmem [shape: bf16[72,4], index: 2, kind: input, shape index: {}]   ;;  %s4815_s3 = inlined_call_operand.vmem [shape: f32[2,16,16,4], index: 3, kind: output, shape index: {0}]   ;;  %s4816_s4 = inlined_call_operand.vmem [shape: f32[2,4], index: 4, kind: output, shape index: {1}]  }
   0x1 LB: > { %s2919_s16 = sadd.s32 4294967295, %s3285_s15   ;;  %p2923_p0 = scmp.ge.s32.totalorder %s3285_s15, 1  ;;  %s3285_s15 = sphi %s3323_s15, %s15_s15  }
   0x2   : > { %p170_p1 = scmp.lt.s32.totalorder %s3285_s15, 3 }
   0x4   : > { %p171_p2 = pnand %p2923_p0, %p170_p1 }
   0x6   : > { %174 = sbr.rel (%p171_p2) target bundleno = 874 (0x36a), region = 32 }
   0xb   : > { %p201_p3 = scmp.lt.s32.totalorder %s2919_s16, 1  ;;  %p2930_p4 = scmp.ne.s32.totalorder %s2919_s16, 0 }
   0xd   : > { %s202_s17 = scalar_select %p201_p3, %s2919_s16, 1 }
   0xe   : > { %220 = sbr.rel (%p2930_p4) target bundleno = 75 (0x4b), region = 36 }
   0xf   : > { %s3183_s18 = sshll.u32 %s202_s17, 7  ;;  %s3185_s19 = sshll.u32 %s202_s17, 8 }
  0x10   : > { %s3334_s22 = scalar_lea.vmem %s4812_s0, %s3183_s18  ;;  %s3339_s25 = scalar_lea.vmem %s4813_s1, %s3183_s18 }
  0x11   : > { %s3344_s28 = scalar_lea.vmem %s4815_s3, %s3185_s19 }
  0x13   : > { %vm221_vm0 = vcmask 25600   ;;  %vm223_vm1 = vcmask 60416   ;;  %v3287_v0 = vmov 0.0   ;;  %v3288_v1 = vmov 0  }
  0x14   : > { %222 = vst.msk [vmem:[%s4816_s4] sm:$0x3] %vm221_vm0, %v3287_v0  ;;  %vm226_vm2 = vcmask 57344  }
  0x15   : > { %224 = vst.msk [vmem:[#allocation2] sm:$0xf] %vm223_vm1, %v3288_v1 }
  0x16   : > { %225 = vst.msk [vmem:[#allocation2 + $0x4] sm:$0xf] %vm223_vm1, %v3288_v1 }
  0x17   : > { %228 = vst.msk [vmem:[#allocation2 + $0xc] sm:$0xf] %vm223_vm1, %v3288_v1 }
  0x18   : > { %229 = vst.msk [vmem:[#allocation2 + $0x10] sm:$0xf] %vm223_vm1, %v3288_v1 }
  0x19   : > { %231 = vst.msk [vmem:[#allocation2 + $0x18] sm:$0xf] %vm223_vm1, %v3288_v1 }
  0x1a   : > { %232 = vst.msk [vmem:[#allocation2 + $0x1c] sm:$0xf] %vm223_vm1, %v3288_v1 }
  0x1b   : > { %234 = vst.msk [vmem:[#allocation2 + $0x24] sm:$0xf] %vm223_vm1, %v3288_v1 }
  0x1c   : > { %235 = vst.msk [vmem:[#allocation2 + $0x28] sm:$0xf] %vm223_vm1, %v3288_v1 }
  0x1d   : > { %237 = vst.msk [vmem:[#allocation2 + $0x30] sm:$0xf] %vm223_vm1, %v3288_v1 }
  0x1e   : > { %238 = vst.msk [vmem:[#allocation2 + $0x34] sm:$0xf] %vm223_vm1, %v3288_v1 }
  0x1f   : > { %240 = vst.msk [vmem:[#allocation2 + $0x3c] sm:$0xf] %vm223_vm1, %v3288_v1 }
  0x20   : > { %241 = vst.msk [vmem:[#allocation2 + $0x40] sm:$0xf] %vm223_vm1, %v3288_v1 }
  0x21   : > { %243 = vst.msk [vmem:[#allocation2 + $0x48] sm:$0xf] %vm223_vm1, %v3288_v1 }
  0x22   : > { %244 = vst.msk [vmem:[#allocation2 + $0x4c] sm:$0xf] %vm223_vm1, %v3288_v1 }
  0x23   : > { %246 = vst.msk [vmem:[#allocation2 + $0x54] sm:$0xf] %vm223_vm1, %v3288_v1 }
  0x24   : > { %247 = vst.msk [vmem:[#allocation2 + $0x58] sm:$0xf] %vm223_vm1, %v3288_v1 }
  0x25   : > { %249 = vst.msk [vmem:[#allocation2 + $0x60] sm:$0xf] %vm223_vm1, %v3288_v1 }
  0x26   : > { %250 = vst.msk [vmem:[#allocation2 + $0x64] sm:$0xf] %vm223_vm1, %v3288_v1 }
  0x27   : > { %252 = vst.msk [vmem:[#allocation2 + $0x6c] sm:$0xf] %vm223_vm1, %v3288_v1 }
  0x28   : > { %253 = vst.msk [vmem:[#allocation2 + $0x70] sm:$0xf] %vm223_vm1, %v3288_v1 }
  0x29   : > { %255 = vst.msk [vmem:[#allocation2 + $0x78] sm:$0xf] %vm223_vm1, %v3288_v1 }
  0x2a   : > { %256 = vst.msk [vmem:[#allocation2 + $0x7c] sm:$0xf] %vm223_vm1, %v3288_v1 }
  0x2b   : > { %258 = vst.msk [vmem:[#allocation2 + $0x84] sm:$0xf] %vm223_vm1, %v3288_v1 }
  0x2c   : > { %259 = vst.msk [vmem:[#allocation2 + $0x88] sm:$0xf] %vm223_vm1, %v3288_v1 }
  0x2d   : > { %261 = vst.msk [vmem:[#allocation2 + $0x90] sm:$0xf] %vm223_vm1, %v3288_v1 }
  0x2e   : > { %262 = vst.msk [vmem:[#allocation2 + $0x94] sm:$0xf] %vm223_vm1, %v3288_v1 }
  0x2f   : > { %264 = vst.msk [vmem:[#allocation2 + $0x9c] sm:$0xf] %vm223_vm1, %v3288_v1 }
  0x30   : > { %265 = vst.msk [vmem:[#allocation2 + $0xa0] sm:$0xf] %vm223_vm1, %v3288_v1 }
  0x31   : > { %267 = vst.msk [vmem:[#allocation2 + $0xa8] sm:$0xf] %vm223_vm1, %v3288_v1 }
  0x32   : > { %268 = vst.msk [vmem:[#allocation2 + $0xac] sm:$0xf] %vm223_vm1, %v3288_v1 }
  0x33   : > { %270 = vst.msk [vmem:[#allocation2 + $0xb4] sm:$0xf] %vm223_vm1, %v3288_v1 }
  0x34   : > { %271 = vst.msk [vmem:[#allocation2 + $0xb8] sm:$0xf] %vm223_vm1, %v3288_v1 }
  0x35   : > { %273 = vst.msk [vmem:[#allocation2 + $0xc0] sm:$0xf] %vm223_vm1, %v3288_v1 }
  0x36   : > { %274 = vst.msk [vmem:[#allocation2 + $0xc4] sm:$0xf] %vm223_vm1, %v3288_v1 }
  0x37   : > { %276 = vst.msk [vmem:[#allocation2 + $0xcc] sm:$0xf] %vm223_vm1, %v3288_v1 }
  0x38   : > { %277 = vst.msk [vmem:[#allocation2 + $0xd0] sm:$0xf] %vm223_vm1, %v3288_v1 }
  0x39   : > { %227 = vst.msk [vmem:[#allocation2 + $0x8] sm:$0x1] %vm226_vm2, %v3288_v1 }
  0x3a   : > { %230 = vst.msk [vmem:[#allocation2 + $0x14] sm:$0x1] %vm226_vm2, %v3288_v1 }
  0x3b   : > { %233 = vst.msk [vmem:[#allocation2 + $0x20] sm:$0x1] %vm226_vm2, %v3288_v1 }
  0x3c   : > { %236 = vst.msk [vmem:[#allocation2 + $0x2c] sm:$0x1] %vm226_vm2, %v3288_v1 }
  0x3d   : > { %239 = vst.msk [vmem:[#allocation2 + $0x38] sm:$0x1] %vm226_vm2, %v3288_v1 }
  0x3e   : > { %242 = vst.msk [vmem:[#allocation2 + $0x44] sm:$0x1] %vm226_vm2, %v3288_v1 }
  0x3f   : > { %245 = vst.msk [vmem:[#allocation2 + $0x50] sm:$0x1] %vm226_vm2, %v3288_v1 }
  0x40   : > { %248 = vst.msk [vmem:[#allocation2 + $0x5c] sm:$0x1] %vm226_vm2, %v3288_v1 }
  0x41   : > { %251 = vst.msk [vmem:[#allocation2 + $0x68] sm:$0x1] %vm226_vm2, %v3288_v1 }
  0x42   : > { %254 = vst.msk [vmem:[#allocation2 + $0x74] sm:$0x1] %vm226_vm2, %v3288_v1 }
  0x43   : > { %257 = vst.msk [vmem:[#allocation2 + $0x80] sm:$0x1] %vm226_vm2, %v3288_v1 }
  0x44   : > { %260 = vst.msk [vmem:[#allocation2 + $0x8c] sm:$0x1] %vm226_vm2, %v3288_v1 }
  0x45   : > { %263 = vst.msk [vmem:[#allocation2 + $0x98] sm:$0x1] %vm226_vm2, %v3288_v1 }
  0x46   : > { %266 = vst.msk [vmem:[#allocation2 + $0xa4] sm:$0x1] %vm226_vm2, %v3288_v1 }
  0x47   : > { %269 = vst.msk [vmem:[#allocation2 + $0xb0] sm:$0x1] %vm226_vm2, %v3288_v1 }
  0x48   : > { %272 = vst.msk [vmem:[#allocation2 + $0xbc] sm:$0x1] %vm226_vm2, %v3288_v1 }
  0x49   : > { %275 = vst.msk [vmem:[#allocation2 + $0xc8] sm:$0x1] %vm226_vm2, %v3288_v1 }
  0x4a   : > { %278 = vst.msk [vmem:[#allocation2 + $0xd4] sm:$0x1] %vm226_vm2, %v3288_v1 }
  0x4b PF: > { %v3204_v2 = vld [vmem:[%s3339_s25 + $0x10] sm:$0xff]  ;;  %v3202_v3 = vld [vmem:[%s3339_s25] sm:$0xff]  ;;  %s3289_s5 = smov 4   ;;  %v3205_v5 = vld [vmem:[%s3339_s25 + $0x18] sm:$0xff]  ;;  %vm535_vm3 = vcmask 31744   ;;  %vm988_vm6 = vcmask 60416  }
  0x4c   : > { %v3206_v4 = vld [vmem:[%s3339_s25 + $0x20] sm:$0xff]  ;;  %507 = vrot.lane.b32.xlu1 %v3204_v2, %s3289_s5  ;;  %503 = vrot.lane.b32.xlu0 %v3202_v3, %s3289_s5  ;;  %v3203_v6 = vld [vmem:[%s3339_s25 + $0x8] sm:$0xff]  ;;  %vm664_vm4 = vsmask.f32 256  ;;  %vm665_vm5 = vsmask.f32 4368 }
  0x4d   : > { %511 = vrot.lane.b32.xlu2 %v3206_v4, %s3289_s5  ;;  %v3207_v7 = vld [vmem:[%s3339_s25 + $0x28] sm:$0xff]  ;;  %v3208_v8 = vld [vmem:[%s3339_s25 + $0x30] sm:$0xff]  ;;  %v3209_v9 = vld [vmem:[%s3339_s25 + $0x38] sm:$0xff]  ;;  %vm989_vm7 = vsmask.f32 7938  ;;  %vm996_vm8 = vcmask 57344  }
  0x4e   : > { %v3210_v10 = vld [vmem:[%s3339_s25 + $0x40] sm:$0xff]  ;;  %v3211_v11 = vld [vmem:[%s3339_s25 + $0x48] sm:$0xff]  ;;  %v3212_v12 = vld [vmem:[%s3339_s25 + $0x50] sm:$0xff]  ;;  %vm1595_vm9 = vcmask 1042432   ;;  %vm1596_vm10 = vcmask 1046532   ;;  %s3290_s6 = smov 16  }
  0x4f   : > { %v3213_v13 = vld [vmem:[%s3339_s25 + $0x58] sm:$0xff]  ;;  %v3214_v14 = vld [vmem:[%s3339_s25 + $0x60] sm:$0xff]  ;;  %v3215_v15 = vld [vmem:[%s3339_s25 + $0x68] sm:$0xff]  ;;  %vm1160_vm13 = vsmask.f32 3328  ;;  %s3291_s7 = smov 8  }
  0x50   : > { %v3216_v16 = vld [vmem:[%s3339_s25 + $0x70] sm:$0xff]  ;;  %v3190_v17 = vld [vmem:[%s3334_s22 + $0x20] sm:$0xff]  ;;  %v3191_v36 = vld [vmem:[%s3334_s22 + $0x28] sm:$0xff]  ;;  %vm1161_vm14 = vsmask.f32 7440  ;;  %s3292_s8 = smov 24  }
  0x51   : > { %v1106_v18 = vld [vmem:[#allocation2] sm:$0xf]  ;;  %v1107_v19 = vld [vmem:[#allocation2 + $0x4] sm:$0xf]  ;;  %v1108_v43 = vld [vmem:[#allocation2 + $0x8] sm:$0x1] }
  0x52   : > { %v1164_v20 = vshrl.u32 %v1106_v18, 16  ;;  %v1167_v21 = vshll.u32 %v1106_v18, 16  ;;  %v1173_v22 = vshll.u32 %v1107_v19, 16  ;;  %v1177_v24 = vshrl.u32 %v1107_v19, 16  ;;  %vm3438_vm11 = vmor %vm1595_vm9, %vm1596_vm10  ;;  %v1022_v55 = vld [vmem:[#allocation2 + $0x3c] sm:$0xf] }
  0x53   : > { %v1600_v30 = vrot.slane %v1107_v19, 5  ;;  %v3059_v37 = vrot.slane %v1106_v18, 9  ;;  %vm3444_vm12 = vmor %vm664_vm4, %vm665_vm5  ;;  %v1603_v47 = vrot.slane %v1108_v43, 5  ;;  %v1026_v56 = vld [vmem:[#allocation2 + $0x44] sm:$0x1]  ;;  %v1183_v60 = vshll.u32 %v1108_v43, 16 }
  0x54   : > { %509 = vrot.lane.b32.xlu1 %v3205_v5, %s3289_s5  ;;  %505 = vrot.lane.b32.xlu0 %v3203_v6, %s3289_s5  ;;  %v1166_v26 = vrot.slane %v1164_v20, 4  ;;  %v1169_v27 = vrot.slane %v1167_v21, 5  ;;  %v3435_v31 = vrot.slane %v1173_v22, 5  ;;  %v1179_v35 = vrot.slane %v1177_v24, 4  ;;  %vm3450_vm15 = vmor %vm1160_vm13, %vm1161_vm14  ;;  %s3293_s9 = smov 48   ;;  %s3294_s10 = smov 40  }
  0x55   : > { %513 = vrot.lane.b32.xlu2 %v3207_v7, %s3289_s5  ;;  %v1602_v38 = vrot.slane %v1600_v30, 4  ;;  %v1601_v46 = vsel %vm3438_vm11, %v3059_v37, %v1600_v30  ;;  %vm3457_vm0 = vmand %vm988_vm6, %vm989_vm7  ;;  %s3295_s11 = smov 64   ;;  %vm2196_vm2 = vcmask 64512   ;;  %s3296_s12 = smov 32   ;;  %vm2278_vm5 = vcmask 195584  }
  0x56   : > { %v1170_v34 = vor.u32 %v1169_v27, %v1166_v26  ;;  %v1180_v53 = vor.u32 %v1179_v35, %v3435_v31  ;;  %v1906_v59 = vunpack.c.l.b16 %v1601_v46  ;;  %vm3466_vm1 = vmand %vm996_vm8, %vm664_vm4  ;;  %v1029_v27 = vld [vmem:[#allocation2 + $0x48] sm:$0xf]  ;;  %v3188_v35 = vld [vmem:[%s3334_s22 + $0x10] sm:$0xff]  ;;  %vm2245_vm4 = vcmask 130048   ;;  %s3297_s13 = smov 56  }
  0x57   : > { %v1604_v58 = vsel %vm3438_vm11, %v1602_v38, %v1603_v47  ;;  %vm2311_vm7 = vcmask 261120   ;;  %vm2344_vm8 = vcmask 326656   ;;  %vm2377_vm9 = vcmask 392192  }
  0x58   : > { %v1171_v52 = vrot.slane %v1170_v34, 4  ;;  %v1907_v4 = vunpack.c.l.b16 %v1604_v58  ;;  %v3197_v58 = vld [vmem:[%s3334_s22 + $0x58] sm:$0xff]  ;;  %vm2410_vm10 = vcmask 457728   ;;  %vm2512_vm13 = vcmask 588800  }
  0x5a   : > { %v1176_v5 = vsel %vm3450_vm15, %v1171_v52, %v3435_v31 }
  0x5b   : > { %v1826_v21 = vunpack.c.l.b16 %v1176_v5 }
  0x5c   : > { %515 = vrot.lane.b32.xlu0 %v3208_v8, %s3289_s5  ;;  %517 = vrot.lane.b32.xlu1 %v3209_v9, %s3289_s5  ;;  %v1181_v9 = vrot.slane %v1180_v53, 4 }
  0x5d   : > { %519 = vrot.lane.b32.xlu2 %v3210_v10, %s3289_s5  ;;  %v3217_v10 = vld [vmem:[%s3339_s25 + $0x78] sm:$0xff] }
  0x64   : > { %521 = vrot.lane.b32.xlu0 %v3211_v11, %s3289_s5  ;;  %523 = vrot.lane.b32.xlu1 %v3212_v12, %s3289_s5 }
  0x65   : > { %525 = vrot.lane.b32.xlu2 %v3213_v13, %s3289_s5  ;;  %v1938_v13 = vpack.c.b16 %v1907_v4, %v1906_v59 }
  0x6c   : > { %527 = vrot.lane.b32.xlu0 %v3214_v14, %s3289_s5  ;;  %529 = vrot.lane.b32.xlu1 %v3215_v15, %s3289_s5  ;;  %v1185_v14 = vrot.slane %v1183_v60, 5  ;;  %v3194_v15 = vld [vmem:[%s3334_s22 + $0x40] sm:$0xff] }
  0x6d   : > { %531 = vrot.lane.b32.xlu2 %v3216_v16, %s3289_s5 }
  0x6e   : > { %v1186_v20 = vsel %vm3450_vm15, %v1181_v9, %v1185_v14 }
  0x74   : > { %533 = vrot.lane.b32.xlu0 %v3217_v10, %s3289_s5 }
  0x75   : > { %1954 = vrot.lane.b32.xlu2 %v1938_v13, %s3290_s6 }
  0xa7   : > { %v512_v23 = vpop.permute.xlu2 %511 }
  0xa8   : > { %v550_v25 = vsel %vm535_vm3, %v3190_v17, %v512_v23 }
  0xa9   : > { %v608_v28 = vunpack.c.l.b16 %v550_v25  ;;  %v609_v29 = vunpack.c.h.b16 %v550_v25  ;;  %v1827_v25 = vunpack.c.l.b16 %v1186_v20 }
  0xab   : > { %v640_v32 = vpack.c.b16 %v608_v28, %v608_v28  ;;  %v641_v33 = vpack.c.b16 %v609_v29, %v609_v29  ;;  %v1033_v28 = vld [vmem:[#allocation2 + $0x50] sm:$0x1]  ;;  %v1858_v37 = vpack.c.b16 %v1827_v25, %v1826_v21 }
  0xad   : > { %v736_v39 = vshrl.u32 %v640_v32, 16  ;;  %v739_v40 = vshll.u32 %v640_v32, 16  ;;  %v744_v41 = vshrl.u32 %v641_v33, 16  ;;  %v747_v42 = vshll.u32 %v641_v33, 16  ;;  %1874 = vrot.lane.b32.xlu1 %v1858_v37, %s3291_s7 }
  0xaf   : > { %v738_v48 = vrot.slane %v736_v39, 7  ;;  %v746_v49 = vrot.slane %v744_v41, 7  ;;  %v514_v50 = vpop.permute.xlu2 %513 }
  0xb0   : > { %v553_v57 = vsel %vm535_vm3, %v3191_v36, %v514_v50  ;;  %v3186_v36 = vld [vmem:[%s3334_s22] sm:$0xff] }
  0xb1   : > { %v741_v61 = vor.u32 %v739_v40, %v738_v48  ;;  %v742_v62 = vrot.slane %v738_v48, 4  ;;  %v749_v63 = vor.u32 %v747_v42, %v746_v49  ;;  %v751_v0 = vrot.slane %v746_v49, 4 }
  0xb2   : > { %v610_v2 = vunpack.c.l.b16 %v553_v57  ;;  %v611_v3 = vunpack.c.h.b16 %v553_v57 }
  0xb3   : > { %v750_v6 = vsel %vm3444_vm12, %v742_v62, %v749_v63  ;;  %v1023_v7 = vsel %vm3457_vm0, %v741_v61, %v1022_v55  ;;  %v1027_v8 = vsel %vm3466_vm1, %v751_v0, %v1026_v56  ;;  %v1050_v63 = vld [vmem:[#allocation2 + $0x6c] sm:$0xf]  ;;  %v1054_v0 = vld [vmem:[#allocation2 + $0x74] sm:$0x1] }
  0xb4   : > { %1024 = vst [vmem:[#allocation2 + $0x3c] sm:$0xf] %v1023_v7  ;;  %v642_v11 = vpack.c.b16 %v610_v2, %v610_v2  ;;  %v643_v12 = vpack.c.b16 %v611_v3, %v611_v3 }
  0xb5   : > { %1025 = vst.msk [vmem:[#allocation2 + $0x40] sm:$0xf] %vm988_vm6, %v750_v6 }
  0xb6   : > { %1028 = vst [vmem:[#allocation2 + $0x44] sm:$0x1] %v1027_v8  ;;  %v753_v16 = vshrl.u32 %v642_v11, 16  ;;  %v756_v17 = vshll.u32 %v642_v11, 16  ;;  %v761_v18 = vshrl.u32 %v643_v12, 16  ;;  %v764_v19 = vshll.u32 %v643_v12, 16 }
  0xb7   : > { %v520_v22 = vpop.permute.xlu2 %519  ;;  %v3189_v11 = vld [vmem:[%s3334_s22 + $0x18] sm:$0xff]  ;;  %v3187_v12 = vld [vmem:[%s3334_s22 + $0x8] sm:$0xff] }
  0xb8   : > { %v755_v23 = vrot.slane %v753_v16, 7  ;;  %v763_v24 = vrot.slane %v761_v18, 7  ;;  %v562_v26 = vsel %vm535_vm3, %v3194_v15, %v520_v22 }
  0xb9   : > { %v616_v29 = vunpack.c.l.b16 %v562_v26  ;;  %v617_v30 = vunpack.c.h.b16 %v562_v26 }
  0xba   : > { %v758_v31 = vor.u32 %v756_v17, %v755_v23  ;;  %v759_v32 = vrot.slane %v755_v23, 4  ;;  %v766_v33 = vor.u32 %v764_v19, %v763_v24  ;;  %v768_v34 = vrot.slane %v763_v24, 4 }
  0xbb   : > { %v648_v38 = vpack.c.b16 %v616_v29, %v616_v29  ;;  %v649_v39 = vpack.c.b16 %v617_v30, %v617_v30 }
  0xbc   : > { %v767_v40 = vsel %vm3444_vm12, %v759_v32, %v766_v33  ;;  %v1030_v41 = vsel %vm3457_vm0, %v758_v31, %v1029_v27  ;;  %v1034_v42 = vsel %vm3466_vm1, %v768_v34, %v1033_v28  ;;  %v3223_v43 = vld [vmem:[#allocation2 + $0x3c] sm:$0xff]  ;;  %v1008_v31 = vld [vmem:[#allocation2 + $0x24] sm:$0xf]  ;;  %v1012_v32 = vld [vmem:[#allocation2 + $0x2c] sm:$0x1] }
  0xbd   : > { %1031 = vst [vmem:[#allocation2 + $0x48] sm:$0xf] %v1030_v41  ;;  %v804_v46 = vshrl.u32 %v648_v38, 16  ;;  %v807_v47 = vshll.u32 %v648_v38, 16  ;;  %v812_v48 = vshrl.u32 %v649_v39, 16  ;;  %v815_v49 = vshll.u32 %v649_v39, 16  ;;  %1997 = vrot.lane.b32.xlu2 %v3223_v43, %s3292_s8 }
  0xbe   : > { %v508_v50 = vpop.permute.xlu1 %507  ;;  %v504_v52 = vpop.permute.xlu0 %503  ;;  %1032 = vst.msk [vmem:[#allocation2 + $0x4c] sm:$0xf] %vm988_vm6, %v767_v40  ;;  %v991_v41 = vld [vmem:[#allocation2 + $0xc] sm:$0xf] }
  0xbf   : > { %v544_v53 = vsel %vm535_vm3, %v3188_v35, %v508_v50  ;;  %v538_v55 = vsel %vm535_vm3, %v3186_v36, %v504_v52  ;;  %1035 = vst [vmem:[#allocation2 + $0x50] sm:$0x1] %v1034_v42  ;;  %v806_v56 = vrot.slane %v804_v46, 7  ;;  %v814_v57 = vrot.slane %v812_v48, 7  ;;  %v526_v2 = vpop.permute.xlu2 %525  ;;  %v998_v42 = vld [vmem:[#allocation2 + $0x14] sm:$0x1] }
  0xc0   : > { %v604_v59 = vunpack.c.l.b16 %v544_v53  ;;  %v605_v60 = vunpack.c.h.b16 %v544_v53  ;;  %v600_v61 = vunpack.c.l.b16 %v538_v55  ;;  %v601_v62 = vunpack.c.h.b16 %v538_v55 }
  0xc1   : > { %v809_v3 = vor.u32 %v807_v47, %v806_v56  ;;  %v810_v4 = vrot.slane %v806_v56, 4  ;;  %v817_v5 = vor.u32 %v815_v49, %v814_v57  ;;  %v819_v6 = vrot.slane %v814_v57, 4 }
  0xc2   : > { %v636_v7 = vpack.c.b16 %v604_v59, %v604_v59  ;;  %v637_v8 = vpack.c.b16 %v605_v60, %v605_v60  ;;  %v632_v9 = vpack.c.b16 %v600_v61, %v600_v61  ;;  %v633_v10 = vpack.c.b16 %v601_v62, %v601_v62  ;;  %v3192_v61 = vld [vmem:[%s3334_s22 + $0x30] sm:$0xff] }
  0xc3   : > { %v818_v13 = vsel %vm3444_vm12, %v810_v4, %v817_v5  ;;  %v1051_v14 = vsel %vm3457_vm0, %v809_v3, %v1050_v63  ;;  %v1055_v15 = vsel %vm3466_vm1, %v819_v6, %v1054_v0  ;;  %v571_v16 = vsel %vm535_vm3, %v3197_v58, %v526_v2 }
  0xc4   : > { %v702_v17 = vshrl.u32 %v636_v7, 16  ;;  %v705_v18 = vshll.u32 %v636_v7, 16  ;;  %v710_v19 = vshrl.u32 %v637_v8, 16  ;;  %v713_v20 = vshll.u32 %v637_v8, 16  ;;  %1052 = vst [vmem:[#allocation2 + $0x6c] sm:$0xf] %v1051_v14 }
  0xc5   : > { %v668_v21 = vshrl.u32 %v632_v9, 16  ;;  %v671_v22 = vshll.u32 %v632_v9, 16  ;;  %v676_v23 = vshrl.u32 %v633_v10, 16  ;;  %v679_v24 = vshll.u32 %v633_v10, 16  ;;  %1053 = vst.msk [vmem:[#allocation2 + $0x70] sm:$0xf] %vm988_vm6, %v818_v13 }
  0xc6   : > { %v704_v25 = vrot.slane %v702_v17, 7  ;;  %v712_v26 = vrot.slane %v710_v19, 7  ;;  %v510_v27 = vpop.permute.xlu1 %509  ;;  %v506_v28 = vpop.permute.xlu0 %505  ;;  %1056 = vst [vmem:[#allocation2 + $0x74] sm:$0x1] %v1055_v15  ;;  %v622_v29 = vunpack.c.l.b16 %v571_v16  ;;  %v623_v30 = vunpack.c.h.b16 %v571_v16  ;;  %v3519_v55 = vld [vmem:[#allocation2 + $0x48] sm:$0xf] }
  0xc7   : > { %v670_v33 = vrot.slane %v668_v21, 7  ;;  %v678_v34 = vrot.slane %v676_v23, 7  ;;  %v547_v35 = vsel %vm535_vm3, %v3189_v11, %v510_v27  ;;  %v541_v36 = vsel %vm535_vm3, %v3187_v12, %v506_v28  ;;  %v3521_v56 = vld [vmem:[#allocation2 + $0x4c] sm:$0xf] }
  0xc8   : > { %v707_v37 = vor.u32 %v705_v18, %v704_v25  ;;  %v708_v38 = vrot.slane %v704_v25, 4  ;;  %v715_v39 = vor.u32 %v713_v20, %v712_v26  ;;  %v717_v40 = vrot.slane %v712_v26, 4  ;;  %v1015_v20 = vld [vmem:[#allocation2 + $0x30] sm:$0xf]  ;;  %v1019_v25 = vld [vmem:[#allocation2 + $0x38] sm:$0x1] }
  0xc9   : > { %v673_v43 = vor.u32 %v671_v22, %v670_v33  ;;  %v674_v46 = vrot.slane %v670_v33, 4  ;;  %v681_v47 = vor.u32 %v679_v24, %v678_v34  ;;  %v683_v48 = vrot.slane %v678_v34, 4 }
  0xca   : > { %v716_v49 = vsel %vm3444_vm12, %v708_v38, %v715_v39  ;;  %v1009_v50 = vsel %vm3457_vm0, %v707_v37, %v1008_v31  ;;  %v1013_v52 = vsel %vm3466_vm1, %v717_v40, %v1012_v32  ;;  %v606_v53 = vunpack.c.l.b16 %v547_v35  ;;  %v1001_v32 = vld [vmem:[#allocation2 + $0x18] sm:$0xf] }
  0xcb   : > { %1010 = vst [vmem:[#allocation2 + $0x24] sm:$0xf] %v1009_v50  ;;  %v682_v57 = vsel %vm3444_vm12, %v674_v46, %v681_v47  ;;  %v992_v58 = vsel %vm3457_vm0, %v673_v43, %v991_v41  ;;  %v999_v59 = vsel %vm3466_vm1, %v683_v48, %v998_v42  ;;  %v607_v60 = vunpack.c.h.b16 %v547_v35  ;;  %v3195_v46 = vld [vmem:[%s3334_s22 + $0x48] sm:$0xff] }
  0xcc   : > { %1011 = vst.msk [vmem:[#allocation2 + $0x28] sm:$0xf] %vm988_vm6, %v716_v49  ;;  %v638_v62 = vpack.c.b16 %v606_v53, %v606_v53  ;;  %v602_v63 = vunpack.c.l.b16 %v541_v36  ;;  %v603_v0 = vunpack.c.h.b16 %v541_v36  ;;  %v3531_v2 = vpack.c.b16 %v622_v29, %v622_v29  ;;  %v1005_v36 = vld [vmem:[#allocation2 + $0x20] sm:$0x1]  ;;  %v1036_v49 = vld [vmem:[#allocation2 + $0x54] sm:$0xf] }
  0xcd   : > { %1014 = vst [vmem:[#allocation2 + $0x2c] sm:$0x1] %v1013_v52  ;;  %v639_v3 = vpack.c.b16 %v607_v60, %v607_v60  ;;  %v3533_v4 = vpack.c.b16 %v623_v30, %v623_v30  ;;  %v3065_v5 = vrot.slane %v3519_v55, 9  ;;  %v1642_v6 = vrot.slane %v3521_v56, 5  ;;  %v1040_v60 = vld [vmem:[#allocation2 + $0x5c] sm:$0x1] }
  0xce   : > { %993 = vst [vmem:[#allocation2 + $0xc] sm:$0xf] %v992_v58  ;;  %v719_v7 = vshrl.u32 %v638_v62, 16  ;;  %v722_v8 = vshll.u32 %v638_v62, 16  ;;  %v634_v9 = vpack.c.b16 %v602_v63, %v602_v63  ;;  %v635_v10 = vpack.c.b16 %v603_v0, %v603_v0  ;;  %v516_v11 = vpop.permute.xlu0 %515 }
  0xcf   : > { %995 = vst.msk [vmem:[#allocation2 + $0x10] sm:$0xf] %vm988_vm6, %v682_v57  ;;  %v727_v12 = vshrl.u32 %v639_v3, 16  ;;  %v730_v13 = vshll.u32 %v639_v3, 16  ;;  %v556_v14 = vsel %vm535_vm3, %v3192_v61, %v516_v11  ;;  %v855_v15 = vshrl.u32 %v3531_v2, 16 }
  0xd0   : > { %1000 = vst [vmem:[#allocation2 + $0x14] sm:$0x1] %v999_v59  ;;  %v721_v16 = vrot.slane %v719_v7, 7  ;;  %v685_v17 = vshrl.u32 %v634_v9, 16  ;;  %v688_v18 = vshll.u32 %v634_v9, 16  ;;  %v693_v19 = vshrl.u32 %v635_v10, 16 }
  0xd1   : > { %v729_v21 = vrot.slane %v727_v12, 7  ;;  %v696_v22 = vshll.u32 %v635_v10, 16  ;;  %v612_v23 = vunpack.c.l.b16 %v556_v14  ;;  %v613_v24 = vunpack.c.h.b16 %v556_v14  ;;  %v1071_v3 = vld [vmem:[#allocation2 + $0x90] sm:$0xf]  ;;  %v1075_v12 = vld [vmem:[#allocation2 + $0x98] sm:$0x1] }
  0xd2   : > { %v724_v26 = vor.u32 %v722_v8, %v721_v16  ;;  %v725_v27 = vrot.slane %v721_v16, 4  ;;  %v687_v28 = vrot.slane %v685_v17, 7  ;;  %v695_v29 = vrot.slane %v693_v19, 7  ;;  %v3552_v58 = vld [vmem:[#allocation2 + $0x24] sm:$0xf] }
  0xd3   : > { %v732_v30 = vor.u32 %v730_v13, %v729_v21  ;;  %v734_v31 = vrot.slane %v729_v21, 4  ;;  %v644_v33 = vpack.c.b16 %v612_v23, %v612_v23  ;;  %v645_v34 = vpack.c.b16 %v613_v24, %v613_v24  ;;  %v3562_v19 = vld [vmem:[#allocation2 + $0x28] sm:$0xf] }
  0xd4   : > { %v1016_v35 = vsel %vm3457_vm0, %v724_v26, %v1015_v20  ;;  %v690_v37 = vor.u32 %v688_v18, %v687_v28  ;;  %v691_v38 = vrot.slane %v687_v28, 4  ;;  %v698_v39 = vor.u32 %v696_v22, %v695_v29  ;;  %v3566_v21 = vld [vmem:[#allocation2 + $0x2c] sm:$0x1] }
  0xd5   : > { %v733_v40 = vsel %vm3444_vm12, %v725_v27, %v732_v30  ;;  %1017 = vst [vmem:[#allocation2 + $0x30] sm:$0xf] %v1016_v35  ;;  %v1020_v41 = vsel %vm3466_vm1, %v734_v31, %v1019_v25  ;;  %v700_v42 = vrot.slane %v695_v29, 4  ;;  %v770_v43 = vshrl.u32 %v644_v33, 16  ;;  %v3569_v23 = vld [vmem:[#allocation2 + $0xc] sm:$0xf] }
  0xd6   : > { %1018 = vst.msk [vmem:[#allocation2 + $0x34] sm:$0xf] %vm988_vm6, %v733_v40  ;;  %v699_v47 = vsel %vm3444_vm12, %v691_v38, %v698_v39  ;;  %v1002_v48 = vsel %vm3457_vm0, %v690_v37, %v1001_v32  ;;  %v773_v50 = vshll.u32 %v644_v33, 16  ;;  %v778_v52 = vshrl.u32 %v645_v34, 16  ;;  %v3219_v53 = vld [vmem:[#allocation2 + $0xc] sm:$0xff]  ;;  %v522_v57 = vpop.permute.xlu0 %521 }
  0xd7   : > { %1021 = vst [vmem:[#allocation2 + $0x38] sm:$0x1] %v1020_v41  ;;  %v1006_v59 = vsel %vm3466_vm1, %v700_v42, %v1005_v36  ;;  %v772_v61 = vrot.slane %v770_v43, 7  ;;  %v781_v62 = vshll.u32 %v645_v34, 16  ;;  %v857_v63 = vrot.slane %v855_v15, 7  ;;  %1989 = vrot.lane.b32.xlu1 %v3219_v53, %s3292_s8  ;;  %v3198_v34 = vld [vmem:[%s3334_s22 + $0x60] sm:$0xff] }
  0xd8   : > { %1003 = vst [vmem:[#allocation2 + $0x18] sm:$0xf] %v1002_v48  ;;  %v780_v0 = vrot.slane %v778_v52, 7  ;;  %v858_v7 = vshll.u32 %v3531_v2, 16  ;;  %v863_v8 = vshrl.u32 %v3533_v4, 16  ;;  %v866_v9 = vshll.u32 %v3533_v4, 16 }
  0xd9   : > { %1004 = vst.msk [vmem:[#allocation2 + $0x1c] sm:$0xf] %vm988_vm6, %v699_v47  ;;  %v775_v10 = vor.u32 %v773_v50, %v772_v61  ;;  %v776_v11 = vrot.slane %v772_v61, 4  ;;  %v861_v13 = vrot.slane %v857_v63, 4  ;;  %v565_v14 = vsel %vm535_vm3, %v3195_v46, %v522_v57  ;;  %v3575_v28 = vld [vmem:[#allocation2 + $0x10] sm:$0xf] }
  0xda   : > { %1007 = vst [vmem:[#allocation2 + $0x20] sm:$0x1] %v1006_v59  ;;  %v783_v15 = vor.u32 %v781_v62, %v780_v0  ;;  %v785_v16 = vrot.slane %v780_v0, 4  ;;  %v860_v17 = vor.u32 %v858_v7, %v857_v63  ;;  %v865_v18 = vrot.slane %v863_v8, 7  ;;  %v3581_v33 = vld [vmem:[#allocation2 + $0x14] sm:$0x1] }
  0xdb   : > { %v1037_v2 = vsel %vm3457_vm0, %v775_v10, %v1036_v49  ;;  %v618_v20 = vunpack.c.l.b16 %v565_v14  ;;  %v619_v4 = vunpack.c.h.b16 %v565_v14  ;;  %v3062_v22 = vrot.slane %v3552_v58, 9  ;;  %v1061_v61 = vld [vmem:[#allocation2 + $0x80] sm:$0x1]  ;;  %v3193_v7 = vld [vmem:[%s3334_s22 + $0x38] sm:$0xff] }
  0xdc   : > { %v784_v24 = vsel %vm3444_vm12, %v776_v11, %v783_v15  ;;  %1038 = vst [vmem:[#allocation2 + $0x54] sm:$0xf] %v1037_v2  ;;  %v1041_v25 = vsel %vm3466_vm1, %v785_v16, %v1040_v60  ;;  %v868_v26 = vor.u32 %v866_v9, %v865_v18  ;;  %v870_v27 = vrot.slane %v865_v18, 4  ;;  %v1057_v60 = vld [vmem:[#allocation2 + $0x78] sm:$0xf] }
  0xdd   : > { %1039 = vst.msk [vmem:[#allocation2 + $0x58] sm:$0xf] %vm988_vm6, %v784_v24  ;;  %v1072_v29 = vsel %vm3457_vm0, %v860_v17, %v1071_v3  ;;  %v650_v30 = vpack.c.b16 %v618_v20, %v618_v20  ;;  %v651_v31 = vpack.c.b16 %v619_v4, %v619_v4  ;;  %v1621_v32 = vrot.slane %v3562_v19, 5 }
  0xde   : > { %1042 = vst [vmem:[#allocation2 + $0x5c] sm:$0x1] %v1041_v25  ;;  %v869_v35 = vsel %vm3444_vm12, %v861_v13, %v868_v26  ;;  %v1076_v36 = vsel %vm3466_vm1, %v870_v27, %v1075_v12  ;;  %v1624_v37 = vrot.slane %v3566_v21, 5  ;;  %v3060_v38 = vrot.slane %v3569_v23, 9  ;;  %v528_v39 = vpop.permute.xlu0 %527  ;;  %v518_v12 = vpop.permute.xlu1 %517  ;;  %v3613_v26 = vld [vmem:[#allocation2 + $0x50] sm:$0x1] }
  0xdf   : > { %1073 = vst [vmem:[#allocation2 + $0x90] sm:$0xf] %v1072_v29  ;;  %v821_v40 = vshrl.u32 %v650_v30, 16  ;;  %v824_v41 = vshll.u32 %v650_v30, 16  ;;  %v829_v42 = vshrl.u32 %v651_v31, 16  ;;  %v832_v43 = vshll.u32 %v651_v31, 16 }
  0xe0   : > { %1074 = vst.msk [vmem:[#allocation2 + $0x94] sm:$0xf] %vm988_vm6, %v869_v35  ;;  %v1622_v46 = vsel %vm3438_vm11, %v3062_v22, %v1621_v32  ;;  %v1623_v47 = vrot.slane %v1621_v32, 4  ;;  %v1607_v48 = vrot.slane %v3575_v28, 5  ;;  %v1610_v49 = vrot.slane %v3581_v33, 5  ;;  %v3220_v50 = vld [vmem:[#allocation2 + $0x18] sm:$0xff] }
  0xe1   : > { %1077 = vst [vmem:[#allocation2 + $0x98] sm:$0x1] %v1076_v36  ;;  %v823_v52 = vrot.slane %v821_v40, 7  ;;  %v831_v53 = vrot.slane %v829_v42, 7  ;;  %v1912_v57 = vunpack.c.l.b16 %v1622_v46  ;;  %v574_v59 = vsel %vm535_vm3, %v3198_v34, %v528_v39  ;;  %2094 = vrot.lane.b32.xlu1 %v3220_v50, %s3293_s9  ;;  %v3624_v32 = vld [vmem:[#allocation2 + $0x30] sm:$0xf] }
  0xe2   : > { %v1625_v62 = vsel %vm3438_vm11, %v1623_v47, %v1624_v37  ;;  %v1608_v63 = vsel %vm3438_vm11, %v3060_v38, %v1607_v48  ;;  %v1609_v0 = vrot.slane %v1607_v48, 4  ;;  %v624_v3 = vunpack.c.l.b16 %v574_v59  ;;  %v1078_v38 = vld [vmem:[#allocation2 + $0x9c] sm:$0xf]  ;;  %v3633_v46 = vld [vmem:[#allocation2 + $0x34] sm:$0xf] }
  0xe3   : > { %v826_v8 = vor.u32 %v824_v41, %v823_v52  ;;  %v827_v9 = vrot.slane %v823_v52, 4  ;;  %v834_v10 = vor.u32 %v832_v43, %v831_v53  ;;  %v836_v11 = vrot.slane %v831_v53, 4  ;;  %v1082_v48 = vld [vmem:[#allocation2 + $0xa4] sm:$0x1] }
  0xe4   : > { %v1913_v13 = vunpack.c.l.b16 %v1625_v62  ;;  %v1611_v14 = vsel %vm3438_vm11, %v1609_v0, %v1610_v49  ;;  %v1908_v15 = vunpack.c.l.b16 %v1608_v63  ;;  %v625_v16 = vunpack.c.h.b16 %v574_v59 }
  0xe5   : > { %v835_v17 = vsel %vm3444_vm12, %v827_v9, %v834_v10  ;;  %v1058_v18 = vsel %vm3457_vm0, %v826_v8, %v1057_v60  ;;  %v1062_v2 = vsel %vm3466_vm1, %v836_v11, %v1061_v61  ;;  %v1909_v20 = vunpack.c.l.b16 %v1611_v14  ;;  %v1043_v61 = vld [vmem:[#allocation2 + $0x60] sm:$0xf]  ;;  %v1047_v10 = vld [vmem:[#allocation2 + $0x68] sm:$0x1] }
  0xe6   : > { %1059 = vst [vmem:[#allocation2 + $0x78] sm:$0xf] %v1058_v18  ;;  %v3610_v4 = vpack.c.b16 %v1913_v13, %v1912_v57  ;;  %v656_v22 = vpack.c.b16 %v624_v3, %v624_v3  ;;  %v657_v24 = vpack.c.b16 %v625_v16, %v625_v16  ;;  %v559_v25 = vsel %vm535_vm3, %v3193_v7, %v518_v12  ;;  %v3639_v3 = vld [vmem:[#allocation2 + $0x38] sm:$0x1]  ;;  %v3196_v12 = vld [vmem:[%s3334_s22 + $0x50] sm:$0xff]  ;;  %v524_v18 = vpop.permute.xlu1 %523 }
  0xe7   : > { %1060 = vst.msk [vmem:[#allocation2 + $0x7c] sm:$0xf] %vm988_vm6, %v835_v17  ;;  %v3616_v27 = vpack.c.b16 %v1909_v20, %v1908_v15  ;;  %v614_v29 = vunpack.c.l.b16 %v559_v25  ;;  %v615_v30 = vunpack.c.h.b16 %v559_v25  ;;  %v1643_v31 = vsel %vm3438_vm11, %v3065_v5, %v1642_v6  ;;  %v3649_v13 = vld [vmem:[#allocation2 + $0x6c] sm:$0xf] }
  0xe8   : > { %4848 = vst [vmem:[#allocation3_spill] sm:$0xff] %v3610_v4  ;;  %1960 = vrot.lane.b32.xlu2 %v3610_v4, %s3290_s6  ;;  %v872_v34 = vshrl.u32 %v656_v22, 16  ;;  %v875_v35 = vshll.u32 %v656_v22, 16  ;;  %v880_v36 = vshrl.u32 %v657_v24, 16  ;;  %v883_v37 = vshll.u32 %v657_v24, 16 }
  0xe9   : > { %1063 = vst [vmem:[#allocation2 + $0x80] sm:$0x1] %v1062_v2  ;;  %1956 = vrot.lane.b32.xlu0 %v3616_v27, %s3290_s6  ;;  %v646_v39 = vpack.c.b16 %v614_v29, %v614_v29  ;;  %v647_v40 = vpack.c.b16 %v615_v30, %v615_v30  ;;  %v1644_v55 = vrot.slane %v1642_v6, 4  ;;  %v1645_v5 = vrot.slane %v3613_v26, 5  ;;  %1991 = vrot.lane.b32.xlu1 %v3220_v50, %s3292_s8  ;;  %v3651_v2 = vld [vmem:[#allocation2 + $0x70] sm:$0xf] }
  0xea   : > { %v874_v41 = vrot.slane %v872_v34, 7  ;;  %v882_v42 = vrot.slane %v880_v36, 7  ;;  %v1918_v43 = vunpack.c.l.b16 %v1643_v31  ;;  %v3063_v47 = vrot.slane %v3624_v32, 9  ;;  %v3659_v29 = vld [vmem:[#allocation2 + $0x74] sm:$0x1] }
  0xeb   : > { %v787_v49 = vshrl.u32 %v646_v39, 16  ;;  %v790_v52 = vshll.u32 %v646_v39, 16  ;;  %v795_v53 = vshrl.u32 %v647_v40, 16  ;;  %v798_v57 = vshll.u32 %v647_v40, 16  ;;  %v3667_v36 = vld [vmem:[#allocation2 + $0x54] sm:$0xf] }
  0xec   : > { %v877_v59 = vor.u32 %v875_v35, %v874_v41  ;;  %v878_v56 = vrot.slane %v874_v41, 4  ;;  %v885_v6 = vor.u32 %v883_v37, %v882_v42  ;;  %v887_v60 = vrot.slane %v882_v42, 4  ;;  %v3669_v37 = vld [vmem:[#allocation2 + $0x58] sm:$0xf] }
  0xed   : > { %v789_v62 = vrot.slane %v787_v49, 7  ;;  %v797_v63 = vrot.slane %v795_v53, 7  ;;  %v1646_v0 = vsel %vm3438_vm11, %v1644_v55, %v1645_v5  ;;  %v1628_v50 = vrot.slane %v3633_v46, 5 }
  0xee   : > { %v886_v7 = vsel %vm3444_vm12, %v878_v56, %v885_v6  ;;  %v1079_v8 = vsel %vm3457_vm0, %v877_v59, %v1078_v38  ;;  %v1083_v9 = vsel %vm3466_vm1, %v887_v60, %v1082_v48  ;;  %v1919_v11 = vunpack.c.l.b16 %v1646_v0  ;;  %v3688_v60 = vld [vmem:[#allocation2 + $0x18] sm:$0xf]  ;;  %v530_v4 = vpop.permute.xlu1 %529 }
  0xef   : > { %1080 = vst [vmem:[#allocation2 + $0x9c] sm:$0xf] %v1079_v8  ;;  %v792_v14 = vor.u32 %v790_v52, %v789_v62  ;;  %v793_v15 = vrot.slane %v789_v62, 4  ;;  %v800_v16 = vor.u32 %v798_v57, %v797_v63  ;;  %v802_v17 = vrot.slane %v797_v63, 4  ;;  %v3699_v8 = vld [vmem:[#allocation2 + $0x90] sm:$0xf] }
  0xf0   : > { %1081 = vst.msk [vmem:[#allocation2 + $0xa0] sm:$0xf] %vm988_vm6, %v886_v7  ;;  %v3654_v20 = vpack.c.b16 %v1919_v11, %v1918_v43  ;;  %v1629_v22 = vsel %vm3438_vm11, %v3063_v47, %v1628_v50  ;;  %v1630_v24 = vrot.slane %v1628_v50, 4  ;;  %v1631_v25 = vrot.slane %v3639_v3, 5  ;;  %v3680_v47 = vld [vmem:[#allocation2 + $0x5c] sm:$0x1] }
  0xf1   : > { %1084 = vst [vmem:[#allocation2 + $0xa4] sm:$0x1] %v1083_v9  ;;  %v801_v30 = vsel %vm3444_vm12, %v793_v15, %v800_v16  ;;  %v1044_v31 = vsel %vm3457_vm0, %v792_v14, %v1043_v61  ;;  %v1048_v34 = vsel %vm3466_vm1, %v802_v17, %v1047_v10  ;;  %v1914_v35 = vunpack.c.l.b16 %v1629_v22  ;;  %v3690_v61 = vld [vmem:[#allocation2 + $0x1c] sm:$0xf]  ;;  %v3697_v7 = vld [vmem:[#allocation2 + $0x20] sm:$0x1] }
  0xf2   : > { %4849 = vst [vmem:[#allocation4_spill] sm:$0xff] %v3654_v20  ;;  %1966 = vrot.lane.b32.xlu2 %v3654_v20, %s3290_s6  ;;  %v1632_v38 = vsel %vm3438_vm11, %v1630_v24, %v1631_v25  ;;  %v568_v39 = vsel %vm535_vm3, %v3196_v12, %v524_v18  ;;  %v3068_v40 = vrot.slane %v3649_v13, 9  ;;  %v1663_v55 = vrot.slane %v3651_v2, 5  ;;  %v3703_v14 = vld [vmem:[#allocation2 + $0x94] sm:$0xf] }
  0xf3   : > { %1045 = vst [vmem:[#allocation2 + $0x60] sm:$0xf] %v1044_v31  ;;  %v1915_v5 = vunpack.c.l.b16 %v1632_v38  ;;  %v620_v41 = vunpack.c.l.b16 %v568_v39  ;;  %v621_v42 = vunpack.c.h.b16 %v568_v39  ;;  %v1666_v43 = vrot.slane %v3659_v29, 5  ;;  %v1064_v15 = vld [vmem:[#allocation2 + $0x84] sm:$0xf] }
  0xf4   : > { %1046 = vst.msk [vmem:[#allocation2 + $0x64] sm:$0xf] %vm988_vm6, %v801_v30  ;;  %v1664_v48 = vsel %vm3438_vm11, %v3068_v40, %v1663_v55  ;;  %v1665_v49 = vrot.slane %v1663_v55, 4  ;;  %v3066_v52 = vrot.slane %v3667_v36, 9  ;;  %v1649_v53 = vrot.slane %v3669_v37, 5 }
  0xf5   : > { %1049 = vst [vmem:[#allocation2 + $0x68] sm:$0x1] %v1048_v34  ;;  %v3686_v57 = vpack.c.b16 %v1915_v5, %v1914_v35  ;;  %v652_v59 = vpack.c.b16 %v620_v41, %v620_v41  ;;  %v653_v56 = vpack.c.b16 %v621_v42, %v621_v42  ;;  %v1924_v6 = vunpack.c.l.b16 %v1664_v48  ;;  %v1068_v24 = vld [vmem:[#allocation2 + $0x8c] sm:$0x1]  ;;  %v3712_v39 = vld [vmem:[#allocation2 + $0x98] sm:$0x1] }
  0xf6   : > { %v1667_v62 = vsel %vm3438_vm11, %v1665_v49, %v1666_v43  ;;  %v1650_v63 = vsel %vm3438_vm11, %v3066_v52, %v1649_v53  ;;  %v1651_v0 = vrot.slane %v1649_v53, 4  ;;  %v1652_v50 = vrot.slane %v3680_v47, 5  ;;  %4852 = vst [vmem:[#allocation7_spill] sm:$0xff] %v3712_v39  ;;  %v3716_v48 = vld [vmem:[#allocation2 + $0x78] sm:$0xf] }
  0xf7   : > { %4850 = vst [vmem:[#allocation5_spill] sm:$0xff] %v3686_v57  ;;  %1962 = vrot.lane.b32.xlu0 %v3686_v57, %s3290_s6  ;;  %v838_v9 = vshrl.u32 %v652_v59, 16  ;;  %v841_v10 = vshll.u32 %v652_v59, 16  ;;  %v846_v11 = vshrl.u32 %v653_v56, 16  ;;  %v849_v12 = vshll.u32 %v653_v56, 16 }
  0xf8   : > { %v1925_v16 = vunpack.c.l.b16 %v1667_v62  ;;  %v1653_v17 = vsel %vm3438_vm11, %v1651_v0, %v1652_v50  ;;  %v1920_v18 = vunpack.c.l.b16 %v1650_v63  ;;  %v3061_v22 = vrot.slane %v3688_v60, 9  ;;  %v3718_v49 = vld [vmem:[#allocation2 + $0x3c] sm:$0xf]  ;;  %v3730_v62 = vld [vmem:[#allocation2 + $0x80] sm:$0x1] }
  0xf9   : > { %v840_v25 = vrot.slane %v838_v9, 7  ;;  %v848_v30 = vrot.slane %v846_v11, 7  ;;  %v1921_v31 = vunpack.c.l.b16 %v1653_v17  ;;  %v1614_v34 = vrot.slane %v3690_v61, 5  ;;  %v3740_v11 = vld [vmem:[#allocation2 + $0x44] sm:$0x1] }
  0xfa   : > { %v3709_v35 = vpack.c.b16 %v1925_v16, %v1924_v6  ;;  %v1617_v38 = vrot.slane %v3697_v7, 5  ;;  %v3071_v40 = vrot.slane %v3699_v8, 9  ;;  %v1684_v55 = vrot.slane %v3703_v14, 5  ;;  %v3728_v6 = vld [vmem:[#allocation2 + $0x7c] sm:$0xf] }
  0xfb   : > { %v843_v5 = vor.u32 %v841_v10, %v840_v25  ;;  %v844_v41 = vrot.slane %v840_v25, 4  ;;  %v851_v42 = vor.u32 %v849_v12, %v848_v30  ;;  %v853_v43 = vrot.slane %v848_v30, 4  ;;  %v3738_v10 = vld [vmem:[#allocation2 + $0x40] sm:$0xf]  ;;  %v3742_v12 = vld [vmem:[#allocation2 + $0x9c] sm:$0xf] }
  0xfc   : > { %4851 = vst [vmem:[#allocation6_spill] sm:$0xff] %v3709_v35  ;;  %1972 = vrot.lane.b32.xlu2 %v3709_v35, %s3290_s6  ;;  %v3722_v52 = vpack.c.b16 %v1921_v31, %v1920_v18  ;;  %v1615_v53 = vsel %vm3438_vm11, %v3061_v22, %v1614_v34  ;;  %v1616_v59 = vrot.slane %v1614_v34, 4  ;;  %v1685_v56 = vsel %vm3438_vm11, %v3071_v40, %v1684_v55  ;;  %v3747_v25 = vld [vmem:[#allocation2 + $0xa0] sm:$0xf]  ;;  %v3199_v35 = vld [vmem:[%s3334_s22 + $0x68] sm:$0xff] }
  0xfd   : > { %v852_v63 = vsel %vm3444_vm12, %v844_v41, %v851_v42  ;;  %v1065_v0 = vsel %vm3457_vm0, %v843_v5, %v1064_v15  ;;  %v1069_v50 = vsel %vm3466_vm1, %v853_v43, %v1068_v24  ;;  %v1910_v9 = vunpack.c.l.b16 %v1615_v53  ;;  %v3764_v53 = vld [vmem:[#allocation2 + $0xa4] sm:$0x1] }
  0xfe   : > { %4853 = vst [vmem:[#allocation8_spill] sm:$0xff] %v3722_v52  ;;  %v1618_v16 = vsel %vm3438_vm11, %v1616_v59, %v1617_v38  ;;  %v1686_v17 = vrot.slane %v1684_v55, 4  ;;  %v1687_v18 = vrot.slane %v3712_v39, 5  ;;  %v1930_v22 = vunpack.c.l.b16 %v1685_v56  ;;  %v3766_v59 = vld [vmem:[#allocation2 + $0x60] sm:$0xf] }
  0xff   : > { %1066 = vst [vmem:[#allocation2 + $0x84] sm:$0xf] %v1065_v0  ;;  %1968 = vrot.lane.b32.xlu0 %v3722_v52, %s3290_s6  ;;  %v1911_v15 = vunpack.c.l.b16 %v1618_v16  ;;  %v3069_v24 = vrot.slane %v3716_v48, 9  ;;  %v1670_v30 = vrot.slane %v3728_v6, 5  ;;  %v1673_v31 = vrot.slane %v3730_v62, 5 }
 0x100   : > { %1067 = vst.msk [vmem:[#allocation2 + $0x88] sm:$0xf] %vm988_vm6, %v852_v63  ;;  %v1688_v34 = vsel %vm3438_vm11, %v1686_v17, %v1687_v18  ;;  %v3064_v38 = vrot.slane %v3718_v49, 9  ;;  %v1635_v40 = vrot.slane %v3738_v10, 5  ;;  %v1638_v55 = vrot.slane %v3740_v11, 5 }
 0x101   : > { %1070 = vst [vmem:[#allocation2 + $0x8c] sm:$0x1] %v1069_v50  ;;  %v3760_v5 = vpack.c.b16 %v1911_v15, %v1910_v9  ;;  %v1931_v41 = vunpack.c.l.b16 %v1688_v34  ;;  %v1671_v42 = vsel %vm3438_vm11, %v3069_v24, %v1670_v30  ;;  %v1672_v43 = vrot.slane %v1670_v30, 4  ;;  %v3771_v16 = vld [vmem:[#allocation2 + $0x64] sm:$0xf] }
 0x102   : > { %v1926_v56 = vunpack.c.l.b16 %v1671_v42  ;;  %v1636_v63 = vsel %vm3438_vm11, %v3064_v38, %v1635_v40  ;;  %v1637_v0 = vrot.slane %v1635_v40, 4  ;;  %v3072_v50 = vrot.slane %v3742_v12, 9  ;;  %v3780_v24 = vld [vmem:[#allocation2 + $0x68] sm:$0x1] }
 0x103   : > { %1958 = vrot.lane.b32.xlu1 %v3760_v5, %s3290_s6  ;;  %v3775_v9 = vpack.c.b16 %v1931_v41, %v1930_v22  ;;  %v1674_v17 = vsel %vm3438_vm11, %v1672_v43, %v1673_v31  ;;  %v1916_v18 = vunpack.c.l.b16 %v1636_v63  ;;  %v1691_v15 = vrot.slane %v3747_v25, 5 }
 0x104   : > { %v1927_v30 = vunpack.c.l.b16 %v1674_v17  ;;  %v1639_v34 = vsel %vm3438_vm11, %v1637_v0, %v1638_v55  ;;  %v1694_v38 = vrot.slane %v3764_v53, 5  ;;  %v3067_v40 = vrot.slane %v3766_v59, 9 }
 0x105   : > { %4854 = vst [vmem:[#allocation9_spill] sm:$0xff] %v3775_v9  ;;  %1978 = vrot.lane.b32.xlu2 %v3775_v9, %s3290_s6  ;;  %v1917_v22 = vunpack.c.l.b16 %v1639_v34  ;;  %v1692_v31 = vsel %vm3438_vm11, %v3072_v50, %v1691_v15  ;;  %v1693_v41 = vrot.slane %v1691_v15, 4  ;;  %v1656_v42 = vrot.slane %v3771_v16, 5 }
 0x106   : > { %v3791_v43 = vpack.c.b16 %v1927_v30, %v1926_v56  ;;  %v1932_v63 = vunpack.c.l.b16 %v1692_v31  ;;  %v1659_v55 = vrot.slane %v3780_v24, 5  ;;  %v1188_v0 = vshrl.u32 %v3569_v23, 16  ;;  %v3801_v15 = vld [vmem:[#allocation2 + $0x84] sm:$0xf] }
 0x107   : > { %v3795_v17 = vpack.c.b16 %v1917_v22, %v1916_v18  ;;  %v1695_v9 = vsel %vm3438_vm11, %v1693_v41, %v1694_v38  ;;  %v1657_v34 = vsel %vm3438_vm11, %v3067_v40, %v1656_v42  ;;  %v1658_v50 = vrot.slane %v1656_v42, 4  ;;  %v3806_v18 = vld [vmem:[#allocation2 + $0x88] sm:$0xf]  ;;  %v3200_v22 = vld [vmem:[%s3334_s22 + $0x70] sm:$0xff] }
 0x108   : > { %4855 = vst [vmem:[#allocation10_spill] sm:$0xff] %v3791_v43  ;;  %1974 = vrot.lane.b32.xlu0 %v3791_v43, %s3290_s6  ;;  %v1933_v56 = vunpack.c.l.b16 %v1695_v9  ;;  %v1922_v30 = vunpack.c.l.b16 %v1657_v34  ;;  %v1190_v31 = vrot.slane %v1188_v0, 4  ;;  %v1191_v52 = vshll.u32 %v3569_v23, 16  ;;  %v3814_v57 = vld [vmem:[#allocation2 + $0x8c] sm:$0x1]  ;;  %v532_v9 = vpop.permute.xlu2 %531 }
 0x109   : > { %4856 = vst [vmem:[#allocation11_spill] sm:$0xff] %v3795_v17  ;;  %v1660_v38 = vsel %vm3438_vm11, %v1658_v50, %v1659_v55  ;;  %v1197_v40 = vshll.u32 %v3575_v28, 16  ;;  %v1201_v41 = vshrl.u32 %v3575_v28, 16  ;;  %v1207_v42 = vshll.u32 %v3581_v33, 16 }
 0x10a   : > { %4857 = vst [vmem:[#allocation12_spill] sm:$0xff] %v3806_v18  ;;  %v3816_v43 = vpack.c.b16 %v1933_v56, %v1932_v63  ;;  %v1923_v0 = vunpack.c.l.b16 %v1660_v38  ;;  %v1193_v34 = vrot.slane %v1191_v52, 5  ;;  %v3070_v23 = vrot.slane %v3801_v15, 9 }
 0x10b   : > { %1964 = vrot.lane.b32.xlu1 %v3795_v17, %s3290_s6  ;;  %v1199_v55 = vrot.slane %v1197_v40, 5  ;;  %v1203_v50 = vrot.slane %v1201_v41, 4  ;;  %v1209_v20 = vrot.slane %v1207_v42, 5  ;;  %v1677_v28 = vrot.slane %v3806_v18, 5 }
 0x10c   : > { %4858 = vst [vmem:[#allocation13_spill] sm:$0xff] %v3816_v43  ;;  %v3823_v33 = vpack.c.b16 %v1923_v0, %v1922_v30  ;;  %v1194_v39 = vor.u32 %v1193_v34, %v1190_v31  ;;  %v1680_v63 = vrot.slane %v3814_v57, 5  ;;  %v580_v56 = vsel %vm535_vm3, %v3200_v22, %v532_v9 }
 0x10d   : > { %2061 = vrot.lane.b32.xlu2 %v3760_v5, %s3294_s10  ;;  %v1204_v52 = vor.u32 %v1203_v50, %v1199_v55  ;;  %v1678_v38 = vsel %vm3438_vm11, %v3070_v23, %v1677_v28  ;;  %v1679_v40 = vrot.slane %v1677_v28, 4  ;;  %v628_v41 = vunpack.c.l.b16 %v580_v56 }
 0x10e   : > { %v1195_v42 = vrot.slane %v1194_v39, 4  ;;  %v1928_v17 = vunpack.c.l.b16 %v1678_v38  ;;  %v629_v18 = vunpack.c.h.b16 %v580_v56  ;;  %v577_v30 = vsel %vm535_vm3, %v3199_v35, %v530_v4 }
 0x10f   : > { %v1205_v31 = vrot.slane %v1204_v52, 4  ;;  %v1681_v0 = vsel %vm3438_vm11, %v1679_v40, %v1680_v63  ;;  %v660_v22 = vpack.c.b16 %v628_v41, %v628_v41  ;;  %v626_v9 = vunpack.c.l.b16 %v577_v30 }
 0x110   : > { %1980 = vrot.lane.b32.xlu0 %v3816_v43, %s3290_s6  ;;  %v1200_v34 = vsel %vm3450_vm15, %v1195_v42, %v1199_v55  ;;  %v1929_v23 = vunpack.c.l.b16 %v1681_v0  ;;  %v661_v50 = vpack.c.b16 %v629_v18, %v629_v18  ;;  %v627_v28 = vunpack.c.h.b16 %v577_v30  ;;  %v1092_v30 = vld [vmem:[#allocation2 + $0xb4] sm:$0xf] }
 0x111   : > { %v1210_v39 = vsel %vm3450_vm15, %v1205_v31, %v1209_v20  ;;  %v1828_v56 = vunpack.c.l.b16 %v1200_v34  ;;  %v906_v4 = vshrl.u32 %v660_v22, 16  ;;  %v909_v35 = vshll.u32 %v660_v22, 16 }
 0x112   : > { %v1829_v52 = vunpack.c.l.b16 %v1210_v39  ;;  %v3840_v38 = vpack.c.b16 %v1929_v23, %v1928_v17  ;;  %v914_v63 = vshrl.u32 %v661_v50, 16  ;;  %v917_v40 = vshll.u32 %v661_v50, 16  ;;  %v1096_v17 = vld [vmem:[#allocation2 + $0xbc] sm:$0x1] }
 0x113   : > { %1970 = vrot.lane.b32.xlu1 %v3823_v33, %s3290_s6  ;;  %v908_v41 = vrot.slane %v906_v4, 7  ;;  %v658_v43 = vpack.c.b16 %v626_v9, %v626_v9  ;;  %v659_v55 = vpack.c.b16 %v627_v28, %v627_v28  ;;  %v1260_v18 = vshrl.u32 %v3624_v32, 16 }
 0x114   : > { %v3845_v42 = vpack.c.b16 %v1829_v52, %v1828_v56  ;;  %v916_v20 = vrot.slane %v914_v63, 7  ;;  %v1263_v31 = vshll.u32 %v3624_v32, 16  ;;  %v1269_v0 = vshll.u32 %v3633_v46, 16 }
 0x115   : > { %v911_v22 = vor.u32 %v909_v35, %v908_v41  ;;  %v912_v34 = vrot.slane %v908_v41, 4  ;;  %v889_v23 = vshrl.u32 %v658_v43, 16  ;;  %v892_v50 = vshll.u32 %v658_v43, 16 }
 0x116   : > { %1876 = vrot.lane.b32.xlu2 %v3845_v42, %s3291_s7  ;;  %v919_v9 = vor.u32 %v917_v40, %v916_v20  ;;  %v921_v28 = vrot.slane %v916_v20, 4  ;;  %v897_v39 = vshrl.u32 %v659_v55, 16  ;;  %v900_v4 = vshll.u32 %v659_v55, 16  ;;  %v1085_v40 = vld [vmem:[#allocation2 + $0xa8] sm:$0xf] }
 0x117   : > { %v1093_v56 = vsel %vm3457_vm0, %v911_v22, %v1092_v30  ;;  %v891_v52 = vrot.slane %v889_v23, 7  ;;  %v1262_v63 = vrot.slane %v1260_v18, 4  ;;  %v1265_v32 = vrot.slane %v1263_v31, 5  ;;  %v1089_v55 = vld [vmem:[#allocation2 + $0xb0] sm:$0x1] }
 0x118   : > { %2059 = vrot.lane.b32.xlu0 %v3616_v27, %s3294_s10  ;;  %v920_v35 = vsel %vm3444_vm12, %v912_v34, %v919_v9  ;;  %1094 = vst [vmem:[#allocation2 + $0xb4] sm:$0xf] %v1093_v56  ;;  %v1097_v43 = vsel %vm3466_vm1, %v921_v28, %v1096_v17  ;;  %v899_v41 = vrot.slane %v897_v39, 7  ;;  %v1271_v20 = vrot.slane %v1269_v0, 5 }
 0x119   : > { %1095 = vst.msk [vmem:[#allocation2 + $0xb8] sm:$0xf] %vm988_vm6, %v920_v35  ;;  %v894_v30 = vor.u32 %v892_v50, %v891_v52  ;;  %v895_v22 = vrot.slane %v891_v52, 4  ;;  %v1266_v18 = vor.u32 %v1265_v32, %v1262_v63  ;;  %v1273_v31 = vshrl.u32 %v3633_v46, 16 }
 0x11a   : > { %1098 = vst [vmem:[#allocation2 + $0xbc] sm:$0x1] %v1097_v43  ;;  %v902_v27 = vor.u32 %v900_v4, %v899_v41  ;;  %v904_v23 = vrot.slane %v899_v41, 4  ;;  %v1279_v34 = vshll.u32 %v3639_v3, 16  ;;  %v1236_v9 = vshrl.u32 %v3552_v58, 16 }
 0x11b   : > { %1976 = vrot.lane.b32.xlu1 %v3840_v38, %s3290_s6  ;;  %v1086_v0 = vsel %vm3457_vm0, %v894_v30, %v1085_v40  ;;  %v1267_v17 = vrot.slane %v1266_v18, 4  ;;  %v1275_v28 = vrot.slane %v1273_v31, 4  ;;  %v1239_v50 = vshll.u32 %v3552_v58, 16 }
 0x11c   : > { %v903_v46 = vsel %vm3444_vm12, %v895_v22, %v902_v27  ;;  %1087 = vst [vmem:[#allocation2 + $0xa8] sm:$0xf] %v1086_v0  ;;  %v1090_v39 = vsel %vm3466_vm1, %v904_v23, %v1089_v55  ;;  %v1281_v3 = vrot.slane %v1279_v34, 5  ;;  %v1238_v4 = vrot.slane %v1236_v9, 4 }
 0x11d   : > { %1088 = vst.msk [vmem:[#allocation2 + $0xac] sm:$0xf] %vm988_vm6, %v903_v46  ;;  %v1272_v56 = vsel %vm3450_vm15, %v1267_v17, %v1271_v20  ;;  %v1276_v52 = vor.u32 %v1275_v28, %v1271_v20  ;;  %v1241_v63 = vrot.slane %v1239_v50, 5  ;;  %v1245_v32 = vshll.u32 %v3562_v19, 16 }
 0x11e   : > { %1091 = vst [vmem:[#allocation2 + $0xb0] sm:$0x1] %v1090_v39  ;;  %v1834_v58 = vunpack.c.l.b16 %v1272_v56  ;;  %v1249_v35 = vshrl.u32 %v3562_v19, 16  ;;  %v1255_v43 = vshll.u32 %v3566_v21, 16  ;;  %v1212_v40 = vshrl.u32 %v3688_v60, 16 }
 0x11f   : > { %v1277_v41 = vrot.slane %v1276_v52, 4  ;;  %v1242_v55 = vor.u32 %v1241_v63, %v1238_v4  ;;  %v1247_v30 = vrot.slane %v1245_v32, 5  ;;  %v1215_v22 = vshll.u32 %v3688_v60, 16 }
 0x120   : > { %2164 = vrot.lane.b32.xlu0 %v3760_v5, %s3295_s11  ;;  %v1251_v20 = vrot.slane %v1249_v35, 4  ;;  %v1257_v18 = vrot.slane %v1255_v43, 5  ;;  %v1214_v31 = vrot.slane %v1212_v40, 4  ;;  %v1221_v27 = vshll.u32 %v3690_v61, 16 }
 0x121   : > { %v1282_v19 = vsel %vm3450_vm15, %v1277_v41, %v1281_v3  ;;  %v1243_v21 = vrot.slane %v1242_v55, 4  ;;  %v1217_v23 = vrot.slane %v1215_v22, 5  ;;  %v1225_v34 = vshrl.u32 %v3690_v61, 16 }
 0x122   : > { %v1835_v9 = vunpack.c.l.b16 %v1282_v19  ;;  %v1252_v0 = vor.u32 %v1251_v20, %v1247_v30  ;;  %v1223_v17 = vrot.slane %v1221_v27, 5  ;;  %v1231_v60 = vshll.u32 %v3697_v7, 16 }
 0x123   : > { %v1248_v5 = vsel %vm3450_vm15, %v1243_v21, %v1247_v30  ;;  %v1218_v28 = vor.u32 %v1217_v23, %v1214_v31  ;;  %v1227_v50 = vrot.slane %v1225_v34, 4  ;;  %v1332_v46 = vshrl.u32 %v3667_v36, 16  ;;  %v3274_v21 = vld [vmem:[#allocation2 + $0x48] sm:$0xf] }
 0x124   : > { %v3890_v39 = vpack.c.b16 %v1835_v9, %v1834_v58  ;;  %v1253_v4 = vrot.slane %v1252_v0, 4  ;;  %v1832_v3 = vunpack.c.l.b16 %v1248_v5  ;;  %v1233_v56 = vrot.slane %v1231_v60, 5  ;;  %v3275_v9 = vld [vmem:[#allocation2 + $0x4c] sm:$0xf] }
 0x125   : > { %v1219_v52 = vrot.slane %v1218_v28, 4  ;;  %v1228_v63 = vor.u32 %v1227_v50, %v1223_v17  ;;  %v1334_v61 = vrot.slane %v1332_v46, 4  ;;  %v1335_v32 = vshll.u32 %v3667_v36, 16 }
 0x126   : > { %1882 = vrot.lane.b32.xlu2 %v3890_v39, %s3291_s7  ;;  %v1258_v7 = vsel %vm3450_vm15, %v1253_v4, %v1257_v18  ;;  %v1341_v35 = vshll.u32 %v3669_v37, 16  ;;  %v1345_v43 = vshrl.u32 %v3669_v37, 16  ;;  %v1351_v58 = vshll.u32 %v3680_v47, 16 }
 0x127   : > { %v1833_v40 = vunpack.c.l.b16 %v1258_v7  ;;  %v1224_v41 = vsel %vm3450_vm15, %v1219_v52, %v1223_v17  ;;  %v1229_v55 = vrot.slane %v1228_v63, 4  ;;  %v1337_v30 = vrot.slane %v1335_v32, 5 }
 0x128   : > { %v1830_v22 = vunpack.c.l.b16 %v1224_v41  ;;  %v1343_v36 = vrot.slane %v1341_v35, 5  ;;  %v1347_v20 = vrot.slane %v1345_v43, 4  ;;  %v1353_v31 = vrot.slane %v1351_v58, 5 }
 0x129   : > { %v3902_v27 = vpack.c.b16 %v1833_v40, %v1832_v3  ;;  %v1234_v18 = vsel %vm3450_vm15, %v1229_v55, %v1233_v56  ;;  %v1338_v19 = vor.u32 %v1337_v30, %v1334_v61  ;;  %v1308_v37 = vshrl.u32 %v3274_v21, 16 }
 0x12a   : > { %v1831_v23 = vunpack.c.l.b16 %v1234_v18  ;;  %v1348_v47 = vor.u32 %v1347_v20, %v1343_v36  ;;  %v1311_v34 = vshll.u32 %v3274_v21, 16  ;;  %v1317_v0 = vshll.u32 %v3275_v9, 16 }
 0x12b   : > { %1880 = vrot.lane.b32.xlu1 %v3902_v27, %s3291_s7  ;;  %v1339_v17 = vrot.slane %v1338_v19, 4  ;;  %v1310_v60 = vrot.slane %v1308_v37, 4  ;;  %v1321_v5 = vshrl.u32 %v3275_v9, 16  ;;  %v1327_v28 = vshll.u32 %v3613_v26, 16 }
 0x12c   : > { %v3909_v50 = vpack.c.b16 %v1831_v23, %v1830_v22  ;;  %v1349_v46 = vrot.slane %v1348_v47, 4  ;;  %v1313_v4 = vrot.slane %v1311_v34, 5  ;;  %v1319_v3 = vrot.slane %v1317_v0, 5 }
 0x12d   : > { %v1344_v56 = vsel %vm3450_vm15, %v1339_v17, %v1343_v36  ;;  %v1323_v52 = vrot.slane %v1321_v5, 4  ;;  %v1329_v63 = vrot.slane %v1327_v28, 5  ;;  %v1284_v61 = vshrl.u32 %v3718_v49, 16  ;;  %v3933_v5 = vpop.permute.xlu2 %1954 }
 0x12e   : > { %1878 = vrot.lane.b32.xlu0 %v3909_v50, %s3291_s7  ;;  %v1354_v32 = vsel %vm3450_vm15, %v1349_v46, %v1353_v31  ;;  %v1840_v7 = vunpack.c.l.b16 %v1344_v56  ;;  %v1314_v26 = vor.u32 %v1313_v4, %v1310_v60  ;;  %v1287_v35 = vshll.u32 %v3718_v49, 16 }
 0x12f   : > { %v1841_v43 = vunpack.c.l.b16 %v1354_v32  ;;  %v1324_v58 = vor.u32 %v1323_v52, %v1319_v3  ;;  %v1286_v40 = vrot.slane %v1284_v61, 4  ;;  %v1293_v41 = vshll.u32 %v3738_v10, 16 }
 0x130   : > { %v1315_v55 = vrot.slane %v1314_v26, 4  ;;  %v1289_v30 = vrot.slane %v1287_v35, 5  ;;  %v1297_v22 = vshrl.u32 %v3738_v10, 16  ;;  %v1303_v36 = vshll.u32 %v3740_v11, 16 }
 0x131   : > { %v3922_v20 = vpack.c.b16 %v1841_v43, %v1840_v7  ;;  %v1325_v18 = vrot.slane %v1324_v58, 4  ;;  %v1295_v19 = vrot.slane %v1293_v41, 5  ;;  %v1404_v31 = vshrl.u32 %v3716_v48, 16 }
 0x132   : > { %v1320_v49 = vsel %vm3450_vm15, %v1315_v55, %v1319_v3  ;;  %v1290_v21 = vor.u32 %v1289_v30, %v1286_v40  ;;  %v1299_v37 = vrot.slane %v1297_v22, 4  ;;  %v1305_v23 = vrot.slane %v1303_v36, 5 }
 0x133   : > { %1888 = vrot.lane.b32.xlu2 %v3922_v20, %s3291_s7  ;;  %v1330_v10 = vsel %vm3450_vm15, %v1325_v18, %v1329_v63  ;;  %v1838_v47 = vunpack.c.l.b16 %v1320_v49  ;;  %v1406_v11 = vrot.slane %v1404_v31, 4  ;;  %v1407_v34 = vshll.u32 %v3716_v48, 16 }
 0x134   : > { %v1839_v9 = vunpack.c.l.b16 %v1330_v10  ;;  %v1291_v0 = vrot.slane %v1290_v21, 4  ;;  %v1300_v17 = vor.u32 %v1299_v37, %v1295_v19  ;;  %v1413_v60 = vshll.u32 %v3728_v6, 16 }
 0x135   : > { %v1409_v28 = vrot.slane %v1407_v34, 5  ;;  %v1417_v46 = vshrl.u32 %v3728_v6, 16  ;;  %v1423_v4 = vshll.u32 %v3730_v62, 16  ;;  %v1380_v3 = vshrl.u32 %v3649_v13, 16 }
 0x136   : > { %v3938_v56 = vpack.c.b16 %v1839_v9, %v1838_v47  ;;  %v1296_v52 = vsel %vm3450_vm15, %v1291_v0, %v1295_v19  ;;  %v1301_v48 = vrot.slane %v1300_v17, 4  ;;  %v1415_v63 = vrot.slane %v1413_v60, 5  ;;  %v3963_v60 = vpop.permute.xlu2 %1997 }
 0x137   : > { %v1836_v61 = vunpack.c.l.b16 %v1296_v52  ;;  %v1410_v32 = vor.u32 %v1409_v28, %v1406_v11  ;;  %v1419_v7 = vrot.slane %v1417_v46, 4  ;;  %v1425_v26 = vrot.slane %v1423_v4, 5 }
 0x138   : > { %1886 = vrot.lane.b32.xlu1 %v3938_v56, %s3291_s7  ;;  %v1306_v6 = vsel %vm3450_vm15, %v1301_v48, %v1305_v23  ;;  %v1382_v62 = vrot.slane %v1380_v3, 4  ;;  %v1383_v35 = vshll.u32 %v3649_v13, 16  ;;  %v1389_v43 = vshll.u32 %v3651_v2, 16 }
 0x139   : > { %v1837_v58 = vunpack.c.l.b16 %v1306_v6  ;;  %v1411_v40 = vrot.slane %v1410_v32, 4  ;;  %v1420_v41 = vor.u32 %v1419_v7, %v1415_v63  ;;  %v1393_v55 = vshrl.u32 %v3651_v2, 16 }
 0x13a   : > { %v1385_v30 = vrot.slane %v1383_v35, 5  ;;  %v1391_v22 = vrot.slane %v1389_v43, 5  ;;  %v1399_v36 = vshll.u32 %v3659_v29, 16  ;;  %v1356_v18 = vshrl.u32 %v3766_v59, 16 }
 0x13b   : > { %v3951_v19 = vpack.c.b16 %v1837_v58, %v1836_v61  ;;  %v1416_v31 = vsel %vm3450_vm15, %v1411_v40, %v1415_v63  ;;  %v1421_v49 = vrot.slane %v1420_v41, 4  ;;  %v1395_v13 = vrot.slane %v1393_v55, 4 }
 0x13c   : > { %v1846_v21 = vunpack.c.l.b16 %v1416_v31  ;;  %v1386_v37 = vor.u32 %v1385_v30, %v1382_v62  ;;  %v1401_v23 = vrot.slane %v1399_v36, 5  ;;  %v1358_v10 = vrot.slane %v1356_v18, 4 }
 0x13d   : > { %1884 = vrot.lane.b32.xlu0 %v3951_v19, %s3291_s7  ;;  %v1426_v2 = vsel %vm3450_vm15, %v1421_v49, %v1425_v26  ;;  %v1396_v29 = vor.u32 %v1395_v13, %v1391_v22  ;;  %v1359_v47 = vshll.u32 %v3766_v59, 16  ;;  %v1365_v11 = vshll.u32 %v3771_v16, 16 }
 0x13e   : > { %v1847_v34 = vunpack.c.l.b16 %v1426_v2  ;;  %v1387_v9 = vrot.slane %v1386_v37, 4  ;;  %v1369_v0 = vshrl.u32 %v3771_v16, 16  ;;  %v1375_v17 = vshll.u32 %v3780_v24, 16 }
 0x13f   : > { %v1397_v28 = vrot.slane %v1396_v29, 4  ;;  %v1361_v46 = vrot.slane %v1359_v47, 5  ;;  %v1367_v4 = vrot.slane %v1365_v11, 5  ;;  %v1476_v3 = vshrl.u32 %v3742_v12, 16  ;;  %v4859_v11 = vld [vmem:[#allocation7_spill] sm:$0xff] }
 0x140   : > { %v3966_v52 = vpack.c.b16 %v1847_v34, %v1846_v21  ;;  %v1392_v59 = vsel %vm3450_vm15, %v1387_v9, %v1391_v22  ;;  %v1371_v48 = vrot.slane %v1369_v0, 4  ;;  %v1377_v63 = vrot.slane %v1375_v17, 5 }
 0x141   : > { %v1402_v61 = vsel %vm3450_vm15, %v1397_v28, %v1401_v23  ;;  %v1844_v16 = vunpack.c.l.b16 %v1392_v59  ;;  %v1362_v32 = vor.u32 %v1361_v46, %v1358_v10  ;;  %v1478_v24 = vrot.slane %v1476_v3, 4 }
 0x142   : > { %1894 = vrot.lane.b32.xlu2 %v3966_v52, %s3291_s7  ;;  %v1845_v7 = vunpack.c.l.b16 %v1402_v61  ;;  %v1372_v26 = vor.u32 %v1371_v48, %v1367_v4  ;;  %v1479_v6 = vshll.u32 %v3742_v12, 16  ;;  %v1485_v62 = vshll.u32 %v3747_v25, 16  ;;  %v3988_v21 = vpop.permute.xlu2 %1960  ;;  %v3998_v48 = vld [vmem:[#allocation2 + $0xb4] sm:$0xf] }
 0x143   : > { %v1363_v35 = vrot.slane %v1362_v32, 4  ;;  %v1489_v43 = vshrl.u32 %v3747_v25, 16  ;;  %v1495_v58 = vshll.u32 %v3764_v53, 16  ;;  %v1452_v40 = vshrl.u32 %v3699_v8, 16 }
 0x144   : > { %v3979_v41 = vpack.c.b16 %v1845_v7, %v1844_v16  ;;  %v1373_v55 = vrot.slane %v1372_v26, 4  ;;  %v1481_v30 = vrot.slane %v1479_v6, 5  ;;  %v1487_v22 = vrot.slane %v1485_v62, 5  ;;  %v4860_v7 = vld [vmem:[#allocation12_spill] sm:$0xff] }
 0x145   : > { %v1368_v36 = vsel %vm3450_vm15, %v1363_v35, %v1367_v4  ;;  %v1491_v18 = vrot.slane %v1489_v43, 4  ;;  %v1497_v31 = vrot.slane %v1495_v58, 5  ;;  %v1454_v12 = vrot.slane %v1452_v40, 4 }
 0x146   : > { %1892 = vrot.lane.b32.xlu1 %v3979_v41, %s3291_s7  ;;  %v1378_v25 = vsel %vm3450_vm15, %v1373_v55, %v1377_v63  ;;  %v1842_v53 = vunpack.c.l.b16 %v1368_v36  ;;  %v1482_v49 = vor.u32 %v1481_v30, %v1478_v24  ;;  %v1455_v13 = vshll.u32 %v3699_v8, 16  ;;  %v4015_v36 = vld [vmem:[#allocation2 + $0xbc] sm:$0x1] }
 0x147   : > { %v1843_v37 = vunpack.c.l.b16 %v1378_v25  ;;  %v1492_v23 = vor.u32 %v1491_v18, %v1487_v22  ;;  %v1461_v10 = vshll.u32 %v3703_v14, 16  ;;  %v1465_v2 = vshrl.u32 %v3703_v14, 16 }
 0x148   : > { %v1483_v29 = vrot.slane %v1482_v49, 4  ;;  %v1457_v47 = vrot.slane %v1455_v13, 5  ;;  %v1471_v34 = vshll.u32 %v4859_v11, 16  ;;  %v1428_v9 = vshrl.u32 %v3801_v15, 16  ;;  %v4021_v49 = vld [vmem:[#allocation2 + $0xa8] sm:$0xf] }
 0x149   : > { %v3994_v0 = vpack.c.b16 %v1843_v37, %v1842_v53  ;;  %v1493_v17 = vrot.slane %v1492_v23, 4  ;;  %v1463_v28 = vrot.slane %v1461_v10, 5  ;;  %v1467_v46 = vrot.slane %v1465_v2, 4 }
 0x14a   : > { %v1488_v8 = vsel %vm3450_vm15, %v1483_v29, %v1487_v22  ;;  %v1458_v4 = vor.u32 %v1457_v47, %v1454_v12  ;;  %v1473_v3 = vrot.slane %v1471_v34, 5  ;;  %v1430_v59 = vrot.slane %v1428_v9, 4 }
 0x14b   : > { %1890 = vrot.lane.b32.xlu0 %v3994_v0, %s3291_s7  ;;  %v1498_v14 = vsel %vm3450_vm15, %v1493_v17, %v1497_v31  ;;  %v1852_v63 = vunpack.c.l.b16 %v1488_v8  ;;  %v1468_v61 = vor.u32 %v1467_v46, %v1463_v28  ;;  %v1431_v16 = vshll.u32 %v3801_v15, 16  ;;  %v4013_v15 = vld [vmem:[#allocation2 + $0xb8] sm:$0xf]  ;;  %v1875_v31 = vpop.permute.xlu1 %1874 }
 0x14c   : > { %v1853_v32 = vunpack.c.l.b16 %v1498_v14  ;;  %v1459_v24 = vrot.slane %v1458_v4, 4  ;;  %v1437_v26 = vshll.u32 %v4860_v7, 16  ;;  %v1441_v6 = vshrl.u32 %v4860_v7, 16  ;;  %v4017_v18 = vpop.permute.xlu2 %1966  ;;  %v4036_v14 = vld [vmem:[#allocation2 + $0xb0] sm:$0x1] }
 0x14d   : > { %v1469_v62 = vrot.slane %v1468_v61, 4  ;;  %v1433_v35 = vrot.slane %v1431_v16, 5  ;;  %v1447_v43 = vshll.u32 %v3814_v57, 16  ;;  %v1524_v58 = vshrl.u32 %v3998_v48, 16 }
 0x14e   : > { %v4009_v40 = vpack.c.b16 %v1853_v32, %v1852_v63  ;;  %v1464_v55 = vsel %vm3450_vm15, %v1459_v24, %v1463_v28  ;;  %v1439_v30 = vrot.slane %v1437_v26, 5  ;;  %v1443_v22 = vrot.slane %v1441_v6, 4  ;;  %v4031_v28 = vld [vmem:[#allocation2 + $0xac] sm:$0xf]  ;;  %v3218_v24 = vld [vmem:[#allocation2] sm:$0xff] }
 0x14f   : > { %v1474_v12 = vsel %vm3450_vm15, %v1469_v62, %v1473_v3  ;;  %v1850_v57 = vunpack.c.l.b16 %v1464_v55  ;;  %v1434_v25 = vor.u32 %v1433_v35, %v1430_v59  ;;  %v1449_v53 = vrot.slane %v1447_v43, 5  ;;  %v3201_v35 = vld [vmem:[%s3334_s22 + $0x78] sm:$0xff] }
 0x150   : > { %1900 = vrot.lane.b32.xlu2 %v4009_v40, %s3291_s7  ;;  %v1851_v13 = vunpack.c.l.b16 %v1474_v12  ;;  %v1444_v37 = vor.u32 %v1443_v22, %v1439_v30  ;;  %v1526_v23 = vrot.slane %v1524_v58, 4  ;;  %v1527_v10 = vshll.u32 %v3998_v48, 16 }
 0x151   : > { %v1435_v2 = vrot.slane %v1434_v25, 4  ;;  %v1533_v29 = vshll.u32 %v4013_v15, 16  ;;  %v1537_v47 = vshrl.u32 %v4013_v15, 16  ;;  %v1543_v11 = vshll.u32 %v4015_v36, 16 }
 0x152   : > { %v4029_v34 = vpack.c.b16 %v1851_v13, %v1850_v57  ;;  %v1445_v9 = vrot.slane %v1444_v37, 4  ;;  %v1529_v17 = vrot.slane %v1527_v10, 5  ;;  %v1500_v46 = vshrl.u32 %v4021_v49, 16 }
 0x153   : > { %v1440_v8 = vsel %vm3450_vm15, %v1435_v2, %v1439_v30  ;;  %v1535_v4 = vrot.slane %v1533_v29, 5  ;;  %v1539_v3 = vrot.slane %v1537_v47, 4  ;;  %v1545_v59 = vrot.slane %v1543_v11, 5  ;;  %v534_v30 = vpop.permute.xlu0 %533  ;;  %v4051_v13 = vpop.permute.xlu1 %1989 }
 0x154   : > { %1898 = vrot.lane.b32.xlu1 %v4029_v34, %s3291_s7  ;;  %v1450_v63 = vsel %vm3450_vm15, %v1445_v9, %v1449_v53  ;;  %v1848_v61 = vunpack.c.l.b16 %v1440_v8  ;;  %v1530_v16 = vor.u32 %v1529_v17, %v1526_v23  ;;  %v1502_v32 = vrot.slane %v1500_v46, 4 }
 0x155   : > { %v1849_v7 = vunpack.c.l.b16 %v1450_v63  ;;  %v1540_v26 = vor.u32 %v1539_v3, %v1535_v4  ;;  %v1503_v6 = vshll.u32 %v4021_v49, 16  ;;  %v1509_v62 = vshll.u32 %v4031_v28, 16 }
 0x156   : > { %v1531_v43 = vrot.slane %v1530_v16, 4  ;;  %v1513_v58 = vshrl.u32 %v4031_v28, 16  ;;  %v1519_v55 = vshll.u32 %v4036_v14, 16  ;;  %v4047_v22 = vpop.permute.xlu2 %1972  ;;  %v2199_v2 = vsel %vm2196_vm2, %v3218_v24, %v1875_v31 }
 0x157   : > { %v4049_v12 = vpack.c.b16 %v1849_v7, %v1848_v61  ;;  %v1541_v57 = vrot.slane %v1540_v26, 4  ;;  %v1505_v25 = vrot.slane %v1503_v6, 5  ;;  %v1511_v53 = vrot.slane %v1509_v62, 5 }
 0x158   : > { %2024 = vrot.lane.b32.xlu2 %v3845_v42, %s3296_s12  ;;  %v1536_v37 = vsel %vm3450_vm15, %v1531_v43, %v1535_v4  ;;  %v1515_v23 = vrot.slane %v1513_v58, 4  ;;  %v1521_v10 = vrot.slane %v1519_v55, 5  ;;  %v583_v9 = vsel %vm535_vm3, %v3201_v35, %v534_v30 }
 0x159   : > { %1896 = vrot.lane.b32.xlu0 %v4049_v12, %s3291_s7  ;;  %v1546_v29 = vsel %vm3450_vm15, %v1541_v57, %v1545_v59  ;;  %v1856_v47 = vunpack.c.l.b16 %v1536_v37  ;;  %v1506_v11 = vor.u32 %v1505_v25, %v1502_v32  ;;  %v630_v42 = vunpack.c.l.b16 %v583_v9  ;;  %v1099_v25 = vld [vmem:[#allocation2 + $0xc0] sm:$0xf] }
 0x15a   : > { %v1857_v17 = vunpack.c.l.b16 %v1546_v29  ;;  %v1516_v46 = vor.u32 %v1515_v23, %v1511_v53  ;;  %v631_v8 = vunpack.c.h.b16 %v583_v9  ;;  %v3073_v4 = vrot.slane %v4021_v49, 9 }
 0x15b   : > { %v1507_v3 = vrot.slane %v1506_v11, 4  ;;  %v662_v61 = vpack.c.b16 %v630_v42, %v630_v42  ;;  %v4070_v32 = vsel %vm2245_vm4, %v2199_v2, %v3933_v5  ;;  %v1698_v24 = vrot.slane %v4031_v28, 5  ;;  %v4087_v37 = vpop.permute.xlu1 %2094  ;;  %v1103_v2 = vld [vmem:[#allocation2 + $0xc8] sm:$0x1]  ;;  %v1957_v45 = vpop.permute.xlu0 %1956 }
 0x15c   : > { %v4064_v63 = vpack.c.b16 %v1857_v17, %v1856_v47  ;;  %v1517_v31 = vrot.slane %v1516_v46, 4  ;;  %v663_v16 = vpack.c.b16 %v631_v8, %v631_v8  ;;  %v1701_v7 = vrot.slane %v4036_v14, 5 }
 0x15d   : > { %v1512_v59 = vsel %vm3450_vm15, %v1507_v3, %v1511_v53  ;;  %v923_v6 = vshrl.u32 %v662_v61, 16  ;;  %v926_v62 = vshll.u32 %v662_v61, 16  ;;  %v1699_v28 = vsel %vm3438_vm11, %v3073_v4, %v1698_v24  ;;  %v4107_v61 = vld [vmem:[#allocation2 + $0x48] sm:$0xff] }
 0x15e   : > { %1904 = vrot.lane.b32.xlu1 %v4064_v63, %s3291_s7  ;;  %v1522_v49 = vsel %vm3450_vm15, %v1517_v31, %v1521_v10  ;;  %v1854_v26 = vunpack.c.l.b16 %v1512_v59  ;;  %v931_v43 = vshrl.u32 %v663_v16, 16  ;;  %v934_v58 = vshll.u32 %v663_v16, 16 }
 0x15f   : > { %v1855_v35 = vunpack.c.l.b16 %v1522_v49  ;;  %v4078_v55 = vpop.permute.xlu2 %1978  ;;  %v925_v5 = vrot.slane %v923_v6, 7  ;;  %v1700_v14 = vrot.slane %v1698_v24, 4  ;;  %v3074_v30 = vrot.slane %v3998_v48, 9  ;;  %v4861_v49 = vld [vmem:[#allocation3_spill] sm:$0xff] }
 0x160   : > { %2129 = vrot.lane.b32.xlu2 %v3909_v50, %s3297_s13  ;;  %v933_v53 = vrot.slane %v931_v43, 7  ;;  %v1934_v23 = vunpack.c.l.b16 %v1699_v28  ;;  %v1705_v10 = vrot.slane %v4013_v15, 5  ;;  %v1708_v9 = vrot.slane %v4015_v36, 5  ;;  %v4138_v28 = vld [vmem:[#allocation2 + $0x6c] sm:$0xff] }
 0x161   : > { %v4085_v57 = vpack.c.b16 %v1855_v35, %v1854_v26  ;;  %v928_v29 = vor.u32 %v926_v62, %v925_v5  ;;  %v929_v47 = vrot.slane %v925_v5, 4  ;;  %v1702_v11 = vsel %vm3438_vm11, %v1700_v14, %v1701_v7  ;;  %v4120_v7 = vld [vmem:[#allocation2 + $0x24] sm:$0xff]  ;;  %v3276_v62 = vld [vmem:[#allocation2 + $0xc] sm:$0xff] }
 0x162   : > { %v936_v48 = vor.u32 %v934_v58, %v933_v53  ;;  %v938_v17 = vrot.slane %v933_v53, 4  ;;  %v1935_v46 = vunpack.c.l.b16 %v1702_v11  ;;  %v1706_v42 = vsel %vm3438_vm11, %v3074_v30, %v1705_v10  ;;  %v4862_v58 = vld [vmem:[#allocation11_spill] sm:$0xff]  ;;  %v4142_v14 = vld [vmem:[#allocation2 + $0x30] sm:$0xff] }
 0x163   : > { %1902 = vrot.lane.b32.xlu0 %v4085_v57, %s3291_s7  ;;  %v1100_v15 = vsel %vm3457_vm0, %v928_v29, %v1099_v25  ;;  %v1707_v8 = vrot.slane %v1705_v10, 4  ;;  %v1936_v31 = vunpack.c.l.b16 %v1706_v42  ;;  %v1992_v24 = vpop.permute.xlu1 %1991  ;;  %v4863_v10 = vld [vmem:[#allocation4_spill] sm:$0xff]  ;;  %v4864_v11 = vld [vmem:[#allocation6_spill] sm:$0xff] }
 0x164   : > { %v937_v3 = vsel %vm3444_vm12, %v929_v47, %v936_v48  ;;  %1101 = vst [vmem:[#allocation2 + $0xc0] sm:$0xf] %v1100_v15  ;;  %v1104_v36 = vsel %vm3466_vm1, %v938_v17, %v1103_v2  ;;  %v4103_v4 = vpack.c.b16 %v1935_v46, %v1934_v23  ;;  %v4155_v2 = vld [vmem:[#allocation2 + $0x78] sm:$0xff]  ;;  %v2484_v46 = vld [vmem:[%s4814_s2 + $0x20] sm:$0xf]  ;;  %vm2443_vm12 = vcmask 523264  }
 0x165   : > { %1102 = vst.msk [vmem:[#allocation2 + $0xc4] sm:$0xf] %vm988_vm6, %v937_v3  ;;  %v1709_v54 = vsel %vm3438_vm11, %v1707_v8, %v1708_v9  ;;  %v4165_v9 = vld [vmem:[#allocation2 + $0x54] sm:$0xff]  ;;  %v2502_v15 = vunpack.c.l.b16 %v2484_v46  ;;  %vm2545_vm6 = vcmask 1043456  }
 0x166   : > { %2032 = vrot.lane.b32.xlu1 %v3951_v19, %s3296_s12  ;;  %1105 = vst [vmem:[#allocation2 + $0xc8] sm:$0x1] %v1104_v36  ;;  %v1937_v59 = vunpack.c.l.b16 %v1709_v54  ;;  %v4865_v36 = vld [vmem:[#allocation10_spill] sm:$0xff] }
 0x167   : > { %v4112_v16 = vpop.permute.xlu2 %2061  ;;  %v2507_v8 = vpack.c.b16 %v2502_v15, %v2502_v15  ;;  %v2280_v15 = vsel %vm2278_vm5, %v4070_v32, %v4051_v13 }
 0x168   : > { %2102 = vrot.lane.b32.xlu2 %v4107_v61, %s3293_s9  ;;  %v4116_v1 = vpack.c.b16 %v1937_v59, %v1936_v31  ;;  %v3238_v59 = vld [vmem:[%s4814_s2 + $0x10] sm:$0xff] }
 0x169   : > { %v1963_v6 = vpop.permute.xlu0 %1962  ;;  %v2547_v54 = vsel %vm2545_vm6, %v2507_v8, 0  ;;  %v4867_v8 = vld [vmem:[#allocation8_spill] sm:$0xff] }
 0x16a   : > { %2552 = vmatpush.bf16.msra.mxu0 %v2547_v54  ;;  %3240 = vmatpush.bf16.msra.mxu1 %v2547_v54 }
 0x16b   : > { %2026 = vrot.lane.b32.xlu0 %v3909_v50, %s3296_s12  ;;  %3241 = vmatpush.bf16.msra.mxu2 %v2547_v54 }
 0x16c   : > { %3242 = vmatpush.bf16.msra.mxu3 %v2547_v54  ;;  %v3277_v54 = vld [vmem:[#allocation2 + $0x18] sm:$0xff] }
 0x16e   : > { %2096 = vrot.lane.b32.xlu1 %v4120_v7, %s3293_s9 }
 0x170   : > { %2166 = vrot.lane.b32.xlu2 %v4861_v49, %s3295_s11  ;;  %v1877_v26 = vpop.permute.xlu2 %1876 }
 0x171   : > { %v2202_v35 = vsel %vm2196_vm2, %v3276_v62, %v1877_v26  ;;  %v1969_v5 = vpop.permute.xlu0 %1968 }
 0x172   : > { %v2249_v43 = vsel %vm2245_vm4, %v2202_v35, %v1957_v45  ;;  %v3239_v45 = vld [vmem:[%s4814_s2 + $0x18] sm:$0xff]  ;;  %v3236_v35 = vld [vmem:[%s4814_s2] sm:$0xff] }
 0x173   : > { %2067 = vrot.lane.b32.xlu0 %v4862_v58, %s3294_s10  ;;  %v4177_v3 = vsel %vm2278_vm5, %v2249_v43, %v1992_v24  ;;  %2553 = vmatpush.bf16.msra.mxu0 %v3239_v45 }
 0x174   : > { %3243 = vmatpush.bf16.msra.mxu1 %v3239_v45  ;;  %3244 = vmatpush.bf16.msra.mxu2 %v3239_v45 }
 0x175   : > { %v4130_v50 = vpop.permute.xlu1 %1958  ;;  %3245 = vmatpush.bf16.msra.mxu3 %v3239_v45 }
 0x176   : > { %2137 = vrot.lane.b32.xlu1 %v3938_v56, %s3297_s13 }
 0x177   : > { %2554 = vmatpush.bf16.msra.mxu0 %v3238_v59 }
 0x178   : > { %2040 = vrot.lane.b32.xlu2 %v3979_v41, %s3296_s12  ;;  %3246 = vmatpush.bf16.msra.mxu1 %v3238_v59 }
 0x179   : > { %3247 = vmatpush.bf16.msra.mxu2 %v3238_v59  ;;  %3248 = vmatpush.bf16.msra.mxu3 %v3238_v59 }
 0x17a   : > { %v1975_v29 = vpop.permute.xlu0 %1974 }
 0x17b   : > { %2131 = vrot.lane.b32.xlu0 %v3902_v27, %s3297_s13 }
 0x17d   : > { %v4144_v30 = vpop.permute.xlu1 %1964 }
 0x17e   : > { %2005 = vrot.lane.b32.xlu1 %v4138_v28, %s3292_s8 }
 0x180   : > { %2145 = vrot.lane.b32.xlu2 %v3966_v52, %s3297_s13  ;;  %v1883_v25 = vpop.permute.xlu2 %1882 }
 0x181   : > { %v2211_v53 = vsel %vm2196_vm2, %v4142_v14, %v1883_v25  ;;  %v4218_v25 = vld [vmem:[#allocation2 + $0x9c] sm:$0xff] }
 0x182   : > { %v4151_v23 = vsel %vm2245_vm4, %v2211_v53, %v1963_v6  ;;  %v1981_v42 = vpop.permute.xlu0 %1980 }
 0x183   : > { %2172 = vrot.lane.b32.xlu0 %v4863_v10, %s3295_s11 }
 0x185   : > { %v4161_v47 = vpop.permute.xlu1 %1970 }
 0x186   : > { %2110 = vrot.lane.b32.xlu1 %v4155_v2, %s3293_s9 }
 0x188   : > { %1999 = vrot.lane.b32.xlu2 %v4107_v61, %s3292_s8 }
 0x18a   : > { %v2060_v24 = vpop.permute.xlu0 %2059 }
 0x18b   : > { %2075 = vrot.lane.b32.xlu0 %v4864_v11, %s3294_s10 }
 0x18d   : > { %v1889_v48 = vpop.permute.xlu2 %1888  ;;  %v4181_v31 = vpop.permute.xlu1 %1976 }
 0x18e   : > { %1993 = vrot.lane.b32.xlu1 %v4120_v7, %s3292_s8  ;;  %v2220_v17 = vsel %vm2196_vm2, %v4165_v9, %v1889_v48 }
 0x18f   : > { %v4212_v43 = vsel %vm2245_vm4, %v2220_v17, %v1969_v5 }
 0x190   : > { %2063 = vrot.lane.b32.xlu2 %v4861_v49, %s3294_s10 }
 0x193   : > { %2180 = vrot.lane.b32.xlu0 %v4865_v36, %s3295_s11 }
 0x196   : > { %2034 = vrot.lane.b32.xlu1 %v3938_v56, %s3296_s12  ;;  %v3237_v56 = vld [vmem:[%s4814_s2 + $0x8] sm:$0xff] }
 0x197   : > { %2555 = vmatpush.bf16.msra.mxu0 %v3237_v56  ;;  %3249 = vmatpush.bf16.msra.mxu1 %v3237_v56 }
 0x198   : > { %2104 = vrot.lane.b32.xlu2 %v4165_v9, %s3293_s9  ;;  %3250 = vmatpush.bf16.msra.mxu2 %v3237_v56 }
 0x199   : > { %3251 = vmatpush.bf16.msra.mxu3 %v3237_v56  ;;  %v3229_v56 = vld [vmem:[#allocation2 + $0x84] sm:$0xff] }
 0x19b   : > { %2028 = vrot.lane.b32.xlu0 %v3902_v27, %s3296_s12  ;;  %v4866_v27 = vld [vmem:[#allocation5_spill] sm:$0xff]  ;;  %2556 = vmatpush.bf16.msra.mxu0 %v3236_v35 }
 0x19c   : > { %v1895_v49 = vpop.permute.xlu2 %1894  ;;  %3252 = vmatpush.bf16.msra.mxu1 %v3236_v35  ;;  %3253 = vmatpush.bf16.msra.mxu2 %v3236_v35 }
 0x19d   : > { %v2229_v26 = vsel %vm2196_vm2, %v4155_v2, %v1895_v49  ;;  %v1881_v6 = vpop.permute.xlu1 %1880  ;;  %3254 = vmatpush.bf16.msra.mxu3 %v3236_v35  ;;  %v3278_v35 = vld [vmem:[#allocation2 + $0x3c] sm:$0xff] }
 0x19e   : > { %2098 = vrot.lane.b32.xlu1 %v4142_v14, %s3293_s9  ;;  %v4204_v62 = vsel %vm2196_vm2, %v4120_v7, %v1881_v6  ;;  %v2165_v7 = vpop.permute.xlu0 %2164  ;;  %v4223_v5 = vsel %vm2245_vm4, %v2229_v26, %v1975_v29 }
 0x1a0   : > { %2168 = vrot.lane.b32.xlu2 %v4866_v27, %s3295_s11 }
 0x1a3   : > { %2069 = vrot.lane.b32.xlu0 %v4863_v10, %s3294_s10 }
 0x1a6   : > { %2139 = vrot.lane.b32.xlu1 %v3922_v20, %s3297_s13  ;;  %v1879_v48 = vpop.permute.xlu0 %1878 }
 0x1a8   : > { %2013 = vrot.lane.b32.xlu2 %v4218_v25, %s3292_s8 }
 0x1aa   : > { %v1901_v53 = vpop.permute.xlu2 %1900  ;;  %v4236_v46 = vpop.permute.xlu1 %1886 }
 0x1ab   : > { %2133 = vrot.lane.b32.xlu0 %v3890_v39, %s3297_s13  ;;  %v2238_v10 = vsel %vm2196_vm2, %v4218_v25, %v1901_v53  ;;  %v2217_v44 = vsel %vm2196_vm2, %v4107_v61, %v4236_v46 }
 0x1ac   : > { %v4234_v17 = vsel %vm2245_vm4, %v2238_v10, %v1981_v42  ;;  %v3232_v42 = vld [vmem:[#allocation2 + $0xa8] sm:$0xff] }
 0x1ad   : > { %v4868_v10 = vld [vmem:[#allocation13_spill] sm:$0xff] }
 0x1ae   : > { %2007 = vrot.lane.b32.xlu1 %v4155_v2, %s3292_s8 }
 0x1af   : > { %v1885_v59 = vpop.permute.xlu0 %1884 }
 0x1b0   : > { %2077 = vrot.lane.b32.xlu2 %v4865_v36, %s3294_s10  ;;  %v2205_v36 = vsel %vm2196_vm2, %v3277_v54, %v1879_v48 }
 0x1b1   : > { %v4251_v13 = vsel %vm2245_vm4, %v2205_v36, %v4130_v50  ;;  %v2214_v50 = vsel %vm2196_vm2, %v3278_v35, %v1885_v59  ;;  %v4293_v36 = vld [vmem:[#allocation2 + $0x60] sm:$0xff] }
 0x1b2   : > { %v2025_v29 = vpop.permute.xlu2 %2024 }
 0x1b3   : > { %2174 = vrot.lane.b32.xlu0 %v4867_v8, %s3295_s11  ;;  %v2313_v2 = vsel %vm2311_vm7, %v2280_v15, %v2025_v29 }
 0x1b4   : > { %v2346_v45 = vsel %vm2344_vm8, %v2313_v2, %v2060_v24 }
 0x1b5   : > { %v2379_v32 = vsel %vm2377_vm9, %v2346_v45, %v4087_v37 }
 0x1b6   : > { %2048 = vrot.lane.b32.xlu1 %v4009_v40, %s3296_s12 }
 0x1b8   : > { %2118 = vrot.lane.b32.xlu2 %v3232_v42, %s3293_s9  ;;  %v4258_v26 = vpop.permute.xlu1 %1892 }
 0x1ba   : > { %v2130_v49 = vpop.permute.xlu2 %2129 }
 0x1bb   : > { %2042 = vrot.lane.b32.xlu0 %v3966_v52, %s3296_s12  ;;  %v2412_v24 = vsel %vm2410_vm10, %v2379_v32, %v2130_v49  ;;  %v4268_v52 = vsel %vm2245_vm4, %v2214_v50, %v4144_v30 }
 0x1bc   : > { %v2445_v6 = vsel %vm2443_vm12, %v2412_v24, %v2165_v7 }
 0x1bd   : > { %3165 = vmatmul.msk.bf16.vlgmr.msra.gmra.mxu0 %vm2512_vm13, %v2445_v6  ;;  %v1891_v37 = vpop.permute.xlu0 %1890 }
 0x1be   : > { %2112 = vrot.lane.b32.xlu1 %v3229_v56, %s3293_s9 }
 0x1c0   : > { %2182 = vrot.lane.b32.xlu2 %v3840_v38, %s3295_s11 }
 0x1c2   : > { %v2103_v53 = vpop.permute.xlu2 %2102 }
 0x1c3   : > { %2083 = vrot.lane.b32.xlu0 %v4868_v10, %s3294_s10 }
 0x1c6   : > { %2153 = vrot.lane.b32.xlu1 %v4085_v57, %s3297_s13  ;;  %v4274_v7 = vpop.permute.xlu1 %1898 }
 0x1c8   : > { %2001 = vrot.lane.b32.xlu2 %v4165_v9, %s3292_s8 }
 0x1ca   : > { %v2167_v48 = vpop.permute.xlu2 %2166 }
 0x1cb   : > { %2147 = vrot.lane.b32.xlu0 %v4049_v12, %s3297_s13  ;;  %v1897_v29 = vpop.permute.xlu0 %1896 }
 0x1cc   : > { %v2232_v30 = vsel %vm2196_vm2, %v3229_v56, %v1897_v29 }
 0x1cd   : > { %v4289_v2 = vsel %vm2245_vm4, %v2232_v30, %v4181_v31  ;;  %v4340_v30 = vld [vmem:[#allocation2 + $0xb4] sm:$0xff] }
 0x1ce   : > { %1995 = vrot.lane.b32.xlu1 %v4142_v14, %s3292_s8 }
 0x1d0   : > { %v4283_v15 = vpop.permute.xlu1 %1904  ;;  %2065 = vrot.lane.b32.xlu2 %v4866_v27, %s3294_s10 }
 0x1d2   : > { %v2041_v9 = vpop.permute.xlu2 %2040 }
 0x1d3   : > { %2188 = vrot.lane.b32.xlu0 %v4103_v4, %s3295_s11 }
 0x1d5   : > { %v1903_v54 = vpop.permute.xlu0 %1902 }
 0x1d6   : > { %2036 = vrot.lane.b32.xlu1 %v3922_v20, %s3296_s12  ;;  %v4298_v14 = vsel %vm2196_vm2, %v3232_v42, %v1903_v54 }
 0x1d8   : > { %v2033_v45 = vpop.permute.xlu1 %2032  ;;  %2106 = vrot.lane.b32.xlu2 %v4293_v36, %s3293_s9 }
 0x1da   : > { %v2146_v27 = vpop.permute.xlu2 %2145 }
 0x1db   : > { %2030 = vrot.lane.b32.xlu0 %v3890_v39, %s3296_s12 }
 0x1dd   : > { %v2027_v31 = vpop.permute.xlu0 %2026 }
 0x1de   : > { %2100 = vrot.lane.b32.xlu1 %v3278_v35, %s3293_s9  ;;  %v2315_v49 = vsel %vm2311_vm7, %v4177_v3, %v2027_v31 }
 0x1df   : > { %v2348_v24 = vsel %vm2344_vm8, %v2315_v49, %v4112_v16 }
 0x1e0   : > { %v2097_v59 = vpop.permute.xlu1 %2096  ;;  %2170 = vrot.lane.b32.xlu2 %v4862_v58, %s3295_s11  ;;  %v2288_v58 = vsel %vm2278_vm5, %v4151_v23, %v3963_v60 }
 0x1e1   : > { %v2321_v3 = vsel %vm2311_vm7, %v2288_v58, %v2033_v45 }
 0x1e2   : > { %v4307_v32 = vpop.permute.xlu2 %1999 }
 0x1e3   : > { %2071 = vrot.lane.b32.xlu0 %v4867_v8, %s3294_s10  ;;  %v2381_v8 = vsel %vm2377_vm9, %v2348_v24, %v2097_v59 }
 0x1e5   : > { %v2068_v20 = vpop.permute.xlu0 %2067 }
 0x1e6   : > { %2141 = vrot.lane.b32.xlu1 %v3994_v0, %s3297_s13  ;;  %v2354_v16 = vsel %vm2344_vm8, %v2321_v3, %v2068_v20 }
 0x1e8   : > { %v2138_v39 = vpop.permute.xlu1 %2137  ;;  %2015 = vrot.lane.b32.xlu2 %v3232_v42, %s3292_s8 }
 0x1ea   : > { %v4318_v6 = vpop.permute.xlu2 %2063 }
 0x1eb   : > { %2135 = vrot.lane.b32.xlu0 %v3951_v19, %s3297_s13  ;;  %v2387_v19 = vsel %vm2377_vm9, %v2354_v16, %v2103_v53  ;;  %v4387_v16 = vld [vmem:[#allocation2 + $0xc0] sm:$0xf] }
 0x1ec   : > { %v2420_v23 = vsel %vm2410_vm10, %v2387_v19, %v2138_v39  ;;  %v4869_v39 = vld [vmem:[#allocation9_spill] sm:$0xff] }
 0x1ed   : > { %v2132_v35 = vpop.permute.xlu0 %2131 }
 0x1ee   : > { %2009 = vrot.lane.b32.xlu1 %v3229_v56, %s3292_s8  ;;  %v2414_v42 = vsel %vm2410_vm10, %v2381_v8, %v2132_v35 }
 0x1ef   : > { %v2447_v50 = vsel %vm2443_vm12, %v2414_v42, %v2167_v48 }
 0x1f0   : > { %v2006_v29 = vpop.permute.xlu1 %2005  ;;  %3166 = vmatmul.msk.bf16.gmra.mxu0 %vm2512_vm13, %v2447_v50  ;;  %2079 = vrot.lane.b32.xlu2 %v3840_v38, %s3294_s10  ;;  %v2223_v38 = vsel %vm2196_vm2, %v4293_v36, %v1891_v37 }
 0x1f1   : > { %v2263_v54 = vsel %vm2245_vm4, %v2223_v38, %v4161_v47 }
 0x1f2   : > { %v4335_v60 = vpop.permute.xlu2 %2104  ;;  %v2296_v31 = vsel %vm2278_vm5, %v2263_v54, %v2006_v29 }
 0x1f3   : > { %2176 = vrot.lane.b32.xlu0 %v3823_v33, %s3295_s11  ;;  %v2329_v37 = vsel %vm2311_vm7, %v2296_v31, %v2041_v9 }
 0x1f5   : > { %v2173_v56 = vpop.permute.xlu0 %2172 }
 0x1f6   : > { %2050 = vrot.lane.b32.xlu1 %v4085_v57, %s3296_s12  ;;  %v2453_v48 = vsel %vm2443_vm12, %v2420_v23, %v2173_v56  ;;  %v4355_v57 = vld [vmem:[#allocation2 + $0x90] sm:$0xff] }
 0x1f7   : > { %3169 = vmatmul.msk.bf16.vlgmr.msra.gmra.mxu1 %vm2512_vm13, %v2453_v48 }
 0x1f8   : > { %v2111_v53 = vpop.permute.xlu1 %2110  ;;  %2120 = vrot.lane.b32.xlu2 %v4340_v30, %s3293_s9 }
 0x1fa   : > { %v2169_v45 = vpop.permute.xlu2 %2168 }
 0x1fb   : > { %2044 = vrot.lane.b32.xlu0 %v4049_v12, %s3296_s12 }
 0x1fd   : > { %v2076_v59 = vpop.permute.xlu0 %2075 }
 0x1fe   : > { %2114 = vrot.lane.b32.xlu1 %v4355_v57, %s3293_s9  ;;  %v2362_v20 = vsel %vm2344_vm8, %v2329_v37, %v2076_v59  ;;  %v1156_v37 = vld [vmem:[#allocation2 + $0xc8] sm:$0x1] }
 0x1ff   : > { %v2395_v47 = vsel %vm2377_vm9, %v2362_v20, %v2111_v53  ;;  %v2290_v20 = vsel %vm2278_vm5, %v4268_v52, %v4307_v32 }
 0x200   : > { %v1994_v49 = vpop.permute.xlu1 %1993  ;;  %2184 = vrot.lane.b32.xlu2 %v4869_v39, %s3295_s11  ;;  %v2428_v58 = vsel %vm2410_vm10, %v2395_v47, %v2146_v27 }
 0x201   : > { %v2284_v29 = vsel %vm2278_vm5, %v4251_v13, %v1994_v49 }
 0x202   : > { %v4364_v24 = vpop.permute.xlu2 %2013 }
 0x203   : > { %2085 = vrot.lane.b32.xlu0 %v4103_v4, %s3294_s10 }
 0x205   : > { %v2181_v12 = vpop.permute.xlu0 %2180 }
 0x206   : > { %2155 = vrot.lane.b32.xlu1 %v4064_v63, %s3297_s13  ;;  %v2461_v9 = vsel %vm2443_vm12, %v2428_v58, %v2181_v12 }
 0x207   : > { %3173 = vmatmul.msk.bf16.vlgmr.msra.gmra.mxu2 %vm2512_vm13, %v2461_v9 }
 0x208   : > { %v2035_v8 = vpop.permute.xlu1 %2034  ;;  %2038 = vrot.lane.b32.xlu2 %v3994_v0, %s3296_s12  ;;  %v4389_v0 = vld [vmem:[#allocation2 + $0xc4] sm:$0xf] }
 0x209   : > { %v1720_v23 = vshll.u32 %v4389_v0, 16  ;;  %v1724_v56 = vshrl.u32 %v4389_v0, 16  ;;  %v2323_v12 = vsel %vm2311_vm7, %v2290_v20, %v2035_v8  ;;  %v4457_v20 = vld [vmem:[#allocation2 + $0xcc] sm:$0xf] }
 0x20a   : > { %v4375_v35 = vpop.permute.xlu2 %2077 }
 0x20b   : > { %2149 = vrot.lane.b32.xlu0 %v4029_v34, %s3297_s13  ;;  %v1722_v54 = vrot.slane %v1720_v23, 5  ;;  %v1726_v31 = vrot.slane %v1724_v56, 4  ;;  %v1739_v56 = vrot.slane %v4389_v0, 5 }
 0x20d   : > { %v2029_v3 = vpop.permute.xlu0 %2028 }
 0x20e   : > { %2003 = vrot.lane.b32.xlu1 %v4293_v36, %s3292_s8  ;;  %v1711_v36 = vshrl.u32 %v4387_v16, 16  ;;  %v2317_v19 = vsel %vm2311_vm7, %v2284_v29, %v2029_v3  ;;  %v1727_v3 = vor.u32 %v1726_v31, %v1722_v54  ;;  %v1730_v29 = vshll.u32 %v1156_v37, 16 }
 0x20f   : > { %v2350_v13 = vsel %vm2344_vm8, %v2317_v19, %v4318_v6  ;;  %v1742_v31 = vrot.slane %v1156_v37, 5 }
 0x210   : > { %v2099_v27 = vpop.permute.xlu1 %2098  ;;  %2143 = vrot.lane.b32.xlu2 %v3979_v41, %s3297_s13  ;;  %v1714_v41 = vshll.u32 %v4387_v16, 16  ;;  %v1713_v38 = vrot.slane %v1711_v36, 4  ;;  %v1728_v32 = vrot.slane %v1727_v3, 4  ;;  %v1732_v8 = vrot.slane %v1730_v29, 5 }
 0x211   : > { %v2383_v49 = vsel %vm2377_vm9, %v2350_v13, %v2099_v27  ;;  %v2226_v13 = vsel %vm2196_vm2, %v4138_v28, %v4258_v26  ;;  %v1748_v26 = vshll.u32 %v4457_v20, 16  ;;  %v2235_v29 = vsel %vm2196_vm2, %v4355_v57, %v4274_v7 }
 0x212   : > { %v4383_v42 = vpop.permute.xlu2 %2118  ;;  %v1716_v53 = vrot.slane %v1714_v41, 5  ;;  %v2265_v0 = vsel %vm2245_vm4, %v2226_v13, %v4047_v22 }
 0x213   : > { %2190 = vrot.lane.b32.xlu0 %v4116_v1, %s3295_s11 }
 0x215   : > { %v2070_v50 = vpop.permute.xlu0 %2069 }
 0x216   : > { %2108 = vrot.lane.b32.xlu1 %v4138_v28, %s3293_s9  ;;  %v2356_v58 = vsel %vm2344_vm8, %v2323_v12, %v2070_v50  ;;  %v1745_v28 = vshrl.u32 %v4457_v20, 16 }
 0x217   : > { %v2389_v52 = vsel %vm2377_vm9, %v2356_v58, %v4335_v60  ;;  %v1750_v58 = vrot.slane %v1748_v26, 5 }
 0x218   : > { %v2140_v48 = vpop.permute.xlu1 %2139  ;;  %2011 = vrot.lane.b32.xlu2 %v4355_v57, %s3292_s8 }
 0x219   : > { %v2422_v27 = vsel %vm2410_vm10, %v2389_v52, %v2140_v48 }
 0x21a   : > { %v4406_v59 = vpop.permute.xlu2 %2182 }
 0x21b   : > { %2073 = vrot.lane.b32.xlu0 %v3823_v33, %s3294_s10  ;;  %v1717_v33 = vor.u32 %v1716_v53, %v1713_v38  ;;  %v3075_v53 = vrot.slane %v4387_v16, 9 }
 0x21d   : > { %v2134_v47 = vpop.permute.xlu0 %2133  ;;  %v1740_v22 = vsel %vm3438_vm11, %v3075_v53, %v1739_v56 }
 0x21e   : > { %1982 = vrot.lane.b32.xlu1 %v4103_v4, %s3290_s6  ;;  %v2416_v6 = vsel %vm2410_vm10, %v2383_v49, %v2134_v47  ;;  %v1718_v4 = vrot.slane %v1717_v33, 4  ;;  %v4459_v49 = vld [vmem:[#allocation2 + $0xd0] sm:$0xf]  ;;  %v1747_v33 = vrot.slane %v1745_v28, 4  ;;  %v2056_v52 = vunpack.c.l.b16 %v1740_v22 }
 0x21f   : > { %v2449_v9 = vsel %vm2443_vm12, %v2416_v6, %v2169_v45  ;;  %v1754_v47 = vshll.u32 %v4459_v49, 16  ;;  %v1758_v16 = vshrl.u32 %v4459_v49, 16 }
 0x220   : > { %v2008_v36 = vpop.permute.xlu1 %2007  ;;  %3167 = vmatmul.msk.bf16.gmra.mxu0 %vm2512_vm13, %v2449_v9  ;;  %2052 = vrot.lane.b32.xlu2 %v4064_v63, %s3296_s12  ;;  %v1723_v63 = vsel %vm3450_vm15, %v1718_v4, %v1722_v54  ;;  %v1741_v54 = vrot.slane %v1739_v56, 4  ;;  %v1751_v7 = vor.u32 %v1750_v58, %v1747_v33 }
 0x221   : > { %v2021_v19 = vunpack.c.l.b16 %v1723_v63  ;;  %v2298_v37 = vsel %vm2278_vm5, %v2265_v0, %v2008_v36  ;;  %v1756_v9 = vrot.slane %v1754_v47, 5  ;;  %v1760_v3 = vrot.slane %v1758_v16, 4 }
 0x222   : > { %v4428_v50 = vpop.permute.xlu2 %2001  ;;  %v1752_v13 = vrot.slane %v1751_v7, 4 }
 0x223   : > { %2178 = vrot.lane.b32.xlu0 %v4864_v11, %s3295_s11  ;;  %v1733_v11 = vsel %vm3450_vm15, %v1728_v32, %v1732_v8  ;;  %v4478_v32 = vld [vmem:[#allocation2 + $0xd4] sm:$0x1]  ;;  %v3234_v8 = vld [vmem:[#allocation2 + $0xc0] sm:$0xff] }
 0x224   : > { %v2022_v23 = vunpack.c.l.b16 %v1733_v11  ;;  %v1764_v57 = vshll.u32 %v4478_v32, 16  ;;  %v1757_v26 = vsel %vm3450_vm15, %v1752_v13, %v1756_v9 }
 0x225   : > { %v2175_v45 = vpop.permute.xlu0 %2174  ;;  %v2126_v33 = vunpack.c.l.b16 %v1757_v26 }
 0x226   : > { %2046 = vrot.lane.b32.xlu1 %v4029_v34, %s3296_s12  ;;  %v2455_v41 = vsel %vm2443_vm12, %v2422_v27, %v2175_v45  ;;  %v4443_v48 = vpack.c.b16 %v2022_v23, %v2021_v19 }
 0x227   : > { %3170 = vmatmul.msk.bf16.gmra.mxu1 %vm2512_vm13, %v2455_v41  ;;  %v2271_v41 = vsel %vm2245_vm4, %v2235_v29, %v4078_v55 }
 0x228   : > { %v2049_v60 = vpop.permute.xlu1 %2048  ;;  %2116 = vrot.lane.b32.xlu2 %v4218_v25, %s3293_s9  ;;  %v2304_v63 = vsel %vm2278_vm5, %v2271_v41, %v4364_v24 }
 0x22a   : > { %v4448_v38 = vpop.permute.xlu2 %2065 }
 0x22b   : > { %2017 = vrot.lane.b32.xlu0 %v4340_v30, %s3292_s8 }
 0x22d   : > { %v2043_v34 = vpop.permute.xlu0 %2042 }
 0x22e   : > { %2087 = vrot.lane.b32.xlu1 %v4116_v1, %s3294_s10  ;;  %v2331_v6 = vsel %vm2311_vm7, %v2298_v37, %v2043_v34 }
 0x230   : > { %v2113_v25 = vpop.permute.xlu1 %2112  ;;  %2157 = vrot.lane.b32.xlu2 %v4443_v48, %s3297_s13 }
 0x232   : > { %v4482_v27 = vpop.permute.xlu2 %2106 }
 0x233   : > { %2081 = vrot.lane.b32.xlu0 %v4869_v39, %s3294_s10  ;;  %v1743_v39 = vsel %vm3438_vm11, %v1741_v54, %v1742_v31  ;;  %v1766_v54 = vrot.slane %v1764_v57, 5 }
 0x234   : > { %v2057_v4 = vunpack.c.l.b16 %v1743_v39 }
 0x235   : > { %v2084_v12 = vpop.permute.xlu0 %2083 }
 0x236   : > { %2151 = vrot.lane.b32.xlu1 %v4009_v40, %s3297_s13  ;;  %v2364_v40 = vsel %vm2344_vm8, %v2331_v6, %v4375_v35  ;;  %v2058_v11 = vpack.c.b16 %v2057_v4, %v2056_v52  ;;  %v2337_v35 = vsel %vm2311_vm7, %v2304_v63, %v2049_v60  ;;  %v1776_v52 = vrot.slane %v4478_v32, 5  ;;  %v3235_v4 = vld [vmem:[#allocation2 + $0xcc] sm:$0xff] }
 0x237   : > { %v2397_v19 = vsel %vm2377_vm9, %v2364_v40, %v2113_v25  ;;  %v2370_v55 = vsel %vm2344_vm8, %v2337_v35, %v2084_v12 }
 0x238   : > { %v2154_v36 = vpop.permute.xlu1 %2153  ;;  %1984 = vrot.lane.b32.xlu2 %v4116_v1, %s3290_s6  ;;  %v1761_v1 = vor.u32 %v1760_v3, %v1756_v9  ;;  %v2403_v25 = vsel %vm2377_vm9, %v2370_v55, %v4383_v42 }
 0x239   : > { %v2436_v42 = vsel %vm2410_vm10, %v2403_v25, %v2154_v36  ;;  %v3076_v36 = vrot.slane %v4457_v20, 9  ;;  %v2253_v20 = vsel %vm2245_vm4, %v4204_v62, %v3988_v21  ;;  %v2259_v21 = vsel %vm2245_vm4, %v2217_v44, %v4017_v18 }
 0x23a   : > { %v2558_v45 = vpop.f32.mrf.mxu0  ;;  %v1762_v53 = vrot.slane %v1761_v1, 4  ;;  %v2171_v16 = vpop.permute.xlu2 %2170  ;;  %v2292_v62 = vsel %vm2278_vm5, %v2259_v21, %v4428_v50 }
 0x23b   : > { %2122 = vrot.lane.b32.xlu0 %v3234_v8, %s3293_s9  ;;  %2638 = vst.msk [vmem:[%s3344_s28] sm:$0xff] %vm535_vm3, %v2558_v45  ;;  %v2740_v60 = vmul.f32 %v2558_v45, %v2558_v45  ;;  %v2671_v31 = vsel %vm535_vm3, %v2558_v45, 0.0 }
 0x23c   : > { %v1767_v47 = vsel %vm3450_vm15, %v1762_v53, %v1766_v54 }
 0x23d   : > { %v2148_v23 = vpop.permute.xlu0 %2147  ;;  %v2772_v12 = vsel %vm535_vm3, %v2740_v60, 0.0  ;;  %v2127_v58 = vunpack.c.l.b16 %v1767_v47 }
 0x23e   : > { %2192 = vrot.lane.b32.xlu1 %v2058_v11, %s3295_s11  ;;  %v2430_v34 = vsel %vm2410_vm10, %v2397_v19, %v2148_v23 }
 0x23f   : > { %v2463_v56 = vsel %vm2443_vm12, %v2430_v34, %v4406_v59  ;;  %v2128_v9 = vpack.c.b16 %v2127_v58, %v2126_v33 }
 0x240   : > { %v1996_v24 = vpop.permute.xlu1 %1995  ;;  %3174 = vmatmul.msk.bf16.gmra.mxu2 %vm2512_vm13, %v2463_v56  ;;  %2089 = vrot.lane.b32.xlu2 %v2058_v11, %s3294_s10 }
 0x241   : > { %v2286_v32 = vsel %vm2278_vm5, %v2253_v20, %v1996_v24 }
 0x242   : > { %v2560_v0 = vpop.f32.mrf.mxu0  ;;  %v4521_v29 = vpop.permute.xlu2 %2015 }
 0x243   : > { %2186 = vrot.lane.b32.xlu0 %v4868_v10, %s3295_s11  ;;  %2639 = vst.msk [vmem:[%s3344_s28 + $0x8] sm:$0xff] %vm535_vm3, %v2560_v0  ;;  %v2672_v59 = vsel %vm535_vm3, %v2560_v0, 0.0  ;;  %v2741_v28 = vmul.f32 %v2560_v0, %v2560_v0 }
 0x244   : > { %v2673_v37 = vadd.f32 %v2672_v59, %v2671_v31 }
 0x245   : > { %v2189_v22 = vpop.permute.xlu0 %2188  ;;  %v2773_v10 = vsel %vm535_vm3, %v2741_v28, 0.0 }
 0x246   : > { %2054 = vrot.lane.b32.xlu1 %v4443_v48, %s3296_s12  ;;  %v2774_v39 = vadd.f32 %v2773_v10, %v2772_v12  ;;  %v2469_v6 = vsel %vm2443_vm12, %v2436_v42, %v2189_v22  ;;  %v1773_v48 = vrot.slane %v4459_v49, 5 }
 0x247   : > { %3177 = vmatmul.msk.bf16.vlgmr.msra.gmra.mxu3 %vm2512_vm13, %v2469_v6 }
 0x248   : > { %v2037_v51 = vpop.permute.xlu1 %2036  ;;  %v1774_v45 = vsel %vm3438_vm11, %v3076_v36, %v1773_v48  ;;  %v1775_v41 = vrot.slane %v1773_v48, 4 }
 0x249   : > { %v2161_v7 = vunpack.c.l.b16 %v1774_v45  ;;  %v2325_v34 = vsel %vm2311_vm7, %v2292_v62, %v2037_v51 }
 0x24a   : > { %v2080_v11 = vpop.permute.xlu2 %2079 }
 0x24b   : > { %2019 = vrot.lane.b32.xlu0 %v3234_v8, %s3292_s8  ;;  %v1777_v8 = vsel %vm3438_vm11, %v1775_v41, %v1776_v52  ;;  %vm2841_vm11 = vcmask 1040384  }
 0x24c   : > { %v2162_v1 = vunpack.c.l.b16 %v1777_v8 }
 0x24d   : > { %v2031_v3 = vpop.permute.xlu0 %2030 }
 0x24e   : > { %2159 = vrot.lane.b32.xlu1 %v2128_v9, %s3297_s13  ;;  %v2163_v57 = vpack.c.b16 %v2162_v1, %v2161_v7  ;;  %v2319_v63 = vsel %vm2311_vm7, %v2286_v32, %v2031_v3 }
 0x24f   : > { %v2352_v19 = vsel %vm2344_vm8, %v2319_v63, %v4448_v38 }
 0x250   : > { %v2101_v40 = vpop.permute.xlu1 %2100  ;;  %2194 = vrot.lane.b32.xlu2 %v2163_v57, %s3295_s11 }
 0x251   : > { %v2385_v23 = vsel %vm2377_vm9, %v2352_v19, %v2101_v40 }
 0x252   : > { %v2121_v38 = vpop.permute.xlu2 %2120 }
 0x253   : > { %2124 = vrot.lane.b32.xlu0 %v3235_v4, %s3293_s9 }
 0x255   : > { %v2072_v49 = vpop.permute.xlu0 %2071 }
 0x256   : > { %v2358_v13 = vsel %vm2344_vm8, %v2325_v34, %v2072_v49 }
 0x257   : > { %v2391_v18 = vsel %vm2377_vm9, %v2358_v13, %v4482_v27 }
 0x258   : > { %v2142_v35 = vpop.permute.xlu1 %2141 }
 0x259   : > { %v2424_v50 = vsel %vm2410_vm10, %v2391_v18, %v2142_v35 }
 0x25a   : > { %v2185_v60 = vpop.permute.xlu2 %2184 }
 0x25d   : > { %v2136_v55 = vpop.permute.xlu0 %2135 }
 0x25e   : > { %v2418_v56 = vsel %vm2410_vm10, %v2385_v23, %v2136_v55 }
 0x25f   : > { %v2451_v61 = vsel %vm2443_vm12, %v2418_v56, %v2171_v16 }
 0x260   : > { %v2010_v46 = vpop.permute.xlu1 %2009  ;;  %3168 = vmatmul.msk.bf16.gmra.mxu0 %vm2512_vm13, %v2451_v61 }
 0x261   : > { %v2300_v22 = vsel %vm2278_vm5, %v4223_v5, %v2010_v46  ;;  %v2306_v5 = vsel %vm2278_vm5, %v4234_v17, %v4521_v29 }
 0x262   : > { %v2039_v6 = vpop.permute.xlu2 %2038 }
 0x265   : > { %v2177_v53 = vpop.permute.xlu0 %2176 }
 0x266   : > { %v2457_v54 = vsel %vm2443_vm12, %v2424_v50, %v2177_v53 }
 0x267   : > { %3171 = vmatmul.msk.bf16.gmra.mxu1 %vm2512_vm13, %v2457_v54 }
 0x268   : > { %v2051_v24 = vpop.permute.xlu1 %2050 }
 0x269   : > { %v2339_v4 = vsel %vm2311_vm7, %v2306_v5, %v2051_v24 }
 0x26a   : > { %v2144_v8 = vpop.permute.xlu2 %2143 }
 0x26d   : > { %v2045_v25 = vpop.permute.xlu0 %2044  ;;  %v2563_v31 = vpop.f32.mrf.mxu0 }
 0x26e   : > { %2640 = vst.msk [vmem:[%s3344_s28 + $0x10] sm:$0xff] %vm535_vm3, %v2563_v31  ;;  %v2674_v0 = vsel %vm535_vm3, %v2563_v31, 0.0  ;;  %v2742_v59 = vmul.f32 %v2563_v31, %v2563_v31  ;;  %v2333_v33 = vsel %vm2311_vm7, %v2300_v22, %v2045_v25 }
 0x26f   : > { %v2675_v28 = vadd.f32 %v2674_v0, %v2673_v37  ;;  %v2366_v3 = vsel %vm2344_vm8, %v2333_v33, %v2080_v11 }
 0x270   : > { %v2775_v27 = vsel %vm535_vm3, %v2742_v59, 0.0  ;;  %v2115_v26 = vpop.permute.xlu1 %2114 }
 0x271   : > { %v2776_v47 = vadd.f32 %v2775_v27, %v2774_v39  ;;  %v2399_v48 = vsel %vm2377_vm9, %v2366_v3, %v2115_v26 }
 0x272   : > { %v2012_v32 = vpop.permute.xlu2 %2011 }
 0x274   : > { %v4562_v16 = vpop.f32.mrf.mxu1 }
 0x275   : > { %2646 = vst.msk [vmem:[%s3344_s28 + $0x40] sm:$0xff] %vm535_vm3, %v4562_v16  ;;  %v2086_v42 = vpop.permute.xlu0 %2085  ;;  %v2565_v12 = vpop.f32.mrf.mxu0 }
 0x276   : > { %2641 = vst.msk [vmem:[%s3344_s28 + $0x18] sm:$0xff] %vm535_vm3, %v2565_v12  ;;  %v2676_v10 = vsel %vm535_vm3, %v2565_v12, 0.0  ;;  %v2743_v37 = vmul.f32 %v2565_v12, %v2565_v12  ;;  %v2372_v45 = vsel %vm2344_vm8, %v2339_v4, %v2086_v42 }
 0x277   : > { %v2677_v39 = vadd.f32 %v2676_v10, %v2675_v28  ;;  %v2405_v17 = vsel %vm2377_vm9, %v2372_v45, %v2121_v38 }
 0x278   : > { %v2777_v58 = vsel %vm535_vm3, %v2743_v37, 0.0  ;;  %v2156_v51 = vpop.permute.xlu1 %2155 }
 0x279   : > { %v2778_v9 = vadd.f32 %v2777_v58, %v2776_v47  ;;  %v2438_v29 = vsel %vm2410_vm10, %v2405_v17, %v2156_v51 }
 0x27a   : > { %v2053_v23 = vpop.permute.xlu2 %2052 }
 0x27c   : > { %v4575_v36 = vpop.f32.mrf.mxu1 }
 0x27d   : > { %2647 = vst.msk [vmem:[%s3344_s28 + $0x48] sm:$0xff] %vm535_vm3, %v4575_v36  ;;  %v2150_v52 = vpop.permute.xlu0 %2149 }
 0x27e   : > { %v2432_v40 = vsel %vm2410_vm10, %v2399_v48, %v2150_v52 }
 0x27f   : > { %v2465_v41 = vsel %vm2443_vm12, %v2432_v40, %v2185_v60 }
 0x280   : > { %v2004_v7 = vpop.permute.xlu1 %2003  ;;  %3175 = vmatmul.msk.bf16.gmra.mxu2 %vm2512_vm13, %v2465_v41  ;;  %v2244_v41 = vsel %vm2196_vm2, %v4340_v30, %v4283_v15 }
 0x281   : > { %v2294_v63 = vsel %vm2278_vm5, %v4212_v43, %v2004_v7 }
 0x282   : > { %v2327_v35 = vsel %vm2311_vm7, %v2294_v63, %v2039_v6  ;;  %v2117_v18 = vpop.permute.xlu2 %2116 }
 0x285   : > { %v2191_v1 = vpop.permute.xlu0 %2190 }
 0x286   : > { %v2471_v20 = vsel %vm2443_vm12, %v2438_v29, %v2191_v1 }
 0x287   : > { %3178 = vmatmul.msk.bf16.gmra.mxu3 %vm2512_vm13, %v2471_v20 }
 0x288   : > { %v2109_v49 = vpop.permute.xlu1 %2108 }
 0x28a   : > { %v4593_v57 = vpop.f32.mrf.mxu2  ;;  %v2158_v12 = vpop.permute.xlu2 %2157 }
 0x28b   : > { %2654 = vst.msk [vmem:[%s3344_s28 + $0x80] sm:$0xff] %vm535_vm3, %v4593_v57 }
 0x28d   : > { %v2074_v11 = vpop.permute.xlu0 %2073 }
 0x28e   : > { %v2360_v44 = vsel %vm2344_vm8, %v2327_v35, %v2074_v11 }
 0x28f   : > { %v2393_v21 = vsel %vm2377_vm9, %v2360_v44, %v2109_v49 }
 0x290   : > { %v1983_v19 = vpop.permute.xlu1 %1982  ;;  %v2426_v43 = vsel %vm2410_vm10, %v2393_v21, %v2144_v8 }
 0x291   : > { %v2275_v0 = vsel %vm2245_vm4, %v4298_v14, %v1983_v19  ;;  %v2302_v14 = vsel %vm2278_vm5, %v4289_v2, %v2012_v32 }
 0x292   : > { %v4603_v62 = vpop.f32.mrf.mxu2  ;;  %v1985_v48 = vpop.permute.xlu2 %1984 }
 0x293   : > { %2655 = vst.msk [vmem:[%s3344_s28 + $0x88] sm:$0xff] %vm535_vm3, %v4603_v62  ;;  %v2277_v17 = vsel %vm2245_vm4, %v2244_v41, %v1985_v48 }
 0x295   : > { %v2179_v55 = vpop.permute.xlu0 %2178 }
 0x296   : > { %v2459_v34 = vsel %vm2443_vm12, %v2426_v43, %v2179_v55 }
 0x297   : > { %3172 = vmatmul.msk.bf16.gmra.mxu1 %vm2512_vm13, %v2459_v34 }
 0x298   : > { %v2047_v56 = vpop.permute.xlu1 %2046 }
 0x29a   : > { %v2090_v7 = vpop.permute.xlu2 %2089 }
 0x29d   : > { %v2018_v13 = vpop.permute.xlu0 %2017  ;;  %v2568_v61 = vpop.f32.mrf.mxu0 }
 0x29e   : > { %2642 = vst.msk [vmem:[%s3344_s28 + $0x20] sm:$0xff] %vm535_vm3, %v2568_v61  ;;  %v2678_v46 = vsel %vm535_vm3, %v2568_v61, 0.0  ;;  %v2744_v38 = vmul.f32 %v2568_v61, %v2568_v61  ;;  %v2308_v27 = vsel %vm2278_vm5, %v2275_v0, %v2018_v13 }
 0x29f   : > { %v2679_v50 = vadd.f32 %v2678_v46, %v2677_v39  ;;  %v2341_v10 = vsel %vm2311_vm7, %v2308_v27, %v2053_v23  ;;  %v2335_v39 = vsel %vm2311_vm7, %v2302_v14, %v2047_v56 }
 0x2a0   : > { %v2779_v53 = vsel %vm535_vm3, %v2744_v38, 0.0  ;;  %v2088_v54 = vpop.permute.xlu1 %2087  ;;  %v2748_v38 = vmul.f32 %v4562_v16, %v4562_v16 }
 0x2a1   : > { %v2780_v24 = vadd.f32 %v2779_v53, %v2778_v9  ;;  %v2374_v6 = vsel %vm2344_vm8, %v2341_v10, %v2088_v54  ;;  %v2686_v54 = vsel %vm535_vm3, %v4562_v16, 0.0 }
 0x2a4   : > { %v4615_v60 = vpop.f32.mrf.mxu1 }
 0x2a5   : > { %2648 = vst.msk [vmem:[%s3344_s28 + $0x50] sm:$0xff] %vm535_vm3, %v4615_v60  ;;  %v2082_v25 = vpop.permute.xlu0 %2081  ;;  %v2570_v31 = vpop.f32.mrf.mxu0  ;;  %v2750_v27 = vmul.f32 %v4615_v60, %v4615_v60 }
 0x2a6   : > { %2643 = vst.msk [vmem:[%s3344_s28 + $0x28] sm:$0xff] %vm535_vm3, %v2570_v31  ;;  %v2680_v59 = vsel %vm535_vm3, %v2570_v31, 0.0  ;;  %v2745_v28 = vmul.f32 %v2570_v31, %v2570_v31  ;;  %v2368_v51 = vsel %vm2344_vm8, %v2335_v39, %v2082_v25 }
 0x2a7   : > { %v2681_v26 = vadd.f32 %v2680_v59, %v2679_v50  ;;  %v2401_v2 = vsel %vm2377_vm9, %v2368_v51, %v2117_v18  ;;  %v2787_v59 = vsel %vm535_vm3, %v2748_v38, 0.0 }
 0x2a8   : > { %v2781_v47 = vsel %vm535_vm3, %v2745_v28, 0.0  ;;  %v2152_v42 = vpop.permute.xlu1 %2151  ;;  %v2688_v28 = vsel %vm535_vm3, %v4575_v36, 0.0 }
 0x2a9   : > { %v2782_v22 = vadd.f32 %v2781_v47, %v2780_v24  ;;  %v2434_v52 = vsel %vm2410_vm10, %v2401_v2, %v2152_v42  ;;  %v2749_v24 = vmul.f32 %v4575_v36, %v4575_v36  ;;  %v2690_v42 = vsel %vm535_vm3, %v4615_v60, 0.0 }
 0x2aa   : > { %v2195_v30 = vpop.permute.xlu2 %2194  ;;  %v2791_v36 = vsel %vm535_vm3, %v2750_v27, 0.0 }
 0x2ab   : > { %v2789_v16 = vsel %vm535_vm3, %v2749_v24, 0.0 }
 0x2ac   : > { %v4628_v37 = vpop.f32.mrf.mxu1 }
 0x2ad   : > { %2649 = vst.msk [vmem:[%s3344_s28 + $0x58] sm:$0xff] %vm535_vm3, %v4628_v37  ;;  %v2123_v33 = vpop.permute.xlu0 %2122 }
 0x2ae   : > { %v2407_v58 = vsel %vm2377_vm9, %v2374_v6, %v2123_v33  ;;  %v2692_v6 = vsel %vm535_vm3, %v4628_v37, 0.0 }
 0x2af   : > { %v2440_v9 = vsel %vm2410_vm10, %v2407_v58, %v2158_v12  ;;  %v2751_v12 = vmul.f32 %v4628_v37, %v4628_v37 }
 0x2b0   : > { %v2193_v3 = vpop.permute.xlu1 %2192 }
 0x2b1   : > { %v2473_v5 = vsel %vm2443_vm12, %v2440_v9, %v2193_v3  ;;  %v2793_v60 = vsel %vm535_vm3, %v2751_v12, 0.0 }
 0x2b2   : > { %3179 = vmatmul.msk.bf16.gmra.mxu3 %vm2512_vm13, %v2473_v5 }
 0x2b5   : > { %v2187_v4 = vpop.permute.xlu0 %2186 }
 0x2b6   : > { %v2467_v40 = vsel %vm2443_vm12, %v2434_v52, %v2187_v4 }
 0x2b7   : > { %3176 = vmatmul.msk.bf16.gmra.mxu2 %vm2512_vm13, %v2467_v40 }
 0x2b8   : > { %v2055_v45 = vpop.permute.xlu1 %2054 }
 0x2bd   : > { %v2020_v8 = vpop.permute.xlu0 %2019 }
 0x2be   : > { %v2310_v29 = vsel %vm2278_vm5, %v2277_v17, %v2020_v8 }
 0x2bf   : > { %v2343_v1 = vsel %vm2311_vm7, %v2310_v29, %v2055_v45 }
 0x2c0   : > { %v2160_v49 = vpop.permute.xlu1 %2159  ;;  %v2376_v15 = vsel %vm2344_vm8, %v2343_v1, %v2090_v7 }
 0x2c3   : > { %v4652_v20 = vpop.f32.mrf.mxu2 }
 0x2c4   : > { %2656 = vst.msk [vmem:[%s3344_s28 + $0x90] sm:$0xff] %vm535_vm3, %v4652_v20  ;;  %v2758_v38 = vmul.f32 %v4652_v20, %v4652_v20 }
 0x2c5   : > { %v2125_v32 = vpop.permute.xlu0 %2124 }
 0x2c6   : > { %v2409_v63 = vsel %vm2377_vm9, %v2376_v15, %v2125_v32 }
 0x2c7   : > { %v2442_v11 = vsel %vm2410_vm10, %v2409_v63, %v2160_v49 }
 0x2c8   : > { %v2475_v35 = vsel %vm2443_vm12, %v2442_v11, %v2195_v30  ;;  %v2756_v30 = vmul.f32 %v4593_v57, %v4593_v57 }
 0x2c9   : > { %3180 = vmatmul.msk.bf16.gmra.mxu3 %vm2512_vm13, %v2475_v35 }
 0x2ca   : > { %v4662_v44 = vpop.f32.mrf.mxu3 }
 0x2cb   : > { %2662 = vst.msk [vmem:[%s3344_s28 + $0xc0] sm:$0xff] %vm535_vm3, %v4662_v44  ;;  %v4667_v19 = vpop.f32.mrf.mxu2 }
 0x2cc   : > { %2657 = vst.msk [vmem:[%s3344_s28 + $0x98] sm:$0xff] %vm535_vm3, %v4667_v19 }
 0x2d2   : > { %v4672_v21 = vpop.f32.mrf.mxu3 }
 0x2d3   : > { %2663 = vst.msk [vmem:[%s3344_s28 + $0xc8] sm:$0xff] %vm535_vm3, %v4672_v21 }
 0x2dd   : > { %v2573_v23 = vpop.f32.mrf.mxu0 }
 0x2de   : > { %2644 = vst.msk [vmem:[%s3344_s28 + $0x30] sm:$0xff] %vm535_vm3, %v2573_v23  ;;  %v2682_v55 = vsel %vm535_vm3, %v2573_v23, 0.0  ;;  %v2746_v43 = vmul.f32 %v2573_v23, %v2573_v23 }
 0x2df   : > { %v2683_v34 = vadd.f32 %v2682_v55, %v2681_v26  ;;  %v2702_v55 = vsel %vm535_vm3, %v4593_v57, 0.0 }
 0x2e0   : > { %v2783_v56 = vsel %vm535_vm3, %v2746_v43, 0.0  ;;  %v2757_v43 = vmul.f32 %v4603_v62, %v4603_v62 }
 0x2e1   : > { %v2784_v13 = vadd.f32 %v2783_v56, %v2782_v22 }
 0x2e2   : > { %v2805_v57 = vsel %vm535_vm3, %v2757_v43, 0.0 }
 0x2e4   : > { %v2588_v61 = vpop.f32.mrf.mxu1 }
 0x2e5   : > { %2650 = vst.msk [vmem:[%s3344_s28 + $0x60] sm:$0xff] %vm535_vm3, %v2588_v61  ;;  %v2575_v46 = vpop.f32.mrf.mxu0  ;;  %v2752_v33 = vmul.f32 %v2588_v61, %v2588_v61  ;;  %v2694_v51 = vsel %vm535_vm3, %v2588_v61, 0.0  ;;  %v2803_v61 = vsel %vm535_vm3, %v2756_v30, 0.0 }
 0x2e6   : > { %2645 = vst.msk [vmem:[%s3344_s28 + $0x38] sm:$0xff] %vm535_vm3, %v2575_v46  ;;  %v2684_v18 = vsel %vm535_vm3, %v2575_v46, 0.0  ;;  %v2747_v50 = vmul.f32 %v2575_v46, %v2575_v46  ;;  %v2704_v46 = vsel %vm535_vm3, %v4603_v62, 0.0  ;;  %v2708_v62 = vsel %vm535_vm3, %v4667_v19, 0.0 }
 0x2e7   : > { %v2685_v53 = vadd.f32 %v2684_v18, %v2683_v34  ;;  %v2795_v2 = vsel %vm535_vm3, %v2752_v33, 0.0 }
 0x2e8   : > { %v2785_v25 = vsel %vm535_vm3, %v2747_v50, 0.0 }
 0x2e9   : > { %v2687_v31 = vadd.f32 %v2686_v54, %v2685_v53  ;;  %v2786_v0 = vadd.f32 %v2785_v25, %v2784_v13  ;;  %v2706_v53 = vsel %vm535_vm3, %v4652_v20, 0.0  ;;  %v2759_v54 = vmul.f32 %v4667_v19, %v4667_v19 }
 0x2eb   : > { %v2689_v26 = vadd.f32 %v2688_v28, %v2687_v31  ;;  %v2788_v47 = vadd.f32 %v2787_v59, %v2786_v0  ;;  %v2807_v31 = vsel %vm535_vm3, %v2758_v38, 0.0  ;;  %v2809_v28 = vsel %vm535_vm3, %v2759_v54, 0.0 }
 0x2ec   : > { %v2590_v22 = vpop.f32.mrf.mxu1 }
 0x2ed   : > { %v2691_v10 = vadd.f32 %v2690_v42, %v2689_v26  ;;  %v2790_v14 = vadd.f32 %v2789_v16, %v2788_v47  ;;  %2651 = vst.msk [vmem:[%s3344_s28 + $0x68] sm:$0xff] %vm535_vm3, %v2590_v22  ;;  %v2753_v9 = vmul.f32 %v2590_v22, %v2590_v22  ;;  %v2696_v48 = vsel %vm535_vm3, %v2590_v22, 0.0 }
 0x2ef   : > { %v2792_v39 = vadd.f32 %v2791_v36, %v2790_v14  ;;  %v2693_v58 = vadd.f32 %v2692_v6, %v2691_v10  ;;  %v2797_v4 = vsel %vm535_vm3, %v2753_v9, 0.0 }
 0x2f1   : > { %v2695_v3 = vadd.f32 %v2694_v51, %v2693_v58  ;;  %v2794_v5 = vadd.f32 %v2793_v60, %v2792_v39 }
 0x2f3   : > { %v2697_v37 = vadd.f32 %v2696_v48, %v2695_v3  ;;  %v2796_v52 = vadd.f32 %v2795_v2, %v2794_v5  ;;  %v2764_v3 = vmul.f32 %v4662_v44, %v4662_v44 }
 0x2f5   : > { %v2798_v40 = vadd.f32 %v2797_v4, %v2796_v52  ;;  %v2718_v52 = vsel %vm535_vm3, %v4662_v44, 0.0  ;;  %v2765_v4 = vmul.f32 %v4672_v21, %v4672_v21 }
 0x2f7   : > { %v2821_v44 = vsel %vm535_vm3, %v2765_v4, 0.0 }
 0x303   : > { %v2608_v45 = vpop.f32.mrf.mxu2 }
 0x304   : > { %2658 = vst.msk [vmem:[%s3344_s28 + $0xa0] sm:$0xff] %vm535_vm3, %v2608_v45  ;;  %v2760_v20 = vmul.f32 %v2608_v45, %v2608_v45  ;;  %v2710_v16 = vsel %vm535_vm3, %v2608_v45, 0.0 }
 0x306   : > { %v2811_v12 = vsel %vm535_vm3, %v2760_v20, 0.0 }
 0x30a   : > { %v4715_v41 = vpop.f32.mrf.mxu3 }
 0x30b   : > { %2664 = vst.msk [vmem:[%s3344_s28 + $0xd0] sm:$0xff] %vm535_vm3, %v4715_v41  ;;  %v2610_v7 = vpop.f32.mrf.mxu2 }
 0x30c   : > { %2659 = vst.msk [vmem:[%s3344_s28 + $0xa8] sm:$0xff] %vm535_vm3, %v2610_v7  ;;  %v2761_v19 = vmul.f32 %v2610_v7, %v2610_v7  ;;  %v2712_v36 = vsel %vm535_vm3, %v2610_v7, 0.0 }
 0x30e   : > { %v2813_v39 = vsel %vm535_vm3, %v2761_v19, 0.0 }
 0x312   : > { %v4722_v8 = vpop.f32.mrf.mxu3 }
 0x313   : > { %2665 = vst.msk [vmem:[%s3344_s28 + $0xd8] sm:$0xff] %vm535_vm3, %v4722_v8  ;;  %v2767_v30 = vmul.f32 %v4722_v8, %v4722_v8 }
 0x314   : > { %v2593_v17 = vpop.f32.mrf.mxu1 }
 0x315   : > { %2652 = vst.msk [vmem:[%s3344_s28 + $0x70] sm:$0xff] %vm535_vm3, %v2593_v17  ;;  %v2754_v29 = vmul.f32 %v2593_v17, %v2593_v17  ;;  %v2698_v1 = vsel %vm535_vm3, %v2593_v17, 0.0  ;;  %v2819_v17 = vsel %vm535_vm3, %v2764_v3, 0.0 }
 0x316   : > { %v2699_v32 = vadd.f32 %v2698_v1, %v2697_v37  ;;  %v2766_v1 = vmul.f32 %v4715_v41, %v4715_v41 }
 0x317   : > { %v2799_v49 = vsel %vm535_vm3, %v2754_v29, 0.0  ;;  %v2720_v29 = vsel %vm535_vm3, %v4672_v21, 0.0  ;;  %v2724_v21 = vsel %vm535_vm3, %v4722_v8, 0.0 }
 0x318   : > { %v2800_v35 = vadd.f32 %v2799_v49, %v2798_v40 }
 0x31c   : > { %v2595_v15 = vpop.f32.mrf.mxu1 }
 0x31d   : > { %2653 = vst.msk [vmem:[%s3344_s28 + $0x78] sm:$0xff] %vm535_vm3, %v2595_v15  ;;  %v2700_v63 = vsel %vm535_vm3, %v2595_v15, 0.0  ;;  %v2755_v11 = vmul.f32 %v2595_v15, %v2595_v15  ;;  %v2722_v15 = vsel %vm535_vm3, %v4715_v41, 0.0 }
 0x31e   : > { %v2701_v23 = vadd.f32 %v2700_v63, %v2699_v32 }
 0x31f   : > { %v2801_v34 = vsel %vm535_vm3, %v2755_v11, 0.0 }
 0x320   : > { %v2703_v56 = vadd.f32 %v2702_v55, %v2701_v23  ;;  %v2802_v13 = vadd.f32 %v2801_v34, %v2800_v35  ;;  %v2823_v35 = vsel %vm535_vm3, %v2766_v1, 0.0 }
 0x322   : > { %v2705_v18 = vadd.f32 %v2704_v46, %v2703_v56  ;;  %v2804_v50 = vadd.f32 %v2803_v61, %v2802_v13  ;;  %v2825_v56 = vsel %vm535_vm3, %v2767_v30, 0.0 }
 0x324   : > { %v2707_v24 = vadd.f32 %v2706_v53, %v2705_v18  ;;  %v2806_v25 = vadd.f32 %v2805_v57, %v2804_v50 }
 0x326   : > { %v2808_v0 = vadd.f32 %v2807_v31, %v2806_v25  ;;  %v2709_v59 = vadd.f32 %v2708_v62, %v2707_v24 }
 0x328   : > { %v2810_v27 = vadd.f32 %v2809_v28, %v2808_v0  ;;  %v2711_v42 = vadd.f32 %v2710_v16, %v2709_v59 }
 0x32a   : > { %v2812_v14 = vadd.f32 %v2811_v12, %v2810_v27  ;;  %v2713_v33 = vadd.f32 %v2712_v36, %v2711_v42 }
 0x32c   : > { %v2814_v51 = vadd.f32 %v2813_v39, %v2812_v14 }
 0x335   : > { %v2628_v26 = vpop.f32.mrf.mxu3 }
 0x336   : > { %2666 = vst.msk [vmem:[%s3344_s28 + $0xe0] sm:$0xff] %vm535_vm3, %v2628_v26  ;;  %v2768_v23 = vmul.f32 %v2628_v26, %v2628_v26  ;;  %v2726_v13 = vsel %vm535_vm3, %v2628_v26, 0.0 }
 0x338   : > { %v2827_v38 = vsel %vm535_vm3, %v2768_v23, 0.0 }
 0x33a   : > { %v2613_v47 = vpop.f32.mrf.mxu2 }
 0x33b   : > { %2660 = vst.msk [vmem:[%s3344_s28 + $0xb0] sm:$0xff] %vm535_vm3, %v2613_v47  ;;  %v2762_v22 = vmul.f32 %v2613_v47, %v2613_v47  ;;  %v2714_v6 = vsel %vm535_vm3, %v2613_v47, 0.0 }
 0x33c   : > { %v2715_v60 = vadd.f32 %v2714_v6, %v2713_v33  ;;  %v2670_v33 = vld [vmem:[%s4816_s4] sm:$0x3] }
 0x33d   : > { %v2630_v10 = vpop.f32.mrf.mxu3  ;;  %v2815_v58 = vsel %vm535_vm3, %v2762_v22, 0.0 }
 0x33e   : > { %2667 = vst.msk [vmem:[%s3344_s28 + $0xe8] sm:$0xff] %vm535_vm3, %v2630_v10  ;;  %v2816_v48 = vadd.f32 %v2815_v58, %v2814_v51  ;;  %v2769_v41 = vmul.f32 %v2630_v10, %v2630_v10  ;;  %v2728_v18 = vsel %vm535_vm3, %v2630_v10, 0.0 }
 0x340   : > { %v2829_v57 = vsel %vm535_vm3, %v2769_v41, 0.0 }
 0x342   : > { %v2615_v9 = vpop.f32.mrf.mxu2 }
 0x343   : > { %2661 = vst.msk [vmem:[%s3344_s28 + $0xb8] sm:$0xff] %vm535_vm3, %v2615_v9  ;;  %v2716_v5 = vsel %vm535_vm3, %v2615_v9, 0.0  ;;  %v2763_v2 = vmul.f32 %v2615_v9, %v2615_v9 }
 0x344   : > { %v2717_v37 = vadd.f32 %v2716_v5, %v2715_v60 }
 0x345   : > { %v2817_v40 = vsel %vm535_vm3, %v2763_v2, 0.0 }
 0x346   : > { %v2719_v45 = vadd.f32 %v2718_v52, %v2717_v37  ;;  %v2818_v7 = vadd.f32 %v2817_v40, %v2816_v48 }
 0x348   : > { %v2721_v49 = vadd.f32 %v2720_v29, %v2719_v45  ;;  %v2820_v32 = vadd.f32 %v2819_v17, %v2818_v7 }
 0x34a   : > { %v2723_v63 = vadd.f32 %v2722_v15, %v2721_v49  ;;  %v2822_v11 = vadd.f32 %v2821_v44, %v2820_v32 }
 0x34c   : > { %v2824_v55 = vadd.f32 %v2823_v35, %v2822_v11  ;;  %v2633_v43 = vpop.f32.mrf.mxu3  ;;  %v2725_v34 = vadd.f32 %v2724_v21, %v2723_v63 }
 0x34d   : > { %2668 = vst.msk [vmem:[%s3344_s28 + $0xf0] sm:$0xff] %vm535_vm3, %v2633_v43  ;;  %v2770_v53 = vmul.f32 %v2633_v43, %v2633_v43  ;;  %v2730_v24 = vsel %vm535_vm3, %v2633_v43, 0.0 }
 0x34e   : > { %v2727_v61 = vadd.f32 %v2726_v13, %v2725_v34  ;;  %v2826_v46 = vadd.f32 %v2825_v56, %v2824_v55 }
 0x34f   : > { %v2831_v62 = vsel %vm535_vm3, %v2770_v53, 0.0 }
 0x350   : > { %v2729_v50 = vadd.f32 %v2728_v18, %v2727_v61  ;;  %v2828_v8 = vadd.f32 %v2827_v38, %v2826_v46 }
 0x352   : > { %v2830_v54 = vadd.f32 %v2829_v57, %v2828_v8  ;;  %v2731_v25 = vadd.f32 %v2730_v24, %v2729_v50 }
 0x354   : > { %v2635_v31 = vpop.f32.mrf.mxu3  ;;  %v2832_v28 = vadd.f32 %v2831_v62, %v2830_v54 }
 0x355   : > { %2669 = vst.msk [vmem:[%s3344_s28 + $0xf8] sm:$0xff] %vm535_vm3, %v2635_v31  ;;  %v2732_v0 = vsel %vm535_vm3, %v2635_v31, 0.0  ;;  %v2771_v59 = vmul.f32 %v2635_v31, %v2635_v31 }
 0x356   : > { %v2733_v27 = vadd.f32 %v2732_v0, %v2731_v25 }
 0x357   : > { %v2833_v26 = vsel %vm535_vm3, %v2771_v59, 0.0  ;;  %vm2844_vm3 = vcmask 25600  }
 0x358   : > { %v2734_v20 = vrot.slane %v2733_v27, 4  ;;  %v2834_v47 = vadd.f32 %v2833_v26, %v2832_v28 }
 0x35a   : > { %v2735_v16 = vadd.f32 %v2734_v20, %v2733_v27  ;;  %v2835_v42 = vrot.slane %v2834_v47, 4 }
 0x35c   : > { %v2736_v12 = vrot.slane %v2735_v16, 2  ;;  %v2836_v19 = vadd.f32 %v2835_v42, %v2834_v47 }
 0x35e   : > { %v2737_v22 = vadd.f32 %v2736_v12, %v2735_v16  ;;  %v2837_v10 = vrot.slane %v2836_v19, 2 }
 0x360   : > { %v2738_v14 = vrot.slane %v2737_v22, 1  ;;  %v2838_v36 = vadd.f32 %v2837_v10, %v2836_v19 }
 0x362   : > { %v2839_v6 = vrot.slane %v2838_v36, 1  ;;  %v2739_v39 = vadd.f32 %v2738_v14, %v2737_v22 }
 0x364   : > { %v2840_v58 = vadd.f32 %v2839_v6, %v2838_v36 }
 0x366   : > { %v2842_v60 = vsel %vm2841_vm11, %v2739_v39, %v2840_v58 }
 0x367   : > { %v2843_v51 = vadd.f32 %v2842_v60, %v2670_v33 }
 0x369   : > { %2845 = vst.msk [vmem:[%s4816_s4] sm:$0x3] %vm2844_vm3, %v2843_v51 }
 0x36a PF: > { %s15_s15 = sadd.s32 1, %s3285_s15  }
 0x36b   : > { %p12_p5 = scmp.ge.s32.totalorder %s15_s15, 4  }
 0x36d   :  { %14 = sbr.rel (!%p12_p5) target bundleno = 1 (0x1), region = 78 }

// kernel: decoder_block_forward.6
= control target key start
LH: loop header
LB: loop body
LE: loop exit
PB: predicated region body
PF: predicated region fallthrough
CT: control target
= control target key end

     0   :  { %s2925_s18 = smov 0   ;;  %s4399_s0 = inlined_call_operand.vmem [shape: f32[2,16,16,4], index: 0, kind: input, shape index: {}]   ;;  %s4400_s1 = inlined_call_operand.vmem [shape: f32[1,4], index: 1, kind: input, shape index: {}]   ;;  %s4401_s2 = inlined_call_operand.vmem [shape: f32[1,4], index: 2, kind: input, shape index: {}]   ;;  %s4402_s3 = inlined_call_operand.vmem [shape: bf16[36,4], index: 3, kind: input, shape index: {}]   ;;  %s4403_s4 = inlined_call_operand.vmem [shape: f32[2,16,16,4], index: 4, kind: output, shape index: {0}]   ;;  %s4404_s5 = inlined_call_operand.vmem [shape: f32[2,4], index: 5, kind: output, shape index: {1}]  }
   0x1 LB: > { %s2681_s19 = sadd.s32 4294967295, %s2883_s18   ;;  %p2685_p0 = scmp.ge.s32.totalorder %s2883_s18, 1  ;;  %s2883_s18 = sphi %s2925_s18, %s16_s18  }
   0x2   : > { %p185_p1 = scmp.lt.s32.totalorder %s2883_s18, 3 }
   0x4   : > { %p186_p2 = pnand %p2685_p0, %p185_p1 }
   0x6   : > { %189 = sbr.rel (%p186_p2) target bundleno = 825 (0x339), region = 36 }
   0xb   : > { %p213_p3 = scmp.lt.s32.totalorder %s2681_s19, 1  ;;  %p2690_p4 = scmp.ne.s32.totalorder %s2681_s19, 0 }
   0xd   : > { %s214_s20 = scalar_select %p213_p3, %s2681_s19, 1 }
   0xe   : > { %227 = sbr.rel (%p2690_p4) target bundleno = 75 (0x4b), region = 40 }
   0xf   : > { %s2807_s21 = sshll.u32 %s214_s20, 8 }
  0x10   : > { %s2936_s24 = scalar_lea.vmem %s4399_s0, %s2807_s21  ;;  %s2941_s27 = scalar_lea.vmem %s4403_s4, %s2807_s21 }
  0x13   : > { %vm228_vm0 = vcmask 25600   ;;  %vm230_vm1 = vcmask 27648   ;;  %v2885_v0 = vmov 0.0   ;;  %v2886_v1 = vmov 0  }
  0x14   : > { %229 = vst.msk [vmem:[%s4404_s5] sm:$0x3] %vm228_vm0, %v2885_v0  ;;  %vm233_vm2 = vcmask 24576  }
  0x15   : > { %231 = vst.msk [vmem:[#allocation2] sm:$0xf] %vm230_vm1, %v2886_v1 }
  0x16   : > { %232 = vst.msk [vmem:[#allocation2 + $0x4] sm:$0xf] %vm230_vm1, %v2886_v1 }
  0x17   : > { %235 = vst.msk [vmem:[#allocation2 + $0xc] sm:$0xf] %vm230_vm1, %v2886_v1 }
  0x18   : > { %236 = vst.msk [vmem:[#allocation2 + $0x10] sm:$0xf] %vm230_vm1, %v2886_v1 }
  0x19   : > { %238 = vst.msk [vmem:[#allocation2 + $0x18] sm:$0xf] %vm230_vm1, %v2886_v1 }
  0x1a   : > { %239 = vst.msk [vmem:[#allocation2 + $0x1c] sm:$0xf] %vm230_vm1, %v2886_v1 }
  0x1b   : > { %241 = vst.msk [vmem:[#allocation2 + $0x24] sm:$0xf] %vm230_vm1, %v2886_v1 }
  0x1c   : > { %242 = vst.msk [vmem:[#allocation2 + $0x28] sm:$0xf] %vm230_vm1, %v2886_v1 }
  0x1d   : > { %244 = vst.msk [vmem:[#allocation2 + $0x30] sm:$0xf] %vm230_vm1, %v2886_v1 }
  0x1e   : > { %245 = vst.msk [vmem:[#allocation2 + $0x34] sm:$0xf] %vm230_vm1, %v2886_v1 }
  0x1f   : > { %247 = vst.msk [vmem:[#allocation2 + $0x3c] sm:$0xf] %vm230_vm1, %v2886_v1 }
  0x20   : > { %248 = vst.msk [vmem:[#allocation2 + $0x40] sm:$0xf] %vm230_vm1, %v2886_v1 }
  0x21   : > { %250 = vst.msk [vmem:[#allocation2 + $0x48] sm:$0xf] %vm230_vm1, %v2886_v1 }
  0x22   : > { %251 = vst.msk [vmem:[#allocation2 + $0x4c] sm:$0xf] %vm230_vm1, %v2886_v1 }
  0x23   : > { %253 = vst.msk [vmem:[#allocation2 + $0x54] sm:$0xf] %vm230_vm1, %v2886_v1 }
  0x24   : > { %254 = vst.msk [vmem:[#allocation2 + $0x58] sm:$0xf] %vm230_vm1, %v2886_v1 }
  0x25   : > { %256 = vst.msk [vmem:[#allocation2 + $0x60] sm:$0xf] %vm230_vm1, %v2886_v1 }
  0x26   : > { %257 = vst.msk [vmem:[#allocation2 + $0x64] sm:$0xf] %vm230_vm1, %v2886_v1 }
  0x27   : > { %259 = vst.msk [vmem:[#allocation2 + $0x6c] sm:$0xf] %vm230_vm1, %v2886_v1 }
  0x28   : > { %260 = vst.msk [vmem:[#allocation2 + $0x70] sm:$0xf] %vm230_vm1, %v2886_v1 }
  0x29   : > { %262 = vst.msk [vmem:[#allocation2 + $0x78] sm:$0xf] %vm230_vm1, %v2886_v1 }
  0x2a   : > { %263 = vst.msk [vmem:[#allocation2 + $0x7c] sm:$0xf] %vm230_vm1, %v2886_v1 }
  0x2b   : > { %265 = vst.msk [vmem:[#allocation2 + $0x84] sm:$0xf] %vm230_vm1, %v2886_v1 }
  0x2c   : > { %266 = vst.msk [vmem:[#allocation2 + $0x88] sm:$0xf] %vm230_vm1, %v2886_v1 }
  0x2d   : > { %268 = vst.msk [vmem:[#allocation2 + $0x90] sm:$0xf] %vm230_vm1, %v2886_v1 }
  0x2e   : > { %269 = vst.msk [vmem:[#allocation2 + $0x94] sm:$0xf] %vm230_vm1, %v2886_v1 }
  0x2f   : > { %271 = vst.msk [vmem:[#allocation2 + $0x9c] sm:$0xf] %vm230_vm1, %v2886_v1 }
  0x30   : > { %272 = vst.msk [vmem:[#allocation2 + $0xa0] sm:$0xf] %vm230_vm1, %v2886_v1 }
  0x31   : > { %274 = vst.msk [vmem:[#allocation2 + $0xa8] sm:$0xf] %vm230_vm1, %v2886_v1 }
  0x32   : > { %275 = vst.msk [vmem:[#allocation2 + $0xac] sm:$0xf] %vm230_vm1, %v2886_v1 }
  0x33   : > { %277 = vst.msk [vmem:[#allocation2 + $0xb4] sm:$0xf] %vm230_vm1, %v2886_v1 }
  0x34   : > { %278 = vst.msk [vmem:[#allocation2 + $0xb8] sm:$0xf] %vm230_vm1, %v2886_v1 }
  0x35   : > { %280 = vst.msk [vmem:[#allocation2 + $0xc0] sm:$0xf] %vm230_vm1, %v2886_v1 }
  0x36   : > { %281 = vst.msk [vmem:[#allocation2 + $0xc4] sm:$0xf] %vm230_vm1, %v2886_v1 }
  0x37   : > { %283 = vst.msk [vmem:[#allocation2 + $0xcc] sm:$0xf] %vm230_vm1, %v2886_v1 }
  0x38   : > { %284 = vst.msk [vmem:[#allocation2 + $0xd0] sm:$0xf] %vm230_vm1, %v2886_v1 }
  0x39   : > { %234 = vst.msk [vmem:[#allocation2 + $0x8] sm:$0x1] %vm233_vm2, %v2886_v1 }
  0x3a   : > { %237 = vst.msk [vmem:[#allocation2 + $0x14] sm:$0x1] %vm233_vm2, %v2886_v1 }
  0x3b   : > { %240 = vst.msk [vmem:[#allocation2 + $0x20] sm:$0x1] %vm233_vm2, %v2886_v1 }
  0x3c   : > { %243 = vst.msk [vmem:[#allocation2 + $0x2c] sm:$0x1] %vm233_vm2, %v2886_v1 }
  0x3d   : > { %246 = vst.msk [vmem:[#allocation2 + $0x38] sm:$0x1] %vm233_vm2, %v2886_v1 }
  0x3e   : > { %249 = vst.msk [vmem:[#allocation2 + $0x44] sm:$0x1] %vm233_vm2, %v2886_v1 }
  0x3f   : > { %252 = vst.msk [vmem:[#allocation2 + $0x50] sm:$0x1] %vm233_vm2, %v2886_v1 }
  0x40   : > { %255 = vst.msk [vmem:[#allocation2 + $0x5c] sm:$0x1] %vm233_vm2, %v2886_v1 }
  0x41   : > { %258 = vst.msk [vmem:[#allocation2 + $0x68] sm:$0x1] %vm233_vm2, %v2886_v1 }
  0x42   : > { %261 = vst.msk [vmem:[#allocation2 + $0x74] sm:$0x1] %vm233_vm2, %v2886_v1 }
  0x43   : > { %264 = vst.msk [vmem:[#allocation2 + $0x80] sm:$0x1] %vm233_vm2, %v2886_v1 }
  0x44   : > { %267 = vst.msk [vmem:[#allocation2 + $0x8c] sm:$0x1] %vm233_vm2, %v2886_v1 }
  0x45   : > { %270 = vst.msk [vmem:[#allocation2 + $0x98] sm:$0x1] %vm233_vm2, %v2886_v1 }
  0x46   : > { %273 = vst.msk [vmem:[#allocation2 + $0xa4] sm:$0x1] %vm233_vm2, %v2886_v1 }
  0x47   : > { %276 = vst.msk [vmem:[#allocation2 + $0xb0] sm:$0x1] %vm233_vm2, %v2886_v1 }
  0x48   : > { %279 = vst.msk [vmem:[#allocation2 + $0xbc] sm:$0x1] %vm233_vm2, %v2886_v1 }
  0x49   : > { %282 = vst.msk [vmem:[#allocation2 + $0xc8] sm:$0x1] %vm233_vm2, %v2886_v1 }
  0x4a   : > { %285 = vst.msk [vmem:[#allocation2 + $0xd4] sm:$0x1] %vm233_vm2, %v2886_v1 }
  0x4b PF: > { %v896_v2 = vld [vmem:[#allocation2] sm:$0xf]  ;;  %v897_v3 = vld [vmem:[#allocation2 + $0x4] sm:$0xf]  ;;  %v898_v4 = vld [vmem:[#allocation2 + $0x8] sm:$0x1] }
  0x4c   : > { %vm950_vm3 = vsmask.f32 3328  ;;  %vm951_vm4 = vsmask.f32 7440  ;;  %v954_v5 = vshrl.u32 %v896_v2, 16  ;;  %v957_v6 = vshll.u32 %v896_v2, 16 }
  0x4d   : > { %v963_v7 = vshll.u32 %v897_v3, 16  ;;  %v967_v8 = vshrl.u32 %v897_v3, 16  ;;  %v973_v9 = vshll.u32 %v898_v4, 16  ;;  %v292_v10 = vld [vmem:[%s2936_s24 + $0x30] sm:$0xff]  ;;  %v293_v11 = vld [vmem:[%s2936_s24 + $0x38] sm:$0xff]  ;;  %vm3016_vm5 = vmor %vm950_vm3, %vm951_vm4  ;;  %vm778_vm8 = vcmask 27648  }
  0x4e   : > { %v956_v12 = vrot.slane %v954_v5, 4  ;;  %v959_v13 = vrot.slane %v957_v6, 5  ;;  %v3005_v14 = vld [vmem:[%s4400_s1] ss:$0 sm:$0xff]  ;;  %vm454_vm6 = vsmask.f32 256 }
  0x4f   : > { %v965_v15 = vrot.slane %v963_v7, 5  ;;  %v969_v16 = vrot.slane %v967_v8, 4  ;;  %v975_v18 = vrot.slane %v973_v9, 5  ;;  %v328_v19 = vmul.f32 %v3005_v14, %v292_v10  ;;  %v3012_v21 = vld [vmem:[%s4401_s2] ss:$0 sm:$0xff]  ;;  %v288_v24 = vld [vmem:[%s2936_s24 + $0x10] sm:$0xff] }
  0x50   : > { %v960_v17 = vor.u32 %v959_v13, %v956_v12  ;;  %v329_v20 = vmul.f32 %v3005_v14, %v293_v11  ;;  %vm455_vm7 = vsmask.f32 4368  ;;  %v289_v28 = vld [vmem:[%s2936_s24 + $0x18] sm:$0xff]  ;;  %v324_v29 = vmul.f32 %v3005_v14, %v288_v24  ;;  %v286_v36 = vld [vmem:[%s2936_s24] sm:$0xff]  ;;  %v287_v37 = vld [vmem:[%s2936_s24 + $0x8] sm:$0xff]  ;;  %s2887_s9 = smov 4  }
  0x51   : > { %v970_v23 = vor.u32 %v969_v16, %v965_v15  ;;  %v364_v26 = vadd.f32 %v3012_v21, %v328_v19  ;;  %vm779_vm9 = vsmask.f32 7938  ;;  %vm786_vm10 = vcmask 24576   ;;  %v294_v42 = vld [vmem:[%s2936_s24 + $0x40] sm:$0xff]  ;;  %v295_v50 = vld [vmem:[%s2936_s24 + $0x48] sm:$0xff]  ;;  %vm3042_vm11 = vmor %vm454_vm6, %vm455_vm7  ;;  %s2888_s14 = smov 8  }
  0x52   : > { %v961_v25 = vrot.slane %v960_v17, 4  ;;  %v365_v27 = vadd.f32 %v3012_v21, %v329_v20  ;;  %v325_v31 = vmul.f32 %v3005_v14, %v289_v28  ;;  %v360_v35 = vadd.f32 %v3012_v21, %v324_v29  ;;  %vm3050_vm12 = vmand %vm778_vm8, %vm779_vm9  ;;  %v805_v0 = vld [vmem:[#allocation2 + $0x30] sm:$0xf]  ;;  %v809_v4 = vld [vmem:[#allocation2 + $0x38] sm:$0x1]  ;;  %s2889_s15 = smov 20  }
  0x53   : > { %v971_v30 = vrot.slane %v970_v23, 4  ;;  %v396_v33 = vmax.f32 %v364_v26, 0.0  ;;  %v322_v41 = vmul.f32 %v3005_v14, %v286_v36  ;;  %v323_v48 = vmul.f32 %v3005_v14, %v287_v37  ;;  %vm3057_vm13 = vmand %vm786_vm10, %vm454_vm6  ;;  %v791_v23 = vld [vmem:[#allocation2 + $0x18] sm:$0xf]  ;;  %v795_v24 = vld [vmem:[#allocation2 + $0x20] sm:$0x1] }
  0x54   : > { %v966_v32 = vsel %vm3016_vm5, %v961_v25, %v965_v15  ;;  %v397_v34 = vmax.f32 %v365_v27, 0.0  ;;  %v361_v40 = vadd.f32 %v3012_v21, %v325_v31  ;;  %v392_v46 = vmax.f32 %v360_v35, 0.0  ;;  %v291_v35 = vld [vmem:[%s2936_s24 + $0x28] sm:$0xff]  ;;  %v296_v36 = vld [vmem:[%s2936_s24 + $0x50] sm:$0xff]  ;;  %s2890_s16 = smov 16   ;;  %s2891_s17 = smov 12  }
  0x55   : > { %v976_v38 = vsel %vm3016_vm5, %v971_v30, %v975_v18  ;;  %v1616_v39 = vunpack.c.l.b16 %v966_v32  ;;  %v428_v44 = vpack.c.bf16 %v396_v33, %v396_v33  ;;  %v358_v49 = vadd.f32 %v3012_v21, %v322_v41  ;;  %v290_v30 = vld [vmem:[%s2936_s24 + $0x20] sm:$0xff]  ;;  %s2892_s19 = smov 32   ;;  %s2893_s20 = smov 28  }
  0x56   : > { %v1617_v43 = vunpack.c.l.b16 %v976_v38  ;;  %v429_v45 = vpack.c.bf16 %v397_v34, %v397_v34  ;;  %v393_v47 = vmax.f32 %v361_v40, 0.0  ;;  %v330_v51 = vmul.f32 %v3005_v14, %v294_v42  ;;  %s2894_s21 = smov 24  }
  0x57   : > { %v509_v53 = vshrl.u32 %v428_v44, 16  ;;  %v512_v54 = vshll.u32 %v428_v44, 16  ;;  %v4428_v56 = vmov 0  ;;  %v424_v58 = vpack.c.bf16 %v392_v46, %v392_v46 }
  0x58   : > { %v1648_v52 = vpack.c.b16 %v1617_v43, %v1616_v39  ;;  %v517_v55 = vshrl.u32 %v429_v45, 16  ;;  %v4429_v56 = vsel %vm3042_vm11, 4294967295, %v4428_v56  ;;  %v520_v57 = vshll.u32 %v429_v45, 16  ;;  %v781_v45 = vld [vmem:[#allocation2 + $0xc] sm:$0xf] }
  0x59   : > { %4430 = vst [vmem:[#allocation3_spill] sm:$0xff] %v4429_v56  ;;  %v425_v59 = vpack.c.bf16 %v393_v47, %v393_v47  ;;  %v359_v60 = vadd.f32 %v3012_v21, %v323_v48  ;;  %v511_v61 = vrot.slane %v509_v53, 7  ;;  %v4431_v63 = vmov 0 }
  0x5a   : > { %1664 = vrot.lane.b32.xlu0 %v1648_v52, %s2887_s9  ;;  %v519_v62 = vrot.slane %v517_v55, 7  ;;  %v4432_v63 = vsel %vm3050_vm12, 4294967295, %v4431_v63  ;;  %v390_v1 = vmax.f32 %v358_v49, 0.0  ;;  %v331_v2 = vmul.f32 %v3005_v14, %v295_v50  ;;  %v788_v55 = vld [vmem:[#allocation2 + $0x14] sm:$0x1] }
  0x5b   : > { %4433 = vst [vmem:[#allocation4_spill] sm:$0xff] %v4432_v63  ;;  %v4434_v3 = vmov 0  ;;  %v475_v5 = vshrl.u32 %v424_v58, 16  ;;  %v478_v6 = vshll.u32 %v424_v58, 16  ;;  %v483_v7 = vshrl.u32 %v425_v59, 16 }
  0x5c   : > { %v4435_v3 = vsel %vm3057_vm13, 4294967295, %v4434_v3  ;;  %v486_v8 = vshll.u32 %v425_v59, 16  ;;  %v514_v9 = vor.u32 %v512_v54, %v511_v61  ;;  %v515_v10 = vrot.slane %v511_v61, 4  ;;  %v297_v54 = vld [vmem:[%s2936_s24 + $0x58] sm:$0xff] }
  0x5d   : > { %4436 = vst [vmem:[#allocation5_spill] sm:$0xff] %v4435_v3  ;;  %v522_v11 = vor.u32 %v520_v57, %v519_v62  ;;  %v524_v12 = vrot.slane %v519_v62, 4  ;;  %v477_v13 = vrot.slane %v475_v5, 7  ;;  %v485_v15 = vrot.slane %v483_v7, 7 }
  0x5e   : > { %v391_v16 = vmax.f32 %v359_v60, 0.0  ;;  %v422_v17 = vpack.c.bf16 %v390_v1, %v390_v1  ;;  %v806_v19 = vsel %vm3050_vm12, %v514_v9, %v805_v0  ;;  %v366_v25 = vadd.f32 %v3012_v21, %v330_v51 }
  0x5f   : > { %v523_v18 = vsel %vm3042_vm11, %v515_v10, %v522_v11  ;;  %v810_v20 = vsel %vm3057_vm13, %v524_v12, %v809_v4  ;;  %807 = vst [vmem:[#allocation2 + $0x30] sm:$0xf] %v806_v19  ;;  %v480_v26 = vor.u32 %v478_v6, %v477_v13  ;;  %v481_v27 = vrot.slane %v477_v13, 4 }
  0x60   : > { %v488_v28 = vor.u32 %v486_v8, %v485_v15  ;;  %v490_v29 = vrot.slane %v485_v15, 4  ;;  %808 = vst.msk [vmem:[#allocation2 + $0x34] sm:$0xf] %vm778_vm8, %v523_v18  ;;  %v423_v31 = vpack.c.bf16 %v391_v16, %v391_v16  ;;  %v458_v32 = vshrl.u32 %v422_v17, 16 }
  0x61   : > { %v461_v33 = vshll.u32 %v422_v17, 16  ;;  %v367_v34 = vadd.f32 %v3012_v21, %v331_v2  ;;  %811 = vst [vmem:[#allocation2 + $0x38] sm:$0x1] %v810_v20  ;;  %v792_v38 = vsel %vm3050_vm12, %v480_v26, %v791_v23  ;;  %v398_v40 = vmax.f32 %v366_v25, 0.0 }
  0x62   : > { %v489_v37 = vsel %vm3042_vm11, %v481_v27, %v488_v28  ;;  %v796_v39 = vsel %vm3057_vm13, %v490_v29, %v795_v24  ;;  %793 = vst [vmem:[#allocation2 + $0x18] sm:$0xf] %v792_v38  ;;  %v460_v41 = vrot.slane %v458_v32, 7  ;;  %v466_v42 = vshrl.u32 %v423_v31, 16 }
  0x63   : > { %v469_v43 = vshll.u32 %v423_v31, 16  ;;  %v399_v44 = vmax.f32 %v367_v34, 0.0  ;;  %794 = vst.msk [vmem:[#allocation2 + $0x1c] sm:$0xf] %vm778_vm8, %v489_v37  ;;  %v430_v46 = vpack.c.bf16 %v398_v40, %v398_v40  ;;  %v326_v47 = vmul.f32 %v3005_v14, %v290_v30 }
  0x64   : > { %v327_v48 = vmul.f32 %v3005_v14, %v291_v35  ;;  %v332_v49 = vmul.f32 %v3005_v14, %v296_v36  ;;  %797 = vst [vmem:[#allocation2 + $0x20] sm:$0x1] %v796_v39  ;;  %v463_v50 = vor.u32 %v461_v33, %v460_v41  ;;  %v464_v51 = vrot.slane %v460_v41, 4 }
  0x65   : > { %v468_v52 = vrot.slane %v466_v42, 7  ;;  %v3083_v53 = vpack.c.bf16 %v399_v44, %v399_v44  ;;  %v526_v57 = vshrl.u32 %v430_v46, 16  ;;  %v529_v58 = vshll.u32 %v430_v46, 16 }
  0x66   : > { %v3087_v59 = vadd.f32 %v3012_v21, %v326_v47  ;;  %v3090_v60 = vadd.f32 %v3012_v21, %v327_v48  ;;  %v908_v61 = vld [vmem:[#allocation2 + $0x30] sm:$0xf]  ;;  %v782_v1 = vsel %vm3050_vm12, %v463_v50, %v781_v45  ;;  %v3096_v7 = vmul.f32 %v3005_v14, %v297_v54 }
  0x67   : > { %v471_v62 = vor.u32 %v469_v43, %v468_v52  ;;  %v473_v0 = vrot.slane %v468_v52, 4  ;;  %v534_v2 = vshrl.u32 %v3083_v53, 16  ;;  %v909_v4 = vld [vmem:[#allocation2 + $0x34] sm:$0xf]  ;;  %v1050_v5 = vshrl.u32 %v908_v61, 16 }
  0x68   : > { %v1053_v6 = vshll.u32 %v908_v61, 16  ;;  %783 = vst [vmem:[#allocation2 + $0xc] sm:$0xf] %v782_v1  ;;  %v3099_v8 = vadd.f32 %v3012_v21, %v332_v49  ;;  %v910_v9 = vld [vmem:[#allocation2 + $0x38] sm:$0x1]  ;;  %v1059_v10 = vshll.u32 %v909_v4, 16 }
  0x69   : > { %v1063_v11 = vshrl.u32 %v909_v4, 16  ;;  %v472_v12 = vsel %vm3042_vm11, %v464_v51, %v471_v62  ;;  %v789_v13 = vsel %vm3057_vm13, %v473_v0, %v788_v55  ;;  %v1052_v15 = vrot.slane %v1050_v5, 4  ;;  %v902_v18 = vld [vmem:[#allocation2 + $0x18] sm:$0xf]  ;;  %v812_v49 = vld [vmem:[#allocation2 + $0x3c] sm:$0xf] }
  0x6a   : > { %v1055_v16 = vrot.slane %v1053_v6, 5  ;;  %v1069_v17 = vshll.u32 %v910_v9, 16  ;;  %v3105_v19 = vrot.slane %v526_v57, 7  ;;  %v1061_v20 = vrot.slane %v1059_v10, 5  ;;  %v903_v24 = vld [vmem:[#allocation2 + $0x1c] sm:$0xf] }
  0x6b   : > { %v1065_v23 = vrot.slane %v1063_v11, 4  ;;  %v1002_v25 = vshrl.u32 %v902_v18, 16  ;;  %v1005_v26 = vshll.u32 %v902_v18, 16  ;;  %v904_v29 = vld [vmem:[#allocation2 + $0x20] sm:$0x1]  ;;  %v1011_v30 = vshll.u32 %v903_v24, 16 }
  0x6c   : > { %v1056_v27 = vor.u32 %v1055_v16, %v1052_v15  ;;  %v1071_v28 = vrot.slane %v1069_v17, 5  ;;  %v1015_v31 = vshrl.u32 %v903_v24, 16  ;;  %v1021_v35 = vshll.u32 %v904_v29, 16  ;;  %785 = vst.msk [vmem:[#allocation2 + $0x10] sm:$0xf] %vm778_vm8, %v472_v12 }
  0x6d   : > { %v1066_v32 = vor.u32 %v1065_v23, %v1061_v20  ;;  %v1004_v33 = vrot.slane %v1002_v25, 4  ;;  %v1007_v34 = vrot.slane %v1005_v26, 5  ;;  %v1013_v37 = vrot.slane %v1011_v30, 5  ;;  %790 = vst [vmem:[#allocation2 + $0x14] sm:$0x1] %v789_v13  ;;  %v300_v23 = vld [vmem:[%s2936_s24 + $0x70] sm:$0xff] }
  0x6e   : > { %v1057_v36 = vrot.slane %v1056_v27, 4  ;;  %v1017_v38 = vrot.slane %v1015_v31, 4  ;;  %v531_v39 = vor.u32 %v529_v58, %v3105_v19  ;;  %v1023_v42 = vrot.slane %v1021_v35, 5  ;;  %v816_v5 = vld [vmem:[#allocation2 + $0x44] sm:$0x1] }
  0x6f   : > { %v1067_v40 = vrot.slane %v1066_v32, 4  ;;  %v1008_v41 = vor.u32 %v1007_v34, %v1004_v33  ;;  %v899_v43 = vld [vmem:[#allocation2 + $0xc] sm:$0xf]  ;;  %v532_v44 = vrot.slane %v3105_v19, 4  ;;  %v536_v54 = vrot.slane %v534_v2, 7  ;;  %v301_v32 = vld [vmem:[%s2936_s24 + $0x78] sm:$0xff] }
  0x70   : > { %v1062_v45 = vsel %vm3016_vm5, %v1057_v36, %v1061_v20  ;;  %v1018_v46 = vor.u32 %v1017_v38, %v1013_v37  ;;  %v978_v47 = vshrl.u32 %v899_v43, 16  ;;  %v981_v48 = vshll.u32 %v899_v43, 16 }
  0x71   : > { %v1072_v50 = vsel %vm3016_vm5, %v1067_v40, %v1071_v28  ;;  %v1624_v51 = vunpack.c.l.b16 %v1062_v45  ;;  %v1009_v52 = vrot.slane %v1008_v41, 4  ;;  %v537_v0 = vshll.u32 %v3083_v53, 16 }
  0x72   : > { %v1625_v55 = vunpack.c.l.b16 %v1072_v50  ;;  %v1019_v57 = vrot.slane %v1018_v46, 4  ;;  %v980_v58 = vrot.slane %v978_v47, 4  ;;  %v983_v61 = vrot.slane %v981_v48, 5 }
  0x73   : > { %v1014_v62 = vsel %vm3016_vm5, %v1009_v52, %v1013_v37  ;;  %v541_v1 = vrot.slane %v536_v54, 4  ;;  %v813_v4 = vsel %vm3050_vm12, %v531_v39, %v812_v49  ;;  %v900_v10 = vld [vmem:[#allocation2 + $0x10] sm:$0xf]  ;;  %v539_v53 = vor.u32 %v537_v0, %v536_v54 }
  0x74   : > { %v3119_v6 = vpack.c.b16 %v1625_v55, %v1624_v51  ;;  %v1024_v2 = vsel %vm3016_vm5, %v1019_v57, %v1023_v42  ;;  %v1620_v9 = vunpack.c.l.b16 %v1014_v62  ;;  %v984_v11 = vor.u32 %v983_v61, %v980_v58  ;;  %814 = vst [vmem:[#allocation2 + $0x3c] sm:$0xf] %v813_v4  ;;  %v901_v13 = vld [vmem:[#allocation2 + $0x14] sm:$0x1]  ;;  %v798_v57 = vld [vmem:[#allocation2 + $0x24] sm:$0xf] }
  0x75   : > { %v1621_v12 = vunpack.c.l.b16 %v1024_v2  ;;  %v987_v15 = vshll.u32 %v900_v10, 16  ;;  %v991_v16 = vshrl.u32 %v900_v10, 16  ;;  %v997_v18 = vshll.u32 %v901_v13, 16  ;;  %v802_v10 = vld [vmem:[#allocation2 + $0x2c] sm:$0x1] }
  0x76   : > { %4437 = vst [vmem:[#allocation6_spill] sm:$0xff] %v3119_v6  ;;  %1672 = vrot.lane.b32.xlu2 %v3119_v6, %s2887_s9  ;;  %v985_v17 = vrot.slane %v984_v11, 4  ;;  %v817_v19 = vsel %vm3057_vm13, %v541_v1, %v816_v5  ;;  %v394_v20 = vmax.f32 %v3087_v59, 0.0  ;;  %v540_v27 = vsel %vm3042_vm11, %v532_v44, %v539_v53 }
  0x77   : > { %v3129_v24 = vpack.c.b16 %v1621_v12, %v1620_v9  ;;  %v989_v25 = vrot.slane %v987_v15, 5  ;;  %v993_v26 = vrot.slane %v991_v16, 4  ;;  %818 = vst [vmem:[#allocation2 + $0x44] sm:$0x1] %v817_v19  ;;  %v999_v28 = vrot.slane %v997_v18, 5 }
  0x78   : > { %815 = vst.msk [vmem:[#allocation2 + $0x40] sm:$0xf] %vm778_vm8, %v540_v27  ;;  %v395_v29 = vmax.f32 %v3090_v60, 0.0  ;;  %v426_v30 = vpack.c.bf16 %v394_v20, %v394_v20  ;;  %v369_v31 = vadd.f32 %v3012_v21, %v3096_v7  ;;  %v400_v34 = vmax.f32 %v3099_v8, 0.0  ;;  %v298_v27 = vld [vmem:[%s2936_s24 + $0x60] sm:$0xff] }
  0x79   : > { %1668 = vrot.lane.b32.xlu1 %v3129_v24, %s2887_s9  ;;  %v990_v59 = vsel %vm3016_vm5, %v985_v17, %v989_v25  ;;  %v994_v33 = vor.u32 %v993_v26, %v989_v25  ;;  %v336_v35 = vmul.f32 %v3005_v14, %v300_v23  ;;  %v337_v42 = vmul.f32 %v3005_v14, %v301_v32  ;;  %v819_v26 = vld [vmem:[#allocation2 + $0x48] sm:$0xf] }
  0x7a   : > { %v1618_v36 = vunpack.c.l.b16 %v990_v59  ;;  %v427_v37 = vpack.c.bf16 %v395_v29, %v395_v29  ;;  %v492_v38 = vshrl.u32 %v426_v30, 16  ;;  %v495_v60 = vshll.u32 %v426_v30, 16 }
  0x7b   : > { %v995_v39 = vrot.slane %v994_v33, 4  ;;  %v911_v40 = vld [vmem:[#allocation2 + $0x3c] sm:$0xf]  ;;  %v401_v41 = vmax.f32 %v369_v31, 0.0  ;;  %v432_v7 = vpack.c.bf16 %v400_v34, %v400_v34  ;;  %v372_v34 = vadd.f32 %v3012_v21, %v336_v35 }
  0x7c   : > { %v1074_v43 = vshrl.u32 %v911_v40, 16  ;;  %v1077_v44 = vshll.u32 %v911_v40, 16  ;;  %v494_v45 = vrot.slane %v492_v38, 7  ;;  %v500_v46 = vshrl.u32 %v427_v37, 16 }
  0x7d   : > { %v1000_v47 = vsel %vm3016_vm5, %v995_v39, %v999_v28  ;;  %v503_v8 = vshll.u32 %v427_v37, 16  ;;  %v433_v48 = vpack.c.bf16 %v401_v41, %v401_v41  ;;  %v543_v49 = vshrl.u32 %v432_v7, 16  ;;  %v299_v28 = vld [vmem:[%s2936_s24 + $0x68] sm:$0xff]  ;;  %v302_v37 = vld [vmem:[%s2936_s24 + $0x80] sm:$0xff]  ;;  %v823_v39 = vld [vmem:[#allocation2 + $0x50] sm:$0x1] }
  0x7e   : > { %v1619_v50 = vunpack.c.l.b16 %v1000_v47  ;;  %v913_v51 = vld [vmem:[#allocation2 + $0x44] sm:$0x1]  ;;  %v1076_v52 = vrot.slane %v1074_v43, 4  ;;  %v1079_v54 = vrot.slane %v1077_v44, 5  ;;  %v497_v55 = vor.u32 %v495_v60, %v494_v45  ;;  %v303_v47 = vld [vmem:[%s2936_s24 + $0x88] sm:$0xff] }
  0x7f   : > { %v912_v58 = vld [vmem:[#allocation2 + $0x40] sm:$0xf]  ;;  %v1093_v61 = vshll.u32 %v913_v51, 16  ;;  %v498_v62 = vrot.slane %v494_v45, 4  ;;  %v502_v0 = vrot.slane %v500_v46, 7  ;;  %v545_v1 = vrot.slane %v543_v49, 7 }
  0x80   : > { %v3147_v4 = vpack.c.b16 %v1619_v50, %v1618_v36  ;;  %v1080_v5 = vor.u32 %v1079_v54, %v1076_v52  ;;  %v1083_v2 = vshll.u32 %v912_v58, 16  ;;  %v1087_v9 = vshrl.u32 %v912_v58, 16 }
  0x81   : > { %v1095_v11 = vrot.slane %v1093_v61, 5  ;;  %v505_v12 = vor.u32 %v503_v8, %v502_v0  ;;  %v507_v13 = vrot.slane %v502_v0, 4  ;;  %v799_v15 = vsel %vm3050_vm12, %v497_v55, %v798_v57 }
  0x82   : > { %1666 = vrot.lane.b32.xlu0 %v3147_v4, %s2887_s9  ;;  %v1081_v16 = vrot.slane %v1080_v5, 4  ;;  %v1085_v53 = vrot.slane %v1083_v2, 5  ;;  %v1089_v17 = vrot.slane %v1087_v9, 4  ;;  %800 = vst [vmem:[#allocation2 + $0x24] sm:$0xf] %v799_v15  ;;  %v546_v18 = vshll.u32 %v432_v7, 16 }
  0x83   : > { %v506_v19 = vsel %vm3042_vm11, %v498_v62, %v505_v12  ;;  %v803_v20 = vsel %vm3057_vm13, %v507_v13, %v802_v10  ;;  %v549_v23 = vrot.slane %v545_v1, 4  ;;  %v551_v25 = vshrl.u32 %v433_v48, 16 }
  0x84   : > { %v1086_v29 = vsel %vm3016_vm5, %v1081_v16, %v1085_v53  ;;  %v1090_v30 = vor.u32 %v1089_v17, %v1085_v53  ;;  %801 = vst.msk [vmem:[#allocation2 + $0x28] sm:$0xf] %vm778_vm8, %v506_v19  ;;  %v548_v31 = vor.u32 %v546_v18, %v545_v1  ;;  %v554_v32 = vshll.u32 %v433_v48, 16  ;;  %v833_v17 = vld [vmem:[#allocation2 + $0x60] sm:$0xf] }
  0x85   : > { %v1626_v59 = vunpack.c.l.b16 %v1086_v29  ;;  %804 = vst [vmem:[#allocation2 + $0x2c] sm:$0x1] %v803_v20  ;;  %v553_v33 = vrot.slane %v551_v25, 7  ;;  %v373_v36 = vadd.f32 %v3012_v21, %v337_v42  ;;  %v334_v40 = vmul.f32 %v3005_v14, %v298_v27 }
  0x86   : > { %v1091_v38 = vrot.slane %v1090_v30, 4  ;;  %v820_v60 = vsel %vm3050_vm12, %v548_v31, %v819_v26  ;;  %v335_v41 = vmul.f32 %v3005_v14, %v299_v28  ;;  %v404_v44 = vmax.f32 %v372_v34, 0.0 }
  0x87   : > { %v556_v7 = vor.u32 %v554_v32, %v553_v33  ;;  %v558_v43 = vrot.slane %v553_v33, 4  ;;  %821 = vst [vmem:[#allocation2 + $0x48] sm:$0xf] %v820_v60  ;;  %v405_v45 = vmax.f32 %v373_v36, 0.0  ;;  %v370_v42 = vadd.f32 %v3012_v21, %v334_v40 }
  0x88   : > { %v1096_v35 = vsel %vm3016_vm5, %v1091_v38, %v1095_v11  ;;  %v3173_v46 = vadd.f32 %v3012_v21, %v335_v41  ;;  %v3177_v8 = vmul.f32 %v3005_v14, %v302_v37  ;;  %v436_v52 = vpack.c.bf16 %v404_v44, %v404_v44 }
  0x89   : > { %v1627_v48 = vunpack.c.l.b16 %v1096_v35  ;;  %v3179_v49 = vld [vmem:[#allocation2 + $0x24] sm:$0xf]  ;;  %v557_v50 = vsel %vm3042_vm11, %v549_v23, %v556_v7  ;;  %v824_v51 = vsel %vm3057_vm13, %v558_v43, %v823_v39  ;;  %v437_v57 = vpack.c.bf16 %v405_v45, %v405_v45 }
  0x8a   : > { %v1026_v54 = vshrl.u32 %v3179_v49, 16  ;;  %v1029_v55 = vshll.u32 %v3179_v49, 16  ;;  %822 = vst.msk [vmem:[#allocation2 + $0x4c] sm:$0xf] %vm778_vm8, %v557_v50  ;;  %v402_v58 = vmax.f32 %v370_v42, 0.0  ;;  %v577_v0 = vshrl.u32 %v436_v52, 16 }
  0x8b   : > { %v3188_v61 = vpack.c.b16 %v1627_v48, %v1626_v59  ;;  %v3190_v62 = vld [vmem:[#allocation2 + $0x28] sm:$0xf]  ;;  %825 = vst [vmem:[#allocation2 + $0x50] sm:$0x1] %v824_v51  ;;  %v580_v1 = vshll.u32 %v436_v52, 16  ;;  %v3193_v5 = vmul.f32 %v3005_v14, %v303_v47  ;;  %v585_v16 = vshrl.u32 %v437_v57, 16 }
  0x8c   : > { %v3195_v2 = vld [vmem:[#allocation2 + $0x2c] sm:$0x1]  ;;  %v1028_v9 = vrot.slane %v1026_v54, 4  ;;  %v1031_v10 = vrot.slane %v1029_v55, 5  ;;  %v1035_v11 = vshll.u32 %v3190_v62, 16  ;;  %v1039_v12 = vshrl.u32 %v3190_v62, 16 }
  0x8d   : > { %1674 = vrot.lane.b32.xlu2 %v3188_v61, %s2887_s9  ;;  %v1045_v13 = vshll.u32 %v3195_v2, 16  ;;  %v579_v15 = vrot.slane %v577_v0, 7  ;;  %v588_v53 = vshll.u32 %v437_v57, 16  ;;  %v403_v25 = vmax.f32 %v3173_v46, 0.0  ;;  %v837_v42 = vld [vmem:[#allocation2 + $0x68] sm:$0x1] }
  0x8e   : > { %v1032_v18 = vor.u32 %v1031_v10, %v1028_v9  ;;  %v1037_v19 = vrot.slane %v1035_v11, 5  ;;  %v1041_v20 = vrot.slane %v1039_v12, 4  ;;  %v3202_v23 = vld [vmem:[#allocation2 + $0x48] sm:$0xf]  ;;  %v587_v59 = vrot.slane %v585_v16, 7  ;;  %v306_v9 = vld [vmem:[%s2936_s24 + $0xa0] sm:$0xff] }
  0x8f   : > { %v1047_v26 = vrot.slane %v1045_v13, 5  ;;  %v1098_v27 = vshrl.u32 %v3202_v23, 16  ;;  %v1101_v28 = vshll.u32 %v3202_v23, 16  ;;  %v582_v29 = vor.u32 %v580_v1, %v579_v15 }
  0x90   : > { %v1033_v30 = vrot.slane %v1032_v18, 4  ;;  %v1042_v31 = vor.u32 %v1041_v20, %v1037_v19  ;;  %v583_v32 = vrot.slane %v579_v15, 4  ;;  %v434_v38 = vpack.c.bf16 %v402_v58, %v402_v58 }
  0x91   : > { %v3207_v33 = vld [vmem:[#allocation2 + $0x4c] sm:$0xf]  ;;  %v1100_v34 = vrot.slane %v1098_v27, 4  ;;  %v1103_v36 = vrot.slane %v1101_v28, 5  ;;  %v834_v37 = vsel %vm3050_vm12, %v582_v29, %v833_v17  ;;  %v590_v35 = vor.u32 %v588_v53, %v587_v59 }
  0x92   : > { %v1038_v60 = vsel %vm3016_vm5, %v1033_v30, %v1037_v19  ;;  %v1043_v39 = vrot.slane %v1042_v31, 4  ;;  %v3213_v40 = vld [vmem:[#allocation2 + $0x50] sm:$0x1]  ;;  %v1107_v41 = vshll.u32 %v3207_v33, 16  ;;  %v1111_v7 = vshrl.u32 %v3207_v33, 16 }
  0x93   : > { %v1622_v43 = vunpack.c.l.b16 %v1038_v60  ;;  %v1104_v44 = vor.u32 %v1103_v36, %v1100_v34  ;;  %v1117_v45 = vshll.u32 %v3213_v40, 16  ;;  %835 = vst [vmem:[#allocation2 + $0x60] sm:$0xf] %v834_v37  ;;  %v592_v50 = vrot.slane %v587_v59, 4  ;;  %v826_v19 = vld [vmem:[#allocation2 + $0x54] sm:$0xf] }
  0x94   : > { %v1048_v46 = vsel %vm3016_vm5, %v1043_v39, %v1047_v26  ;;  %v1109_v47 = vrot.slane %v1107_v41, 5  ;;  %v1113_v48 = vrot.slane %v1111_v7, 4  ;;  %v591_v55 = vsel %vm3042_vm11, %v583_v32, %v590_v35  ;;  %v830_v34 = vld [vmem:[#allocation2 + $0x5c] sm:$0x1] }
  0x95   : > { %v1623_v51 = vunpack.c.l.b16 %v1048_v46  ;;  %v1105_v52 = vrot.slane %v1104_v44, 4  ;;  %v1119_v54 = vrot.slane %v1117_v45, 5  ;;  %836 = vst.msk [vmem:[#allocation2 + $0x64] sm:$0xf] %vm778_vm8, %v591_v55  ;;  %v838_v58 = vsel %vm3057_vm13, %v592_v50, %v837_v42  ;;  %v304_v55 = vld [vmem:[%s2936_s24 + $0x90] sm:$0xff] }
  0x96   : > { %v1114_v57 = vor.u32 %v1113_v48, %v1109_v47  ;;  %v435_v0 = vpack.c.bf16 %v403_v25, %v403_v25  ;;  %v560_v1 = vshrl.u32 %v434_v38, 16  ;;  %839 = vst [vmem:[#allocation2 + $0x68] sm:$0x1] %v838_v58  ;;  %v563_v12 = vshll.u32 %v434_v38, 16  ;;  %v307_v48 = vld [vmem:[%s2936_s24 + $0xa8] sm:$0xff] }
  0x97   : > { %v3226_v10 = vpack.c.b16 %v1623_v51, %v1622_v43  ;;  %v1110_v11 = vsel %vm3016_vm5, %v1105_v52, %v1109_v47  ;;  %v374_v13 = vadd.f32 %v3012_v21, %v3177_v8  ;;  %v375_v20 = vadd.f32 %v3012_v21, %v3193_v5 }
  0x98   : > { %v1115_v15 = vrot.slane %v1114_v57, 4  ;;  %v1628_v16 = vunpack.c.l.b16 %v1110_v11  ;;  %v562_v53 = vrot.slane %v560_v1, 7  ;;  %v568_v17 = vshrl.u32 %v435_v0, 16 }
  0x99   : > { %1670 = vrot.lane.b32.xlu1 %v3226_v10, %s2887_s9  ;;  %v571_v18 = vshll.u32 %v435_v0, 16  ;;  %v406_v25 = vmax.f32 %v374_v13, 0.0  ;;  %v342_v26 = vmul.f32 %v3005_v14, %v306_v9  ;;  %v407_v36 = vmax.f32 %v375_v20, 0.0 }
  0x9a   : > { %v1120_v27 = vsel %vm3016_vm5, %v1115_v15, %v1119_v54  ;;  %v3239_v28 = vld [vmem:[#allocation2 + $0x60] sm:$0xf]  ;;  %v565_v8 = vor.u32 %v563_v12, %v562_v53  ;;  %v566_v29 = vrot.slane %v562_v53, 4  ;;  %v570_v30 = vrot.slane %v568_v17, 7  ;;  %v840_v53 = vld [vmem:[#allocation2 + $0x6c] sm:$0xf] }
  0x9b   : > { %v1629_v31 = vunpack.c.l.b16 %v1120_v27  ;;  %v1146_v32 = vshrl.u32 %v3239_v28, 16  ;;  %v1149_v59 = vshll.u32 %v3239_v28, 16  ;;  %v438_v60 = vpack.c.bf16 %v406_v25, %v406_v25  ;;  %v844_v27 = vld [vmem:[#allocation2 + $0x74] sm:$0x1] }
  0x9c   : > { %v573_v5 = vor.u32 %v571_v18, %v570_v30  ;;  %v575_v37 = vrot.slane %v570_v30, 4  ;;  %v827_v38 = vsel %vm3050_vm12, %v565_v8, %v826_v19  ;;  %v3247_v41 = vld [vmem:[#allocation2 + $0x64] sm:$0xf]  ;;  %v439_v44 = vpack.c.bf16 %v407_v36, %v407_v36 }
  0x9d   : > { %v3245_v39 = vpack.c.b16 %v1629_v31, %v1628_v16  ;;  %v1148_v7 = vrot.slane %v1146_v32, 4  ;;  %v1151_v43 = vrot.slane %v1149_v59, 5  ;;  %828 = vst [vmem:[#allocation2 + $0x54] sm:$0xf] %v827_v38  ;;  %v3249_v45 = vld [vmem:[#allocation2 + $0x68] sm:$0x1]  ;;  %v343_v13 = vmul.f32 %v3005_v14, %v307_v48 }
  0x9e   : > { %v1155_v35 = vshll.u32 %v3247_v41, 16  ;;  %v1159_v42 = vshrl.u32 %v3247_v41, 16  ;;  %v574_v46 = vsel %vm3042_vm11, %v566_v29, %v573_v5  ;;  %v831_v47 = vsel %vm3057_vm13, %v575_v37, %v830_v34 }
  0x9f   : > { %1676 = vrot.lane.b32.xlu0 %v3245_v39, %s2887_s9  ;;  %v1152_v50 = vor.u32 %v1151_v43, %v1148_v7  ;;  %v1165_v51 = vshll.u32 %v3249_v45, 16  ;;  %829 = vst.msk [vmem:[#allocation2 + $0x58] sm:$0xf] %vm778_vm8, %v574_v46  ;;  %v594_v52 = vshrl.u32 %v438_v60, 16  ;;  %v597_v54 = vshll.u32 %v438_v60, 16 }
  0xa0   : > { %v1157_v57 = vrot.slane %v1155_v35, 5  ;;  %v1161_v58 = vrot.slane %v1159_v42, 4  ;;  %832 = vst [vmem:[#allocation2 + $0x5c] sm:$0x1] %v831_v47  ;;  %v602_v0 = vshrl.u32 %v439_v44, 16  ;;  %v605_v1 = vshll.u32 %v439_v44, 16 }
  0xa1   : > { %v1153_v9 = vrot.slane %v1152_v50, 4  ;;  %v1167_v11 = vrot.slane %v1165_v51, 5  ;;  %v596_v12 = vrot.slane %v594_v52, 7  ;;  %v378_v17 = vadd.f32 %v3012_v21, %v342_v26  ;;  %v305_v44 = vld [vmem:[%s2936_s24 + $0x98] sm:$0xff] }
  0xa2   : > { %v1162_v15 = vor.u32 %v1161_v58, %v1157_v57  ;;  %v604_v16 = vrot.slane %v602_v0, 7  ;;  %v340_v18 = vmul.f32 %v3005_v14, %v304_v55  ;;  %v379_v8 = vadd.f32 %v3012_v21, %v343_v13 }
  0xa3   : > { %v1158_v19 = vsel %vm3016_vm5, %v1153_v9, %v1157_v57  ;;  %v599_v20 = vor.u32 %v597_v54, %v596_v12  ;;  %v600_v25 = vrot.slane %v596_v12, 4  ;;  %v410_v5 = vmax.f32 %v378_v17, 0.0 }
  0xa4   : > { %v1163_v29 = vrot.slane %v1162_v15, 4  ;;  %v1632_v30 = vunpack.c.l.b16 %v1158_v19  ;;  %v3269_v31 = vld [vmem:[#allocation2 + $0x54] sm:$0xf]  ;;  %v607_v32 = vor.u32 %v605_v1, %v604_v16  ;;  %v609_v59 = vrot.slane %v604_v16, 4  ;;  %v309_v15 = vld [vmem:[%s2936_s24 + $0xb8] sm:$0xff] }
  0xa5   : > { %v1122_v34 = vshrl.u32 %v3269_v31, 16  ;;  %v1125_v26 = vshll.u32 %v3269_v31, 16  ;;  %v841_v36 = vsel %vm3050_vm12, %v599_v20, %v840_v53  ;;  %v411_v43 = vmax.f32 %v379_v8, 0.0  ;;  %v308_v1 = vld [vmem:[%s2936_s24 + $0xb0] sm:$0xff] }
  0xa6   : > { %v1168_v37 = vsel %vm3016_vm5, %v1163_v29, %v1167_v11  ;;  %v3277_v38 = vld [vmem:[#allocation2 + $0x58] sm:$0xf]  ;;  %v608_v60 = vsel %vm3042_vm11, %v600_v25, %v607_v32  ;;  %842 = vst [vmem:[#allocation2 + $0x6c] sm:$0xf] %v841_v36  ;;  %v845_v7 = vsel %vm3057_vm13, %v609_v59, %v844_v27  ;;  %v442_v52 = vpack.c.bf16 %v410_v5, %v410_v5 }
  0xa7   : > { %v1633_v35 = vunpack.c.l.b16 %v1168_v37  ;;  %v3284_v42 = vld [vmem:[#allocation2 + $0x5c] sm:$0x1]  ;;  %v1124_v46 = vrot.slane %v1122_v34, 4  ;;  %v1127_v47 = vrot.slane %v1125_v26, 5  ;;  %v1131_v48 = vshll.u32 %v3277_v38, 16 }
  0xa8   : > { %v1135_v50 = vshrl.u32 %v3277_v38, 16  ;;  %v1141_v51 = vshll.u32 %v3284_v42, 16  ;;  %843 = vst.msk [vmem:[#allocation2 + $0x70] sm:$0xf] %vm778_vm8, %v608_v60  ;;  %v443_v54 = vpack.c.bf16 %v411_v43, %v411_v43  ;;  %v341_v0 = vmul.f32 %v3005_v14, %v305_v44  ;;  %v854_v37 = vld [vmem:[#allocation2 + $0x84] sm:$0xf] }
  0xa9   : > { %v3290_v55 = vpack.c.b16 %v1633_v35, %v1632_v30  ;;  %v1128_v57 = vor.u32 %v1127_v47, %v1124_v46  ;;  %v1133_v58 = vrot.slane %v1131_v48, 5  ;;  %846 = vst [vmem:[#allocation2 + $0x74] sm:$0x1] %v845_v7  ;;  %v628_v12 = vshrl.u32 %v442_v52, 16  ;;  %v858_v46 = vld [vmem:[#allocation2 + $0x8c] sm:$0x1] }
  0xaa   : > { %v1137_v9 = vrot.slane %v1135_v50, 4  ;;  %v1143_v11 = vrot.slane %v1141_v51, 5  ;;  %v631_v13 = vshll.u32 %v442_v52, 16  ;;  %v636_v53 = vshrl.u32 %v443_v54, 16 }
  0xab   : > { %4438 = vst [vmem:[#allocation7_spill] sm:$0xff] %v3290_v55  ;;  %1680 = vrot.lane.b32.xlu2 %v3290_v55, %s2887_s9  ;;  %v1129_v16 = vrot.slane %v1128_v57, 4  ;;  %v639_v17 = vshll.u32 %v443_v54, 16  ;;  %v376_v19 = vadd.f32 %v3012_v21, %v340_v18  ;;  %v630_v25 = vrot.slane %v628_v12, 7  ;;  %v312_v12 = vld [vmem:[%s2936_s24 + $0xd0] sm:$0xff] }
  0xac   : > { %v1138_v20 = vor.u32 %v1137_v9, %v1133_v58  ;;  %v377_v27 = vadd.f32 %v3012_v21, %v341_v0  ;;  %v344_v8 = vmul.f32 %v3005_v14, %v308_v1  ;;  %v638_v32 = vrot.slane %v636_v53, 7 }
  0xad   : > { %v1134_v29 = vsel %vm3016_vm5, %v1129_v16, %v1133_v58  ;;  %v3302_v30 = vld [vmem:[#allocation2 + $0x6c] sm:$0xf]  ;;  %v408_v59 = vmax.f32 %v376_v19, 0.0  ;;  %v345_v34 = vmul.f32 %v3005_v14, %v309_v15  ;;  %v633_v7 = vor.u32 %v631_v13, %v630_v25  ;;  %v313_v13 = vld [vmem:[%s2936_s24 + $0xd8] sm:$0xff] }
  0xae   : > { %v1139_v26 = vrot.slane %v1138_v20, 4  ;;  %v1630_v36 = vunpack.c.l.b16 %v1134_v29  ;;  %v1170_v5 = vshrl.u32 %v3302_v30, 16  ;;  %v1173_v18 = vshll.u32 %v3302_v30, 16 }
  0xaf   : > { %v3307_v60 = vld [vmem:[#allocation2 + $0x70] sm:$0xf]  ;;  %v634_v43 = vrot.slane %v630_v25, 4  ;;  %v641_v44 = vor.u32 %v639_v17, %v638_v32  ;;  %v643_v35 = vrot.slane %v638_v32, 4  ;;  %v855_v9 = vsel %vm3050_vm12, %v633_v7, %v854_v37 }
  0xb0   : > { %v1144_v47 = vsel %vm3016_vm5, %v1139_v26, %v1143_v11  ;;  %v3311_v14 = vld [vmem:[#allocation2 + $0x74] sm:$0x1]  ;;  %v1172_v48 = vrot.slane %v1170_v5, 4  ;;  %v1175_v50 = vrot.slane %v1173_v18, 5  ;;  %v1179_v51 = vshll.u32 %v3307_v60, 16 }
  0xb1   : > { %v1631_v52 = vunpack.c.l.b16 %v1144_v47  ;;  %v1183_v54 = vshrl.u32 %v3307_v60, 16  ;;  %v1189_v57 = vshll.u32 %v3311_v14, 16  ;;  %v642_v58 = vsel %vm3042_vm11, %v634_v43, %v641_v44  ;;  %856 = vst [vmem:[#allocation2 + $0x84] sm:$0xf] %v855_v9 }
  0xb2   : > { %v1176_v0 = vor.u32 %v1175_v50, %v1172_v48  ;;  %v1181_v1 = vrot.slane %v1179_v51, 5  ;;  %857 = vst.msk [vmem:[#allocation2 + $0x88] sm:$0xf] %vm778_vm8, %v642_v58  ;;  %v859_v11 = vsel %vm3057_vm13, %v643_v35, %v858_v46  ;;  %v409_v17 = vmax.f32 %v377_v27, 0.0  ;;  %v3344_v48 = vld [vmem:[%s4401_s2] ss:$0 sm:$0xff] }
  0xb3   : > { %v3325_v15 = vpack.c.b16 %v1631_v52, %v1630_v36  ;;  %v1185_v16 = vrot.slane %v1183_v54, 4  ;;  %v1191_v53 = vrot.slane %v1189_v57, 5  ;;  %860 = vst [vmem:[#allocation2 + $0x8c] sm:$0x1] %v859_v11  ;;  %v440_v20 = vpack.c.bf16 %v408_v59, %v408_v59  ;;  %v3334_v36 = vld [vmem:[%s4400_s1] ss:$0 sm:$0xff] }
  0xb4   : > { %v1177_v19 = vrot.slane %v1176_v0, 4  ;;  %v380_v25 = vadd.f32 %v3012_v21, %v344_v8  ;;  %v381_v29 = vadd.f32 %v3012_v21, %v345_v34  ;;  %v441_v26 = vpack.c.bf16 %v409_v17, %v409_v17  ;;  %v310_v34 = vld [vmem:[%s2936_s24 + $0xc0] sm:$0xff] }
  0xb5   : > { %4439 = vst [vmem:[#allocation8_spill] sm:$0xff] %v3325_v15  ;;  %1678 = vrot.lane.b32.xlu1 %v3325_v15, %s2887_s9  ;;  %v1186_v32 = vor.u32 %v1185_v16, %v1181_v1  ;;  %v348_v27 = vmul.f32 %v3334_v36, %v312_v12  ;;  %v349_v5 = vmul.f32 %v3334_v36, %v313_v13  ;;  %v611_v8 = vshrl.u32 %v440_v20, 16  ;;  %v847_v13 = vld [vmem:[#allocation2 + $0x78] sm:$0xf] }
  0xb6   : > { %v1182_v59 = vsel %vm3016_vm5, %v1177_v19, %v1181_v1  ;;  %v614_v18 = vshll.u32 %v440_v20, 16  ;;  %v412_v21 = vmax.f32 %v380_v25, 0.0  ;;  %v619_v43 = vshrl.u32 %v441_v26, 16 }
  0xb7   : > { %v1187_v37 = vrot.slane %v1186_v32, 4  ;;  %v1634_v7 = vunpack.c.l.b16 %v1182_v59  ;;  %v622_v44 = vshll.u32 %v441_v26, 16  ;;  %v613_v35 = vrot.slane %v611_v8, 7 }
  0xb8   : > { %v413_v46 = vmax.f32 %v381_v29, 0.0  ;;  %v444_v47 = vpack.c.bf16 %v412_v21, %v412_v21  ;;  %v384_v50 = vadd.f32 %v3344_v48, %v348_v27  ;;  %v621_v54 = vrot.slane %v619_v43, 7  ;;  %v3353_v1 = vld [vmem:[#allocation2 + $0x84] sm:$0xf]  ;;  %v851_v27 = vld [vmem:[#allocation2 + $0x80] sm:$0x1] }
  0xb9   : > { %v1192_v51 = vsel %vm3016_vm5, %v1187_v37, %v1191_v53  ;;  %v3349_v52 = vld [vmem:[#allocation2 + $0x88] sm:$0xf]  ;;  %v385_v57 = vadd.f32 %v3344_v48, %v349_v5  ;;  %v346_v58 = vmul.f32 %v3334_v36, %v310_v34  ;;  %v616_v12 = vor.u32 %v614_v18, %v613_v35 }
  0xba   : > { %v1635_v0 = vunpack.c.l.b16 %v1192_v51  ;;  %v1227_v9 = vshll.u32 %v3349_v52, 16  ;;  %v1231_v11 = vshrl.u32 %v3349_v52, 16  ;;  %v3357_v16 = vld [vmem:[#allocation2 + $0x8c] sm:$0x1]  ;;  %v1218_v53 = vshrl.u32 %v3353_v1, 16 }
  0xbb   : > { %v1221_v17 = vshll.u32 %v3353_v1, 16  ;;  %v617_v19 = vrot.slane %v613_v35, 4  ;;  %v624_v20 = vor.u32 %v622_v44, %v621_v54  ;;  %v1237_v26 = vshll.u32 %v3357_v16, 16  ;;  %v311_v43 = vld [vmem:[%s2936_s24 + $0xc8] sm:$0xff] }
  0xbc   : > { %v3361_v25 = vpack.c.b16 %v1635_v0, %v1634_v7  ;;  %v1229_v29 = vrot.slane %v1227_v9, 5  ;;  %v1233_v32 = vrot.slane %v1231_v11, 4  ;;  %v1220_v5 = vrot.slane %v1218_v53, 4 }
  0xbd   : > { %v1223_v59 = vrot.slane %v1221_v17, 5  ;;  %v625_v8 = vsel %vm3042_vm11, %v617_v19, %v624_v20  ;;  %v626_v18 = vrot.slane %v621_v54, 4  ;;  %v1239_v34 = vrot.slane %v1237_v26, 5 }
  0xbe   : > { %1682 = vrot.lane.b32.xlu0 %v3361_v25, %s2887_s9  ;;  %v1234_v21 = vor.u32 %v1233_v32, %v1229_v29  ;;  %v848_v37 = vsel %vm3050_vm12, %v616_v12, %v847_v13  ;;  %850 = vst.msk [vmem:[#allocation2 + $0x7c] sm:$0xf] %vm778_vm8, %v625_v8  ;;  %v445_v7 = vpack.c.bf16 %v413_v46, %v413_v46  ;;  %v645_v51 = vshrl.u32 %v444_v47, 16  ;;  %v861_v32 = vld [vmem:[#allocation2 + $0x90] sm:$0xf] }
  0xbf   : > { %v1224_v44 = vor.u32 %v1223_v59, %v1220_v5  ;;  %849 = vst [vmem:[#allocation2 + $0x78] sm:$0xf] %v848_v37  ;;  %v852_v35 = vsel %vm3057_vm13, %v626_v18, %v851_v27  ;;  %v648_v0 = vshll.u32 %v444_v47, 16  ;;  %v416_v53 = vmax.f32 %v384_v50, 0.0 }
  0xc0   : > { %v1235_v54 = vrot.slane %v1234_v21, 4  ;;  %853 = vst [vmem:[#allocation2 + $0x80] sm:$0x1] %v852_v35  ;;  %v653_v9 = vshrl.u32 %v445_v7, 16  ;;  %v656_v11 = vshll.u32 %v445_v7, 16  ;;  %v647_v19 = vrot.slane %v645_v51, 7 }
  0xc1   : > { %v1225_v17 = vrot.slane %v1224_v44, 4  ;;  %v417_v20 = vmax.f32 %v385_v57, 0.0  ;;  %v347_v12 = vmul.f32 %v3334_v36, %v311_v43  ;;  %v448_v26 = vpack.c.bf16 %v416_v53, %v416_v53  ;;  %v865_v21 = vld [vmem:[#allocation2 + $0x98] sm:$0x1]  ;;  %v314_v7 = vld [vmem:[%s2936_s24 + $0xe0] sm:$0xff] }
  0xc2   : > { %v1240_v46 = vsel %vm3016_vm5, %v1235_v54, %v1239_v34  ;;  %v655_v13 = vrot.slane %v653_v9, 7  ;;  %v382_v27 = vadd.f32 %v3344_v48, %v346_v58  ;;  %v650_v59 = vor.u32 %v648_v0, %v647_v19 }
  0xc3   : > { %v1230_v47 = vsel %vm3016_vm5, %v1225_v17, %v1229_v29  ;;  %v1639_v5 = vunpack.c.l.b16 %v1240_v46  ;;  %v651_v50 = vrot.slane %v647_v19, 4  ;;  %v449_v37 = vpack.c.bf16 %v417_v20, %v417_v20  ;;  %v315_v20 = vld [vmem:[%s2936_s24 + $0xe8] sm:$0xff] }
  0xc4   : > { %v1638_v8 = vunpack.c.l.b16 %v1230_v47  ;;  %v658_v18 = vor.u32 %v656_v11, %v655_v13  ;;  %v660_v57 = vrot.slane %v655_v13, 4  ;;  %v862_v34 = vsel %vm3050_vm12, %v650_v59, %v861_v32 }
  0xc5   : > { %v3381_v43 = vld [vmem:[#allocation2 + $0x7c] sm:$0xf]  ;;  %v679_v44 = vshrl.u32 %v448_v26, 16  ;;  %v682_v58 = vshll.u32 %v448_v26, 16  ;;  %v383_v35 = vadd.f32 %v3344_v48, %v347_v12  ;;  %863 = vst [vmem:[#allocation2 + $0x90] sm:$0xf] %v862_v34  ;;  %v350_v12 = vmul.f32 %v3334_v36, %v314_v7 }
  0xc6   : > { %v3386_v29 = vpack.c.b16 %v1639_v5, %v1638_v8  ;;  %v3388_v51 = vld [vmem:[#allocation2 + $0x78] sm:$0xf]  ;;  %v1203_v0 = vshll.u32 %v3381_v43, 16  ;;  %v1207_v54 = vshrl.u32 %v3381_v43, 16  ;;  %v659_v9 = vsel %vm3042_vm11, %v651_v50, %v658_v18  ;;  %v875_v8 = vld [vmem:[#allocation2 + $0xa8] sm:$0xf] }
  0xc7   : > { %v3394_v11 = vld [vmem:[#allocation2 + $0x80] sm:$0x1]  ;;  %v1194_v53 = vshrl.u32 %v3388_v51, 16  ;;  %v1197_v17 = vshll.u32 %v3388_v51, 16  ;;  %864 = vst.msk [vmem:[#allocation2 + $0x94] sm:$0xf] %vm778_vm8, %v659_v9  ;;  %v866_v19 = vsel %vm3057_vm13, %v660_v57, %v865_v21 }
  0xc8   : > { %4440 = vst [vmem:[#allocation9_spill] sm:$0xff] %v3386_v29  ;;  %1686 = vrot.lane.b32.xlu2 %v3386_v29, %s2887_s9  ;;  %v1205_v46 = vrot.slane %v1203_v0, 5  ;;  %v1209_v13 = vrot.slane %v1207_v54, 4  ;;  %v1213_v32 = vshll.u32 %v3394_v11, 16  ;;  %v681_v26 = vrot.slane %v679_v44, 7 }
  0xc9   : > { %867 = vst [vmem:[#allocation2 + $0x98] sm:$0x1] %v866_v19  ;;  %v1196_v47 = vrot.slane %v1194_v53, 4  ;;  %v1199_v5 = vrot.slane %v1197_v17, 5  ;;  %v687_v59 = vshrl.u32 %v449_v37, 16  ;;  %v690_v50 = vshll.u32 %v449_v37, 16 }
  0xca   : > { %v1210_v18 = vor.u32 %v1209_v13, %v1205_v46  ;;  %v1215_v34 = vrot.slane %v1213_v32, 5  ;;  %v684_v57 = vor.u32 %v682_v58, %v681_v26  ;;  %v685_v21 = vrot.slane %v681_v26, 4 }
  0xcb   : > { %v1200_v9 = vor.u32 %v1199_v5, %v1196_v47  ;;  %v689_v7 = vrot.slane %v687_v59, 7  ;;  %v414_v55 = vmax.f32 %v382_v27, 0.0  ;;  %v415_v15 = vmax.f32 %v383_v35, 0.0 }
  0xcc   : > { %v1211_v29 = vrot.slane %v1210_v18, 4  ;;  %v876_v0 = vsel %vm3050_vm12, %v684_v57, %v875_v8  ;;  %v351_v54 = vmul.f32 %v3334_v36, %v315_v20  ;;  %v3410_v44 = vadd.f32 %v3344_v48, %v350_v12  ;;  %v3412_v37 = vld [vmem:[#allocation2 + $0x90] sm:$0xf] }
  0xcd   : > { %v1201_v53 = vrot.slane %v1200_v9, 4  ;;  %v692_v17 = vor.u32 %v690_v50, %v689_v7  ;;  %v694_v19 = vrot.slane %v689_v7, 4  ;;  %877 = vst [vmem:[#allocation2 + $0xa8] sm:$0xf] %v876_v0  ;;  %v446_v58 = vpack.c.bf16 %v414_v55, %v414_v55  ;;  %v879_v36 = vld [vmem:[#allocation2 + $0xb0] sm:$0x1] }
  0xce   : > { %v1216_v27 = vsel %vm3016_vm5, %v1211_v29, %v1215_v34  ;;  %v3416_v35 = vld [vmem:[#allocation2 + $0x94] sm:$0xf]  ;;  %v1242_v13 = vshrl.u32 %v3412_v37, 16  ;;  %v1245_v32 = vshll.u32 %v3412_v37, 16  ;;  %v447_v20 = vpack.c.bf16 %v415_v15, %v415_v15 }
  0xcf   : > { %v1206_v12 = vsel %vm3016_vm5, %v1201_v53, %v1205_v46  ;;  %v1637_v26 = vunpack.c.l.b16 %v1216_v27  ;;  %v1251_v5 = vshll.u32 %v3416_v35, 16  ;;  %v1255_v55 = vshrl.u32 %v3416_v35, 16 }
  0xd0   : > { %v3422_v47 = vld [vmem:[#allocation2 + $0x98] sm:$0x1]  ;;  %v1636_v59 = vunpack.c.l.b16 %v1206_v12  ;;  %v1244_v29 = vrot.slane %v1242_v13, 4  ;;  %v1247_v50 = vrot.slane %v1245_v32, 5  ;;  %v693_v15 = vsel %vm3042_vm11, %v685_v21, %v692_v17 }
  0xd1   : > { %v1261_v8 = vshll.u32 %v3422_v47, 16  ;;  %v1253_v18 = vrot.slane %v1251_v5, 5  ;;  %v1257_v34 = vrot.slane %v1255_v55, 4  ;;  %v880_v46 = vsel %vm3057_vm13, %v694_v19, %v879_v36  ;;  %878 = vst.msk [vmem:[#allocation2 + $0xac] sm:$0xf] %vm778_vm8, %v693_v15 }
  0xd2   : > { %v3431_v57 = vpack.c.b16 %v1637_v26, %v1636_v59  ;;  %v1248_v9 = vor.u32 %v1247_v50, %v1244_v29  ;;  %v662_v0 = vshrl.u32 %v446_v58, 16  ;;  %881 = vst [vmem:[#allocation2 + $0xb0] sm:$0x1] %v880_v46  ;;  %v665_v27 = vshll.u32 %v446_v58, 16  ;;  %v868_v58 = vld [vmem:[#allocation2 + $0x9c] sm:$0xf] }
  0xd3   : > { %v1263_v7 = vrot.slane %v1261_v8, 5  ;;  %v1258_v53 = vor.u32 %v1257_v34, %v1253_v18  ;;  %v670_v13 = vshrl.u32 %v447_v20, 16  ;;  %v673_v32 = vshll.u32 %v447_v20, 16 }
  0xd4   : > { %4441 = vst [vmem:[#allocation10_spill] sm:$0xff] %v3431_v57  ;;  %1684 = vrot.lane.b32.xlu1 %v3431_v57, %s2887_s9  ;;  %v1249_v12 = vrot.slane %v1248_v9, 4  ;;  %v3436_v21 = vld [vmem:[#allocation2 + $0xa8] sm:$0xf]  ;;  %v664_v17 = vrot.slane %v662_v0, 7  ;;  %v387_v19 = vadd.f32 %v3344_v48, %v351_v54  ;;  %v418_v36 = vmax.f32 %v3410_v44, 0.0 }
  0xd5   : > { %4442 = vst [vmem:[#allocation11_spill] sm:$0xff] %v3436_v21  ;;  %v1259_v26 = vrot.slane %v1258_v53, 4  ;;  %v1290_v5 = vshrl.u32 %v3436_v21, 16  ;;  %v1293_v55 = vshll.u32 %v3436_v21, 16  ;;  %v672_v59 = vrot.slane %v670_v13, 7 }
  0xd6   : > { %v1254_v20 = vsel %vm3016_vm5, %v1249_v12, %v1253_v18  ;;  %v667_v29 = vor.u32 %v665_v27, %v664_v17  ;;  %v668_v50 = vrot.slane %v664_v17, 4  ;;  %v419_v8 = vmax.f32 %v387_v19, 0.0  ;;  %v872_v53 = vld [vmem:[#allocation2 + $0xa4] sm:$0x1] }
  0xd7   : > { %v1264_v34 = vsel %vm3016_vm5, %v1259_v26, %v1263_v7  ;;  %v1640_v15 = vunpack.c.l.b16 %v1254_v20  ;;  %v1292_v48 = vrot.slane %v1290_v5, 4  ;;  %v1295_v54 = vrot.slane %v1293_v55, 5 }
  0xd8   : > { %v1641_v44 = vunpack.c.l.b16 %v1264_v34  ;;  %v675_v46 = vor.u32 %v673_v32, %v672_v59  ;;  %v677_v9 = vrot.slane %v672_v59, 4  ;;  %v869_v0 = vsel %vm3050_vm12, %v667_v29, %v868_v58  ;;  %v3448_v13 = vld [vmem:[#allocation2 + $0xac] sm:$0xf] }
  0xd9   : > { %4443 = vst [vmem:[#allocation12_spill] sm:$0xff] %v3448_v13  ;;  %v1296_v21 = vor.u32 %v1295_v54, %v1292_v48  ;;  %v450_v18 = vpack.c.bf16 %v418_v36, %v418_v36  ;;  %v451_v27 = vpack.c.bf16 %v419_v8, %v419_v8  ;;  %v3452_v17 = vld [vmem:[#allocation2 + $0xb0] sm:$0x1]  ;;  %v1299_v7 = vshll.u32 %v3448_v13, 16  ;;  %v882_v54 = vld [vmem:[#allocation2 + $0xb4] sm:$0xf] }
  0xda   : > { %870 = vst [vmem:[#allocation2 + $0x9c] sm:$0xf] %v869_v0  ;;  %v3450_v12 = vpack.c.b16 %v1641_v44, %v1640_v15  ;;  %v1303_v19 = vshrl.u32 %v3448_v13, 16  ;;  %v676_v32 = vsel %vm3042_vm11, %v668_v50, %v675_v46  ;;  %v1309_v5 = vshll.u32 %v3452_v17, 16  ;;  %v2860_v0 = vld [vmem:[#allocation2 + $0x4] sm:$0xf] }
  0xdb   : > { %4445 = vst [vmem:[#allocation14_spill] sm:$0xff] %v3452_v17  ;;  %v1297_v26 = vrot.slane %v1296_v21, 4  ;;  %v873_v36 = vsel %vm3057_vm13, %v677_v9, %v872_v53  ;;  %v696_v55 = vshrl.u32 %v450_v18, 16  ;;  %v1301_v59 = vrot.slane %v1299_v7, 5  ;;  %v886_v9 = vld [vmem:[#allocation2 + $0xbc] sm:$0x1] }
  0xdc   : > { %4444 = vst [vmem:[#allocation13_spill] sm:$0xff] %v3450_v12  ;;  %1688 = vrot.lane.b32.xlu0 %v3450_v12, %s2887_s9  ;;  %v1305_v58 = vrot.slane %v1303_v19, 4  ;;  %v699_v20 = vshll.u32 %v450_v18, 16  ;;  %v704_v29 = vshrl.u32 %v451_v27, 16  ;;  %v707_v34 = vshll.u32 %v451_v27, 16 }
  0xdd   : > { %871 = vst.msk [vmem:[#allocation2 + $0xa0] sm:$0xf] %vm778_vm8, %v676_v32  ;;  %v698_v8 = vrot.slane %v696_v55, 7  ;;  %v1302_v21 = vsel %vm3016_vm5, %v1297_v26, %v1301_v59  ;;  %v1311_v15 = vrot.slane %v1309_v5, 5  ;;  %v1390_v53 = vrot.slane %v2860_v0, 5 }
  0xde   : > { %874 = vst [vmem:[#allocation2 + $0xa4] sm:$0x1] %v873_v36  ;;  %v1306_v50 = vor.u32 %v1305_v58, %v1301_v59  ;;  %v706_v48 = vrot.slane %v704_v29, 7  ;;  %vm1385_vm14 = vcmask 1042432   ;;  %v1644_v36 = vunpack.c.l.b16 %v1302_v21 }
  0xdf   : > { %v701_v44 = vor.u32 %v699_v20, %v698_v8  ;;  %v702_v46 = vrot.slane %v698_v8, 4  ;;  %vm1386_vm15 = vcmask 1046532   ;;  %vm1986_vm1 = vcmask 31744  }
  0xe0   : > { %v1307_v32 = vrot.slane %v1306_v50, 4  ;;  %v709_v19 = vor.u32 %v707_v34, %v706_v48  ;;  %v711_v18 = vrot.slane %v706_v48, 4  ;;  %vm3490_vm0 = vmor %vm1385_vm14, %vm1386_vm15  ;;  %vm2035_vm2 = vcmask 64512  }
  0xe1   : > { %v3466_v7 = vld [vmem:[#allocation2 + $0x9c] sm:$0xf]  ;;  %v883_v5 = vsel %vm3050_vm12, %v701_v44, %v882_v54  ;;  %v2861_v54 = vld [vmem:[#allocation2] sm:$0xf]  ;;  %vm2319_vm3 = vcmask 1041408   ;;  %vm2068_vm4 = vcmask 97280  }
  0xe2   : > { %v1266_v27 = vshrl.u32 %v3466_v7, 16  ;;  %v1269_v26 = vshll.u32 %v3466_v7, 16  ;;  %v1312_v55 = vsel %vm3016_vm5, %v1307_v32, %v1311_v15  ;;  %v710_v58 = vsel %vm3042_vm11, %v702_v46, %v709_v19  ;;  %884 = vst [vmem:[#allocation2 + $0xb4] sm:$0xf] %v883_v5  ;;  %v2863_v5 = vld [vmem:[#allocation2 + $0xc] sm:$0xf] }
  0xe3   : > { %v887_v20 = vsel %vm3057_vm13, %v711_v18, %v886_v9  ;;  %v1645_v29 = vunpack.c.l.b16 %v1312_v55  ;;  %885 = vst.msk [vmem:[#allocation2 + $0xb8] sm:$0xf] %vm778_vm8, %v710_v58  ;;  %v2691_v44 = vrot.slane %v2861_v54, 9  ;;  %v1392_v46 = vrot.slane %v1390_v53, 4  ;;  %v2862_v18 = vld [vmem:[#allocation2 + $0x8] sm:$0x1] }
  0xe4   : > { %v3474_v59 = vld [vmem:[#allocation2 + $0xa0] sm:$0xf]  ;;  %v1268_v34 = vrot.slane %v1266_v27, 4  ;;  %v1271_v21 = vrot.slane %v1269_v26, 5  ;;  %888 = vst [vmem:[#allocation2 + $0xbc] sm:$0x1] %v887_v20 }
  0xe5   : > { %v3480_v8 = vld [vmem:[#allocation2 + $0xa4] sm:$0x1]  ;;  %v1275_v50 = vshll.u32 %v3474_v59, 16  ;;  %v1279_v48 = vshrl.u32 %v3474_v59, 16  ;;  %v3486_v0 = vpack.c.b16 %v1645_v29, %v1644_v36  ;;  %v1393_v27 = vrot.slane %v2862_v18, 5 }
  0xe6   : > { %v1285_v15 = vshll.u32 %v3480_v8, 16  ;;  %v1272_v9 = vor.u32 %v1271_v21, %v1268_v34  ;;  %v2692_v55 = vrot.slane %v2863_v5, 9  ;;  %v2864_v58 = vld [vmem:[#allocation2 + $0x10] sm:$0xf]  ;;  %v2865_v29 = vld [vmem:[#allocation2 + $0x14] sm:$0x1]  ;;  %v1391_v5 = vsel %vm3490_vm0, %v2691_v44, %v1390_v53 }
  0xe7   : > { %4446 = vst [vmem:[#allocation15_spill] sm:$0xff] %v3486_v0  ;;  %v1277_v32 = vrot.slane %v1275_v50, 5  ;;  %v1281_v26 = vrot.slane %v1279_v48, 4  ;;  %v1397_v3 = vrot.slane %v2864_v58, 5  ;;  %1692 = vrot.lane.b32.xlu2 %v3486_v0, %s2887_s9  ;;  %v1400_v34 = vrot.slane %v2865_v29, 5 }
  0xe8   : > { %v1273_v36 = vrot.slane %v1272_v9, 4  ;;  %v1287_v21 = vrot.slane %v1285_v15, 5  ;;  %v1394_v58 = vsel %vm3490_vm0, %v1392_v46, %v1393_v27  ;;  %v2866_v9 = vld [vmem:[#allocation2 + $0x1c] sm:$0xf]  ;;  %v1411_v53 = vrot.slane %v3190_v62, 5 }
  0xe9   : > { %v1282_v20 = vor.u32 %v1281_v26, %v1277_v32  ;;  %v1398_v50 = vsel %vm3490_vm0, %v2692_v55, %v1397_v3  ;;  %v1399_v54 = vrot.slane %v1397_v3, 4  ;;  %v3500_v48 = vld [vmem:[#allocation2 + $0xb4] sm:$0xf]  ;;  %v1404_v56 = vrot.slane %v2866_v9, 5 }
  0xea   : > { %v1278_v18 = vsel %vm3016_vm5, %v1273_v36, %v1277_v32  ;;  %4449 = vst [vmem:[#allocation16_spill] sm:$0xff] %v3500_v48  ;;  %v1314_v15 = vshrl.u32 %v3500_v48, 16  ;;  %v1317_v26 = vshll.u32 %v3500_v48, 16  ;;  %v1698_v55 = vunpack.c.l.b16 %v1398_v50  ;;  %v3508_v63 = vld [vmem:[#allocation2 + $0xb8] sm:$0xf] }
  0xeb   : > { %v1283_v29 = vrot.slane %v1282_v20, 4  ;;  %v1642_v3 = vunpack.c.l.b16 %v1278_v18  ;;  %v1401_v32 = vsel %vm3490_vm0, %v1399_v54, %v1400_v34  ;;  %v2694_v36 = vrot.slane %v3179_v49, 9  ;;  %v3516_v46 = vld [vmem:[#allocation2 + $0xbc] sm:$0x1] }
  0xec   : > { %v1316_v27 = vrot.slane %v1314_v15, 4  ;;  %v1319_v20 = vrot.slane %v1317_v26, 5  ;;  %v1323_v9 = vshll.u32 %v3508_v63, 16  ;;  %v1327_v18 = vshrl.u32 %v3508_v63, 16 }
  0xed   : > { %v1288_v44 = vsel %vm3016_vm5, %v1283_v29, %v1287_v21  ;;  %v1333_v48 = vshll.u32 %v3516_v46, 16  ;;  %v1699_v12 = vunpack.c.l.b16 %v1401_v32  ;;  %v1696_v49 = vunpack.c.l.b16 %v1391_v5  ;;  %v2867_v29 = vld [vmem:[#allocation2 + $0x18] sm:$0xf] }
  0xee   : > { %v1643_v50 = vunpack.c.l.b16 %v1288_v44  ;;  %v1320_v34 = vor.u32 %v1319_v20, %v1316_v27  ;;  %v1325_v54 = vrot.slane %v1323_v9, 5  ;;  %v1697_v0 = vunpack.c.l.b16 %v1394_v58  ;;  %v2868_v44 = vld [vmem:[#allocation2 + $0x20] sm:$0x1]  ;;  %v2869_v58 = vld [vmem:[#allocation2 + $0x30] sm:$0xf] }
  0xef   : > { %v1329_v17 = vrot.slane %v1327_v18, 4  ;;  %v3523_v21 = vpack.c.b16 %v1699_v12, %v1698_v55  ;;  %v2693_v15 = vrot.slane %v2867_v29, 9  ;;  %v1335_v13 = vrot.slane %v1333_v48, 5  ;;  %v2870_v27 = vld [vmem:[#allocation2 + $0x34] sm:$0xf] }
  0xf0   : > { %v3521_v62 = vpack.c.b16 %v1643_v50, %v1642_v3  ;;  %v1321_v26 = vrot.slane %v1320_v34, 4  ;;  %v1406_v6 = vrot.slane %v1404_v56, 4  ;;  %v1407_v57 = vrot.slane %v2868_v44, 5  ;;  %v2871_v9 = vld [vmem:[#allocation2 + $0x38] sm:$0x1] }
  0xf1   : > { %v1330_v32 = vor.u32 %v1329_v17, %v1325_v54  ;;  %1746 = vrot.lane.b32.xlu2 %v3523_v21, %s2888_s14  ;;  %v1412_v5 = vsel %vm3490_vm0, %v2694_v36, %v1411_v53  ;;  %v1413_v12 = vrot.slane %v1411_v53, 4  ;;  %v2695_v55 = vrot.slane %v2869_v58, 9  ;;  %v2872_v44 = vld [vmem:[#allocation2 + $0x40] sm:$0xf] }
  0xf2   : > { %1690 = vrot.lane.b32.xlu1 %v3521_v62, %s2887_s9  ;;  %v1326_v48 = vsel %vm3016_vm5, %v1321_v26, %v1325_v54  ;;  %v1414_v3 = vrot.slane %v3195_v2, 5  ;;  %v1418_v20 = vrot.slane %v2870_v27, 5  ;;  %v1421_v50 = vrot.slane %v2871_v9, 5 }
  0xf3   : > { %v1331_v17 = vrot.slane %v1330_v32, 4  ;;  %v1728_v18 = vpack.c.b16 %v1697_v0, %v1696_v49  ;;  %v1405_v34 = vsel %vm3490_vm0, %v2693_v15, %v1404_v56  ;;  %v1646_v29 = vunpack.c.l.b16 %v1326_v48  ;;  %v2873_v49 = vld [vmem:[#allocation2 + $0x3c] sm:$0xf]  ;;  %v2874_v48 = vld [vmem:[#allocation2 + $0x44] sm:$0x1] }
  0xf4   : > { %v1419_v36 = vsel %vm3490_vm0, %v2695_v55, %v1418_v20  ;;  %v1420_v53 = vrot.slane %v1418_v20, 4  ;;  %v1425_v58 = vrot.slane %v2872_v44, 5  ;;  %v1408_v2 = vsel %vm3490_vm0, %v1406_v6, %v1407_v57 }
  0xf5   : > { %v1336_v54 = vsel %vm3016_vm5, %v1331_v17, %v1335_v13  ;;  %v1702_v26 = vunpack.c.l.b16 %v1412_v5  ;;  %v1704_v27 = vunpack.c.l.b16 %v1419_v36  ;;  %v1415_v0 = vsel %vm3490_vm0, %v1413_v12, %v1414_v3 }
  0xf6   : > { %v1647_v32 = vunpack.c.l.b16 %v1336_v54  ;;  %v1422_v56 = vsel %vm3490_vm0, %v1420_v53, %v1421_v50  ;;  %v2696_v15 = vrot.slane %v2873_v49, 9  ;;  %v1428_v20 = vrot.slane %v2874_v48, 5 }
  0xf7   : > { %v1705_v55 = vunpack.c.l.b16 %v1422_v56  ;;  %v2697_v9 = vrot.slane %v3202_v23, 9  ;;  %v1432_v13 = vrot.slane %v3207_v33, 5  ;;  %v1427_v6 = vrot.slane %v1425_v58, 4 }
  0xf8   : > { %v3548_v17 = vpack.c.b16 %v1647_v32, %v1646_v29  ;;  %v2698_v57 = vrot.slane %v3269_v31, 9  ;;  %v1439_v5 = vrot.slane %v3277_v38, 5  ;;  %v1703_v12 = vunpack.c.l.b16 %v1415_v0 }
  0xf9   : > { %v3553_v3 = vpack.c.b16 %v1705_v55, %v1704_v27  ;;  %v1434_v50 = vrot.slane %v1432_v13, 4  ;;  %v1435_v36 = vrot.slane %v3213_v40, 5  ;;  %v1700_v23 = vunpack.c.l.b16 %v1405_v34 }
  0xfa   : > { %1744 = vrot.lane.b32.xlu1 %v1728_v18, %s2888_s14  ;;  %1694 = vrot.lane.b32.xlu0 %v3548_v17, %s2887_s9  ;;  %v1701_v33 = vunpack.c.l.b16 %v1408_v2  ;;  %v1440_v29 = vsel %vm3490_vm0, %v2698_v57, %v1439_v5  ;;  %v1441_v53 = vrot.slane %v1439_v5, 4  ;;  %v1426_v31 = vsel %vm3490_vm0, %v2696_v15, %v1425_v58 }
  0xfb   : > { %1752 = vrot.lane.b32.xlu2 %v3553_v3, %s2888_s14  ;;  %v1442_v38 = vrot.slane %v3284_v42, 5  ;;  %v1429_v40 = vsel %vm3490_vm0, %v1427_v6, %v1428_v20  ;;  %v1433_v18 = vsel %vm3490_vm0, %v2697_v9, %v1432_v13  ;;  %v1710_v34 = vunpack.c.l.b16 %v1440_v29 }
  0xfc   : > { %v3569_v44 = vpack.c.b16 %v1703_v12, %v1702_v26  ;;  %v1436_v54 = vsel %vm3490_vm0, %v1434_v50, %v1435_v36  ;;  %v1446_v27 = vrot.slane %v3247_v41, 5  ;;  %v3576_v58 = vpack.c.b16 %v1701_v33, %v1700_v23 }
  0xfd   : > { %v1443_v2 = vsel %vm3490_vm0, %v1441_v53, %v1442_v38  ;;  %v1706_v42 = vunpack.c.l.b16 %v1426_v31  ;;  %v1453_v0 = vrot.slane %v3307_v60, 5  ;;  %v1707_v56 = vunpack.c.l.b16 %v1429_v40 }
  0xfe   : > { %v1711_v32 = vunpack.c.l.b16 %v1443_v2  ;;  %v1708_v49 = vunpack.c.l.b16 %v1433_v18  ;;  %v2699_v15 = vrot.slane %v3239_v28, 9  ;;  %v2701_v26 = vrot.slane %v3388_v51, 9 }
  0xff   : > { %v1709_v55 = vunpack.c.l.b16 %v1436_v54  ;;  %v2700_v20 = vrot.slane %v3302_v30, 9  ;;  %v1460_v9 = vrot.slane %v3381_v43, 5  ;;  %v1448_v41 = vrot.slane %v1446_v27, 4 }
 0x100   : > { %v3581_v48 = vpack.c.b16 %v1711_v32, %v1710_v34  ;;  %v1449_v13 = vrot.slane %v3249_v45, 5  ;;  %v1463_v60 = vrot.slane %v3394_v11, 5  ;;  %v1455_v28 = vrot.slane %v1453_v0, 4 }
 0x101   : > { %v1456_v51 = vrot.slane %v3311_v14, 5  ;;  %v1461_v6 = vsel %vm3490_vm0, %v2701_v26, %v1460_v9  ;;  %v1462_v30 = vrot.slane %v1460_v9, 4  ;;  %v3594_v57 = vpack.c.b16 %v1707_v56, %v1706_v42 }
 0x102   : > { %1750 = vrot.lane.b32.xlu1 %v3569_v44, %s2888_s14  ;;  %1748 = vrot.lane.b32.xlu0 %v3576_v58, %s2888_s14  ;;  %v1716_v43 = vunpack.c.l.b16 %v1461_v6  ;;  %v2703_v45 = vrot.slane %v3412_v37, 9  ;;  %v3599_v5 = vpack.c.b16 %v1709_v55, %v1708_v49  ;;  %v1447_v11 = vsel %vm3490_vm0, %v2699_v15, %v1446_v27  ;;  %v3664_v6 = vpop.permute.xlu0 %1664 }
 0x103   : > { %1758 = vrot.lane.b32.xlu2 %v3581_v48, %s2888_s14  ;;  %v1454_v14 = vsel %vm3490_vm0, %v2700_v20, %v1453_v0  ;;  %v1464_v12 = vsel %vm3490_vm0, %v1462_v30, %v1463_v60  ;;  %v1450_v50 = vsel %vm3490_vm0, %v1448_v41, %v1449_v13  ;;  %v1474_v23 = vrot.slane %v3416_v35, 5 }
 0x104   : > { %v1717_v36 = vunpack.c.l.b16 %v1464_v12  ;;  %v1477_v33 = vrot.slane %v3422_v47, 5  ;;  %v1457_v37 = vsel %vm3490_vm0, %v1455_v28, %v1456_v51  ;;  %v2704_v29 = vrot.slane %v3466_v7, 9  ;;  %v1673_v28 = vpop.permute.xlu2 %1672  ;;  %v2810_v51 = vld [vmem:[#allocation2 + $0xc] sm:$0xff] }
 0x105   : > { %v1481_v53 = vrot.slane %v3474_v59, 5  ;;  %v1484_v31 = vrot.slane %v3480_v8, 5  ;;  %v1467_v40 = vrot.slane %v3349_v52, 5  ;;  %v1475_v18 = vsel %vm3490_vm0, %v2703_v45, %v1474_v23 }
 0x106   : > { %v3616_v38 = vpack.c.b16 %v1717_v36, %v1716_v43  ;;  %v1476_v34 = vrot.slane %v1474_v23, 4  ;;  %v1720_v35 = vunpack.c.l.b16 %v1475_v18  ;;  %v1712_v7 = vunpack.c.l.b16 %v1447_v11  ;;  %v2811_v43 = vld [vmem:[#allocation2 + $0x18] sm:$0xff]  ;;  %v2815_v36 = vld [vmem:[#allocation2 + $0x48] sm:$0xff] }
 0x107   : > { %v1482_v47 = vsel %vm3490_vm0, %v2704_v29, %v1481_v53  ;;  %v1483_v54 = vrot.slane %v1481_v53, 4  ;;  %v1714_v59 = vunpack.c.l.b16 %v1454_v14  ;;  %v1715_v2 = vunpack.c.l.b16 %v1457_v37  ;;  %v3679_v14 = vld [vmem:[#allocation2 + $0x3c] sm:$0xff] }
 0x108   : > { %v1478_v8 = vsel %vm3490_vm0, %v1476_v34, %v1477_v33  ;;  %v1713_v52 = vunpack.c.l.b16 %v1450_v50  ;;  %v2702_v27 = vrot.slane %v3353_v1, 9  ;;  %v1469_v0 = vrot.slane %v1467_v40, 4  ;;  %v2812_v50 = vld [vmem:[#allocation2 + $0x24] sm:$0xff] }
 0x109   : > { %v1721_v42 = vunpack.c.l.b16 %v1478_v8  ;;  %v1485_v32 = vsel %vm3490_vm0, %v1483_v54, %v1484_v31  ;;  %v1470_v56 = vrot.slane %v3357_v16, 5  ;;  %v1722_v49 = vunpack.c.l.b16 %v1482_v47  ;;  %v3719_v47 = vld [vmem:[#allocation2 + $0x6c] sm:$0xff] }
 0x10a   : > { %1756 = vrot.lane.b32.xlu1 %v3599_v5, %s2888_s14  ;;  %1754 = vrot.lane.b32.xlu0 %v3594_v57, %s2888_s14  ;;  %v1723_v15 = vunpack.c.l.b16 %v1485_v32  ;;  %v3637_v55 = vpack.c.b16 %v1715_v2, %v1714_v59  ;;  %v3639_v20 = vpack.c.b16 %v1713_v52, %v1712_v7  ;;  %v1468_v1 = vsel %vm3490_vm0, %v2702_v27, %v1467_v40  ;;  %v1667_v45 = vpop.permute.xlu0 %1666  ;;  %v3706_v40 = vld [vmem:[#allocation2 + $0x78] sm:$0xff]  ;;  %v3721_v54 = vld [vmem:[#allocation2 + $0x30] sm:$0xff] }
 0x10b   : > { %1764 = vrot.lane.b32.xlu2 %v3616_v38, %s2888_s14  ;;  %v3635_v26 = vpack.c.b16 %v1721_v42, %v1720_v35  ;;  %v1471_v9 = vsel %vm3490_vm0, %v1469_v0, %v1470_v56  ;;  %v1718_v16 = vunpack.c.l.b16 %v1468_v1  ;;  %v1992_v11 = vsel %vm1986_vm1, %v2810_v51, %v1667_v45  ;;  %v3734_v52 = vld [vmem:[#allocation2 + $0x54] sm:$0xff]  ;;  %v3756_v1 = vld [vmem:[#allocation2 + $0x9c] sm:$0xff] }
 0x10c   : > { %v3645_v41 = vpack.c.b16 %v1723_v15, %v1722_v49  ;;  %v1719_v13 = vunpack.c.l.b16 %v1471_v9  ;;  %v3666_v30 = vpop.permute.xlu2 %1674  ;;  %v2001_v7 = vsel %vm1986_vm1, %v3721_v54, %v1673_v28  ;;  %v4450_v27 = vld [vmem:[#allocation10_spill] sm:$0xff]  ;;  %vm2101_vm6 = vcmask 130048  }
 0x10d   : > { %vm2134_vm7 = vcmask 162816   ;;  %vm2167_vm9 = vcmask 195584   ;;  %vm2200_vm10 = vcmask 228352   ;;  %vm2233_vm14 = vcmask 261120  }
 0x10e   : > { %v3653_v60 = vpack.c.b16 %v1719_v13, %v1718_v16  ;;  %v4451_v16 = vld [vmem:[#allocation6_spill] sm:$0xff]  ;;  %vm2286_vm15 = vcmask 293888  }
 0x112   : > { %1762 = vrot.lane.b32.xlu1 %v3637_v55, %s2888_s14  ;;  %1760 = vrot.lane.b32.xlu0 %v3639_v20, %s2888_s14  ;;  %v1677_v33 = vpop.permute.xlu0 %1676 }
 0x113   : > { %1770 = vrot.lane.b32.xlu2 %v3645_v41, %s2888_s14  ;;  %v3690_v37 = vsel %vm1986_vm1, %v2815_v36, %v1677_v33  ;;  %v2004_v33 = vsel %vm1986_vm1, %v3679_v14, %v3666_v30  ;;  %v2827_v30 = vld [vmem:[%s4402_s3] sm:$0xff] }
 0x114   : > { %v3681_v12 = vpop.permute.xlu2 %1680 }
 0x11a   : > { %1768 = vrot.lane.b32.xlu1 %v3635_v26, %s2888_s14  ;;  %1766 = vrot.lane.b32.xlu0 %v3653_v60, %s2888_s14 }
 0x11b   : > { %1849 = vrot.lane.b32.xlu2 %v3523_v21, %s2889_s15 }
 0x122   : > { %1814 = vrot.lane.b32.xlu1 %v3147_v4, %s2890_s16  ;;  %1779 = vrot.lane.b32.xlu0 %v2810_v51, %s2891_s17  ;;  %v1669_v4 = vpop.permute.xlu1 %1668  ;;  %v3692_v29 = vpop.permute.xlu2 %1686 }
 0x123   : > { %1954 = vrot.lane.b32.xlu2 %v3576_v58, %s2892_s19  ;;  %v3676_v21 = vsel %vm1986_vm1, %v2811_v43, %v1669_v4 }
 0x12a   : > { %1919 = vrot.lane.b32.xlu1 %v3129_v24, %s2893_s20  ;;  %1884 = vrot.lane.b32.xlu0 %v2811_v43, %s2894_s21  ;;  %v1671_v23 = vpop.permute.xlu1 %1670 }
 0x12b   : > { %1816 = vrot.lane.b32.xlu2 %v3129_v24, %s2890_s16  ;;  %v1998_v24 = vsel %vm1986_vm1, %v2812_v50, %v1671_v23  ;;  %v4452_v23 = vld [vmem:[#allocation8_spill] sm:$0xff] }
 0x130   : > { %v1683_v8 = vpop.permute.xlu0 %1682 }
 0x132   : > { %1787 = vrot.lane.b32.xlu1 %v3679_v14, %s2891_s17  ;;  %1781 = vrot.lane.b32.xlu0 %v2811_v43, %s2891_s17  ;;  %v1679_v53 = vpop.permute.xlu1 %1678 }
 0x133   : > { %1857 = vrot.lane.b32.xlu2 %v3594_v57, %s2889_s15  ;;  %v2010_v42 = vsel %vm1986_vm1, %v3734_v52, %v1679_v53 }
 0x13a   : > { %1851 = vrot.lane.b32.xlu1 %v3576_v58, %s2889_s15  ;;  %1822 = vrot.lane.b32.xlu0 %v3188_v61, %s2890_s16 }
 0x13b   : > { %1921 = vrot.lane.b32.xlu2 %v3226_v10, %s2893_s20 }
 0x141   : > { %v3701_v31 = vpop.permute.xlu2 %1692 }
 0x142   : > { %1892 = vrot.lane.b32.xlu1 %v2815_v36, %s2894_s21  ;;  %1886 = vrot.lane.b32.xlu0 %v2812_v50, %s2894_s21 }
 0x143   : > { %1962 = vrot.lane.b32.xlu2 %v3599_v5, %s2892_s19 }
 0x146   : > { %v1685_v18 = vpop.permute.xlu1 %1684 }
 0x147   : > { %v2019_v58 = vsel %vm1986_vm1, %v3706_v40, %v1685_v18 }
 0x14a   : > { %1956 = vrot.lane.b32.xlu1 %v3569_v44, %s2892_s19  ;;  %1927 = vrot.lane.b32.xlu0 %v3245_v39, %s2893_s20 }
 0x14b   : > { %v1747_v34 = vpop.permute.xlu2 %1746  ;;  %1865 = vrot.lane.b32.xlu2 %v3637_v55, %s2889_s15 }
 0x14c   : > { %v3717_v35 = vsel %vm2035_vm2, %v1992_v11, %v1747_v34  ;;  %v2270_v11 = vld [vmem:[%s4402_s3 + $0x10] sm:$0x3] }
 0x14e   : > { %v3749_v56 = vpop.permute.xlu0 %1688 }
 0x152   : > { %1830 = vrot.lane.b32.xlu1 %v3361_v25, %s2890_s16  ;;  %1795 = vrot.lane.b32.xlu0 %v3719_v47, %s2891_s17 }
 0x153   : > { %1970 = vrot.lane.b32.xlu2 %v3616_v38, %s2892_s19 }
 0x155   : > { %v1753_v59 = vpop.permute.xlu2 %1752 }
 0x156   : > { %v3732_v2 = vsel %vm2035_vm2, %v2001_v7, %v1753_v59  ;;  %v2828_v7 = vld [vmem:[%s4402_s3 + $0x8] sm:$0xff]  ;;  %v3812_v59 = vld [vmem:[#allocation2 + $0x60] sm:$0xff] }
 0x15a   : > { %1935 = vrot.lane.b32.xlu1 %v4450_v27, %s2893_s20  ;;  %1900 = vrot.lane.b32.xlu0 %v3706_v40, %s2894_s21 }
 0x15b   : > { %1818 = vrot.lane.b32.xlu2 %v3226_v10, %s2890_s16 }
 0x15d   : > { %v1759_v32 = vpop.permute.xlu2 %1758 }
 0x15e   : > { %v3745_v0 = vsel %vm2035_vm2, %v2010_v42, %v1759_v32  ;;  %v2013_v42 = vsel %vm1986_vm1, %v3812_v59, %v3681_v12  ;;  %v4453_v12 = vld [vmem:[#allocation12_spill] sm:$0xff] }
 0x162   : > { %1789 = vrot.lane.b32.xlu1 %v2815_v36, %s2891_s17  ;;  %1783 = vrot.lane.b32.xlu0 %v2812_v50, %s2891_s17  ;;  %v2280_v50 = vunpack.c.l.b16 %v2270_v11 }
 0x163   : > { %1859 = vrot.lane.b32.xlu2 %v3599_v5, %s2889_s15 }
 0x164   : > { %v1691_v49 = vpop.permute.xlu1 %1690  ;;  %v2283_v36 = vpack.c.b16 %v2280_v50, %v2280_v50  ;;  %v4454_v50 = vld [vmem:[#allocation9_spill] sm:$0xff] }
 0x165   : > { %v1765_v15 = vpop.permute.xlu2 %1764  ;;  %v2028_v5 = vsel %vm1986_vm1, %v3756_v1, %v1691_v49 }
 0x166   : > { %v3754_v10 = vsel %vm2035_vm2, %v2019_v58, %v1765_v15 }
 0x16a   : > { %1853 = vrot.lane.b32.xlu1 %v3569_v44, %s2889_s15  ;;  %1824 = vrot.lane.b32.xlu0 %v3245_v39, %s2890_s16 }
 0x16b   : > { %1923 = vrot.lane.b32.xlu2 %v4451_v16, %s2893_s20 }
 0x16c   : > { %v3762_v9 = vpop.permute.xlu1 %1744  ;;  %v3766_v13 = vpop.permute.xlu0 %1694 }
 0x16d   : > { %v1771_v28 = vpop.permute.xlu2 %1770 }
 0x16e   : > { %v3771_v51 = vsel %vm2035_vm2, %v2028_v5, %v1771_v28  ;;  %v3838_v5 = vld [vmem:[#allocation2 + $0x90] sm:$0xff]  ;;  %v1488_v28 = vrot.slane %v4453_v12, 5  ;;  %v2809_v12 = vld [vmem:[#allocation2] sm:$0xff] }
 0x172   : > { %1894 = vrot.lane.b32.xlu1 %v3734_v52, %s2894_s21  ;;  %1888 = vrot.lane.b32.xlu0 %v3721_v54, %s2894_s21 }
 0x173   : > { %1964 = vrot.lane.b32.xlu2 %v3581_v48, %s2892_s19 }
 0x174   : > { %v1751_v39 = vpop.permute.xlu1 %1750  ;;  %v1749_v44 = vpop.permute.xlu0 %1748 }
 0x175   : > { %v3780_v43 = vsel %vm2035_vm2, %v1998_v24, %v1751_v39  ;;  %v3784_v4 = vsel %vm2035_vm2, %v3676_v21, %v1749_v44  ;;  %v3786_v45 = vpop.permute.xlu2 %1849  ;;  %v2321_v21 = vsel %vm2319_vm3, %v2283_v36, 0  ;;  %v2025_v44 = vsel %vm1986_vm1, %v3838_v5, %v3749_v56 }
 0x176   : > { %2328 = vmatpush.bf16.msra.mxu0 %v2321_v21  ;;  %2829 = vmatpush.bf16.msra.mxu1 %v2321_v21 }
 0x177   : > { %2830 = vmatpush.bf16.msra.mxu2 %v2321_v21  ;;  %2831 = vmatpush.bf16.msra.mxu3 %v2321_v21 }
 0x17a   : > { %1958 = vrot.lane.b32.xlu1 %v3553_v3, %s2892_s19  ;;  %1929 = vrot.lane.b32.xlu0 %v4452_v23, %s2893_s20 }
 0x17b   : > { %1832 = vrot.lane.b32.xlu2 %v4450_v27, %s2890_s16  ;;  %2329 = vmatpush.bf16.msra.mxu0 %v2828_v7 }
 0x17c   : > { %v1757_v24 = vpop.permute.xlu1 %1756  ;;  %v1755_v53 = vpop.permute.xlu0 %1754  ;;  %2832 = vmatpush.bf16.msra.mxu1 %v2828_v7  ;;  %2833 = vmatpush.bf16.msra.mxu2 %v2828_v7 }
 0x17d   : > { %v3802_v18 = vsel %vm2035_vm2, %v3690_v37, %v1757_v24  ;;  %v3805_v58 = vsel %vm2035_vm2, %v2004_v33, %v1755_v53  ;;  %v3807_v34 = vpop.permute.xlu2 %1954  ;;  %2834 = vmatpush.bf16.msra.mxu3 %v2828_v7  ;;  %v2016_v37 = vsel %vm1986_vm1, %v3719_v47, %v1683_v8  ;;  %v3836_v8 = vld [vmem:[#allocation2 + $0x84] sm:$0xff]  ;;  %v4455_v24 = vld [vmem:[#allocation11_spill] sm:$0xff]  ;;  %v1490_v33 = vrot.slane %v1488_v28, 4  ;;  %v4456_v53 = vld [vmem:[#allocation14_spill] sm:$0xff] }
 0x17e   : > { %v2022_v39 = vsel %vm1986_vm1, %v3836_v8, %v3692_v29  ;;  %v2705_v21 = vrot.slane %v4455_v24, 9  ;;  %v1491_v7 = vrot.slane %v4456_v53, 5  ;;  %v4457_v53 = vld [vmem:[#allocation15_spill] sm:$0xff] }
 0x17f   : > { %2330 = vmatpush.bf16.msra.mxu0 %v2827_v30 }
 0x180   : > { %2835 = vmatpush.bf16.msra.mxu1 %v2827_v30  ;;  %2836 = vmatpush.bf16.msra.mxu2 %v2827_v30  ;;  %v1489_v56 = vsel %vm3490_vm0, %v2705_v21, %v1488_v28  ;;  %v1989_v28 = vsel %vm1986_vm1, %v2809_v12, %v3664_v6 }
 0x181   : > { %2837 = vmatpush.bf16.msra.mxu3 %v2827_v30 }
 0x182   : > { %1803 = vrot.lane.b32.xlu1 %v3756_v1, %s2891_s17  ;;  %1797 = vrot.lane.b32.xlu0 %v3706_v40, %s2891_s17 }
 0x183   : > { %1873 = vrot.lane.b32.xlu2 %v3645_v41, %s2889_s15 }
 0x184   : > { %v1763_v27 = vpop.permute.xlu1 %1762  ;;  %v1761_v32 = vpop.permute.xlu0 %1760 }
 0x185   : > { %v3829_v49 = vsel %vm2035_vm2, %v2016_v37, %v1763_v27  ;;  %v3832_v40 = vsel %vm2035_vm2, %v2013_v42, %v1761_v32  ;;  %v3834_v15 = vpop.permute.xlu2 %1816  ;;  %v1492_v37 = vsel %vm3490_vm0, %v1490_v33, %v1491_v7  ;;  %v3865_v27 = vld [vmem:[#allocation2 + $0xa8] sm:$0xff]  ;;  %v1724_v42 = vunpack.c.l.b16 %v1489_v56 }
 0x186   : > { %v1725_v32 = vunpack.c.l.b16 %v1492_v37 }
 0x18a   : > { %1867 = vrot.lane.b32.xlu1 %v3616_v38, %s2889_s15  ;;  %1838 = vrot.lane.b32.xlu0 %v3521_v62, %s2890_s16 }
 0x18b   : > { %1937 = vrot.lane.b32.xlu2 %v4454_v50, %s2893_s20 }
 0x18c   : > { %v1769_v11 = vpop.permute.xlu1 %1768  ;;  %v1767_v36 = vpop.permute.xlu0 %1766 }
 0x18d   : > { %v3854_v38 = vsel %vm2035_vm2, %v2025_v44, %v1769_v11  ;;  %v3859_v30 = vsel %vm2035_vm2, %v2022_v39, %v1767_v36  ;;  %v1858_v29 = vpop.permute.xlu2 %1857  ;;  %v3869_v44 = vpack.c.b16 %v1725_v32, %v1724_v42  ;;  %v2037_v36 = vsel %vm2035_vm2, %v1989_v28, %v3762_v9 }
 0x192   : > { %1908 = vrot.lane.b32.xlu1 %v3865_v27, %s2894_s21  ;;  %1902 = vrot.lane.b32.xlu0 %v3836_v8, %s2894_s21 }
 0x193   : > { %1978 = vrot.lane.b32.xlu2 %v3869_v44, %s2892_s19 }
 0x194   : > { %v1815_v39 = vpop.permute.xlu1 %1814  ;;  %v1780_v11 = vpop.permute.xlu0 %1779 }
 0x195   : > { %v1922_v24 = vpop.permute.xlu2 %1921  ;;  %v2070_v21 = vsel %vm2068_vm4, %v2037_v36, %v1780_v11 }
 0x196   : > { %v2103_v33 = vsel %vm2101_vm6, %v2070_v21, %v1815_v39 }
 0x197   : > { %v2136_v6 = vsel %vm2134_vm7, %v2103_v33, %v3786_v45 }
 0x19a   : > { %1972 = vrot.lane.b32.xlu1 %v3653_v60, %s2892_s19  ;;  %1943 = vrot.lane.b32.xlu0 %v4457_v53, %s2893_s20 }
 0x19b   : > { %1820 = vrot.lane.b32.xlu2 %v4451_v16, %s2890_s16 }
 0x19c   : > { %v1920_v7 = vpop.permute.xlu1 %1919  ;;  %v1885_v9 = vpop.permute.xlu0 %1884 }
 0x19d   : > { %v2169_v56 = vsel %vm2167_vm9, %v2136_v6, %v1885_v9  ;;  %v1963_v37 = vpop.permute.xlu2 %1962 }
 0x19e   : > { %v2202_v42 = vsel %vm2200_vm10, %v2169_v56, %v1920_v7 }
 0x19f   : > { %v2235_v32 = vsel %vm2233_vm14, %v2202_v42, %v3807_v34 }
 0x1a0   : > { %2789 = vmatmul.msk.bf16.vlgmr.msra.gmra.mxu0 %vm2286_vm15, %v2235_v32  ;;  %v1495_v32 = vrot.slane %v3508_v63, 5 }
 0x1a2   : > { %1791 = vrot.lane.b32.xlu1 %v3734_v52, %s2891_s17  ;;  %1785 = vrot.lane.b32.xlu0 %v3721_v54, %s2891_s17 }
 0x1a3   : > { %1861 = vrot.lane.b32.xlu2 %v3581_v48, %s2889_s15 }
 0x1a4   : > { %v1788_v16 = vpop.permute.xlu1 %1787  ;;  %v1782_v45 = vpop.permute.xlu0 %1781 }
 0x1a5   : > { %v1866_v12 = vpop.permute.xlu2 %1865  ;;  %v2072_v54 = vsel %vm2068_vm4, %v3717_v35, %v1782_v45  ;;  %v4459_v45 = vld [vmem:[#allocation13_spill] sm:$0xff] }
 0x1aa   : > { %1855 = vrot.lane.b32.xlu1 %v3553_v3, %s2889_s15  ;;  %1826 = vrot.lane.b32.xlu0 %v4452_v23, %s2890_s16  ;;  %v2078_v3 = vsel %vm2068_vm4, %v3732_v2, %v1788_v16  ;;  %v4458_v2 = vld [vmem:[#allocation7_spill] sm:$0xff] }
 0x1ab   : > { %1925 = vrot.lane.b32.xlu2 %v3188_v61, %s2893_s20  ;;  %v2105_v61 = vsel %vm2101_vm6, %v2072_v54, %v3834_v15 }
 0x1ac   : > { %v1852_v34 = vpop.permute.xlu1 %1851  ;;  %v1823_v52 = vpop.permute.xlu0 %1822 }
 0x1ad   : > { %v1971_v39 = vpop.permute.xlu2 %1970  ;;  %v2138_v28 = vsel %vm2134_vm7, %v2105_v61, %v1852_v34  ;;  %v2111_v11 = vsel %vm2101_vm6, %v2078_v3, %v1823_v52  ;;  %v4460_v52 = vld [vmem:[#allocation16_spill] sm:$0xff]  ;;  %v1498_v3 = vrot.slane %v3516_v46, 5  ;;  %v316_v61 = vld [vmem:[%s2936_s24 + $0xf0] sm:$0xff] }
 0x1ae   : > { %v2706_v54 = vrot.slane %v4460_v52, 9  ;;  %v3973_v46 = vld [vmem:[#allocation2 + $0xb4] sm:$0xff] }
 0x1b0   : > { %v1496_v63 = vsel %vm3490_vm0, %v2706_v54, %v1495_v32 }
 0x1b2   : > { %1896 = vrot.lane.b32.xlu1 %v3812_v59, %s2894_s21  ;;  %1890 = vrot.lane.b32.xlu0 %v3679_v14, %s2894_s21  ;;  %v2144_v14 = vsel %vm2134_vm7, %v2111_v11, %v1858_v29 }
 0x1b3   : > { %1966 = vrot.lane.b32.xlu2 %v3639_v20, %s2892_s19 }
 0x1b4   : > { %v1893_v48 = vpop.permute.xlu1 %1892  ;;  %v1887_v23 = vpop.permute.xlu0 %1886 }
 0x1b5   : > { %v3919_v35 = vpop.permute.xlu2 %1818  ;;  %v2171_v36 = vsel %vm2167_vm9, %v2138_v28, %v1887_v23  ;;  %v2177_v21 = vsel %vm2167_vm9, %v2144_v14, %v1893_v48  ;;  %v2875_v28 = vld [vmem:[%s4400_s1] ss:$0 sm:$0xff]  ;;  %v1726_v14 = vunpack.c.l.b16 %v1496_v63 }
 0x1b6   : > { %v2204_v15 = vsel %vm2200_vm10, %v2171_v36, %v1922_v24  ;;  %v352_v11 = vmul.f32 %v2875_v28, %v316_v61 }
 0x1ba   : > { %1960 = vrot.lane.b32.xlu1 %v3594_v57, %s2892_s19  ;;  %1931 = vrot.lane.b32.xlu0 %v4458_v2, %s2893_s20 }
 0x1bb   : > { %1834 = vrot.lane.b32.xlu2 %v4454_v50, %s2890_s16 }
 0x1bc   : > { %v1957_v33 = vpop.permute.xlu1 %1956  ;;  %v1928_v6 = vpop.permute.xlu0 %1927 }
 0x1bd   : > { %v2237_v7 = vsel %vm2233_vm14, %v2204_v15, %v1957_v33  ;;  %v2210_v9 = vsel %vm2200_vm10, %v2177_v21, %v1928_v6  ;;  %v3935_v29 = vpop.permute.xlu2 %1859  ;;  %v2876_v33 = vld [vmem:[%s4401_s2] ss:$0 sm:$0xff] }
 0x1be   : > { %2790 = vmatmul.msk.bf16.gmra.mxu0 %vm2286_vm15, %v2237_v7  ;;  %v2243_v57 = vsel %vm2233_vm14, %v2210_v9, %v1963_v37  ;;  %v388_v6 = vadd.f32 %v2876_v33, %v352_v11 }
 0x1bf   : > { %2793 = vmatmul.msk.bf16.vlgmr.msra.gmra.mxu1 %vm2286_vm15, %v2243_v57 }
 0x1c2   : > { %1805 = vrot.lane.b32.xlu1 %v3865_v27, %s2891_s17  ;;  %1799 = vrot.lane.b32.xlu0 %v3836_v8, %s2891_s17 }
 0x1c3   : > { %1875 = vrot.lane.b32.xlu2 %v3869_v44, %s2889_s15 }
 0x1c4   : > { %v1831_v50 = vpop.permute.xlu1 %1830  ;;  %v1796_v24 = vpop.permute.xlu0 %1795 }
 0x1c5   : > { %v3945_v56 = vpop.permute.xlu2 %1923  ;;  %v2086_v37 = vsel %vm2068_vm4, %v3832_v40, %v1796_v24  ;;  %v1497_v40 = vrot.slane %v1495_v32, 4 }
 0x1c6   : > { %v2119_v42 = vsel %vm2101_vm6, %v2086_v37, %v1831_v50 }
 0x1c7   : > { %v2152_v8 = vsel %vm2134_vm7, %v2119_v42, %v1866_v12  ;;  %v1499_v23 = vsel %vm3490_vm0, %v1497_v40, %v1498_v3 }
 0x1c8   : > { %v1727_v21 = vunpack.c.l.b16 %v1499_v23 }
 0x1ca   : > { %1869 = vrot.lane.b32.xlu1 %v3653_v60, %s2889_s15  ;;  %1840 = vrot.lane.b32.xlu0 %v4457_v53, %s2890_s16  ;;  %v317_v53 = vld [vmem:[%s2936_s24 + $0xf8] sm:$0xff]  ;;  %v3982_v7 = vpack.c.b16 %v1727_v21, %v1726_v14 }
 0x1cb   : > { %1939 = vrot.lane.b32.xlu2 %v4459_v45, %s2893_s20  ;;  %v353_v15 = vmul.f32 %v2875_v28, %v317_v53 }
 0x1cc   : > { %v1936_v16 = vpop.permute.xlu1 %1935  ;;  %v1901_v34 = vpop.permute.xlu0 %1900 }
 0x1cd   : > { %v2185_v48 = vsel %vm2167_vm9, %v2152_v8, %v1901_v34  ;;  %v3961_v60 = vpop.permute.xlu2 %1964  ;;  %v389_v9 = vadd.f32 %v2876_v33, %v353_v15  ;;  %v893_v15 = vld [vmem:[#allocation2 + $0xc8] sm:$0x1] }
 0x1ce   : > { %v2218_v12 = vsel %vm2200_vm10, %v2185_v48, %v1936_v16 }
 0x1cf   : > { %v2251_v36 = vsel %vm2233_vm14, %v2218_v12, %v1971_v39  ;;  %v420_v39 = vmax.f32 %v388_v6, 0.0  ;;  %v421_v50 = vmax.f32 %v389_v9, 0.0  ;;  %v889_v12 = vld [vmem:[#allocation2 + $0xc0] sm:$0xf] }
 0x1d0   : > { %2797 = vmatmul.msk.bf16.vlgmr.msra.gmra.mxu2 %vm2286_vm15, %v2251_v36 }
 0x1d1   : > { %v452_v37 = vpack.c.bf16 %v420_v39, %v420_v39  ;;  %v453_v8 = vpack.c.bf16 %v421_v50, %v421_v50 }
 0x1d2   : > { %1910 = vrot.lane.b32.xlu1 %v3973_v46, %s2894_s21  ;;  %1904 = vrot.lane.b32.xlu0 %v3838_v5, %s2894_s21 }
 0x1d3   : > { %1980 = vrot.lane.b32.xlu2 %v3982_v7, %s2892_s19  ;;  %v713_v32 = vshrl.u32 %v452_v37, 16  ;;  %v721_v16 = vshrl.u32 %v453_v8, 16  ;;  %v716_v52 = vshll.u32 %v452_v37, 16  ;;  %v724_v54 = vshll.u32 %v453_v8, 16 }
 0x1d4   : > { %v1790_v57 = vpop.permute.xlu1 %1789  ;;  %v1784_v24 = vpop.permute.xlu0 %1783 }
 0x1d5   : > { %v3988_v42 = vpop.permute.xlu2 %1832  ;;  %v715_v34 = vrot.slane %v713_v32, 7  ;;  %v723_v40 = vrot.slane %v721_v16, 7  ;;  %v2080_v9 = vsel %vm2068_vm4, %v3805_v58, %v1790_v57 }
 0x1d7   : > { %v718_v3 = vor.u32 %v716_v52, %v715_v34  ;;  %v719_v48 = vrot.slane %v715_v34, 4  ;;  %v726_v53 = vor.u32 %v724_v54, %v723_v40  ;;  %v728_v21 = vrot.slane %v723_v40, 4 }
 0x1d9   : > { %v890_v28 = vsel %vm3050_vm12, %v718_v3, %v889_v12  ;;  %v727_v14 = vsel %vm3042_vm11, %v719_v48, %v726_v53  ;;  %v894_v6 = vsel %vm3057_vm13, %v728_v21, %v893_v15 }
 0x1da   : > { %1974 = vrot.lane.b32.xlu1 %v3635_v26, %s2892_s19  ;;  %1945 = vrot.lane.b32.xlu0 %v3548_v17, %s2893_s20  ;;  %891 = vst [vmem:[#allocation2 + $0xc0] sm:$0xf] %v890_v28 }
 0x1db   : > { %1863 = vrot.lane.b32.xlu2 %v3639_v20, %s2889_s15  ;;  %892 = vst.msk [vmem:[#allocation2 + $0xc4] sm:$0xf] %vm778_vm8, %v727_v14  ;;  %v2074_v20 = vsel %vm2068_vm4, %v3784_v4, %v1784_v24  ;;  %vm2618_vm8 = vcmask 25600  }
 0x1dc   : > { %v1854_v61 = vpop.permute.xlu1 %1853  ;;  %v1825_v63 = vpop.permute.xlu0 %1824  ;;  %895 = vst [vmem:[#allocation2 + $0xc8] sm:$0x1] %v894_v6  ;;  %v2107_v50 = vsel %vm2101_vm6, %v2074_v20, %v3919_v35 }
 0x1dd   : > { %v3998_v11 = vpop.permute.xlu2 %1873  ;;  %v2140_v4 = vsel %vm2134_vm7, %v2107_v50, %v1854_v61 }
 0x1e1   : > { %v4029_v58 = vld [vmem:[#allocation2 + $0xc0] sm:$0xf] }
 0x1e2   : > { %1828 = vrot.lane.b32.xlu1 %v4458_v2, %s2890_s16  ;;  %1793 = vrot.lane.b32.xlu0 %v3812_v59, %s2891_s17  ;;  %v2113_v2 = vsel %vm2101_vm6, %v2080_v9, %v1825_v63  ;;  %v945_v32 = vld [vmem:[#allocation2 + $0xc4] sm:$0xf]  ;;  %v2707_v50 = vrot.slane %v4029_v58, 9 }
 0x1e3   : > { %1968 = vrot.lane.b32.xlu2 %v3637_v55, %s2892_s19  ;;  %v2146_v59 = vsel %vm2134_vm7, %v2113_v2, %v3935_v29  ;;  %v1510_v54 = vshll.u32 %v945_v32, 16  ;;  %v1514_v40 = vshrl.u32 %v945_v32, 16  ;;  %v2825_v14 = vld [vmem:[#allocation2 + $0xc0] sm:$0xff]  ;;  %v1529_v9 = vrot.slane %v945_v32, 5 }
 0x1e4   : > { %v1895_v39 = vpop.permute.xlu1 %1894  ;;  %v1889_v37 = vpop.permute.xlu0 %1888 }
 0x1e5   : > { %v4018_v24 = vpop.permute.xlu2 %1937  ;;  %v2173_v8 = vsel %vm2167_vm9, %v2140_v4, %v1889_v37  ;;  %v2179_v55 = vsel %vm2167_vm9, %v2146_v59, %v1895_v39  ;;  %v1512_v61 = vrot.slane %v1510_v54, 5  ;;  %v1516_v53 = vrot.slane %v1514_v40, 4 }
 0x1e6   : > { %v2206_v35 = vsel %vm2200_vm10, %v2173_v8, %v3945_v56  ;;  %v1504_v56 = vshll.u32 %v4029_v58, 16  ;;  %v1531_v8 = vrot.slane %v1529_v9, 4 }
 0x1e7   : > { %v1517_v28 = vor.u32 %v1516_v53, %v1512_v61 }
 0x1e8   : > { %v1506_v48 = vrot.slane %v1504_v56, 5 }
 0x1ea   : > { %1933 = vrot.lane.b32.xlu1 %v3361_v25, %s2893_s20  ;;  %1898 = vrot.lane.b32.xlu0 %v3719_v47, %s2894_s21  ;;  %v1501_v47 = vshrl.u32 %v4029_v58, 16 }
 0x1eb   : > { %1807 = vrot.lane.b32.xlu2 %v3973_v46, %s2891_s17 }
 0x1ec   : > { %v1959_v57 = vpop.permute.xlu1 %1958  ;;  %v1930_v16 = vpop.permute.xlu0 %1929  ;;  %v1503_v3 = vrot.slane %v1501_v47, 4 }
 0x1ed   : > { %v2239_v29 = vsel %vm2233_vm14, %v2206_v35, %v1959_v57  ;;  %v2212_v25 = vsel %vm2200_vm10, %v2179_v55, %v1930_v16  ;;  %v4041_v52 = vpop.permute.xlu2 %1978  ;;  %v948_v35 = vld [vmem:[#allocation2 + $0xd0] sm:$0xf] }
 0x1ee   : > { %2791 = vmatmul.msk.bf16.gmra.mxu0 %vm2286_vm15, %v2239_v29  ;;  %v2245_v34 = vsel %vm2233_vm14, %v2212_v25, %v3961_v60  ;;  %v946_v60 = vld [vmem:[#allocation2 + $0xc8] sm:$0x1]  ;;  %v1507_v23 = vor.u32 %v1506_v48, %v1503_v3  ;;  %v1548_v47 = vshrl.u32 %v948_v35, 16 }
 0x1ef   : > { %2794 = vmatmul.msk.bf16.gmra.mxu1 %vm2286_vm15, %v2245_v34  ;;  %v1520_v36 = vshll.u32 %v946_v60, 16  ;;  %v1532_v59 = vrot.slane %v946_v60, 5 }
 0x1f0   : > { %v1550_v60 = vrot.slane %v1548_v47, 4 }
 0x1f1   : > { %v1522_v15 = vrot.slane %v1520_v36, 5  ;;  %v1533_v29 = vsel %vm3490_vm0, %v1531_v8, %v1532_v59 }
 0x1f2   : > { %1801 = vrot.lane.b32.xlu1 %v3838_v5, %s2891_s17  ;;  %1772 = vrot.lane.b32.xlu0 %v3869_v44, %s2888_s14  ;;  %v1508_v5 = vrot.slane %v1507_v23, 4  ;;  %v1518_v44 = vrot.slane %v1517_v28, 4  ;;  %v1847_v40 = vunpack.c.l.b16 %v1533_v29  ;;  %v949_v23 = vld [vmem:[#allocation2 + $0xd4] sm:$0x1] }
 0x1f3   : > { %1871 = vrot.lane.b32.xlu2 %v3635_v26, %s2889_s15 }
 0x1f4   : > { %v1804_v12 = vpop.permute.xlu1 %1803  ;;  %v1798_v63 = vpop.permute.xlu0 %1797  ;;  %v1513_v6 = vsel %vm3016_vm5, %v1508_v5, %v1512_v61  ;;  %v1523_v20 = vsel %vm3016_vm5, %v1518_v44, %v1522_v15  ;;  %v1563_v5 = vrot.slane %v948_v35, 5 }
 0x1f5   : > { %v4051_v21 = vpop.permute.xlu2 %1820  ;;  %v1812_v39 = vunpack.c.l.b16 %v1523_v20  ;;  %v2094_v4 = vsel %vm2068_vm4, %v3854_v38, %v1804_v12  ;;  %v1530_v38 = vsel %vm3490_vm0, %v2707_v50, %v1529_v9 }
 0x1f6   : > { %v1846_v54 = vunpack.c.l.b16 %v1530_v38 }
 0x1fa   : > { %1842 = vrot.lane.b32.xlu1 %v3548_v17, %s2890_s16  ;;  %1836 = vrot.lane.b32.xlu0 %v4459_v45, %s2890_s16  ;;  %v2088_v17 = vsel %vm2068_vm4, %v3829_v49, %v1798_v63  ;;  %v1811_v45 = vunpack.c.l.b16 %v1513_v6  ;;  %v947_v49 = vld [vmem:[#allocation2 + $0xcc] sm:$0xf]  ;;  %v1566_v6 = vrot.slane %v949_v23, 5 }
 0x1fb   : > { %1912 = vrot.lane.b32.xlu2 %v2825_v14, %s2894_s21  ;;  %v1535_v16 = vshrl.u32 %v947_v49, 16  ;;  %v1538_v25 = vshll.u32 %v947_v49, 16 }
 0x1fc   : > { %v1868_v33 = vpop.permute.xlu1 %1867  ;;  %v1839_v26 = vpop.permute.xlu0 %1838  ;;  %v1813_v58 = vpack.c.b16 %v1812_v39, %v1811_v45 }
 0x1fd   : > { %v4069_v37 = vpop.permute.xlu2 %1861  ;;  %v2127_v32 = vsel %vm2101_vm6, %v2094_v4, %v1839_v26  ;;  %v1537_v3 = vrot.slane %v1535_v16, 4  ;;  %v1540_v53 = vrot.slane %v1538_v25, 5  ;;  %v1565_v26 = vrot.slane %v1563_v5, 4 }
 0x1ff   : > { %v1541_v44 = vor.u32 %v1540_v53, %v1537_v3  ;;  %v1567_v50 = vsel %vm3490_vm0, %v1565_v26, %v1566_v6 }
 0x201   : > { %v1542_v9 = vrot.slane %v1541_v44, 4 }
 0x202   : > { %1906 = vrot.lane.b32.xlu1 %v3756_v1, %s2894_s21  ;;  %1877 = vrot.lane.b32.xlu0 %v3982_v7, %s2889_s15  ;;  %v2121_v1 = vsel %vm2101_vm6, %v2088_v17, %v3988_v42  ;;  %v2160_v42 = vsel %vm2134_vm7, %v2127_v32, %v3998_v11 }
 0x203   : > { %1976 = vrot.lane.b32.xlu2 %v3645_v41, %s2892_s19  ;;  %v2154_v57 = vsel %vm2134_vm7, %v2121_v1, %v1868_v33  ;;  %v1544_v41 = vshll.u32 %v948_v35, 16  ;;  %v2708_v33 = vrot.slane %v947_v49, 9  ;;  %v1952_v49 = vunpack.c.l.b16 %v1567_v50 }
 0x204   : > { %v1909_v2 = vpop.permute.xlu1 %1908  ;;  %v1903_v55 = vpop.permute.xlu0 %1902 }
 0x205   : > { %v2187_v34 = vsel %vm2167_vm9, %v2154_v57, %v1903_v55  ;;  %v2193_v56 = vsel %vm2167_vm9, %v2160_v42, %v1909_v2  ;;  %v1546_v12 = vrot.slane %v1544_v41, 5  ;;  %v4094_v28 = vpop.permute.xlu2 %1925  ;;  %v1564_v39 = vsel %vm3490_vm0, %v2708_v33, %v1563_v5  ;;  %v2826_v2 = vld [vmem:[#allocation2 + $0xcc] sm:$0xff] }
 0x206   : > { %v2220_v48 = vsel %vm2200_vm10, %v2187_v34, %v4018_v24  ;;  %v1848_v24 = vpack.c.b16 %v1847_v40, %v1846_v54  ;;  %v1951_v59 = vunpack.c.l.b16 %v1564_v39 }
 0x207   : > { %v1551_v15 = vor.u32 %v1550_v60, %v1546_v12 }
 0x208   : > { %v1953_v32 = vpack.c.b16 %v1952_v49, %v1951_v59 }
 0x209   : > { %v1552_v17 = vrot.slane %v1551_v15, 4 }
 0x20a   : > { %1947 = vrot.lane.b32.xlu1 %v1813_v58, %s2893_s20  ;;  %1941 = vrot.lane.b32.xlu0 %v3521_v62, %s2893_s20 }
 0x20b   : > { %1809 = vrot.lane.b32.xlu2 %v2825_v14, %s2891_s17  ;;  %v1554_v14 = vshll.u32 %v949_v23, 16 }
 0x20c   : > { %v1973_v61 = vpop.permute.xlu1 %1972  ;;  %v1944_v11 = vpop.permute.xlu0 %1943 }
 0x20d   : > { %v2253_v63 = vsel %vm2233_vm14, %v2220_v48, %v1973_v61  ;;  %v2226_v62 = vsel %vm2200_vm10, %v2193_v56, %v1944_v11  ;;  %v1556_v45 = vrot.slane %v1554_v14, 5  ;;  %v1967_v4 = vpop.permute.xlu2 %1966 }
 0x20e   : > { %2798 = vmatmul.msk.bf16.gmra.mxu2 %vm2286_vm15, %v2253_v63  ;;  %v2259_v36 = vsel %vm2233_vm14, %v2226_v62, %v4041_v52 }
 0x20f   : > { %2801 = vmatmul.msk.bf16.vlgmr.msra.gmra.mxu3 %vm2286_vm15, %v2259_v36  ;;  %v1557_v8 = vsel %vm3016_vm5, %v1552_v17, %v1556_v45 }
 0x210   : > { %v1917_v19 = vunpack.c.l.b16 %v1557_v8 }
 0x212   : > { %1774 = vrot.lane.b32.xlu1 %v3982_v7, %s2888_s14  ;;  %1982 = vrot.lane.b32.xlu0 %v1848_v24, %s2892_s19  ;;  %v1547_v7 = vsel %vm3016_vm5, %v1542_v9, %v1546_v12  ;;  %vm2615_vm5 = vcmask 1040384  }
 0x213   : > { %1914 = vrot.lane.b32.xlu2 %v2826_v2, %s2894_s21  ;;  %v1916_v1 = vunpack.c.l.b16 %v1547_v7 }
 0x214   : > { %v1792_v20 = vpop.permute.xlu1 %1791  ;;  %v1786_v52 = vpop.permute.xlu0 %1785 }
 0x215   : > { %v1918_v38 = vpack.c.b16 %v1917_v19, %v1916_v1  ;;  %v1835_v22 = vpop.permute.xlu2 %1834  ;;  %v2076_v16 = vsel %vm2068_vm4, %v3780_v43, %v1786_v52 }
 0x216   : > { %v2109_v25 = vsel %vm2101_vm6, %v2076_v16, %v4051_v21 }
 0x21a   : > { %1879 = vrot.lane.b32.xlu1 %v1848_v24, %s2889_s15  ;;  %1844 = vrot.lane.b32.xlu0 %v1813_v58, %s2890_s16  ;;  %v2082_v58 = vsel %vm2068_vm4, %v3802_v18, %v1792_v20 }
 0x21c   : > { %v1856_v55 = vpop.permute.xlu1 %1855  ;;  %v1827_v35 = vpop.permute.xlu0 %1826 }
 0x21d   : > { %v2332_v57 = vpop.f32.mrf.mxu0  ;;  %v2142_v34 = vsel %vm2134_vm7, %v2109_v25, %v1856_v55  ;;  %v2115_v56 = vsel %vm2101_vm6, %v2082_v58, %v1827_v35  ;;  %v1876_v60 = vpop.permute.xlu2 %1875 }
 0x21e   : > { %2412 = vst.msk [vmem:[%s2941_s27] sm:$0xff] %vm1986_vm1, %v2332_v57  ;;  %v2514_v41 = vmul.f32 %v2332_v57, %v2332_v57  ;;  %v2445_v43 = vsel %vm1986_vm1, %v2332_v57, 0.0  ;;  %v2148_v61 = vsel %vm2134_vm7, %v2115_v56, %v4069_v37 }
 0x220   : > { %v2546_v18 = vsel %vm1986_vm1, %v2514_v41, 0.0 }
 0x222   : > { %1984 = vrot.lane.b32.xlu1 %v1953_v32, %s2892_s19  ;;  %1949 = vrot.lane.b32.xlu0 %v1918_v38, %s2893_s20 }
 0x224   : > { %v1897_v29 = vpop.permute.xlu1 %1896  ;;  %v1891_v47 = vpop.permute.xlu0 %1890 }
 0x225   : > { %v2334_v42 = vpop.f32.mrf.mxu0  ;;  %v2175_v48 = vsel %vm2167_vm9, %v2142_v34, %v1891_v47  ;;  %v2181_v12 = vsel %vm2167_vm9, %v2148_v61, %v1897_v29  ;;  %v1940_v44 = vpop.permute.xlu2 %1939 }
 0x226   : > { %2413 = vst.msk [vmem:[%s2941_s27 + $0x8] sm:$0xff] %vm1986_vm1, %v2334_v42  ;;  %v2446_v54 = vsel %vm1986_vm1, %v2334_v42, 0.0  ;;  %v2515_v40 = vmul.f32 %v2334_v42, %v2334_v42  ;;  %v2208_v11 = vsel %vm2200_vm10, %v2175_v48, %v4094_v28 }
 0x227   : > { %v2447_v3 = vadd.f32 %v2446_v54, %v2445_v43 }
 0x228   : > { %v2547_v21 = vsel %vm1986_vm1, %v2515_v40, 0.0 }
 0x229   : > { %v2548_v53 = vadd.f32 %v2547_v21, %v2546_v18 }
 0x22c   : > { %v1961_v63 = vpop.permute.xlu1 %1960  ;;  %v1932_v23 = vpop.permute.xlu0 %1931 }
 0x22d   : > { %v2241_v62 = vsel %vm2233_vm14, %v2208_v11, %v1961_v63  ;;  %v2214_v36 = vsel %vm2200_vm10, %v2181_v12, %v1932_v23  ;;  %v1981_v45 = vpop.permute.xlu2 %1980 }
 0x22e   : > { %2792 = vmatmul.msk.bf16.gmra.mxu0 %vm2286_vm15, %v2241_v62  ;;  %v2247_v24 = vsel %vm2233_vm14, %v2214_v36, %v1967_v4 }
 0x22f   : > { %2795 = vmatmul.msk.bf16.gmra.mxu1 %vm2286_vm15, %v2247_v24 }
 0x234   : > { %v1806_v37 = vpop.permute.xlu1 %1805  ;;  %v1800_v5 = vpop.permute.xlu0 %1799 }
 0x235   : > { %v2090_v52 = vsel %vm2068_vm4, %v3754_v10, %v1800_v5  ;;  %v2096_v50 = vsel %vm2068_vm4, %v3771_v51, %v1806_v37  ;;  %v1864_v57 = vpop.permute.xlu2 %1863 }
 0x236   : > { %v2123_v8 = vsel %vm2101_vm6, %v2090_v52, %v1835_v22 }
 0x23b   : > { %v2337_v15 = vpop.f32.mrf.mxu0 }
 0x23c   : > { %2414 = vst.msk [vmem:[%s2941_s27 + $0x10] sm:$0xff] %vm1986_vm1, %v2337_v15  ;;  %v2448_v28 = vsel %vm1986_vm1, %v2337_v15, 0.0  ;;  %v2516_v14 = vmul.f32 %v2337_v15, %v2337_v15  ;;  %v1870_v33 = vpop.permute.xlu1 %1869  ;;  %v1841_v26 = vpop.permute.xlu0 %1840 }
 0x23d   : > { %v4147_v6 = vpop.f32.mrf.mxu1  ;;  %v2449_v20 = vadd.f32 %v2448_v28, %v2447_v3  ;;  %v2156_v19 = vsel %vm2134_vm7, %v2123_v8, %v1870_v33  ;;  %v2129_v51 = vsel %vm2101_vm6, %v2096_v50, %v1841_v26  ;;  %v1969_v47 = vpop.permute.xlu2 %1968  ;;  %v2031_v50 = vsel %vm1986_vm1, %v3865_v27, %v3701_v31 }
 0x23e   : > { %2420 = vst.msk [vmem:[%s2941_s27 + $0x40] sm:$0xff] %vm1986_vm1, %v4147_v6  ;;  %v2549_v9 = vsel %vm1986_vm1, %v2516_v14, 0.0  ;;  %v2162_v32 = vsel %vm2134_vm7, %v2129_v51, %v1876_v60 }
 0x23f   : > { %v2550_v17 = vadd.f32 %v2549_v9, %v2548_v53 }
 0x243   : > { %v2339_v39 = vpop.f32.mrf.mxu0 }
 0x244   : > { %2415 = vst.msk [vmem:[%s2941_s27 + $0x18] sm:$0xff] %vm1986_vm1, %v2339_v39  ;;  %v2450_v4 = vsel %vm1986_vm1, %v2339_v39, 0.0  ;;  %v2517_v2 = vmul.f32 %v2339_v39, %v2339_v39  ;;  %v1911_v7 = vpop.permute.xlu1 %1910  ;;  %v1905_v59 = vpop.permute.xlu0 %1904 }
 0x245   : > { %v4161_v49 = vpop.f32.mrf.mxu1  ;;  %v2451_v1 = vadd.f32 %v2450_v4, %v2449_v20  ;;  %v2189_v35 = vsel %vm2167_vm9, %v2156_v19, %v1905_v59  ;;  %v2195_v38 = vsel %vm2167_vm9, %v2162_v32, %v1911_v7  ;;  %v1808_v61 = vpop.permute.xlu2 %1807 }
 0x246   : > { %2421 = vst.msk [vmem:[%s2941_s27 + $0x48] sm:$0xff] %vm1986_vm1, %v4161_v49  ;;  %v2551_v10 = vsel %vm1986_vm1, %v2517_v2, 0.0  ;;  %v2222_v22 = vsel %vm2200_vm10, %v2189_v35, %v1940_v44 }
 0x247   : > { %v2552_v55 = vadd.f32 %v2551_v10, %v2550_v17 }
 0x24c   : > { %v1975_v16 = vpop.permute.xlu1 %1974  ;;  %v1946_v58 = vpop.permute.xlu0 %1945 }
 0x24d   : > { %v2255_v29 = vsel %vm2233_vm14, %v2222_v22, %v1975_v16  ;;  %v2228_v25 = vsel %vm2200_vm10, %v2195_v38, %v1946_v58  ;;  %v1872_v11 = vpop.permute.xlu2 %1871  ;;  %v2034_v58 = vsel %vm1986_vm1, %v3973_v46, %v3766_v13 }
 0x24e   : > { %2799 = vmatmul.msk.bf16.gmra.mxu2 %vm2286_vm15, %v2255_v29  ;;  %v2261_v41 = vsel %vm2233_vm14, %v2228_v25, %v1981_v45 }
 0x24f   : > { %2802 = vmatmul.msk.bf16.gmra.mxu3 %vm2286_vm15, %v2261_v41 }
 0x253   : > { %v4178_v34 = vpop.f32.mrf.mxu2 }
 0x254   : > { %v1829_v42 = vpop.permute.xlu1 %1828  ;;  %v1794_v56 = vpop.permute.xlu0 %1793  ;;  %2428 = vst.msk [vmem:[%s2941_s27 + $0x80] sm:$0xff] %vm1986_vm1, %v4178_v34 }
 0x255   : > { %v2084_v43 = vsel %vm2068_vm4, %v3745_v0, %v1794_v56  ;;  %v1913_v28 = vpop.permute.xlu2 %1912 }
 0x256   : > { %v2117_v54 = vsel %vm2101_vm6, %v2084_v43, %v1829_v42 }
 0x257   : > { %v2150_v40 = vsel %vm2134_vm7, %v2117_v54, %v1864_v57 }
 0x25b   : > { %v4187_v3 = vpop.f32.mrf.mxu2 }
 0x25c   : > { %v1934_v18 = vpop.permute.xlu1 %1933  ;;  %v1899_v48 = vpop.permute.xlu0 %1898  ;;  %2429 = vst.msk [vmem:[%s2941_s27 + $0x88] sm:$0xff] %vm1986_vm1, %v4187_v3 }
 0x25d   : > { %v2183_v21 = vsel %vm2167_vm9, %v2150_v40, %v1899_v48  ;;  %v1977_v19 = vpop.permute.xlu2 %1976 }
 0x25e   : > { %v2216_v53 = vsel %vm2200_vm10, %v2183_v21, %v1934_v18 }
 0x25f   : > { %v2249_v0 = vsel %vm2233_vm14, %v2216_v53, %v1969_v47 }
 0x260   : > { %2796 = vmatmul.msk.bf16.gmra.mxu1 %vm2286_vm15, %v2249_v0 }
 0x264   : > { %v1802_v12 = vpop.permute.xlu1 %1801  ;;  %v1773_v60 = vpop.permute.xlu0 %1772 }
 0x265   : > { %v2092_v33 = vsel %vm2068_vm4, %v3859_v30, %v1802_v12  ;;  %v2065_v2 = vsel %vm2035_vm2, %v2031_v50, %v1773_v60  ;;  %v1810_v16 = vpop.permute.xlu2 %1809 }
 0x266   : > { %v2098_v8 = vsel %vm2068_vm4, %v2065_v2, %v1808_v61 }
 0x26b   : > { %v2342_v63 = vpop.f32.mrf.mxu0 }
 0x26c   : > { %2416 = vst.msk [vmem:[%s2941_s27 + $0x20] sm:$0xff] %vm1986_vm1, %v2342_v63  ;;  %v2452_v23 = vsel %vm1986_vm1, %v2342_v63, 0.0  ;;  %v2518_v62 = vmul.f32 %v2342_v63, %v2342_v63  ;;  %v1843_v36 = vpop.permute.xlu1 %1842  ;;  %v4199_v24 = vpop.f32.mrf.mxu1 }
 0x26d   : > { %v1837_v37 = vpop.permute.xlu0 %1836  ;;  %v2453_v5 = vadd.f32 %v2452_v23, %v2451_v1  ;;  %2422 = vst.msk [vmem:[%s2941_s27 + $0x50] sm:$0xff] %vm1986_vm1, %v4199_v24  ;;  %v2131_v1 = vsel %vm2101_vm6, %v2098_v8, %v1843_v36  ;;  %v1915_v43 = vpop.permute.xlu2 %1914 }
 0x26e   : > { %v2553_v44 = vsel %vm1986_vm1, %v2518_v62, 0.0  ;;  %v2125_v30 = vsel %vm2101_vm6, %v2092_v33, %v1837_v37  ;;  %v2522_v37 = vmul.f32 %v4147_v6, %v4147_v6  ;;  %v2523_v33 = vmul.f32 %v4161_v49, %v4161_v49 }
 0x26f   : > { %v2554_v15 = vadd.f32 %v2553_v44, %v2552_v55  ;;  %v2158_v7 = vsel %vm2134_vm7, %v2125_v30, %v1872_v11 }
 0x273   : > { %v2344_v14 = vpop.f32.mrf.mxu0 }
 0x274   : > { %2417 = vst.msk [vmem:[%s2941_s27 + $0x28] sm:$0xff] %vm1986_vm1, %v2344_v14  ;;  %v2454_v26 = vsel %vm1986_vm1, %v2344_v14, 0.0  ;;  %v2519_v20 = vmul.f32 %v2344_v14, %v2344_v14  ;;  %v1907_v9 = vpop.permute.xlu1 %1906  ;;  %v4210_v17 = vpop.f32.mrf.mxu1  ;;  %v2460_v14 = vsel %vm1986_vm1, %v4147_v6, 0.0  ;;  %v2563_v6 = vsel %vm1986_vm1, %v2523_v33, 0.0 }
 0x275   : > { %v1878_v45 = vpop.permute.xlu0 %1877  ;;  %v2455_v52 = vadd.f32 %v2454_v26, %v2453_v5  ;;  %2423 = vst.msk [vmem:[%s2941_s27 + $0x58] sm:$0xff] %vm1986_vm1, %v4210_v17  ;;  %v2191_v59 = vsel %vm2167_vm9, %v2158_v7, %v1907_v9  ;;  %v2525_v2 = vmul.f32 %v4210_v17, %v4210_v17 }
 0x276   : > { %v2555_v39 = vsel %vm1986_vm1, %v2519_v20, 0.0  ;;  %v2164_v31 = vsel %vm2134_vm7, %v2131_v1, %v1878_v45  ;;  %v2561_v45 = vsel %vm1986_vm1, %v2522_v37, 0.0 }
 0x277   : > { %v2556_v4 = vadd.f32 %v2555_v39, %v2554_v15  ;;  %v2197_v35 = vsel %vm2167_vm9, %v2164_v31, %v1913_v28  ;;  %v2524_v39 = vmul.f32 %v4199_v24, %v4199_v24 }
 0x27c   : > { %v1948_v10 = vpop.permute.xlu1 %1947 }
 0x27d   : > { %v1942_v51 = vpop.permute.xlu0 %1941  ;;  %v2230_v57 = vsel %vm2200_vm10, %v2197_v35, %v1948_v10 }
 0x27e   : > { %v2224_v55 = vsel %vm2200_vm10, %v2191_v59, %v1942_v51  ;;  %v2565_v59 = vsel %vm1986_vm1, %v2524_v39, 0.0  ;;  %v2567_v51 = vsel %vm1986_vm1, %v2525_v2, 0.0 }
 0x27f   : > { %v2257_v27 = vsel %vm2233_vm14, %v2224_v55, %v1977_v19 }
 0x280   : > { %2800 = vmatmul.msk.bf16.gmra.mxu2 %vm2286_vm15, %v2257_v27 }
 0x284   : > { %v1775_v32 = vpop.permute.xlu1 %1774 }
 0x285   : > { %v1983_v38 = vpop.permute.xlu0 %1982  ;;  %v2067_v29 = vsel %vm2035_vm2, %v2034_v58, %v1775_v32 }
 0x286   : > { %v2263_v22 = vsel %vm2233_vm14, %v2230_v57, %v1983_v38  ;;  %v2100_v25 = vsel %vm2068_vm4, %v2067_v29, %v1810_v16 }
 0x287   : > { %2803 = vmatmul.msk.bf16.gmra.mxu3 %vm2286_vm15, %v2263_v22 }
 0x28c   : > { %v1880_v41 = vpop.permute.xlu1 %1879 }
 0x28d   : > { %v1845_v47 = vpop.permute.xlu0 %1844 }
 0x28e   : > { %v2133_v42 = vsel %vm2101_vm6, %v2100_v25, %v1845_v47 }
 0x28f   : > { %v2166_v56 = vsel %vm2134_vm7, %v2133_v42, %v1880_v41 }
 0x290   : > { %v2199_v46 = vsel %vm2167_vm9, %v2166_v56, %v1915_v43 }
 0x291   : > { %v4240_v54 = vpop.f32.mrf.mxu2 }
 0x292   : > { %2430 = vst.msk [vmem:[%s2941_s27 + $0x90] sm:$0xff] %vm1986_vm1, %v4240_v54  ;;  %v4245_v13 = vpop.f32.mrf.mxu3  ;;  %v2532_v37 = vmul.f32 %v4240_v54, %v4240_v54 }
 0x293   : > { %2436 = vst.msk [vmem:[%s2941_s27 + $0xc0] sm:$0xff] %vm1986_vm1, %v4245_v13 }
 0x294   : > { %v1985_v40 = vpop.permute.xlu1 %1984 }
 0x295   : > { %v1950_v18 = vpop.permute.xlu0 %1949 }
 0x296   : > { %v2232_v48 = vsel %vm2200_vm10, %v2199_v46, %v1950_v18 }
 0x297   : > { %v2265_v21 = vsel %vm2233_vm14, %v2232_v48, %v1985_v40  ;;  %v2530_v40 = vmul.f32 %v4178_v34, %v4178_v34 }
 0x298   : > { %2804 = vmatmul.msk.bf16.gmra.mxu3 %vm2286_vm15, %v2265_v21 }
 0x299   : > { %v4254_v61 = vpop.f32.mrf.mxu2 }
 0x29a   : > { %2431 = vst.msk [vmem:[%s2941_s27 + $0x98] sm:$0xff] %vm1986_vm1, %v4254_v61  ;;  %v4259_v53 = vpop.f32.mrf.mxu3 }
 0x29b   : > { %2437 = vst.msk [vmem:[%s2941_s27 + $0xc8] sm:$0xff] %vm1986_vm1, %v4259_v53 }
 0x2ab   : > { %v2347_v0 = vpop.f32.mrf.mxu0 }
 0x2ac   : > { %2418 = vst.msk [vmem:[%s2941_s27 + $0x30] sm:$0xff] %vm1986_vm1, %v2347_v0  ;;  %v2456_v12 = vsel %vm1986_vm1, %v2347_v0, 0.0  ;;  %v2520_v60 = vmul.f32 %v2347_v0, %v2347_v0  ;;  %v2362_v11 = vpop.f32.mrf.mxu1 }
 0x2ad   : > { %v2457_v63 = vadd.f32 %v2456_v12, %v2455_v52  ;;  %2424 = vst.msk [vmem:[%s2941_s27 + $0x60] sm:$0xff] %vm1986_vm1, %v2362_v11  ;;  %v2462_v52 = vsel %vm1986_vm1, %v4161_v49, 0.0  ;;  %v2466_v49 = vsel %vm1986_vm1, %v4210_v17, 0.0  ;;  %v2526_v1 = vmul.f32 %v2362_v11, %v2362_v11 }
 0x2ae   : > { %v2557_v23 = vsel %vm1986_vm1, %v2520_v60, 0.0  ;;  %v2476_v12 = vsel %vm1986_vm1, %v4178_v34, 0.0  ;;  %v2531_v60 = vmul.f32 %v4187_v3, %v4187_v3 }
 0x2af   : > { %v2558_v62 = vadd.f32 %v2557_v23, %v2556_v4  ;;  %v2464_v4 = vsel %vm1986_vm1, %v4199_v24, 0.0  ;;  %v2468_v24 = vsel %vm1986_vm1, %v2362_v11, 0.0  ;;  %v2569_v35 = vsel %vm1986_vm1, %v2526_v1, 0.0 }
 0x2b0   : > { %v2579_v34 = vsel %vm1986_vm1, %v2531_v60, 0.0 }
 0x2b3   : > { %v2349_v36 = vpop.f32.mrf.mxu0 }
 0x2b4   : > { %2419 = vst.msk [vmem:[%s2941_s27 + $0x38] sm:$0xff] %vm1986_vm1, %v2349_v36  ;;  %v2458_v5 = vsel %vm1986_vm1, %v2349_v36, 0.0  ;;  %v2521_v44 = vmul.f32 %v2349_v36, %v2349_v36  ;;  %v2364_v15 = vpop.f32.mrf.mxu1  ;;  %v2478_v36 = vsel %vm1986_vm1, %v4187_v3, 0.0  ;;  %v2482_v3 = vsel %vm1986_vm1, %v4254_v61, 0.0 }
 0x2b5   : > { %v2459_v28 = vadd.f32 %v2458_v5, %v2457_v63  ;;  %2425 = vst.msk [vmem:[%s2941_s27 + $0x68] sm:$0xff] %vm1986_vm1, %v2364_v15  ;;  %v2527_v55 = vmul.f32 %v2364_v15, %v2364_v15  ;;  %v2470_v57 = vsel %vm1986_vm1, %v2364_v15, 0.0  ;;  %v2480_v15 = vsel %vm1986_vm1, %v4240_v54, 0.0 }
 0x2b6   : > { %v2559_v26 = vsel %vm1986_vm1, %v2521_v44, 0.0 }
 0x2b7   : > { %v2461_v20 = vadd.f32 %v2460_v14, %v2459_v28  ;;  %v2560_v9 = vadd.f32 %v2559_v26, %v2558_v62  ;;  %v2571_v38 = vsel %vm1986_vm1, %v2527_v55, 0.0  ;;  %v2577_v62 = vsel %vm1986_vm1, %v2530_v40, 0.0 }
 0x2b8   : > { %v2533_v28 = vmul.f32 %v4254_v61, %v4254_v61  ;;  %v2581_v26 = vsel %vm1986_vm1, %v2532_v37, 0.0  ;;  %v2538_v55 = vmul.f32 %v4245_v13, %v4245_v13 }
 0x2b9   : > { %v2463_v50 = vadd.f32 %v2462_v52, %v2461_v20  ;;  %v2562_v30 = vadd.f32 %v2561_v45, %v2560_v9 }
 0x2ba   : > { %v2583_v45 = vsel %vm1986_vm1, %v2533_v28, 0.0 }
 0x2bb   : > { %v2465_v7 = vadd.f32 %v2464_v4, %v2463_v50  ;;  %v2564_v8 = vadd.f32 %v2563_v6, %v2562_v30 }
 0x2bd   : > { %v2566_v19 = vadd.f32 %v2565_v59, %v2564_v8  ;;  %v2467_v10 = vadd.f32 %v2466_v49, %v2465_v7 }
 0x2bf   : > { %v2469_v31 = vadd.f32 %v2468_v24, %v2467_v10  ;;  %v2568_v27 = vadd.f32 %v2567_v51, %v2566_v19 }
 0x2c1   : > { %v2471_v17 = vadd.f32 %v2470_v57, %v2469_v31  ;;  %v2570_v32 = vadd.f32 %v2569_v35, %v2568_v27 }
 0x2c3   : > { %v2572_v22 = vadd.f32 %v2571_v38, %v2570_v32  ;;  %v2539_v32 = vmul.f32 %v4259_v53, %v4259_v53 }
 0x2d1   : > { %v2382_v16 = vpop.f32.mrf.mxu2 }
 0x2d2   : > { %2432 = vst.msk [vmem:[%s2941_s27 + $0xa0] sm:$0xff] %vm1986_vm1, %v2382_v16  ;;  %v4302_v58 = vpop.f32.mrf.mxu3  ;;  %v2534_v39 = vmul.f32 %v2382_v16, %v2382_v16  ;;  %v2484_v54 = vsel %vm1986_vm1, %v2382_v16, 0.0 }
 0x2d3   : > { %2438 = vst.msk [vmem:[%s2941_s27 + $0xd0] sm:$0xff] %vm1986_vm1, %v4302_v58 }
 0x2d4   : > { %v2585_v6 = vsel %vm1986_vm1, %v2534_v39, 0.0 }
 0x2d9   : > { %v2384_v29 = vpop.f32.mrf.mxu2 }
 0x2da   : > { %2433 = vst.msk [vmem:[%s2941_s27 + $0xa8] sm:$0xff] %vm1986_vm1, %v2384_v29  ;;  %v4309_v25 = vpop.f32.mrf.mxu3  ;;  %v2535_v4 = vmul.f32 %v2384_v29, %v2384_v29  ;;  %v2486_v61 = vsel %vm1986_vm1, %v2384_v29, 0.0  ;;  %v2593_v29 = vsel %vm1986_vm1, %v2538_v55, 0.0 }
 0x2db   : > { %2439 = vst.msk [vmem:[%s2941_s27 + $0xd8] sm:$0xff] %vm1986_vm1, %v4309_v25 }
 0x2dc   : > { %v2587_v49 = vsel %vm1986_vm1, %v2535_v4, 0.0 }
 0x2dd   : > { %v2367_v41 = vpop.f32.mrf.mxu1 }
 0x2de   : > { %2426 = vst.msk [vmem:[%s2941_s27 + $0x70] sm:$0xff] %vm1986_vm1, %v2367_v41  ;;  %v2528_v47 = vmul.f32 %v2367_v41, %v2367_v41  ;;  %v2472_v42 = vsel %vm1986_vm1, %v2367_v41, 0.0  ;;  %v2494_v41 = vsel %vm1986_vm1, %v4259_v53, 0.0 }
 0x2df   : > { %v2473_v43 = vadd.f32 %v2472_v42, %v2471_v17  ;;  %v2492_v17 = vsel %vm1986_vm1, %v4245_v13, 0.0  ;;  %v2595_v13 = vsel %vm1986_vm1, %v2539_v32, 0.0 }
 0x2e0   : > { %v2573_v56 = vsel %vm1986_vm1, %v2528_v47, 0.0  ;;  %v2540_v47 = vmul.f32 %v4302_v58, %v4302_v58 }
 0x2e1   : > { %v2574_v21 = vadd.f32 %v2573_v56, %v2572_v22 }
 0x2e2   : > { %v2597_v53 = vsel %vm1986_vm1, %v2540_v47, 0.0 }
 0x2e5   : > { %v2369_v46 = vpop.f32.mrf.mxu1 }
 0x2e6   : > { %2427 = vst.msk [vmem:[%s2941_s27 + $0x78] sm:$0xff] %vm1986_vm1, %v2369_v46  ;;  %v2474_v18 = vsel %vm1986_vm1, %v2369_v46, 0.0  ;;  %v2529_v48 = vmul.f32 %v2369_v46, %v2369_v46  ;;  %v2541_v46 = vmul.f32 %v4309_v25, %v4309_v25 }
 0x2e7   : > { %v2475_v0 = vadd.f32 %v2474_v18, %v2473_v43  ;;  %v2496_v43 = vsel %vm1986_vm1, %v4302_v58, 0.0 }
 0x2e8   : > { %v2575_v11 = vsel %vm1986_vm1, %v2529_v48, 0.0  ;;  %v2599_v60 = vsel %vm1986_vm1, %v2541_v46, 0.0 }
 0x2e9   : > { %v2477_v63 = vadd.f32 %v2476_v12, %v2475_v0  ;;  %v2576_v23 = vadd.f32 %v2575_v11, %v2574_v21  ;;  %v2498_v21 = vsel %vm1986_vm1, %v4309_v25, 0.0 }
 0x2eb   : > { %v2479_v5 = vadd.f32 %v2478_v36, %v2477_v63  ;;  %v2578_v44 = vadd.f32 %v2577_v62, %v2576_v23 }
 0x2ed   : > { %v2481_v14 = vadd.f32 %v2480_v15, %v2479_v5  ;;  %v2580_v33 = vadd.f32 %v2579_v34, %v2578_v44 }
 0x2ef   : > { %v2582_v20 = vadd.f32 %v2581_v26, %v2580_v33  ;;  %v2483_v9 = vadd.f32 %v2482_v3, %v2481_v14 }
 0x2f1   : > { %v2584_v52 = vadd.f32 %v2583_v45, %v2582_v20  ;;  %v2485_v30 = vadd.f32 %v2484_v54, %v2483_v9 }
 0x2f3   : > { %v2586_v7 = vadd.f32 %v2585_v6, %v2584_v52  ;;  %v2487_v59 = vadd.f32 %v2486_v61, %v2485_v30 }
 0x2f5   : > { %v2588_v51 = vadd.f32 %v2587_v49, %v2586_v7 }
 0x303   : > { %v2387_v50 = vpop.f32.mrf.mxu2 }
 0x304   : > { %2434 = vst.msk [vmem:[%s2941_s27 + $0xb0] sm:$0xff] %vm1986_vm1, %v2387_v50  ;;  %v2536_v2 = vmul.f32 %v2387_v50, %v2387_v50  ;;  %v2488_v8 = vsel %vm1986_vm1, %v2387_v50, 0.0 }
 0x305   : > { %v2489_v10 = vadd.f32 %v2488_v8, %v2487_v59 }
 0x306   : > { %v2589_v1 = vsel %vm1986_vm1, %v2536_v2, 0.0 }
 0x307   : > { %v2590_v35 = vadd.f32 %v2589_v1, %v2588_v51  ;;  %v2444_v1 = vld [vmem:[%s4404_s5] sm:$0x3] }
 0x30a   : > { %v2402_v19 = vpop.f32.mrf.mxu3 }
 0x30b   : > { %2440 = vst.msk [vmem:[%s2941_s27 + $0xe0] sm:$0xff] %vm1986_vm1, %v2402_v19  ;;  %v2389_v24 = vpop.f32.mrf.mxu2  ;;  %v2542_v63 = vmul.f32 %v2402_v19, %v2402_v19  ;;  %v2500_v23 = vsel %vm1986_vm1, %v2402_v19, 0.0 }
 0x30c   : > { %2435 = vst.msk [vmem:[%s2941_s27 + $0xb8] sm:$0xff] %vm1986_vm1, %v2389_v24  ;;  %v2490_v31 = vsel %vm1986_vm1, %v2389_v24, 0.0  ;;  %v2537_v27 = vmul.f32 %v2389_v24, %v2389_v24 }
 0x30d   : > { %v2491_v57 = vadd.f32 %v2490_v31, %v2489_v10  ;;  %v2601_v36 = vsel %vm1986_vm1, %v2542_v63, 0.0 }
 0x30e   : > { %v2591_v38 = vsel %vm1986_vm1, %v2537_v27, 0.0 }
 0x30f   : > { %v2493_v22 = vadd.f32 %v2492_v17, %v2491_v57  ;;  %v2592_v16 = vadd.f32 %v2591_v38, %v2590_v35 }
 0x311   : > { %v2495_v42 = vadd.f32 %v2494_v41, %v2493_v22  ;;  %v2594_v56 = vadd.f32 %v2593_v29, %v2592_v16 }
 0x312   : > { %v2404_v40 = vpop.f32.mrf.mxu3 }
 0x313   : > { %v2497_v18 = vadd.f32 %v2496_v43, %v2495_v42  ;;  %v2596_v48 = vadd.f32 %v2595_v13, %v2594_v56  ;;  %2441 = vst.msk [vmem:[%s2941_s27 + $0xe8] sm:$0xff] %vm1986_vm1, %v2404_v40  ;;  %v2543_v37 = vmul.f32 %v2404_v40, %v2404_v40  ;;  %v2502_v25 = vsel %vm1986_vm1, %v2404_v40, 0.0 }
 0x315   : > { %v2598_v0 = vadd.f32 %v2597_v53, %v2596_v48  ;;  %v2499_v12 = vadd.f32 %v2498_v21, %v2497_v18  ;;  %v2603_v28 = vsel %vm1986_vm1, %v2543_v37, 0.0 }
 0x317   : > { %v2600_v11 = vadd.f32 %v2599_v60, %v2598_v0  ;;  %v2501_v62 = vadd.f32 %v2500_v23, %v2499_v12 }
 0x319   : > { %v2602_v44 = vadd.f32 %v2601_v36, %v2600_v11  ;;  %v2503_v15 = vadd.f32 %v2502_v25, %v2501_v62 }
 0x31b   : > { %v2407_v58 = vpop.f32.mrf.mxu3  ;;  %v2604_v33 = vadd.f32 %v2603_v28, %v2602_v44 }
 0x31c   : > { %2442 = vst.msk [vmem:[%s2941_s27 + $0xf0] sm:$0xff] %vm1986_vm1, %v2407_v58  ;;  %v2544_v5 = vmul.f32 %v2407_v58, %v2407_v58  ;;  %v2504_v34 = vsel %vm1986_vm1, %v2407_v58, 0.0 }
 0x31d   : > { %v2505_v26 = vadd.f32 %v2504_v34, %v2503_v15 }
 0x31e   : > { %v2605_v14 = vsel %vm1986_vm1, %v2544_v5, 0.0 }
 0x31f   : > { %v2606_v45 = vadd.f32 %v2605_v14, %v2604_v33 }
 0x323   : > { %v2409_v3 = vpop.f32.mrf.mxu3 }
 0x324   : > { %2443 = vst.msk [vmem:[%s2941_s27 + $0xf8] sm:$0xff] %vm1986_vm1, %v2409_v3  ;;  %v2506_v20 = vsel %vm1986_vm1, %v2409_v3, 0.0  ;;  %v2545_v9 = vmul.f32 %v2409_v3, %v2409_v3 }
 0x325   : > { %v2507_v52 = vadd.f32 %v2506_v20, %v2505_v26 }
 0x326   : > { %v2607_v39 = vsel %vm1986_vm1, %v2545_v9, 0.0 }
 0x327   : > { %v2508_v50 = vrot.slane %v2507_v52, 4  ;;  %v2608_v54 = vadd.f32 %v2607_v39, %v2606_v45 }
 0x329   : > { %v2509_v30 = vadd.f32 %v2508_v50, %v2507_v52  ;;  %v2609_v6 = vrot.slane %v2608_v54, 4 }
 0x32b   : > { %v2510_v4 = vrot.slane %v2509_v30, 2  ;;  %v2610_v2 = vadd.f32 %v2609_v6, %v2608_v54 }
 0x32d   : > { %v2511_v7 = vadd.f32 %v2510_v4, %v2509_v30  ;;  %v2611_v61 = vrot.slane %v2610_v2, 2 }
 0x32f   : > { %v2512_v8 = vrot.slane %v2511_v7, 1  ;;  %v2612_v59 = vadd.f32 %v2611_v61, %v2610_v2 }
 0x331   : > { %v2613_v49 = vrot.slane %v2612_v59, 1  ;;  %v2513_v19 = vadd.f32 %v2512_v8, %v2511_v7 }
 0x333   : > { %v2614_v10 = vadd.f32 %v2613_v49, %v2612_v59 }
 0x335   : > { %v2616_v51 = vsel %vm2615_vm5, %v2513_v19, %v2614_v10 }
 0x336   : > { %v2617_v24 = vadd.f32 %v2616_v51, %v2444_v1 }
 0x338   : > { %2619 = vst.msk [vmem:[%s4404_s5] sm:$0x3] %vm2618_vm8, %v2617_v24 }
 0x339 PF: > { %s16_s18 = sadd.s32 1, %s2883_s18  }
 0x33a   : > { %p13_p5 = scmp.ge.s32.totalorder %s16_s18, 4  }
 0x33c   :  { %15 = sbr.rel (!%p13_p5) target bundleno = 1 (0x1), region = 79 }

</bundles_post_ra>
